<compile_context>
chip_gen: v6e
topology: v6e:2x2x1
jax: 0.10.0
libtpu: 0.0.40
codegen_flags: <defaults>
</compile_context>

<pallas_src>
import functools
import math

import jax
import jax.numpy as jnp
from jax.experimental import pallas as pl
from jax.experimental.pallas import tpu as pltpu

EPS = 1e-5
LANE = 128               # TPU lane width; channel dims are zero-padded to a multiple.
CDTYPE = jnp.bfloat16    # storage dtype for activations and conv weights


def _round_up(n, m):
    return (n + m - 1) // m * m


# ------------------------------- Pallas kernel --------------------------------

def _conv_bn_kernel(*refs, K, stride, relu, out_halo, has_sc, proj, sc_off):
    """Fused KxK conv + folded-BN affine (+ shortcut / fused 1x1-proj-BN) (+ ReLU).

    The (possibly strided) conv is expressed over stride**2 spatial phase tensors of
    the padded input, so every tap is a contiguous (Ho, Wo, Cin) slice and the whole
    output block is produced by K*K MXU matmuls of shape (Ho*Wo, Cin) @ (Cin, Ct).

    refs (in order):
      phase_0 .. phase_{stride^2-1}   (1, Rp, Cp, Cin)   bf16
      w        (K*K, Cin, Ct)         tap-major (ky*K + kx) conv weights, bf16
      scale    (1, Ct)  f32           folded BN scale  = gamma / sqrt(var + eps)
      bias     (1, Ct)  f32           folded BN bias   = beta - mean * scale
      [sc      (1, Hs, Ws, Csc)]      shortcut source                    (if has_sc)
      [wsc (Csc, Ct), ssc (1, Ct), bsc (1, Ct)]                          (if proj)
      out      (1, Ho + 2*out_halo, Wo + 2*out_halo, Ct)
    """
    nph = stride * stride
    phase_refs = refs[:nph]
    w_ref, scale_ref, bias_ref = refs[nph], refs[nph + 1], refs[nph + 2]
    i = nph + 3
    sc_ref = wsc_ref = ssc_ref = bsc_ref = None
    if has_sc:
        sc_ref = refs[i]
        i += 1
        if proj:
            wsc_ref, ssc_ref, bsc_ref = refs[i], refs[i + 1], refs[i + 2]
            i += 3
    out_ref = refs[i]

    Ct = out_ref.shape[-1]
    Ho = out_ref.shape[1] - 2 * out_halo
    Wo = out_ref.shape[2] - 2 * out_halo
    Cin = w_ref.shape[1]
    M = Ho * Wo

    # K*K whole-block matmuls accumulated in f32; first tap initializes the accumulator.
    acc = None
    for ky in range(K):
        for kx in range(K):
            pref = phase_refs[(ky % stride) * stride + (kx % stride)]
            i0, j0 = ky // stride, kx // stride
            patch = pref[0, i0:i0 + Ho, j0:j0 + Wo, :]          # (Ho, Wo, Cin) bf16
            d = jnp.dot(patch.reshape(M, Cin), w_ref[ky * K + kx],
                        preferred_element_type=jnp.float32)
            acc = d if acc is None else acc + d
    y = acc * scale_ref[...] + bias_ref[...]

    if has_sc:
        oy, ox = sc_off
        Csc = sc_ref.shape[-1]
        xs = sc_ref[0, oy:oy + Ho, ox:ox + Wo, :].reshape(M, Csc)
        if proj:  # fused 1x1 projection conv + its BN
            r = jnp.dot(xs, wsc_ref[...], preferred_element_type=jnp.float32)
            r = r * ssc_ref[...] + bsc_ref[...]
        else:     # identity shortcut
            r = xs.astype(jnp.float32)
        y = y + r
    if relu:
        y = jnp.maximum(y, 0.0)
    y = y.reshape(Ho, Wo, Ct).astype(out_ref.dtype)

    if out_halo:
        # Emit the result with a zero 1-px halo so the next conv reads it directly.
        # Only the four border strips are zeroed; the interior is stored exactly once.
        h = out_halo
        Hout, Wout = Ho + 2 * h, Wo + 2 * h
        zrow = jnp.zeros((h, Wout, Ct), out_ref.dtype)
        zcol = jnp.zeros((Ho, h, Ct), out_ref.dtype)
        out_ref[0, 0:h, :, :] = zrow
        out_ref[0, Hout - h:Hout, :, :] = zrow
        out_ref[0, h:h + Ho, 0:h, :] = zcol
        out_ref[0, h:h + Ho, Wout - h:Wout, :] = zcol
        out_ref[0, h:h + Ho, h:h + Wo, :] = y
    else:
        out_ref[0] = y


def _conv_bn_pallas(phases, w, scale, bias, *, K, stride, Ho, Wo, relu, out_halo,
                    shortcut=None, sc_off=(0, 0), proj_params=None, out_dtype=None):
    """pallas_call wrapper.  Grid = (Cout tiles, batch), both 'parallel'.

    The Cout-tile axis is outermost so the weight / scale / bias / projection blocks keep
    a constant block index across the inner batch loop and are not re-DMA'd per batch.
    """
    N = phases[0].shape[0]
    Cin, Cout = w.shape[1], w.shape[2]
    assert all(p.shape[-1] == Cin for p in phases)
    # 256-wide Cout tiles feed the 256x256 MXU on v6e/v7x; fall back to 128 otherwise.
    ct = 256 if Cout % 256 == 0 else LANE
    ct = min(ct, Cout)
    assert Cout % ct == 0 and ct % LANE == 0
    grid = (Cout // ct, N)

    def _nbytes(shape, dtype):
        return math.prod(shape) * jnp.dtype(dtype).itemsize

    in_specs, args = [], []
    blk_bytes = 0
    for p in phases:
        _, ph_h, ph_w, ph_c = p.shape
        in_specs.append(pl.BlockSpec((1, ph_h, ph_w, ph_c), lambda c, n: (n, 0, 0, 0)))
        args.append(p)
        blk_bytes += _nbytes((1, ph_h, ph_w, ph_c), p.dtype)
    in_specs += [
        pl.BlockSpec((K * K, Cin, ct), lambda c, n: (0, 0, c)),
        pl.BlockSpec((1, ct), lambda c, n: (0, c)),
        pl.BlockSpec((1, ct), lambda c, n: (0, c)),
    ]
    args += [w, scale, bias]
    blk_bytes += _nbytes((K * K, Cin, ct), w.dtype) + 2 * _nbytes((1, ct), jnp.float32)

    proj = proj_params is not None
    if shortcut is not None:
        _, sh, sw, sc_c = shortcut.shape
        if proj:
            in_specs.append(pl.BlockSpec((1, sh, sw, sc_c), lambda c, n: (n, 0, 0, 0)))
            blk_bytes += _nbytes((1, sh, sw, sc_c), shortcut.dtype)
        else:
            assert sc_c == Cout  # identity shortcut: channel-tiled like the output
            in_specs.append(pl.BlockSpec((1, sh, sw, ct), lambda c, n: (n, 0, 0, c)))
            blk_bytes += _nbytes((1, sh, sw, ct), shortcut.dtype)
        args.append(shortcut)
        if proj:
            wsc, ssc, bsc = proj_params
            in_specs += [
                pl.BlockSpec((wsc.shape[0], ct), lambda c, n: (0, c)),
                pl.BlockSpec((1, ct), lambda c, n: (0, c)),
                pl.BlockSpec((1, ct), lambda c, n: (0, c)),
            ]
            args += [wsc, ssc, bsc]
            blk_bytes += (_nbytes((wsc.shape[0], ct), wsc.dtype)
                          + 2 * _nbytes((1, ct), jnp.float32))

    Hout, Wout = Ho + 2 * out_halo, Wo + 2 * out_halo
    out_dtype = phases[0].dtype if out_dtype is None else out_dtype
    blk_bytes += _nbytes((1, Hout, Wout, ct), out_dtype)

    # Double-buffered blocks + headroom, clamped so v7x (64 MiB VMEM) keeps spill room.
    vmem_limit = int(min(48 * 2**20, max(16 * 2**20, 2 * blk_bytes + 4 * 2**20)))

    kern = functools.partial(
        _conv_bn_kernel, K=K, stride=stride, relu=relu, out_halo=out_halo,
        has_sc=shortcut is not None, proj=proj, sc_off=sc_off)

    return pl.pallas_call(
        kern,
        out_shape=jax.ShapeDtypeStruct((N, Hout, Wout, Cout), out_dtype),
        grid=grid,
        in_specs=in_specs,
        out_specs=pl.BlockSpec((1, Hout, Wout, ct), lambda c, n: (n, 0, 0, c)),
        compiler_params=pltpu.CompilerParams(
            dimension_semantics=("parallel", "parallel"),
            vmem_limit_bytes=vmem_limit),
    )(*args)


# ------------------------------ host-side helpers ------------------------------

def _fold_bn(g, b, m, v, cpad, eps=EPS):
    scale = g / jnp.sqrt(v + eps)
    bias = b - m * scale
    scale = jnp.pad(scale, (0, cpad - scale.shape[0]))
    bias = jnp.pad(bias, (0, cpad - bias.shape[0]))
    return (scale.reshape(1, -1).astype(jnp.float32),
            bias.reshape(1, -1).astype(jnp.float32))


def _pad_w(w, cin_p, cout_p):
    """Zero-pad the last two dims (Cin, Cout) to lane multiples; store in bf16."""
    pads = [(0, 0)] * (w.ndim - 2) + [(0, cin_p - w.shape[-2]), (0, cout_p - w.shape[-1])]
    return jnp.pad(w, pads).astype(CDTYPE)


def _phase_split(xp, stride, R, C):
    """Split a spatially padded input into stride*stride phase tensors of shape
    (N, R, C, ch); phase (a, b) holds xp[:, a::stride, b::stride, :] (XLA-side strided
    slice, so the kernel only ever does contiguous slices)."""
    if stride == 1:
        return [xp[:, :R, :C, :]]
    _, Hp, Wp, _ = xp.shape
    need_h, need_w = stride * R, stride * C
    if Hp < need_h or Wp < need_w:
        xp = jnp.pad(xp, ((0, 0), (0, max(0, need_h - Hp)),
                          (0, max(0, need_w - Wp)), (0, 0)))
    return [xp[:, a::stride, b::stride, :][:, :R, :C, :]
            for a in range(stride) for b in range(stride)]


def basic_block_forward(x, p, stride=1):
    """BasicBlock forward.  x: (N, H, W, in_planes) float32 (NHWC).  Returns float32."""
    N, H, W, Cin = x.shape
    planes = p["w1"].shape[-1]
    K = 3
    Ho = (H - 1) // stride + 1
    Wo = (W - 1) // stride + 1

    cin_p = _round_up(Cin, LANE)
    cout_p = _round_up(planes, LANE)

    s1, b1 = _fold_bn(p["g1"], p["b1"], p["m1"], p["v1"], cout_p)
    s2, b2 = _fold_bn(p["g2"], p["b2"], p["m2"], p["v2"], cout_p)
    w1 = _pad_w(p["w1"].reshape(K * K, Cin, planes), cin_p, cout_p)
    w2 = _pad_w(p["w2"].reshape(K * K, planes, planes), cout_p, cout_p)

    xb = x.astype(CDTYPE)   # bf16 activations end-to-end (f32 accumulation in-kernel)
    # One copy: 1-px spatial halo + channel pad to lane multiple (exact zero padding).
    x_p = jnp.pad(xb, ((0, 0), (1, 1), (1, 1), (0, cin_p - Cin)))

    R1 = (K - 1) // stride + Ho
    C1 = (K - 1) // stride + Wo
    phases = _phase_split(x_p, stride, R1, C1)

    # conv1 + bn1 + relu, stride folded in; bf16 output with a 1-px zero halo for conv2.
    out1p = _conv_bn_pallas(phases, w1, s1, b1, K=K, stride=stride,
                            Ho=Ho, Wo=Wo, relu=True, out_halo=1, out_dtype=CDTYPE)

    need_proj = (stride != 1) or (Cin != planes)
    if need_proj:
        ssc, bsc = _fold_bn(p["gsc"], p["bsc"], p["msc"], p["vsc"], cout_p)
        wsc = _pad_w(p["wsc"].reshape(Cin, planes), cin_p, cout_p)
        if stride == 1:
            # halo-free channel-padded x -> offset-free full-block shortcut read.
            sc_src = jnp.pad(xb, ((0, 0), (0, 0), (0, 0), (0, cin_p - Cin)))
            sc_off = (0, 0)
        else:
            # 1x1 stride-s projection reads x[s*oh, s*ow] = x_p[s*oh+1, s*ow+1],
            # which is phase (1 % s, 1 % s) at offset (1 // s, 1 // s) = (0, 0).
            sc_src = phases[(1 % stride) * stride + (1 % stride)]
            sc_off = (1 // stride, 1 // stride)
        proj_params = (wsc, ssc, bsc)
    else:
        # identity shortcut: halo-free channel-padded x, offset-free read.
        sc_src = jnp.pad(xb, ((0, 0), (0, 0), (0, 0), (0, cin_p - Cin)))
        sc_off = (0, 0)
        proj_params = None

    # conv2 + bn2 + (projection) shortcut + residual add + relu, all fused; f32 output.
    out = _conv_bn_pallas([out1p], w2, s2, b2, K=K, stride=1,
                          Ho=Ho, Wo=Wo, relu=True, out_halo=0,
                          shortcut=sc_src, sc_off=sc_off, proj_params=proj_params,
                          out_dtype=jnp.float32)
    return out[..., :planes]


# ----------------------------- pure-JAX reference -----------------------------

def ref_basic_block(x, p, stride=1):
    dn = ("NHWC", "HWIO", "NHWC")

    def conv(z, w, s, pad):
        return jax.lax.conv_general_dilated(
            z, w, (s, s), ((pad, pad), (pad, pad)), dimension_numbers=dn)

    def bn(z, g, b, m, v):
        return (z - m) * (g / jnp.sqrt(v + EPS)) + b

    out = jax.nn.relu(bn(conv(x, p["w1"], stride, 1), p["g1"], p["b1"], p["m1"], p["v1"]))
    out = bn(conv(out, p["w2"], 1, 1), p["g2"], p["b2"], p["m2"], p["v2"])
    if stride != 1 or x.shape[-1] != p["w1"].shape[-1]:
        sc = bn(conv(x, p["wsc"], stride, 0), p["gsc"], p["bsc"], p["msc"], p["vsc"])
    else:
        sc = x
    return jax.nn.relu(out + sc)


# ------------------------------ deterministic init ------------------------------

def init_params(key, in_planes, planes, need_proj):
    ks = jax.random.split(key, 8)

    def conv_w(k, kh, kw, cin, cout):
        fan_in = kh * kw * cin
        return jax.random.normal(k, (kh, kw, cin, cout), jnp.float32) / math.sqrt(fan_in)

    def bn_p(k, c):
        k1, k2, k3, k4 = jax.random.split(k, 4)
        g = 1.0 + 0.1 * jax.random.normal(k1, (c,), jnp.float32)
        b = 0.1 * jax.random.normal(k2, (c,), jnp.float32)
        m = 0.1 * jax.random.normal(k3, (c,), jnp.float32)
        v = 1.0 + 0.2 * jax.random.uniform(k4, (c,), dtype=jnp.float32)
        return g, b, m, v

    p = {}
    p["w1"] = conv_w(ks[0], 3, 3, in_planes, planes)
    p["g1"], p["b1"], p["m1"], p["v1"] = bn_p(ks[1], planes)
    p["w2"] = conv_w(ks[2], 3, 3, planes, planes)
    p["g2"], p["b2"], p["m2"], p["v2"] = bn_p(ks[3], planes)
    if need_proj:
        p["wsc"] = conv_w(ks[4], 1, 1, in_planes, planes)
        p["gsc"], p["bsc"], p["msc"], p["vsc"] = bn_p(ks[5], planes)
    return p


if __name__ == "__main__":
    key = jax.random.PRNGKey(0)
    N, H, W = 2, 16, 16

    cases = [
        (4, 4, 1),   # identity shortcut (stride=1, in_planes == planes)
        (4, 8, 1),   # projection shortcut (1x1 conv, stride=1, channel change)
        (4, 8, 2),   # projection shortcut (1x1 conv, stride=2)
    ]
    fwd = jax.jit(basic_block_forward, static_argnums=2)
    for in_planes, planes, stride in cases:
        kx, kp, key = jax.random.split(key, 3)
        x = jax.random.normal(kx, (N, H, W, in_planes), jnp.float32)
        need_proj = (stride != 1) or (in_planes != planes)
        params = init_params(kp, in_planes, planes, need_proj)

        y = fwd(x, params, stride)
        y = jax.block_until_ready(y)

        y_ref = ref_basic_block(x, params, stride)
        # bf16 activation/weight storage + default (bf16) MXU precision on both paths
        # -> tolerance looser than bit-exact f32.
        if not bool(jnp.allclose(y, y_ref, atol=4e-2, rtol=4e-2)):
            err = float(jnp.max(jnp.abs(y - y_ref)))
            raise AssertionError(
                f"mismatch for case (in={in_planes}, planes={planes}, stride={stride}); "
                f"max abs err = {err}")

    print("KERNEL_OK")
</pallas_src>

<mosaic_0001>
module attributes {stable_mosaic.version = 11 : i64} {
  func.func @_conv_bn_kernel(%arg0: i32, %arg1: i32, %arg2: memref<1x18x18x128xbf16, #tpu.memory_space<vmem>>, %arg3: memref<9x128x128xbf16, #tpu.memory_space<vmem>>, %arg4: memref<1x128xf32, #tpu.memory_space<vmem>>, %arg5: memref<1x128xf32, #tpu.memory_space<vmem>>, %arg6: memref<1x18x18x128xbf16, #tpu.memory_space<vmem>>) attributes {dimension_semantics = [#tpu.dimension_semantics<parallel>, #tpu.dimension_semantics<parallel>], iteration_bounds = array<i64: 1, 2>, scalar_prefetch = 0 : i64, scratch_operands = 0 : i64, tpu.core_type = #tpu.core_type<tc>, window_params = [{transform_indices = @transform_0, window_bounds = array<i64: 1, 18, 18, 128>}, {transform_indices = @transform_1, window_bounds = array<i64: 9, 128, 128>}, {transform_indices = @transform_2, window_bounds = array<i64: 1, 128>}, {transform_indices = @transform_3, window_bounds = array<i64: 1, 128>}, {transform_indices = @transform_4, window_bounds = array<i64: 1, 18, 18, 128>}]} {
    %c0 = arith.constant 0 : index
    %c0_0 = arith.constant 0 : index
    %c0_1 = arith.constant 0 : index
    %c0_2 = arith.constant 0 : index
    %0 = vector.load %arg2[%c0, %c0_0, %c0_1, %c0_2] : memref<1x18x18x128xbf16, #tpu.memory_space<vmem>>, vector<1x16x16x128xbf16>
    %1 = vector.shape_cast %0 : vector<1x16x16x128xbf16> to vector<16x16x128xbf16>
    %2 = vector.shape_cast %1 : vector<16x16x128xbf16> to vector<256x128xbf16>
    %c0_3 = arith.constant 0 : index
    %c0_4 = arith.constant 0 : index
    %c0_5 = arith.constant 0 : index
    %3 = vector.load %arg3[%c0_3, %c0_4, %c0_5] : memref<9x128x128xbf16, #tpu.memory_space<vmem>>, vector<1x128x128xbf16>
    %4 = vector.shape_cast %3 : vector<1x128x128xbf16> to vector<128x128xbf16>
    %cst = arith.constant dense<0.000000e+00> : vector<256x128xf32>
    %5 = tpu.matmul %2, %4, %cst {dimension_numbers = #tpu.dot_dimension_numbers<[1], [0], [0], [1], [0, 0, 1, 1], [], []>} : vector<256x128xbf16>, vector<128x128xbf16>, vector<256x128xf32> -> vector<256x128xf32>
    %c0_6 = arith.constant 0 : index
    %c0_7 = arith.constant 0 : index
    %c1 = arith.constant 1 : index
    %c0_8 = arith.constant 0 : index
    %6 = vector.load %arg2[%c0_6, %c0_7, %c1, %c0_8] : memref<1x18x18x128xbf16, #tpu.memory_space<vmem>>, vector<1x16x16x128xbf16>
    %7 = vector.shape_cast %6 : vector<1x16x16x128xbf16> to vector<16x16x128xbf16>
    %8 = vector.shape_cast %7 : vector<16x16x128xbf16> to vector<256x128xbf16>
    %c1_9 = arith.constant 1 : index
    %c0_10 = arith.constant 0 : index
    %c0_11 = arith.constant 0 : index
    %9 = vector.load %arg3[%c1_9, %c0_10, %c0_11] : memref<9x128x128xbf16, #tpu.memory_space<vmem>>, vector<1x128x128xbf16>
    %10 = vector.shape_cast %9 : vector<1x128x128xbf16> to vector<128x128xbf16>
    %cst_12 = arith.constant dense<0.000000e+00> : vector<256x128xf32>
    %11 = tpu.matmul %8, %10, %cst_12 {dimension_numbers = #tpu.dot_dimension_numbers<[1], [0], [0], [1], [0, 0, 1, 1], [], []>} : vector<256x128xbf16>, vector<128x128xbf16>, vector<256x128xf32> -> vector<256x128xf32>
    %12 = arith.addf %5, %11 : vector<256x128xf32>
    %c0_13 = arith.constant 0 : index
    %c0_14 = arith.constant 0 : index
    %c2 = arith.constant 2 : index
    %c0_15 = arith.constant 0 : index
    %13 = vector.load %arg2[%c0_13, %c0_14, %c2, %c0_15] : memref<1x18x18x128xbf16, #tpu.memory_space<vmem>>, vector<1x16x16x128xbf16>
    %14 = vector.shape_cast %13 : vector<1x16x16x128xbf16> to vector<16x16x128xbf16>
    %15 = vector.shape_cast %14 : vector<16x16x128xbf16> to vector<256x128xbf16>
    %c2_16 = arith.constant 2 : index
    %c0_17 = arith.constant 0 : index
    %c0_18 = arith.constant 0 : index
    %16 = vector.load %arg3[%c2_16, %c0_17, %c0_18] : memref<9x128x128xbf16, #tpu.memory_space<vmem>>, vector<1x128x128xbf16>
    %17 = vector.shape_cast %16 : vector<1x128x128xbf16> to vector<128x128xbf16>
    %cst_19 = arith.constant dense<0.000000e+00> : vector<256x128xf32>
    %18 = tpu.matmul %15, %17, %cst_19 {dimension_numbers = #tpu.dot_dimension_numbers<[1], [0], [0], [1], [0, 0, 1, 1], [], []>} : vector<256x128xbf16>, vector<128x128xbf16>, vector<256x128xf32> -> vector<256x128xf32>
    %19 = arith.addf %12, %18 : vector<256x128xf32>
    %c0_20 = arith.constant 0 : index
    %c1_21 = arith.constant 1 : index
    %c0_22 = arith.constant 0 : index
    %c0_23 = arith.constant 0 : index
    %20 = vector.load %arg2[%c0_20, %c1_21, %c0_22, %c0_23] : memref<1x18x18x128xbf16, #tpu.memory_space<vmem>>, vector<1x16x16x128xbf16>
    %21 = vector.shape_cast %20 : vector<1x16x16x128xbf16> to vector<16x16x128xbf16>
    %22 = vector.shape_cast %21 : vector<16x16x128xbf16> to vector<256x128xbf16>
    %c3 = arith.constant 3 : index
    %c0_24 = arith.constant 0 : index
    %c0_25 = arith.constant 0 : index
    %23 = vector.load %arg3[%c3, %c0_24, %c0_25] : memref<9x128x128xbf16, #tpu.memory_space<vmem>>, vector<1x128x128xbf16>
    %24 = vector.shape_cast %23 : vector<1x128x128xbf16> to vector<128x128xbf16>
    %cst_26 = arith.constant dense<0.000000e+00> : vector<256x128xf32>
    %25 = tpu.matmul %22, %24, %cst_26 {dimension_numbers = #tpu.dot_dimension_numbers<[1], [0], [0], [1], [0, 0, 1, 1], [], []>} : vector<256x128xbf16>, vector<128x128xbf16>, vector<256x128xf32> -> vector<256x128xf32>
    %26 = arith.addf %19, %25 : vector<256x128xf32>
    %c0_27 = arith.constant 0 : index
    %c1_28 = arith.constant 1 : index
    %c1_29 = arith.constant 1 : index
    %c0_30 = arith.constant 0 : index
    %27 = vector.load %arg2[%c0_27, %c1_28, %c1_29, %c0_30] : memref<1x18x18x128xbf16, #tpu.memory_space<vmem>>, vector<1x16x16x128xbf16>
    %28 = vector.shape_cast %27 : vector<1x16x16x128xbf16> to vector<16x16x128xbf16>
    %29 = vector.shape_cast %28 : vector<16x16x128xbf16> to vector<256x128xbf16>
    %c4 = arith.constant 4 : index
    %c0_31 = arith.constant 0 : index
    %c0_32 = arith.constant 0 : index
    %30 = vector.load %arg3[%c4, %c0_31, %c0_32] : memref<9x128x128xbf16, #tpu.memory_space<vmem>>, vector<1x128x128xbf16>
    %31 = vector.shape_cast %30 : vector<1x128x128xbf16> to vector<128x128xbf16>
    %cst_33 = arith.constant dense<0.000000e+00> : vector<256x128xf32>
    %32 = tpu.matmul %29, %31, %cst_33 {dimension_numbers = #tpu.dot_dimension_numbers<[1], [0], [0], [1], [0, 0, 1, 1], [], []>} : vector<256x128xbf16>, vector<128x128xbf16>, vector<256x128xf32> -> vector<256x128xf32>
    %33 = arith.addf %26, %32 : vector<256x128xf32>
    %c0_34 = arith.constant 0 : index
    %c1_35 = arith.constant 1 : index
    %c2_36 = arith.constant 2 : index
    %c0_37 = arith.constant 0 : index
    %34 = vector.load %arg2[%c0_34, %c1_35, %c2_36, %c0_37] : memref<1x18x18x128xbf16, #tpu.memory_space<vmem>>, vector<1x16x16x128xbf16>
    %35 = vector.shape_cast %34 : vector<1x16x16x128xbf16> to vector<16x16x128xbf16>
    %36 = vector.shape_cast %35 : vector<16x16x128xbf16> to vector<256x128xbf16>
    %c5 = arith.constant 5 : index
    %c0_38 = arith.constant 0 : index
    %c0_39 = arith.constant 0 : index
    %37 = vector.load %arg3[%c5, %c0_38, %c0_39] : memref<9x128x128xbf16, #tpu.memory_space<vmem>>, vector<1x128x128xbf16>
    %38 = vector.shape_cast %37 : vector<1x128x128xbf16> to vector<128x128xbf16>
    %cst_40 = arith.constant dense<0.000000e+00> : vector<256x128xf32>
    %39 = tpu.matmul %36, %38, %cst_40 {dimension_numbers = #tpu.dot_dimension_numbers<[1], [0], [0], [1], [0, 0, 1, 1], [], []>} : vector<256x128xbf16>, vector<128x128xbf16>, vector<256x128xf32> -> vector<256x128xf32>
    %40 = arith.addf %33, %39 : vector<256x128xf32>
    %c0_41 = arith.constant 0 : index
    %c2_42 = arith.constant 2 : index
    %c0_43 = arith.constant 0 : index
    %c0_44 = arith.constant 0 : index
    %41 = vector.load %arg2[%c0_41, %c2_42, %c0_43, %c0_44] : memref<1x18x18x128xbf16, #tpu.memory_space<vmem>>, vector<1x16x16x128xbf16>
    %42 = vector.shape_cast %41 : vector<1x16x16x128xbf16> to vector<16x16x128xbf16>
    %43 = vector.shape_cast %42 : vector<16x16x128xbf16> to vector<256x128xbf16>
    %c6 = arith.constant 6 : index
    %c0_45 = arith.constant 0 : index
    %c0_46 = arith.constant 0 : index
    %44 = vector.load %arg3[%c6, %c0_45, %c0_46] : memref<9x128x128xbf16, #tpu.memory_space<vmem>>, vector<1x128x128xbf16>
    %45 = vector.shape_cast %44 : vector<1x128x128xbf16> to vector<128x128xbf16>
    %cst_47 = arith.constant dense<0.000000e+00> : vector<256x128xf32>
    %46 = tpu.matmul %43, %45, %cst_47 {dimension_numbers = #tpu.dot_dimension_numbers<[1], [0], [0], [1], [0, 0, 1, 1], [], []>} : vector<256x128xbf16>, vector<128x128xbf16>, vector<256x128xf32> -> vector<256x128xf32>
    %47 = arith.addf %40, %46 : vector<256x128xf32>
    %c0_48 = arith.constant 0 : index
    %c2_49 = arith.constant 2 : index
    %c1_50 = arith.constant 1 : index
    %c0_51 = arith.constant 0 : index
    %48 = vector.load %arg2[%c0_48, %c2_49, %c1_50, %c0_51] : memref<1x18x18x128xbf16, #tpu.memory_space<vmem>>, vector<1x16x16x128xbf16>
    %49 = vector.shape_cast %48 : vector<1x16x16x128xbf16> to vector<16x16x128xbf16>
    %50 = vector.shape_cast %49 : vector<16x16x128xbf16> to vector<256x128xbf16>
    %c7 = arith.constant 7 : index
    %c0_52 = arith.constant 0 : index
    %c0_53 = arith.constant 0 : index
    %51 = vector.load %arg3[%c7, %c0_52, %c0_53] : memref<9x128x128xbf16, #tpu.memory_space<vmem>>, vector<1x128x128xbf16>
    %52 = vector.shape_cast %51 : vector<1x128x128xbf16> to vector<128x128xbf16>
    %cst_54 = arith.constant dense<0.000000e+00> : vector<256x128xf32>
    %53 = tpu.matmul %50, %52, %cst_54 {dimension_numbers = #tpu.dot_dimension_numbers<[1], [0], [0], [1], [0, 0, 1, 1], [], []>} : vector<256x128xbf16>, vector<128x128xbf16>, vector<256x128xf32> -> vector<256x128xf32>
    %54 = arith.addf %47, %53 : vector<256x128xf32>
    %c0_55 = arith.constant 0 : index
    %c2_56 = arith.constant 2 : index
    %c2_57 = arith.constant 2 : index
    %c0_58 = arith.constant 0 : index
    %55 = vector.load %arg2[%c0_55, %c2_56, %c2_57, %c0_58] : memref<1x18x18x128xbf16, #tpu.memory_space<vmem>>, vector<1x16x16x128xbf16>
    %56 = vector.shape_cast %55 : vector<1x16x16x128xbf16> to vector<16x16x128xbf16>
    %57 = vector.shape_cast %56 : vector<16x16x128xbf16> to vector<256x128xbf16>
    %c8 = arith.constant 8 : index
    %c0_59 = arith.constant 0 : index
    %c0_60 = arith.constant 0 : index
    %58 = vector.load %arg3[%c8, %c0_59, %c0_60] : memref<9x128x128xbf16, #tpu.memory_space<vmem>>, vector<1x128x128xbf16>
    %59 = vector.shape_cast %58 : vector<1x128x128xbf16> to vector<128x128xbf16>
    %cst_61 = arith.constant dense<0.000000e+00> : vector<256x128xf32>
    %60 = tpu.matmul %57, %59, %cst_61 {dimension_numbers = #tpu.dot_dimension_numbers<[1], [0], [0], [1], [0, 0, 1, 1], [], []>} : vector<256x128xbf16>, vector<128x128xbf16>, vector<256x128xf32> -> vector<256x128xf32>
    %61 = arith.addf %54, %60 : vector<256x128xf32>
    %c0_62 = arith.constant 0 : index
    %c0_63 = arith.constant 0 : index
    %62 = vector.load %arg4[%c0_62, %c0_63] : memref<1x128xf32, #tpu.memory_space<vmem>>, vector<1x128xf32>
    %63 = vector.broadcast %62 : vector<1x128xf32> to vector<256x128xf32>
    %64 = arith.mulf %61, %63 : vector<256x128xf32>
    %c0_64 = arith.constant 0 : index
    %c0_65 = arith.constant 0 : index
    %65 = vector.load %arg5[%c0_64, %c0_65] : memref<1x128xf32, #tpu.memory_space<vmem>>, vector<1x128xf32>
    %66 = vector.broadcast %65 : vector<1x128xf32> to vector<256x128xf32>
    %67 = arith.addf %64, %66 : vector<256x128xf32>
    %cst_66 = arith.constant 0.000000e+00 : f32
    %68 = vector.broadcast %cst_66 : f32 to vector<256x128xf32>
    %69 = arith.maximumf %67, %68 : vector<256x128xf32>
    %70 = vector.shape_cast %69 : vector<256x128xf32> to vector<16x16x128xf32>
    %71 = arith.truncf %70 : vector<16x16x128xf32> to vector<16x16x128xbf16>
    %cst_67 = arith.constant 0.000000e+00 : bf16
    %72 = vector.broadcast %cst_67 : bf16 to vector<1x18x128xbf16>
    %cst_68 = arith.constant 0.000000e+00 : bf16
    %73 = vector.broadcast %cst_68 : bf16 to vector<16x1x128xbf16>
    %c0_69 = arith.constant 0 : index
    %c0_70 = arith.constant 0 : index
    %c0_71 = arith.constant 0 : index
    %c0_72 = arith.constant 0 : index
    %74 = vector.load %arg6[%c0_69, %c0_70, %c0_71, %c0_72] : memref<1x18x18x128xbf16, #tpu.memory_space<vmem>>, vector<1x1x18x128xbf16>
    %75 = vector.shape_cast %74 : vector<1x1x18x128xbf16> to vector<1x18x128xbf16>
    %76 = vector.shape_cast %72 : vector<1x18x128xbf16> to vector<1x1x18x128xbf16>
    tpu.vector_store %arg6[%c0_69, %c0_70, %c0_71, %c0_72], %76 {strides = array<i32>} : memref<1x18x18x128xbf16, #tpu.memory_space<vmem>>, vector<1x1x18x128xbf16>,
    %c0_73 = arith.constant 0 : index
    %c17 = arith.constant 17 : index
    %c0_74 = arith.constant 0 : index
    %c0_75 = arith.constant 0 : index
    %77 = vector.load %arg6[%c0_73, %c17, %c0_74, %c0_75] : memref<1x18x18x128xbf16, #tpu.memory_space<vmem>>, vector<1x1x18x128xbf16>
    %78 = vector.shape_cast %77 : vector<1x1x18x128xbf16> to vector<1x18x128xbf16>
    %79 = vector.shape_cast %72 : vector<1x18x128xbf16> to vector<1x1x18x128xbf16>
    tpu.vector_store %arg6[%c0_73, %c17, %c0_74, %c0_75], %79 {strides = array<i32>} : memref<1x18x18x128xbf16, #tpu.memory_space<vmem>>, vector<1x1x18x128xbf16>,
    %c0_76 = arith.constant 0 : index
    %c1_77 = arith.constant 1 : index
    %c0_78 = arith.constant 0 : index
    %c0_79 = arith.constant 0 : index
    %80 = vector.load %arg6[%c0_76, %c1_77, %c0_78, %c0_79] : memref<1x18x18x128xbf16, #tpu.memory_space<vmem>>, vector<1x16x1x128xbf16>
    %81 = vector.shape_cast %80 : vector<1x16x1x128xbf16> to vector<16x1x128xbf16>
    %82 = vector.shape_cast %73 : vector<16x1x128xbf16> to vector<1x16x1x128xbf16>
    tpu.vector_store %arg6[%c0_76, %c1_77, %c0_78, %c0_79], %82 {strides = array<i32>} : memref<1x18x18x128xbf16, #tpu.memory_space<vmem>>, vector<1x16x1x128xbf16>,
    %c0_80 = arith.constant 0 : index
    %c1_81 = arith.constant 1 : index
    %c17_82 = arith.constant 17 : index
    %c0_83 = arith.constant 0 : index
    %83 = vector.load %arg6[%c0_80, %c1_81, %c17_82, %c0_83] : memref<1x18x18x128xbf16, #tpu.memory_space<vmem>>, vector<1x16x1x128xbf16>
    %84 = vector.shape_cast %83 : vector<1x16x1x128xbf16> to vector<16x1x128xbf16>
    %85 = vector.shape_cast %73 : vector<16x1x128xbf16> to vector<1x16x1x128xbf16>
    tpu.vector_store %arg6[%c0_80, %c1_81, %c17_82, %c0_83], %85 {strides = array<i32>} : memref<1x18x18x128xbf16, #tpu.memory_space<vmem>>, vector<1x16x1x128xbf16>,
    %c0_84 = arith.constant 0 : index
    %c1_85 = arith.constant 1 : index
    %c1_86 = arith.constant 1 : index
    %c0_87 = arith.constant 0 : index
    %86 = vector.load %arg6[%c0_84, %c1_85, %c1_86, %c0_87] : memref<1x18x18x128xbf16, #tpu.memory_space<vmem>>, vector<1x16x16x128xbf16>
    %87 = vector.shape_cast %86 : vector<1x16x16x128xbf16> to vector<16x16x128xbf16>
    %88 = vector.shape_cast %71 : vector<16x16x128xbf16> to vector<1x16x16x128xbf16>
    tpu.vector_store %arg6[%c0_84, %c1_85, %c1_86, %c0_87], %88 {strides = array<i32>} : memref<1x18x18x128xbf16, #tpu.memory_space<vmem>>, vector<1x16x16x128xbf16>,
    return
  }
  func.func @transform_0(%arg0: i32, %arg1: i32) -> (i32, i32, i32, i32) {
    %c0_i32 = arith.constant 0 : i32
    %c0_i32_0 = arith.constant 0 : i32
    %c0_i32_1 = arith.constant 0 : i32
    %c0_i32_2 = arith.constant 0 : i32
    return %arg1, %c0_i32, %c0_i32_0, %c0_i32_1 : i32, i32, i32, i32
  }
  func.func @transform_1(%arg0: i32, %arg1: i32) -> (i32, i32, i32) {
    %c0_i32 = arith.constant 0 : i32
    %c0_i32_0 = arith.constant 0 : i32
    %c0_i32_1 = arith.constant 0 : i32
    return %c0_i32, %c0_i32_0, %arg0 : i32, i32, i32
  }
  func.func @transform_2(%arg0: i32, %arg1: i32) -> (i32, i32) {
    %c0_i32 = arith.constant 0 : i32
    %c0_i32_0 = arith.constant 0 : i32
    return %c0_i32, %arg0 : i32, i32
  }
  func.func @transform_3(%arg0: i32, %arg1: i32) -> (i32, i32) {
    %c0_i32 = arith.constant 0 : i32
    %c0_i32_0 = arith.constant 0 : i32
    return %c0_i32, %arg0 : i32, i32
  }
  func.func @transform_4(%arg0: i32, %arg1: i32) -> (i32, i32, i32, i32) {
    %c0_i32 = arith.constant 0 : i32
    %c0_i32_0 = arith.constant 0 : i32
    %c0_i32_1 = arith.constant 0 : i32
    return %arg1, %c0_i32, %c0_i32_0, %arg0 : i32, i32, i32, i32
  }
}

module attributes {stable_mosaic.version = 11 : i64} {
  func.func @_conv_bn_kernel(%arg0: i32, %arg1: i32, %arg2: memref<1x18x18x128xbf16, #tpu.memory_space<vmem>>, %arg3: memref<9x128x128xbf16, #tpu.memory_space<vmem>>, %arg4: memref<1x128xf32, #tpu.memory_space<vmem>>, %arg5: memref<1x128xf32, #tpu.memory_space<vmem>>, %arg6: memref<1x16x16x128xbf16, #tpu.memory_space<vmem>>, %arg7: memref<1x16x16x128xf32, #tpu.memory_space<vmem>>) attributes {dimension_semantics = [#tpu.dimension_semantics<parallel>, #tpu.dimension_semantics<parallel>], iteration_bounds = array<i64: 1, 2>, scalar_prefetch = 0 : i64, scratch_operands = 0 : i64, tpu.core_type = #tpu.core_type<tc>, window_params = [{transform_indices = @transform_0, window_bounds = array<i64: 1, 18, 18, 128>}, {transform_indices = @transform_1, window_bounds = array<i64: 9, 128, 128>}, {transform_indices = @transform_2, window_bounds = array<i64: 1, 128>}, {transform_indices = @transform_3, window_bounds = array<i64: 1, 128>}, {transform_indices = @transform_4, window_bounds = array<i64: 1, 16, 16, 128>}, {transform_indices = @transform_5, window_bounds = array<i64: 1, 16, 16, 128>}]} {
    %c0 = arith.constant 0 : index
    %c0_0 = arith.constant 0 : index
    %c0_1 = arith.constant 0 : index
    %c0_2 = arith.constant 0 : index
    %0 = vector.load %arg2[%c0, %c0_0, %c0_1, %c0_2] : memref<1x18x18x128xbf16, #tpu.memory_space<vmem>>, vector<1x16x16x128xbf16>
    %1 = vector.shape_cast %0 : vector<1x16x16x128xbf16> to vector<16x16x128xbf16>
    %2 = vector.shape_cast %1 : vector<16x16x128xbf16> to vector<256x128xbf16>
    %c0_3 = arith.constant 0 : index
    %c0_4 = arith.constant 0 : index
    %c0_5 = arith.constant 0 : index
    %3 = vector.load %arg3[%c0_3, %c0_4, %c0_5] : memref<9x128x128xbf16, #tpu.memory_space<vmem>>, vector<1x128x128xbf16>
    %4 = vector.shape_cast %3 : vector<1x128x128xbf16> to vector<128x128xbf16>
    %cst = arith.constant dense<0.000000e+00> : vector<256x128xf32>
    %5 = tpu.matmul %2, %4, %cst {dimension_numbers = #tpu.dot_dimension_numbers<[1], [0], [0], [1], [0, 0, 1, 1], [], []>} : vector<256x128xbf16>, vector<128x128xbf16>, vector<256x128xf32> -> vector<256x128xf32>
    %c0_6 = arith.constant 0 : index
    %c0_7 = arith.constant 0 : index
    %c1 = arith.constant 1 : index
    %c0_8 = arith.constant 0 : index
    %6 = vector.load %arg2[%c0_6, %c0_7, %c1, %c0_8] : memref<1x18x18x128xbf16, #tpu.memory_space<vmem>>, vector<1x16x16x128xbf16>
    %7 = vector.shape_cast %6 : vector<1x16x16x128xbf16> to vector<16x16x128xbf16>
    %8 = vector.shape_cast %7 : vector<16x16x128xbf16> to vector<256x128xbf16>
    %c1_9 = arith.constant 1 : index
    %c0_10 = arith.constant 0 : index
    %c0_11 = arith.constant 0 : index
    %9 = vector.load %arg3[%c1_9, %c0_10, %c0_11] : memref<9x128x128xbf16, #tpu.memory_space<vmem>>, vector<1x128x128xbf16>
    %10 = vector.shape_cast %9 : vector<1x128x128xbf16> to vector<128x128xbf16>
    %cst_12 = arith.constant dense<0.000000e+00> : vector<256x128xf32>
    %11 = tpu.matmul %8, %10, %cst_12 {dimension_numbers = #tpu.dot_dimension_numbers<[1], [0], [0], [1], [0, 0, 1, 1], [], []>} : vector<256x128xbf16>, vector<128x128xbf16>, vector<256x128xf32> -> vector<256x128xf32>
    %12 = arith.addf %5, %11 : vector<256x128xf32>
    %c0_13 = arith.constant 0 : index
    %c0_14 = arith.constant 0 : index
    %c2 = arith.constant 2 : index
    %c0_15 = arith.constant 0 : index
    %13 = vector.load %arg2[%c0_13, %c0_14, %c2, %c0_15] : memref<1x18x18x128xbf16, #tpu.memory_space<vmem>>, vector<1x16x16x128xbf16>
    %14 = vector.shape_cast %13 : vector<1x16x16x128xbf16> to vector<16x16x128xbf16>
    %15 = vector.shape_cast %14 : vector<16x16x128xbf16> to vector<256x128xbf16>
    %c2_16 = arith.constant 2 : index
    %c0_17 = arith.constant 0 : index
    %c0_18 = arith.constant 0 : index
    %16 = vector.load %arg3[%c2_16, %c0_17, %c0_18] : memref<9x128x128xbf16, #tpu.memory_space<vmem>>, vector<1x128x128xbf16>
    %17 = vector.shape_cast %16 : vector<1x128x128xbf16> to vector<128x128xbf16>
    %cst_19 = arith.constant dense<0.000000e+00> : vector<256x128xf32>
    %18 = tpu.matmul %15, %17, %cst_19 {dimension_numbers = #tpu.dot_dimension_numbers<[1], [0], [0], [1], [0, 0, 1, 1], [], []>} : vector<256x128xbf16>, vector<128x128xbf16>, vector<256x128xf32> -> vector<256x128xf32>
    %19 = arith.addf %12, %18 : vector<256x128xf32>
    %c0_20 = arith.constant 0 : index
    %c1_21 = arith.constant 1 : index
    %c0_22 = arith.constant 0 : index
    %c0_23 = arith.constant 0 : index
    %20 = vector.load %arg2[%c0_20, %c1_21, %c0_22, %c0_23] : memref<1x18x18x128xbf16, #tpu.memory_space<vmem>>, vector<1x16x16x128xbf16>
    %21 = vector.shape_cast %20 : vector<1x16x16x128xbf16> to vector<16x16x128xbf16>
    %22 = vector.shape_cast %21 : vector<16x16x128xbf16> to vector<256x128xbf16>
    %c3 = arith.constant 3 : index
    %c0_24 = arith.constant 0 : index
    %c0_25 = arith.constant 0 : index
    %23 = vector.load %arg3[%c3, %c0_24, %c0_25] : memref<9x128x128xbf16, #tpu.memory_space<vmem>>, vector<1x128x128xbf16>
    %24 = vector.shape_cast %23 : vector<1x128x128xbf16> to vector<128x128xbf16>
    %cst_26 = arith.constant dense<0.000000e+00> : vector<256x128xf32>
    %25 = tpu.matmul %22, %24, %cst_26 {dimension_numbers = #tpu.dot_dimension_numbers<[1], [0], [0], [1], [0, 0, 1, 1], [], []>} : vector<256x128xbf16>, vector<128x128xbf16>, vector<256x128xf32> -> vector<256x128xf32>
    %26 = arith.addf %19, %25 : vector<256x128xf32>
    %c0_27 = arith.constant 0 : index
    %c1_28 = arith.constant 1 : index
    %c1_29 = arith.constant 1 : index
    %c0_30 = arith.constant 0 : index
    %27 = vector.load %arg2[%c0_27, %c1_28, %c1_29, %c0_30] : memref<1x18x18x128xbf16, #tpu.memory_space<vmem>>, vector<1x16x16x128xbf16>
    %28 = vector.shape_cast %27 : vector<1x16x16x128xbf16> to vector<16x16x128xbf16>
    %29 = vector.shape_cast %28 : vector<16x16x128xbf16> to vector<256x128xbf16>
    %c4 = arith.constant 4 : index
    %c0_31 = arith.constant 0 : index
    %c0_32 = arith.constant 0 : index
    %30 = vector.load %arg3[%c4, %c0_31, %c0_32] : memref<9x128x128xbf16, #tpu.memory_space<vmem>>, vector<1x128x128xbf16>
    %31 = vector.shape_cast %30 : vector<1x128x128xbf16> to vector<128x128xbf16>
    %cst_33 = arith.constant dense<0.000000e+00> : vector<256x128xf32>
    %32 = tpu.matmul %29, %31, %cst_33 {dimension_numbers = #tpu.dot_dimension_numbers<[1], [0], [0], [1], [0, 0, 1, 1], [], []>} : vector<256x128xbf16>, vector<128x128xbf16>, vector<256x128xf32> -> vector<256x128xf32>
    %33 = arith.addf %26, %32 : vector<256x128xf32>
    %c0_34 = arith.constant 0 : index
    %c1_35 = arith.constant 1 : index
    %c2_36 = arith.constant 2 : index
    %c0_37 = arith.constant 0 : index
    %34 = vector.load %arg2[%c0_34, %c1_35, %c2_36, %c0_37] : memref<1x18x18x128xbf16, #tpu.memory_space<vmem>>, vector<1x16x16x128xbf16>
    %35 = vector.shape_cast %34 : vector<1x16x16x128xbf16> to vector<16x16x128xbf16>
    %36 = vector.shape_cast %35 : vector<16x16x128xbf16> to vector<256x128xbf16>
    %c5 = arith.constant 5 : index
    %c0_38 = arith.constant 0 : index
    %c0_39 = arith.constant 0 : index
    %37 = vector.load %arg3[%c5, %c0_38, %c0_39] : memref<9x128x128xbf16, #tpu.memory_space<vmem>>, vector<1x128x128xbf16>
    %38 = vector.shape_cast %37 : vector<1x128x128xbf16> to vector<128x128xbf16>
    %cst_40 = arith.constant dense<0.000000e+00> : vector<256x128xf32>
    %39 = tpu.matmul %36, %38, %cst_40 {dimension_numbers = #tpu.dot_dimension_numbers<[1], [0], [0], [1], [0, 0, 1, 1], [], []>} : vector<256x128xbf16>, vector<128x128xbf16>, vector<256x128xf32> -> vector<256x128xf32>
    %40 = arith.addf %33, %39 : vector<256x128xf32>
    %c0_41 = arith.constant 0 : index
    %c2_42 = arith.constant 2 : index
    %c0_43 = arith.constant 0 : index
    %c0_44 = arith.constant 0 : index
    %41 = vector.load %arg2[%c0_41, %c2_42, %c0_43, %c0_44] : memref<1x18x18x128xbf16, #tpu.memory_space<vmem>>, vector<1x16x16x128xbf16>
    %42 = vector.shape_cast %41 : vector<1x16x16x128xbf16> to vector<16x16x128xbf16>
    %43 = vector.shape_cast %42 : vector<16x16x128xbf16> to vector<256x128xbf16>
    %c6 = arith.constant 6 : index
    %c0_45 = arith.constant 0 : index
    %c0_46 = arith.constant 0 : index
    %44 = vector.load %arg3[%c6, %c0_45, %c0_46] : memref<9x128x128xbf16, #tpu.memory_space<vmem>>, vector<1x128x128xbf16>
    %45 = vector.shape_cast %44 : vector<1x128x128xbf16> to vector<128x128xbf16>
    %cst_47 = arith.constant dense<0.000000e+00> : vector<256x128xf32>
    %46 = tpu.matmul %43, %45, %cst_47 {dimension_numbers = #tpu.dot_dimension_numbers<[1], [0], [0], [1], [0, 0, 1, 1], [], []>} : vector<256x128xbf16>, vector<128x128xbf16>, vector<256x128xf32> -> vector<256x128xf32>
    %47 = arith.addf %40, %46 : vector<256x128xf32>
    %c0_48 = arith.constant 0 : index
    %c2_49 = arith.constant 2 : index
    %c1_50 = arith.constant 1 : index
    %c0_51 = arith.constant 0 : index
    %48 = vector.load %arg2[%c0_48, %c2_49, %c1_50, %c0_51] : memref<1x18x18x128xbf16, #tpu.memory_space<vmem>>, vector<1x16x16x128xbf16>
    %49 = vector.shape_cast %48 : vector<1x16x16x128xbf16> to vector<16x16x128xbf16>
    %50 = vector.shape_cast %49 : vector<16x16x128xbf16> to vector<256x128xbf16>
    %c7 = arith.constant 7 : index
    %c0_52 = arith.constant 0 : index
    %c0_53 = arith.constant 0 : index
    %51 = vector.load %arg3[%c7, %c0_52, %c0_53] : memref<9x128x128xbf16, #tpu.memory_space<vmem>>, vector<1x128x128xbf16>
    %52 = vector.shape_cast %51 : vector<1x128x128xbf16> to vector<128x128xbf16>
    %cst_54 = arith.constant dense<0.000000e+00> : vector<256x128xf32>
    %53 = tpu.matmul %50, %52, %cst_54 {dimension_numbers = #tpu.dot_dimension_numbers<[1], [0], [0], [1], [0, 0, 1, 1], [], []>} : vector<256x128xbf16>, vector<128x128xbf16>, vector<256x128xf32> -> vector<256x128xf32>
    %54 = arith.addf %47, %53 : vector<256x128xf32>
    %c0_55 = arith.constant 0 : index
    %c2_56 = arith.constant 2 : index
    %c2_57 = arith.constant 2 : index
    %c0_58 = arith.constant 0 : index
    %55 = vector.load %arg2[%c0_55, %c2_56, %c2_57, %c0_58] : memref<1x18x18x128xbf16, #tpu.memory_space<vmem>>, vector<1x16x16x128xbf16>
    %56 = vector.shape_cast %55 : vector<1x16x16x128xbf16> to vector<16x16x128xbf16>
    %57 = vector.shape_cast %56 : vector<16x16x128xbf16> to vector<256x128xbf16>
    %c8 = arith.constant 8 : index
    %c0_59 = arith.constant 0 : index
    %c0_60 = arith.constant 0 : index
    %58 = vector.load %arg3[%c8, %c0_59, %c0_60] : memref<9x128x128xbf16, #tpu.memory_space<vmem>>, vector<1x128x128xbf16>
    %59 = vector.shape_cast %58 : vector<1x128x128xbf16> to vector<128x128xbf16>
    %cst_61 = arith.constant dense<0.000000e+00> : vector<256x128xf32>
    %60 = tpu.matmul %57, %59, %cst_61 {dimension_numbers = #tpu.dot_dimension_numbers<[1], [0], [0], [1], [0, 0, 1, 1], [], []>} : vector<256x128xbf16>, vector<128x128xbf16>, vector<256x128xf32> -> vector<256x128xf32>
    %61 = arith.addf %54, %60 : vector<256x128xf32>
    %c0_62 = arith.constant 0 : index
    %c0_63 = arith.constant 0 : index
    %62 = vector.load %arg4[%c0_62, %c0_63] : memref<1x128xf32, #tpu.memory_space<vmem>>, vector<1x128xf32>
    %63 = vector.broadcast %62 : vector<1x128xf32> to vector<256x128xf32>
    %64 = arith.mulf %61, %63 : vector<256x128xf32>
    %c0_64 = arith.constant 0 : index
    %c0_65 = arith.constant 0 : index
    %65 = vector.load %arg5[%c0_64, %c0_65] : memref<1x128xf32, #tpu.memory_space<vmem>>, vector<1x128xf32>
    %66 = vector.broadcast %65 : vector<1x128xf32> to vector<256x128xf32>
    %67 = arith.addf %64, %66 : vector<256x128xf32>
    %c0_66 = arith.constant 0 : index
    %c0_67 = arith.constant 0 : index
    %c0_68 = arith.constant 0 : index
    %c0_69 = arith.constant 0 : index
    %68 = vector.load %arg6[%c0_66, %c0_67, %c0_68, %c0_69] : memref<1x16x16x128xbf16, #tpu.memory_space<vmem>>, vector<1x16x16x128xbf16>
    %69 = vector.shape_cast %68 : vector<1x16x16x128xbf16> to vector<16x16x128xbf16>
    %70 = vector.shape_cast %69 : vector<16x16x128xbf16> to vector<256x128xbf16>
    %71 = arith.extf %70 : vector<256x128xbf16> to vector<256x128xf32>
    %72 = arith.addf %67, %71 : vector<256x128xf32>
    %cst_70 = arith.constant 0.000000e+00 : f32
    %73 = vector.broadcast %cst_70 : f32 to vector<256x128xf32>
    %74 = arith.maximumf %72, %73 : vector<256x128xf32>
    %75 = vector.shape_cast %74 : vector<256x128xf32> to vector<16x16x128xf32>
    %c0_71 = arith.constant 0 : index
    %c0_72 = arith.constant 0 : index
    %c0_73 = arith.constant 0 : index
    %c0_74 = arith.constant 0 : index
    %76 = vector.load %arg7[%c0_71, %c0_72, %c0_73, %c0_74] : memref<1x16x16x128xf32, #tpu.memory_space<vmem>>, vector<1x16x16x128xf32>
    %77 = vector.shape_cast %76 : vector<1x16x16x128xf32> to vector<16x16x128xf32>
    %78 = vector.shape_cast %75 : vector<16x16x128xf32> to vector<1x16x16x128xf32>
    tpu.vector_store %arg7[%c0_71, %c0_72, %c0_73, %c0_74], %78 {strides = array<i32>} : memref<1x16x16x128xf32, #tpu.memory_space<vmem>>, vector<1x16x16x128xf32>,
    return
  }
  func.func @transform_0(%arg0: i32, %arg1: i32) -> (i32, i32, i32, i32) {
    %c0_i32 = arith.constant 0 : i32
    %c0_i32_0 = arith.constant 0 : i32
    %c0_i32_1 = arith.constant 0 : i32
    %c0_i32_2 = arith.constant 0 : i32
    return %arg1, %c0_i32, %c0_i32_0, %c0_i32_1 : i32, i32, i32, i32
  }
  func.func @transform_1(%arg0: i32, %arg1: i32) -> (i32, i32, i32) {
    %c0_i32 = arith.constant 0 : i32
    %c0_i32_0 = arith.constant 0 : i32
    %c0_i32_1 = arith.constant 0 : i32
    return %c0_i32, %c0_i32_0, %arg0 : i32, i32, i32
  }
  func.func @transform_2(%arg0: i32, %arg1: i32) -> (i32, i32) {
    %c0_i32 = arith.constant 0 : i32
    %c0_i32_0 = arith.constant 0 : i32
    return %c0_i32, %arg0 : i32, i32
  }
  func.func @transform_3(%arg0: i32, %arg1: i32) -> (i32, i32) {
    %c0_i32 = arith.constant 0 : i32
    %c0_i32_0 = arith.constant 0 : i32
    return %c0_i32, %arg0 : i32, i32
  }
  func.func @transform_4(%arg0: i32, %arg1: i32) -> (i32, i32, i32, i32) {
    %c0_i32 = arith.constant 0 : i32
    %c0_i32_0 = arith.constant 0 : i32
    %c0_i32_1 = arith.constant 0 : i32
    return %arg1, %c0_i32, %c0_i32_0, %arg0 : i32, i32, i32, i32
  }
  func.func @transform_5(%arg0: i32, %arg1: i32) -> (i32, i32, i32, i32) {
    %c0_i32 = arith.constant 0 : i32
    %c0_i32_0 = arith.constant 0 : i32
    %c0_i32_1 = arith.constant 0 : i32
    return %arg1, %c0_i32, %c0_i32_0, %arg0 : i32, i32, i32, i32
  }
}

</mosaic_0001>

<bundles_post_ra>
// kernel: basic_block_forward.3
= control target key start
LH: loop header
LB: loop body
LE: loop exit
PB: predicated region body
PF: predicated region fallthrough
CT: control target
= control target key end

     0   :  { %s7058_s18 = smov 0   ;;  %s7060_s19 = smov 0   ;;  %s9976_s0 = inlined_call_operand.vmem [shape: bf16[2,18,18,128], index: 0, kind: input, shape index: {}]   ;;  %s9977_s1 = inlined_call_operand.vmem [shape: bf16[9,128,128], index: 1, kind: input, shape index: {}]   ;;  %s9978_s2 = inlined_call_operand.vmem [shape: f32[1,128], index: 2, kind: input, shape index: {}]   ;;  %s9979_s3 = inlined_call_operand.vmem [shape: f32[1,128], index: 3, kind: input, shape index: {}]   ;;  %s9980_s4 = inlined_call_operand.vmem [shape: bf16[2,16,16,128], index: 4, kind: input, shape index: {}]   ;;  %s9981_s5 = inlined_call_operand.vmem [shape: f32[2,16,16,128], index: 5, kind: output, shape index: {}]  }
   0x1   :  { %s7062_s20 = smov 0  }
   0x2 LB: > { %s24_s21 = sadd.s32 1, %s7022_s19  ;;  %p5511_p0 = scmp.ge.s32.totalorder %s7026_s20, 1  ;;  %s7026_s20 = sphi %s7062_s20, %s15_s20   ;;  %s7022_s19 = sphi %s7060_s19, %s10280_s19   ;;  %s7018_s18 = sphi %s7058_s18, %s10279_s18  }
   0x3   : > { %p25_p1 = scmp.ge.s32.totalorder %s24_s21, 2  ;;  %p241_p2 = scmp.lt.s32.totalorder %s7026_s20, 3 }
   0x5   : > { %s10282_s21 = smov (%p25_p1, %s24_s21), 0  ;;  %p242_p3 = pnand %p5511_p0, %p241_p2 }
   0x7   : > { %245 = sbr.rel (%p242_p3) target bundleno = 565 (0x235), region = 40 }
   0xc   : > { %v6875_v0 = vld [vmem:[%s9977_s1 + $0x78] sm:$0xff]   ;;  %p290_p4 = scmp.lt.s32.totalorder %s7018_s18, 1  ;;  %v6876_v1 = vld [vmem:[%s9977_s1 + $0x70] sm:$0xff]   ;;  %v6877_v2 = vld [vmem:[%s9977_s1 + $0x68] sm:$0xff]   ;;  %vm386_vm0 = vsmask.f32 3328 }
   0xd   : > { %6402 = vmatprep.subr.bf16.mxu0 %v6875_v0  ;;  %6834 = vmatprep.subr.bf16.mxu1 %v6875_v0  ;;  %v6878_v3 = vld [vmem:[%s9977_s1 + $0x60] sm:$0xff]   ;;  %vm387_vm1 = vsmask.f32 7440  ;;  %v6879_v17 = vld [vmem:[%s9977_s1 + $0x58] sm:$0xff]   ;;  %v6880_v33 = vld [vmem:[%s9977_s1 + $0x50] sm:$0xff]   ;;  %vm1416_vm3 = vcmask 1042432  }
   0xe   : > { %s10284_s18 = smov (!%p290_p4, %s7018_s18), 1  ;;  %6403 = vmatpush3.bf16.msra.mxu0 %v6875_v0  ;;  %6842 = vmatpush3.bf16.msra.mxu1 %v6875_v0  ;;  %vm7122_vm2 = vmor %vm386_vm0, %vm387_vm1  ;;  %v6881_v58 = vld [vmem:[%s9977_s1 + $0x48] sm:$0xff]   ;;  %vm1417_vm4 = vcmask 1046532  }
   0xf   : > { %6404 = vmatprep.subr.bf16.mxu0 %v6876_v1  ;;  %6835 = vmatprep.subr.bf16.mxu1 %v6876_v1  ;;  %s6850_s28 = smul.u32 216, %s10284_s18  ;;  %vm7433_vm5 = vmor %vm1416_vm3, %vm1417_vm4  ;;  %s6106_s12 = sshll.u32 %s10284_s18, 8 }
  0x10   : > { %s9746_s14 = scalar_lea.vmem %s9981_s5, %s6106_s12 }
  0x11   : > { %s7091_s6 = scalar_lea.vmem %s9976_s0, %s6850_s28 }
  0x12   : > { %6405 = vmatpush3.bf16.msra.mxu0 %v6876_v1  ;;  %6843 = vmatpush3.bf16.msra.mxu1 %v6876_v1  ;;  %v7097_v4 = vld [vmem:[%s7091_s6] sm:$0xf]  ;;  %v7100_v5 = vld [vmem:[%s7091_s6 + $0x4] sm:$0xf]  ;;  %v7103_v6 = vld [vmem:[%s7091_s6 + $0x8] sm:$0x1] }
  0x13   : > { %6406 = vmatprep.subr.bf16.mxu0 %v6877_v2  ;;  %6836 = vmatprep.subr.bf16.mxu1 %v6877_v2  ;;  %v390_v7 = vshrl.u32 %v7097_v4, 16  ;;  %v393_v8 = vshll.u32 %v7097_v4, 16  ;;  %v399_v9 = vshll.u32 %v7100_v5, 16  ;;  %v403_v10 = vshrl.u32 %v7100_v5, 16  ;;  %v338_v12 = vld [vmem:[%s7091_s6 + $0x60] sm:$0xf] }
  0x14   : > { %v409_v11 = vshll.u32 %v7103_v6, 16  ;;  %v339_v15 = vld [vmem:[%s7091_s6 + $0x64] sm:$0xf]  ;;  %v378_v16 = vld [vmem:[%s7091_s6 + $0x68] sm:$0x1]  ;;  %v582_v21 = vshrl.u32 %v338_v12, 16 }
  0x15   : > { %v392_v13 = vrot.slane %v390_v7, 4  ;;  %v395_v14 = vrot.slane %v393_v8, 5  ;;  %v401_v18 = vrot.slane %v399_v9, 5  ;;  %v405_v19 = vrot.slane %v403_v10, 4  ;;  %v7118_v26 = vld [vmem:[%s7091_s6 + $0xc] sm:$0xf] }
  0x16   : > { %6407 = vmatpush3.bf16.msra.mxu0 %v6877_v2  ;;  %6844 = vmatpush3.bf16.msra.mxu1 %v6877_v2  ;;  %v585_v23 = vshll.u32 %v338_v12, 16  ;;  %v591_v24 = vshll.u32 %v339_v15, 16  ;;  %v595_v25 = vshrl.u32 %v339_v15, 16  ;;  %v411_v29 = vrot.slane %v409_v11, 5  ;;  %v7127_v32 = vld [vmem:[%s7091_s6 + $0x10] sm:$0xf] }
  0x17   : > { %6408 = vmatprep.subr.bf16.mxu0 %v6878_v3  ;;  %6837 = vmatprep.subr.bf16.mxu1 %v6878_v3  ;;  %v396_v22 = vor.u32 %v395_v14, %v392_v13  ;;  %v406_v28 = vor.u32 %v405_v19, %v401_v18  ;;  %v584_v30 = vrot.slane %v582_v21, 4  ;;  %v601_v31 = vshll.u32 %v378_v16, 16  ;;  %v7133_v40 = vld [vmem:[%s7091_s6 + $0x14] sm:$0x1]  ;;  %v340_v47 = vld [vmem:[%s7091_s6 + $0x6c] sm:$0xf] }
  0x18   : > { %v587_v35 = vrot.slane %v585_v23, 5  ;;  %v593_v36 = vrot.slane %v591_v24, 5  ;;  %v597_v37 = vrot.slane %v595_v25, 4  ;;  %v414_v41 = vshrl.u32 %v7118_v26, 16  ;;  %v341_v52 = vld [vmem:[%s7091_s6 + $0x70] sm:$0xf] }
  0x19   : > { %v397_v34 = vrot.slane %v396_v22, 4  ;;  %v407_v38 = vrot.slane %v406_v28, 4  ;;  %v603_v39 = vrot.slane %v601_v31, 5  ;;  %v417_v42 = vshll.u32 %v7118_v26, 16  ;;  %v379_v57 = vld [vmem:[%s7091_s6 + $0x74] sm:$0x1] }
  0x1a   : > { %6409 = vmatpush3.bf16.msra.mxu0 %v6878_v3  ;;  %6845 = vmatpush3.bf16.msra.mxu1 %v6878_v3  ;;  %v588_v44 = vor.u32 %v587_v35, %v584_v30  ;;  %v598_v45 = vor.u32 %v597_v37, %v593_v36  ;;  %v423_v46 = vshll.u32 %v7127_v32, 16  ;;  %v416_v49 = vrot.slane %v414_v41, 4  ;;  %v7156_v14 = vld [vmem:[%s7091_s6 + $0x18] sm:$0xf]  ;;  %v6882_v15 = vld [vmem:[%s9977_s1 + $0x40] sm:$0xff]  }
  0x1b   : > { %6410 = vmatprep.subr.bf16.mxu0 %v6879_v17  ;;  %6838 = vmatprep.subr.bf16.mxu1 %v6879_v17  ;;  %v402_v43 = vsel %vm7122_vm2, %v397_v34, %v401_v18  ;;  %v412_v48 = vsel %vm7122_vm2, %v407_v38, %v411_v29  ;;  %v419_v50 = vrot.slane %v417_v42, 5  ;;  %v427_v51 = vshrl.u32 %v7127_v32, 16  ;;  %v7164_v19 = vld [vmem:[%s7091_s6 + $0x1c] sm:$0xf]  ;;  %v7169_v25 = vld [vmem:[%s7091_s6 + $0x20] sm:$0x1] }
  0x1c   : > { %v5533_v53 = vcombine.low %v402_v43, %v412_v48  ;;  %v589_v54 = vrot.slane %v588_v44, 4  ;;  %v599_v55 = vrot.slane %v598_v45, 4  ;;  %v425_v56 = vrot.slane %v423_v46, 5  ;;  %v342_v34 = vld [vmem:[%s7091_s6 + $0x78] sm:$0xf] }
  0x1d   : > { %v420_v59 = vor.u32 %v419_v50, %v416_v49  ;;  %v429_v60 = vrot.slane %v427_v51, 4  ;;  %v433_v61 = vshll.u32 %v7133_v40, 16  ;;  %v606_v1 = vshrl.u32 %v340_v47, 16  ;;  %v6883_v41 = vld [vmem:[%s9977_s1 + $0x38] sm:$0xff]   ;;  %v380_v49 = vld [vmem:[%s7091_s6 + $0x80] sm:$0x1] }
  0x1e   : > { %6411 = vmatpush3.bf16.msra.mxu0 %v6879_v17  ;;  %6846 = vmatpush3.bf16.msra.mxu1 %v6879_v17  ;;  %v594_v63 = vsel %vm7122_vm2, %v589_v54, %v593_v36  ;;  %v604_v0 = vsel %vm7122_vm2, %v599_v55, %v603_v39  ;;  %v609_v2 = vshll.u32 %v340_v47, 16  ;;  %v615_v12 = vshll.u32 %v341_v52, 16  ;;  %v7178_v39 = vld [vmem:[%s7091_s6 + $0x7c] sm:$0xf] }
  0x1f   : > { %6412 = vmatprep.subr.bf16.mxu0 %v6880_v33  ;;  %6839 = vmatprep.subr.bf16.mxu1 %v6880_v33  ;;  %v5541_v3 = vcombine.low %v594_v63, %v604_v0  ;;  %v421_v7 = vrot.slane %v420_v59, 4  ;;  %v430_v8 = vor.u32 %v429_v60, %v425_v56  ;;  %v435_v9 = vrot.slane %v433_v61, 5  ;;  %v6884_v42 = vld [vmem:[%s9977_s1 + $0xb8] sm:$0xff]   ;;  %v6886_v59 = vld [vmem:[%s9977_s1 + $0xb0] sm:$0xff]   ;;  %v7205_v0 = vld [vmem:[%s7091_s6 + $0x28] sm:$0xf] }
  0x20   : > { %6418 = vmatprep.mubr.bf16.mxu0 %v5533_v53  ;;  %v608_v10 = vrot.slane %v606_v1, 4  ;;  %v611_v11 = vrot.slane %v609_v2, 5  ;;  %v619_v13 = vshrl.u32 %v341_v52, 16  ;;  %v625_v18 = vshll.u32 %v379_v57, 16  ;;  %v6885_v52 = vld [vmem:[%s9977_s1 + $0x30] sm:$0xff]  }
  0x21   : > { %v426_v16 = vsel %vm7122_vm2, %v421_v7, %v425_v56  ;;  %v431_v17 = vrot.slane %v430_v8, 4  ;;  %6434 = vmatprep.mubr.bf16.mxu1 %v5541_v3  ;;  %v617_v23 = vrot.slane %v615_v12, 5  ;;  %v438_v28 = vshrl.u32 %v7156_v14, 16  ;;  %v7196_v57 = vld [vmem:[%s7091_s6 + $0x24] sm:$0xf] }
  0x22   : > { %6413 = vmatpush3.bf16.msra.mxu0 %v6880_v33  ;;  %6847 = vmatpush3.bf16.msra.mxu1 %v6880_v33  ;;  %v612_v22 = vor.u32 %v611_v11, %v608_v10  ;;  %v621_v24 = vrot.slane %v619_v13, 4  ;;  %v627_v30 = vrot.slane %v625_v18, 5  ;;  %v441_v31 = vshll.u32 %v7156_v14, 16  ;;  %v7208_v8 = vld [vmem:[%s7091_s6 + $0x2c] sm:$0x1] }
  0x23   : > { %6414 = vmatprep.subr.bf16.mxu0 %v6881_v58  ;;  %6840 = vmatprep.subr.bf16.mxu1 %v6881_v58  ;;  %v436_v29 = vsel %vm7122_vm2, %v431_v17, %v435_v9  ;;  %v447_v33 = vshll.u32 %v7164_v19, 16  ;;  %v440_v38 = vrot.slane %v438_v28, 4  ;;  %v451_v45 = vshrl.u32 %v7164_v19, 16  ;;  %v7212_v13 = vld [vmem:[%s7091_s6 + $0x84] sm:$0xf] }
  0x24   : > { %v5534_v35 = vcombine.low %v426_v16, %v436_v29  ;;  %v613_v36 = vrot.slane %v612_v22, 4  ;;  %v622_v37 = vor.u32 %v621_v24, %v617_v23  ;;  %v443_v43 = vrot.slane %v441_v31, 5  ;;  %v7219_v22 = vld [vmem:[%s7091_s6 + $0x88] sm:$0xf] }
  0x25   : > { %v449_v44 = vrot.slane %v447_v33, 5  ;;  %v457_v46 = vshll.u32 %v7169_v25, 16  ;;  %v630_v50 = vshrl.u32 %v342_v34, 16  ;;  %v633_v51 = vshll.u32 %v342_v34, 16 }
  0x26   : > { %6415 = vmatpush3.bf16.msra.mxu0 %v6881_v58  ;;  %6848 = vmatpush3.bf16.msra.mxu1 %v6881_v58  ;;  %v618_v47 = vsel %vm7122_vm2, %v613_v36, %v617_v23  ;;  %v623_v48 = vrot.slane %v622_v37, 4  ;;  %v444_v53 = vor.u32 %v443_v43, %v440_v38  ;;  %v453_v54 = vrot.slane %v451_v45, 4  ;;  %v7228_v36 = vld [vmem:[%s7091_s6 + $0x8c] sm:$0x1] }
  0x27   : > { %6416 = vmatprep.subr.bf16.mxu0 %v6882_v15  ;;  %6841 = vmatprep.subr.bf16.mxu1 %v6882_v15  ;;  %v459_v55 = vrot.slane %v457_v46, 5  ;;  %v639_v56 = vshll.u32 %v7178_v39, 16  ;;  %v632_v60 = vrot.slane %v630_v50, 4  ;;  %v635_v61 = vrot.slane %v633_v51, 5  ;;  %v6888_v37 = vld [vmem:[%s9977_s1 + $0xa8] sm:$0xff]  }
  0x28   : > { %v628_v58 = vsel %vm7122_vm2, %v623_v48, %v627_v30  ;;  %v643_v63 = vshrl.u32 %v7178_v39, 16  ;;  %v445_v2 = vrot.slane %v444_v53, 4  ;;  %v454_v3 = vor.u32 %v453_v54, %v449_v44  ;;  %v6887_v30 = vld [vmem:[%s9977_s1 + $0x28] sm:$0xff]   ;;  %v7243_v53 = vld [vmem:[%s7091_s6 + $0x30] sm:$0xf] }
  0x29   : > { %v5542_v1 = vcombine.low %v618_v47, %v628_v58  ;;  %v641_v7 = vrot.slane %v639_v56, 5  ;;  %v636_v9 = vor.u32 %v635_v61, %v632_v60  ;;  %v649_v11 = vshll.u32 %v380_v49, 16  ;;  %v7252_v60 = vld [vmem:[%s7091_s6 + $0x34] sm:$0xf] }
  0x2a   : > { %6417 = vmatpush3.bf16.msra.mxu0 %v6882_v15  ;;  %6849 = vmatpush3.bf16.msra.mxu1 %v6882_v15  ;;  %v645_v10 = vrot.slane %v643_v63, 4  ;;  %v462_v12 = vshrl.u32 %v7196_v57, 16  ;;  %v450_v15 = vsel %vm7122_vm2, %v445_v2, %v449_v44  ;;  %v455_v16 = vrot.slane %v454_v3, 4 }
  0x2b   : > { %6450 = vmatprep.subr.bf16.mxu1 %v6883_v41  ;;  %6498 = vmatprep.subr.bf16.mxu0 %v6884_v42  ;;  %v465_v17 = vshll.u32 %v7196_v57, 16  ;;  %v471_v18 = vshll.u32 %v7205_v0, 16  ;;  %v637_v23 = vrot.slane %v636_v9, 4  ;;  %v651_v28 = vrot.slane %v649_v11, 5 }
  0x2c   : > { %v646_v24 = vor.u32 %v645_v10, %v641_v7  ;;  %v464_v29 = vrot.slane %v462_v12, 4  ;;  %v460_v31 = vsel %vm7122_vm2, %v455_v16, %v459_v55  ;;  %v481_v43 = vshll.u32 %v7208_v8, 16  ;;  %v7260_v16 = vld [vmem:[%s7091_s6 + $0x38] sm:$0x1] }
  0x2d   : > { %6419 = vmatmul.mubr.bf16.vlgmr.msra.gmra.mxu0 %v5534_v35  ;;  %6435 = vmatmul.mubr.bf16.vlgmr.msra.gmra.mxu1 %v5542_v1  ;;  %v467_v33 = vrot.slane %v465_v17, 5  ;;  %v473_v34 = vrot.slane %v471_v18, 5  ;;  %v475_v35 = vshrl.u32 %v7205_v0, 16  ;;  %v5535_v38 = vcombine.low %v450_v15, %v460_v31  ;;  %v7264_v18 = vld [vmem:[%s7091_s6 + $0x90] sm:$0xf] }
  0x2e   : > { %6451 = vmatpush3.bf16.msra.mxu1 %v6883_v41  ;;  %6499 = vmatpush3.bf16.msra.mxu0 %v6884_v42  ;;  %v642_v41 = vsel %vm7122_vm2, %v637_v23, %v641_v7  ;;  %v647_v42 = vrot.slane %v646_v24, 4  ;;  %v654_v46 = vshrl.u32 %v7212_v13, 16  ;;  %v657_v47 = vshll.u32 %v7212_v13, 16  ;;  %v7270_v31 = vld [vmem:[%s7091_s6 + $0x94] sm:$0xf] }
  0x2f   : > { %6452 = vmatprep.subr.bf16.mxu1 %v6885_v52  ;;  %6500 = vmatprep.subr.bf16.mxu0 %v6886_v59  ;;  %v468_v44 = vor.u32 %v467_v33, %v464_v29  ;;  %v477_v45 = vrot.slane %v475_v35, 4  ;;  %v483_v49 = vrot.slane %v481_v43, 5  ;;  %v663_v50 = vshll.u32 %v7219_v22, 16 }
  0x30   : > { %v652_v48 = vsel %vm7122_vm2, %v647_v42, %v651_v28  ;;  %v667_v51 = vshrl.u32 %v7219_v22, 16  ;;  %6422 = vmatprep.mubr.bf16.mxu0 %v5535_v38  ;;  %v656_v58 = vrot.slane %v654_v46, 4  ;;  %v659_v61 = vrot.slane %v657_v47, 5  ;;  %v6892_v38 = vld [vmem:[%s9977_s1 + $0x98] sm:$0xff]   ;;  %v6893_v46 = vld [vmem:[%s9977_s1 + $0x10] sm:$0xff]  }
  0x31   : > { %v5543_v54 = vcombine.low %v642_v41, %v652_v48  ;;  %v469_v55 = vrot.slane %v468_v44, 4  ;;  %v478_v56 = vor.u32 %v477_v45, %v473_v34  ;;  %v665_v63 = vrot.slane %v663_v50, 5  ;;  %v7280_v44 = vld [vmem:[%s7091_s6 + $0x98] sm:$0x1] }
  0x32   : > { %6453 = vmatpush3.bf16.msra.mxu1 %v6885_v52  ;;  %6501 = vmatpush3.bf16.msra.mxu0 %v6886_v59  ;;  %v6889_v52 = vld [vmem:[%s9977_s1 + $0x20] sm:$0xff]   ;;  %v669_v1 = vrot.slane %v667_v51, 4  ;;  %v673_v2 = vshll.u32 %v7228_v36, 16  ;;  %v486_v9 = vshrl.u32 %v7243_v53, 16  ;;  %v489_v10 = vshll.u32 %v7243_v53, 16 }
  0x33   : > { %6454 = vmatprep.subr.bf16.mxu1 %v6887_v30  ;;  %v6890_v59 = vld [vmem:[%s9977_s1 + $0xa0] sm:$0xff]   ;;  %6502 = vmatprep.subr.bf16.mxu0 %v6888_v37  ;;  %v474_v3 = vsel %vm7122_vm2, %v469_v55, %v473_v34  ;;  %v479_v7 = vrot.slane %v478_v56, 4  ;;  %v660_v11 = vor.u32 %v659_v61, %v656_v58  ;;  %v495_v17 = vshll.u32 %v7252_v60, 16  ;;  %v7293_v51 = vld [vmem:[%s7091_s6 + $0x3c] sm:$0xf]  ;;  %v6894_v55 = vld [vmem:[%s9977_s1 + $0x90] sm:$0xff]  }
  0x34   : > { %6438 = vmatprep.mubr.bf16.mxu1 %v5543_v54  ;;  %v670_v12 = vor.u32 %v669_v1, %v665_v63  ;;  %v675_v15 = vrot.slane %v673_v2, 5  ;;  %v488_v24 = vrot.slane %v486_v9, 4  ;;  %v491_v28 = vrot.slane %v489_v10, 5  ;;  %v7296_v54 = vld [vmem:[%s7091_s6 + $0x40] sm:$0xf] }
  0x35   : > { %v484_v23 = vsel %vm7122_vm2, %v479_v7, %v483_v49  ;;  %v499_v29 = vshrl.u32 %v7252_v60, 16  ;;  %v661_v34 = vrot.slane %v660_v11, 4  ;;  %v505_v43 = vshll.u32 %v7260_v16, 16  ;;  %v7303_v7 = vld [vmem:[%s7091_s6 + $0x44] sm:$0x1] }
  0x36   : > { %6455 = vmatpush3.bf16.msra.mxu1 %v6887_v30  ;;  %6503 = vmatpush3.bf16.msra.mxu0 %v6888_v37  ;;  %v6891_v30 = vld [vmem:[%s9977_s1 + $0x18] sm:$0xff]   ;;  %v5536_v33 = vcombine.low %v474_v3, %v484_v23  ;;  %v671_v35 = vrot.slane %v670_v12, 4  ;;  %v497_v37 = vrot.slane %v495_v17, 5  ;;  %v492_v41 = vor.u32 %v491_v28, %v488_v24  ;;  %v7315_v28 = vld [vmem:[%s7091_s6 + $0xa0] sm:$0xf] }
  0x37   : > { %6456 = vmatprep.subr.bf16.mxu1 %v6889_v52  ;;  %6504 = vmatprep.subr.bf16.mxu0 %v6890_v59  ;;  %v501_v42 = vrot.slane %v499_v29, 4  ;;  %v678_v45 = vshrl.u32 %v7264_v18, 16  ;;  %v666_v47 = vsel %vm7122_vm2, %v661_v34, %v665_v63  ;;  %v681_v49 = vshll.u32 %v7264_v18, 16  ;;  %v7306_v9 = vld [vmem:[%s7091_s6 + $0x9c] sm:$0xf]  ;;  %v6895_v29 = vld [vmem:[%s9977_s1 + $0x8] sm:$0xff]  }
  0x38   : > { %6423 = vmatmul.mubr.bf16.gmra.mxu0 %v5536_v33  ;;  %v676_v48 = vsel %vm7122_vm2, %v671_v35, %v675_v15  ;;  %v687_v50 = vshll.u32 %v7270_v31, 16  ;;  %v493_v58 = vrot.slane %v492_v41, 4  ;;  %v507_v63 = vrot.slane %v505_v43, 5  ;;  %v6896_v41 = vld [vmem:[%s9977_s1 + $0x88] sm:$0xff]  }
  0x39   : > { %v5544_v56 = vcombine.low %v666_v47, %v676_v48  ;;  %v502_v61 = vor.u32 %v501_v42, %v497_v37  ;;  %v683_v1 = vrot.slane %v681_v49, 5  ;;  %v691_v3 = vshrl.u32 %v7270_v31, 16 }
  0x3a   : > { %6457 = vmatpush3.bf16.msra.mxu1 %v6889_v52  ;;  %6505 = vmatpush3.bf16.msra.mxu0 %v6890_v59  ;;  %v680_v52 = vrot.slane %v678_v45, 4  ;;  %v689_v2 = vrot.slane %v687_v50, 5  ;;  %v498_v10 = vsel %vm7122_vm2, %v493_v58, %v497_v37  ;;  %v697_v11 = vshll.u32 %v7280_v44, 16 }
  0x3b   : > { %6458 = vmatprep.subr.bf16.mxu1 %v6891_v30  ;;  %6506 = vmatprep.subr.bf16.mxu0 %v6892_v38  ;;  %v503_v59 = vrot.slane %v502_v61, 4  ;;  %v510_v12 = vshrl.u32 %v7293_v51, 16  ;;  %v693_v17 = vrot.slane %v691_v3, 4  ;;  %v513_v23 = vshll.u32 %v7293_v51, 16  ;;  %v7331_v61 = vld [vmem:[%s7091_s6 + $0xa4] sm:$0x1] }
  0x3c   : > { %6439 = vmatmul.mubr.bf16.gmra.mxu1 %v5544_v56  ;;  %v684_v15 = vor.u32 %v683_v1, %v680_v52  ;;  %v519_v24 = vshll.u32 %v7296_v54, 16  ;;  %v699_v34 = vrot.slane %v697_v11, 5  ;;  %v523_v37 = vshrl.u32 %v7296_v54, 16 }
  0x3d   : > { %v508_v33 = vsel %vm7122_vm2, %v503_v59, %v507_v63  ;;  %v512_v35 = vrot.slane %v510_v12, 4  ;;  %v694_v43 = vor.u32 %v693_v17, %v689_v2  ;;  %v515_v45 = vrot.slane %v513_v23, 5  ;;  %v7336_v59 = vld [vmem:[%s7091_s6 + $0x48] sm:$0xf]  ;;  %v7345_v17 = vld [vmem:[%s7091_s6 + $0x4c] sm:$0xf] }
  0x3e   : > { %6459 = vmatpush3.bf16.msra.mxu1 %v6891_v30  ;;  %6507 = vmatpush3.bf16.msra.mxu0 %v6892_v38  ;;  %v5537_v42 = vcombine.low %v498_v10, %v508_v33  ;;  %v685_v30 = vrot.slane %v684_v15, 4  ;;  %v521_v47 = vrot.slane %v519_v24, 5  ;;  %v525_v48 = vrot.slane %v523_v37, 4 }
  0x3f   : > { %6460 = vmatprep.subr.bf16.mxu1 %v6893_v46  ;;  %6508 = vmatprep.subr.bf16.mxu0 %v6894_v55  ;;  %v529_v49 = vshll.u32 %v7303_v7, 16  ;;  %v702_v50 = vshrl.u32 %v7306_v9, 16  ;;  %v695_v56 = vrot.slane %v694_v43, 4  ;;  %v516_v58 = vor.u32 %v515_v45, %v512_v35 }
  0x40   : > { %6426 = vmatprep.mubr.bf16.mxu0 %v5537_v42  ;;  %v690_v38 = vsel %vm7122_vm2, %v685_v30, %v689_v2  ;;  %v705_v63 = vshll.u32 %v7306_v9, 16  ;;  %v526_v52 = vor.u32 %v525_v48, %v521_v47  ;;  %v711_v10 = vshll.u32 %v7315_v28, 16  ;;  %v6897_v2 = vld [vmem:[%s9977_s1] sm:$0xff]   ;;  %v7354_v30 = vld [vmem:[%s7091_s6 + $0x50] sm:$0x1] }
  0x41   : > { %v531_v1 = vrot.slane %v529_v49, 5  ;;  %v704_v3 = vrot.slane %v702_v50, 4  ;;  %v700_v11 = vsel %vm7122_vm2, %v695_v56, %v699_v34  ;;  %v517_v12 = vrot.slane %v516_v58, 4 }
  0x42   : > { %6461 = vmatpush3.bf16.msra.mxu1 %v6893_v46  ;;  %6509 = vmatpush3.bf16.msra.mxu0 %v6894_v55  ;;  %v707_v15 = vrot.slane %v705_v63, 5  ;;  %v715_v46 = vshrl.u32 %v7315_v28, 16  ;;  %v6898_v55 = vld [vmem:[%s9977_s1 + $0x80] sm:$0xff]   ;;  %v5545_v23 = vcombine.low %v690_v38, %v700_v11  ;;  %v527_v24 = vrot.slane %v526_v52, 4  ;;  %v7362_v38 = vld [vmem:[%s7091_s6 + $0xa8] sm:$0xf] }
  0x43   : > { %6462 = vmatprep.subr.bf16.mxu1 %v6895_v29  ;;  %6510 = vmatprep.subr.bf16.mxu0 %v6896_v41  ;;  %v713_v33 = vrot.slane %v711_v10, 5  ;;  %v721_v35 = vshll.u32 %v7331_v61, 16  ;;  %v522_v34 = vsel %vm7122_vm2, %v517_v12, %v521_v47  ;;  %v534_v43 = vshrl.u32 %v7336_v59, 16  ;;  %10012 = vst [vmem:[#allocation2_spill] sm:$0xff] %v7362_v38  ;;  %v7367_v47 = vld [vmem:[%s9977_s1 + $0xf8] sm:$0xff]  }
  0x44   : > { %v708_v37 = vor.u32 %v707_v15, %v704_v3  ;;  %v717_v42 = vrot.slane %v715_v46, 4  ;;  %6442 = vmatprep.mubr.bf16.mxu1 %v5545_v23  ;;  %v532_v45 = vsel %vm7122_vm2, %v527_v24, %v531_v1  ;;  %v537_v49 = vshll.u32 %v7336_v59, 16  ;;  %v7370_v52 = vld [vmem:[%s7091_s6 + $0xac] sm:$0xf]  ;;  %v7375_v1 = vld [vmem:[%s9977_s1 + $0x138] sm:$0xff]  }
  0x45   : > { %v723_v48 = vrot.slane %v721_v35, 5  ;;  %v543_v50 = vshll.u32 %v7345_v17, 16  ;;  %v536_v63 = vrot.slane %v534_v43, 4  ;;  %v547_v10 = vshrl.u32 %v7345_v17, 16  ;;  %v7380_v12 = vld [vmem:[%s7091_s6 + $0xb0] sm:$0x1] }
  0x46   : > { %6463 = vmatpush3.bf16.msra.mxu1 %v6895_v29  ;;  %6511 = vmatpush3.bf16.msra.mxu0 %v6896_v41  ;;  %v5538_v29 = vcombine.low %v522_v34, %v532_v45  ;;  %v709_v56 = vrot.slane %v708_v37, 4  ;;  %v718_v58 = vor.u32 %v717_v42, %v713_v33  ;;  %v539_v41 = vrot.slane %v537_v49, 5  ;;  %10013 = vst [vmem:[#allocation3_spill] sm:$0xff] %v7380_v12  ;;  %v7383_v15 = vld [vmem:[%s7091_s6 + $0x54] sm:$0xf] }
  0x47   : > { %6464 = vmatprep.subr.bf16.mxu1 %v6897_v2  ;;  %6512 = vmatprep.subr.bf16.mxu0 %v6898_v55  ;;  %v545_v3 = vrot.slane %v543_v50, 5  ;;  %v553_v11 = vshll.u32 %v7354_v30, 16  ;;  %v726_v24 = vshrl.u32 %v7362_v38, 16  ;;  %v729_v35 = vshll.u32 %v7362_v38, 16  ;;  %v7390_v34 = vld [vmem:[%s7091_s6 + $0x58] sm:$0xf] }
  0x48   : > { %6427 = vmatmul.mubr.bf16.gmra.mxu0 %v5538_v29  ;;  %v714_v46 = vsel %vm7122_vm2, %v709_v56, %v713_v33  ;;  %v719_v23 = vrot.slane %v718_v58, 4  ;;  %v540_v37 = vor.u32 %v539_v41, %v536_v63  ;;  %v549_v42 = vrot.slane %v547_v10, 4 }
  0x49   : > { %v555_v43 = vrot.slane %v553_v11, 5  ;;  %v735_v45 = vshll.u32 %v7370_v52, 16  ;;  %v728_v49 = vrot.slane %v726_v24, 4  ;;  %v731_v50 = vrot.slane %v729_v35, 5 }
  0x4a   : > { %6465 = vmatpush3.bf16.msra.mxu1 %v6897_v2  ;;  %6513 = vmatpush3.bf16.msra.mxu0 %v6898_v55  ;;  %v724_v33 = vsel %vm7122_vm2, %v719_v23, %v723_v48  ;;  %v739_v29 = vshrl.u32 %v7370_v52, 16  ;;  %v541_v56 = vrot.slane %v540_v37, 4  ;;  %v550_v58 = vor.u32 %v549_v42, %v545_v3  ;;  %v7399_v55 = vld [vmem:[%s7091_s6 + $0x5c] sm:$0x1]  ;;  %v7404_v48 = vld [vmem:[%s7091_s6 + $0xb4] sm:$0xf] }
  0x4b   : > { %6546 = vmatprep.subr.bf16.mxu1 %v7367_v47  ;;  %6594 = vmatprep.subr.bf16.mxu0 %v7375_v1  ;;  %v5546_v2 = vcombine.low %v714_v46, %v724_v33  ;;  %v737_v63 = vrot.slane %v735_v45, 5  ;;  %v732_v41 = vor.u32 %v731_v50, %v728_v49  ;;  %v745_v11 = vshll.u32 %v7380_v12, 16  ;;  %10014 = vst [vmem:[#allocation4_spill] sm:$0xff] %v7404_v48  ;;  %v7411_v37 = vld [vmem:[%s7091_s6 + $0xb8] sm:$0xf] }
  0x4c   : > { %v741_v10 = vrot.slane %v739_v29, 4  ;;  %v558_v21 = vshrl.u32 %v7383_v15, 16  ;;  %v546_v23 = vsel %vm7122_vm2, %v541_v56, %v545_v3  ;;  %v551_v24 = vrot.slane %v550_v58, 4  ;;  %10015 = vst [vmem:[#allocation5_spill] sm:$0xff] %v7411_v37  ;;  %v7417_v3 = vld [vmem:[%s7091_s6 + $0xbc] sm:$0x1] }
  0x4d   : > { %6443 = vmatmul.mubr.bf16.gmra.mxu1 %v5546_v2  ;;  %v561_v46 = vshll.u32 %v7383_v15, 16  ;;  %v567_v35 = vshll.u32 %v7390_v34, 16  ;;  %v733_v42 = vrot.slane %v732_v41, 4  ;;  %v747_v33 = vrot.slane %v745_v11, 5  ;;  %10016 = vst [vmem:[#allocation6_spill] sm:$0xff] %v7417_v3 }
  0x4e   : > { %v742_v45 = vor.u32 %v741_v10, %v737_v63  ;;  %v560_v49 = vrot.slane %v558_v21, 4  ;;  %v556_v50 = vsel %vm7122_vm2, %v551_v24, %v555_v43  ;;  %v571_v62 = vshrl.u32 %v7390_v34, 16  ;;  %v1368_v10 = vld [vmem:[%s7091_s6] sm:$0xe] }
  0x4f   : > { %v563_v29 = vrot.slane %v561_v46, 5  ;;  %v569_v2 = vrot.slane %v567_v35, 5  ;;  %v5539_v56 = vcombine.low %v546_v23, %v556_v50  ;;  %v738_v58 = vsel %vm7122_vm2, %v733_v42, %v737_v63 }
  0x50   : > { %v743_v20 = vrot.slane %v742_v45, 4  ;;  %v577_v41 = vshll.u32 %v7399_v55, 16  ;;  %v573_v21 = vrot.slane %v571_v62, 4  ;;  %v750_v12 = vshrl.u32 %v7404_v48, 16 }
  0x51   : > { %v564_v11 = vor.u32 %v563_v29, %v560_v49  ;;  %v753_v43 = vshll.u32 %v7404_v48, 16  ;;  %6430 = vmatprep.mubr.bf16.mxu0 %v5539_v56  ;;  %v759_v46 = vshll.u32 %v7411_v37, 16  ;;  %v763_v63 = vshrl.u32 %v7411_v37, 16  ;;  %v1369_v49 = vld [vmem:[%s7091_s6 + $0xc] sm:$0xe] }
  0x52   : > { %v748_v24 = vsel %vm7122_vm2, %v743_v20, %v747_v33  ;;  %v579_v23 = vrot.slane %v577_v41, 5  ;;  %v574_v45 = vor.u32 %v573_v21, %v569_v2  ;;  %v752_v50 = vrot.slane %v750_v12, 4  ;;  %v1370_v20 = vld [vmem:[%s7091_s6 + $0x18] sm:$0xe] }
  0x53   : > { %v5547_v35 = vcombine.low %v738_v58, %v748_v24  ;;  %v565_v42 = vrot.slane %v564_v11, 4  ;;  %v755_v62 = vrot.slane %v753_v43, 5  ;;  %v761_v29 = vrot.slane %v759_v46, 5 }
  0x54   : > { %v765_v38 = vrot.slane %v763_v63, 4  ;;  %v769_v48 = vshll.u32 %v7417_v3, 16  ;;  %v575_v58 = vrot.slane %v574_v45, 4  ;;  %v5581_v41 = vrot.slane %v1368_v10, 9 }
  0x55   : > { %6446 = vmatprep.mubr.bf16.mxu1 %v5547_v35  ;;  %v570_v33 = vsel %vm7122_vm2, %v565_v42, %v569_v2  ;;  %v1421_v12 = vrot.slane %v7100_v5, 5  ;;  %v756_v11 = vor.u32 %v755_v62, %v752_v50  ;;  %v5582_v24 = vrot.slane %v1369_v49, 9 }
  0x56   : > { %v766_v21 = vor.u32 %v765_v38, %v761_v29  ;;  %v771_v43 = vrot.slane %v769_v48, 5  ;;  %v580_v46 = vsel %vm7122_vm2, %v575_v58, %v579_v23  ;;  %v1428_v35 = vrot.slane %v7127_v32, 5 }
  0x57   : > { %v1422_v63 = vsel %vm7433_vm5, %v5581_v41, %v1421_v12  ;;  %v1423_v3 = vrot.slane %v1421_v12, 4  ;;  %v5540_v37 = vcombine.low %v570_v33, %v580_v46  ;;  %v757_v2 = vrot.slane %v756_v11, 4  ;;  %v1372_v12 = vld [vmem:[%s7091_s6 + $0x30] sm:$0xe]  ;;  %v1374_v46 = vld [vmem:[%s7091_s6 + $0x48] sm:$0xe] }
  0x58   : > { %v767_v42 = vrot.slane %v766_v21, 4  ;;  %v5557_v10 = vcombine.low %v7097_v4, %v7100_v5  ;;  %v10019_v38 = vrot.slane %v7103_v6, 5  ;;  %v1430_v45 = vrot.slane %v1428_v35, 4 }
  0x59   : > { %v5583_v23 = vrot.slane %v1370_v20, 9  ;;  %6431 = vmatmul.mubr.bf16.gmra.mxu0 %v5540_v37  ;;  %v762_v50 = vsel %vm7122_vm2, %v757_v2, %v761_v29  ;;  %v1435_v33 = vrot.slane %v7164_v19, 5  ;;  %v1429_v4 = vsel %vm7433_vm5, %v5582_v24, %v1428_v35  ;;  %v1373_v24 = vld [vmem:[%s7091_s6 + $0x3c] sm:$0xe] }
  0x5a   : > { %v1425_v48 = vsel %vm7433_vm5, %v1423_v3, %v10019_v38  ;;  %v772_v49 = vsel %vm7122_vm2, %v767_v42, %v771_v43  ;;  %v10020_v5 = vrot.slane %v7133_v40, 5  ;;  %v1438_v37 = vrot.slane %v7169_v25, 5  ;;  %v1371_v3 = vld [vmem:[%s7091_s6 + $0x24] sm:$0xe]  ;;  %v6906_v25 = vld [vmem:[%s9977_s1 + $0x130] sm:$0xff]  }
  0x5b   : > { %v5613_v62 = vcombine.low %v1422_v63, %v1425_v48  ;;  %v5548_v58 = vcombine.low %v762_v50, %v772_v49  ;;  %v1436_v29 = vsel %vm7433_vm5, %v5583_v23, %v1435_v33  ;;  %v1437_v20 = vrot.slane %v1435_v33, 4  ;;  %v6905_v23 = vld [vmem:[%s9977_s1 + $0xf0] sm:$0xff]  }
  0x5c   : > { %v1432_v6 = vsel %vm7433_vm5, %v1430_v45, %v10020_v5  ;;  %v1442_v41 = vrot.slane %v7205_v0, 5  ;;  %v5584_v21 = vrot.slane %v1371_v3, 9  ;;  %v1449_v43 = vrot.slane %v7252_v60, 5  ;;  %v7508_v3 = vld [vmem:[%s7091_s6 + $0x68] sm:$0x1] }
  0x5d   : > { %6514 = vmatprep.mubr.bf16.mxu0 %v5613_v62  ;;  %6447 = vmatmul.mubr.bf16.gmra.mxu1 %v5548_v58  ;;  %v5614_v11 = vcombine.low %v1429_v4, %v1432_v6  ;;  %v1439_v40 = vsel %vm7433_vm5, %v1437_v20, %v1438_v37  ;;  %v1445_v2 = vrot.slane %v7208_v8, 5  ;;  %v5585_v42 = vrot.slane %v1372_v12, 9  ;;  %v1375_v37 = vld [vmem:[%s7091_s6 + $0x54] sm:$0xe]  ;;  %v7532_v12 = vld [vmem:[%s7091_s6 + $0x60] sm:$0xe] }
  0x5e   : > { %6466 = vmatprep.mubr.bf16.mxu1 %v5557_v10  ;;  %v5615_v63 = vcombine.low %v1436_v29, %v1439_v40  ;;  %v1444_v35 = vrot.slane %v1442_v41, 4  ;;  %v1451_v38 = vrot.slane %v1449_v43, 4  ;;  %v1452_v10 = vrot.slane %v7260_v16, 5 }
  0x5f   : > { %v1456_v48 = vrot.slane %v7296_v54, 5  ;;  %v5559_v45 = vcombine.low %v7156_v14, %v7164_v19  ;;  %v1463_v50 = vrot.slane %v7345_v17, 5  ;;  %v5586_v49 = vrot.slane %v1373_v24, 9  ;;  %v6914_v24 = vld [vmem:[%s9977_s1 + $0x120] sm:$0xff]  }
  0x60   : > { %v1459_v8 = vrot.slane %v7303_v7, 5  ;;  %v5587_v33 = vrot.slane %v1374_v46, 9  ;;  %v1443_v14 = vsel %vm7433_vm5, %v5584_v21, %v1442_v41  ;;  %v1446_v19 = vsel %vm7433_vm5, %v1444_v35, %v1445_v2  ;;  %v7544_v46 = vld [vmem:[%s7091_s6 + $0x78] sm:$0xe]  ;;  %v6913_v2 = vld [vmem:[%s9977_s1 + $0xe0] sm:$0xff]  }
  0x61   : > { %6515 = vmatmul.mubr.bf16.vlgmr.msra.gmra.mxu0 %v5614_v11  ;;  %v1458_v62 = vrot.slane %v1456_v48, 4  ;;  %v1465_v16 = vrot.slane %v1463_v50, 4  ;;  %v1466_v58 = vrot.slane %v7354_v30, 5  ;;  %v1450_v4 = vsel %vm7433_vm5, %v5585_v42, %v1449_v43  ;;  %v7535_v11 = vld [vmem:[%s7091_s6 + $0x6c] sm:$0xe] }
  0x62   : > { %6595 = vmatpush3.bf16.msra.mxu0 %v7375_v1  ;;  %6518 = vmatprep.mubr.bf16.mxu0 %v5615_v63  ;;  %v1453_v7 = vsel %vm7433_vm5, %v1451_v38, %v1452_v10  ;;  %v6910_v1 = vld [vmem:[%s9977_s1 + $0x128] sm:$0xff]   ;;  %v1470_v5 = vrot.slane %v7390_v34, 5  ;;  %v10021_v6 = vcombine.low %v7118_v26, %v7127_v32  ;;  %v5560_v30 = vcombine.low %v7196_v57, %v7205_v0  ;;  %v1379_v63 = vld [vmem:[%s7091_s6 + $0x84] sm:$0xe]  ;;  %v1380_v42 = vld [vmem:[%s7091_s6 + $0x90] sm:$0xe] }
  0x63   : > { %6596 = vmatprep.subr.bf16.mxu0 %v6906_v25  ;;  %v1480_v29 = vrot.slane %v7508_v3, 5  ;;  %v5616_v20 = vcombine.low %v1443_v14, %v1446_v19  ;;  %v7514_v41 = vsel %vm7433_vm5, %v5586_v49, %v1456_v48  ;;  %v7518_v26 = vsel %vm7433_vm5, %v1458_v62, %v1459_v8  ;;  %v6909_v32 = vld [vmem:[%s9977_s1 + $0xe8] sm:$0xff]   ;;  %v7563_v48 = vld [vmem:[%s7091_s6 + $0x64] sm:$0xf]  ;;  %v1381_v49 = vld [vmem:[%s7091_s6 + $0x9c] sm:$0xe] }
  0x64   : > { %v5617_v57 = vcombine.low %v1450_v4, %v1453_v7  ;;  %v7525_v0 = vsel %vm7433_vm5, %v5587_v33, %v1463_v50  ;;  %v5561_v40 = vcombine.low %v7243_v53, %v7252_v60  ;;  %v5588_v21 = vrot.slane %v1375_v37, 9  ;;  %v7585_v4 = vld [vmem:[%s7091_s6 + $0x74] sm:$0x1] }
  0x65   : > { %6467 = vmatmul.mubr.bf16.vlgmr.msra.gmra.mxu1 %v10021_v6  ;;  %v1473_v43 = vrot.slane %v7399_v55, 5  ;;  %v5562_v35 = vcombine.low %v7293_v51, %v7296_v54  ;;  %v5618_v53 = vcombine.low %v7514_v41, %v7518_v26  ;;  %v5563_v60 = vcombine.low %v7336_v59, %v7345_v17  ;;  %v6999_v54 = vld [vmem:[%s7091_s6 + $0x80] sm:$0x1] }
  0x66   : > { %6547 = vmatpush3.bf16.msra.mxu1 %v7367_v47  ;;  %6470 = vmatprep.mubr.bf16.mxu1 %v5559_v45  ;;  %v7529_v47 = vsel %vm7433_vm5, %v1465_v16, %v1466_v58  ;;  %v5564_v55 = vcombine.low %v7383_v15, %v7390_v34  ;;  %v5589_v10 = vrot.slane %v7532_v12, 9  ;;  %v1477_v45 = vrot.slane %v7563_v48, 5  ;;  %v7581_v16 = vld [vmem:[%s7091_s6 + $0x70] sm:$0xf]  ;;  %v7000_v17 = vld [vmem:[%s7091_s6 + $0x60] sm:$0xf] }
  0x67   : > { %6548 = vmatprep.subr.bf16.mxu1 %v6905_v23  ;;  %6597 = vmatpush3.bf16.msra.mxu0 %v6906_v25  ;;  %v1472_v25 = vrot.slane %v1470_v5, 4  ;;  %v5619_v38 = vcombine.low %v7525_v0, %v7529_v47  ;;  %v5590_v62 = vrot.slane %v7535_v11, 9  ;;  %v1498_v8 = vrot.slane %v7219_v22, 5  ;;  %v1382_v0 = vld [vmem:[%s7091_s6 + $0xa8] sm:$0xe]  ;;  %v7765_v15 = vld [vmem:[%s9977_s1 + $0x1b8] sm:$0xff]  }
  0x68   : > { %6598 = vmatprep.subr.bf16.mxu0 %v6910_v1  ;;  %v1501_v33 = vrot.slane %v7228_v36, 5  ;;  %v7574_v14 = vsel %vm7433_vm5, %v5588_v21, %v1470_v5  ;;  %v1484_v58 = vrot.slane %v7581_v16, 5  ;;  %v1487_v7 = vrot.slane %v7585_v4, 5  ;;  %v6917_v36 = vld [vmem:[%s9977_s1 + $0xd8] sm:$0xff]  }
  0x69   : > { %6519 = vmatmul.mubr.bf16.gmra.mxu0 %v5616_v20  ;;  %v7578_v19 = vsel %vm7433_vm5, %v1472_v25, %v1473_v43  ;;  %v5591_v5 = vrot.slane %v7544_v46, 9  ;;  %v1500_v37 = vrot.slane %v1498_v8, 4  ;;  %v5593_v41 = vrot.slane %v1380_v42, 9  ;;  %v5709_v42 = vld [vmem:[%s7091_s6 + $0xc] sm:$0xf] }
  0x6a   : > { %6549 = vmatpush3.bf16.msra.mxu1 %v6905_v23  ;;  %6522 = vmatprep.mubr.bf16.mxu0 %v5617_v57  ;;  %v5592_v23 = vrot.slane %v1379_v63, 9  ;;  %v1505_v26 = vrot.slane %v7270_v31, 5  ;;  %v1508_v57 = vrot.slane %v7280_v44, 5  ;;  %v1491_v47 = vrot.slane %v7178_v39, 5 }
  0x6b   : > { %6550 = vmatprep.subr.bf16.mxu1 %v6909_v32  ;;  %6599 = vmatpush3.bf16.msra.mxu0 %v6910_v1  ;;  %v6918_v1 = vld [vmem:[%s9977_s1 + $0x118] sm:$0xff]   ;;  %v7609_v21 = vsel %vm7433_vm5, %v1500_v37, %v1501_v33  ;;  %v1512_v63 = vrot.slane %v7315_v28, 5  ;;  %v5595_v33 = vrot.slane %v1382_v0, 9  ;;  %v1519_v37 = vrot.slane %v7370_v52, 5  ;;  %v6921_v0 = vld [vmem:[%s9977_s1 + $0xd0] sm:$0xff]  }
  0x6c   : > { %6600 = vmatprep.subr.bf16.mxu0 %v6914_v24  ;;  %v7597_v6 = vsel %vm7433_vm5, %v5592_v23, %v1498_v8  ;;  %v7617_v44 = vsel %vm7433_vm5, %v5593_v41, %v1505_v26  ;;  %v1507_v43 = vrot.slane %v1505_v26, 4  ;;  %v6922_v23 = vld [vmem:[%s9977_s1 + $0x110] sm:$0xff]   ;;  %v1515_v8 = vrot.slane %v7331_v61, 5  ;;  %v10023_v61 = vld [vmem:[#allocation3_spill] sm:$0xff] }
  0x6d   : > { %6471 = vmatmul.mubr.bf16.gmra.mxu1 %v5560_v30  ;;  %v1479_v30 = vrot.slane %v1477_v45, 4  ;;  %v1514_v20 = vrot.slane %v1512_v63, 4  ;;  %v1522_v50 = vrot.slane %v10023_v61, 5  ;;  %v1478_v61 = vsel %vm7433_vm5, %v5589_v10, %v1477_v45  ;;  %v5712_v45 = vld [vmem:[%s7091_s6 + $0x18] sm:$0xf] }
  0x6e   : > { %6474 = vmatprep.mubr.bf16.mxu1 %v5561_v40  ;;  %6551 = vmatpush3.bf16.msra.mxu1 %v6909_v32  ;;  %v5594_v40 = vrot.slane %v1381_v49, 9  ;;  %v7629_v32 = vld [vmem:[%s7091_s6 + $0x10] sm:$0xf]  ;;  %v7633_v41 = vsel %vm7433_vm5, %v1507_v43, %v1508_v57  ;;  %v1521_v57 = vrot.slane %v1519_v37, 4  ;;  %v2289_v12 = vshrl.u32 %v5709_v42, 16 }
  0x6f   : > { %6552 = vmatprep.subr.bf16.mxu1 %v6913_v2  ;;  %6601 = vmatpush3.bf16.msra.mxu0 %v6914_v24  ;;  %v10022_v24 = vld [vmem:[#allocation2_spill] sm:$0xff]  ;;  %v10025_v43 = vld [vmem:[#allocation4_spill] sm:$0xff]  ;;  %v2292_v10 = vshll.u32 %v5709_v42, 16  ;;  %v1486_v51 = vrot.slane %v1484_v58, 4  ;;  %v2298_v59 = vshll.u32 %v7629_v32, 16  ;;  %v1492_v4 = vsel %vm7433_vm5, %v5591_v5, %v1491_v47 }
  0x70   : > { %6602 = vmatprep.subr.bf16.mxu0 %v6918_v1  ;;  %v7637_v26 = vsel %vm7433_vm5, %v5594_v40, %v1512_v63  ;;  %v10024_v40 = vld [vmem:[#allocation5_spill] sm:$0xff]  ;;  %v7703_v42 = vld [vmem:[%s7091_s6 + $0x14] sm:$0x1]  ;;  %v2291_v63 = vrot.slane %v2289_v12, 4  ;;  %v10027_v5 = vld [vmem:[#allocation6_spill] sm:$0xff] }
  0x71   : > { %6523 = vmatmul.mubr.bf16.gmra.mxu0 %v5618_v53  ;;  %v2294_v49 = vrot.slane %v2292_v10, 5  ;;  %v5715_v53 = vld [vmem:[%s7091_s6 + $0x24] sm:$0xf]  ;;  %v1488_v11 = vsel %vm7433_vm5, %v1486_v51, %v1487_v7 }
  0x72   : > { %6553 = vmatpush3.bf16.msra.mxu1 %v6913_v2  ;;  %6526 = vmatprep.mubr.bf16.mxu0 %v5619_v38  ;;  %v7647_v2 = vsel %vm7433_vm5, %v5595_v33, %v1519_v37  ;;  %v5620_v38 = vcombine.low %v7574_v14, %v7578_v19  ;;  %v1481_v33 = vsel %vm7433_vm5, %v1479_v30, %v1480_v29  ;;  %v6926_v14 = vld [vmem:[%s9977_s1 + $0x108] sm:$0xff]   ;;  %v6930_v30 = vld [vmem:[%s9977_s1 + $0x100] sm:$0xff]   ;;  %v7722_v19 = vrot.slane %v2298_v59, 5 }
  0x73   : > { %6554 = vmatprep.subr.bf16.mxu1 %v6917_v36  ;;  %6603 = vmatpush3.bf16.msra.mxu0 %v6918_v1  ;;  %v7665_v37 = vsel %vm7433_vm5, %v1514_v20, %v1515_v8  ;;  %v7677_v29 = vsel %vm7433_vm5, %v1521_v57, %v1522_v50  ;;  %v6925_v50 = vld [vmem:[%s9977_s1 + $0xc8] sm:$0xff]   ;;  %v7692_v1 = vld [vmem:[%s7091_s6 + $0xb4] sm:$0xe]  ;;  %v5621_v20 = vcombine.low %v1478_v61, %v1481_v33  ;;  %v2302_v8 = vshrl.u32 %v7629_v32, 16  ;;  %v7720_v61 = vld [vmem:[%s7091_s6 + $0x1c] sm:$0xf] }
  0x74   : > { %6604 = vmatprep.subr.bf16.mxu0 %v6922_v23  ;;  %v7707_v57 = vld [vmem:[%s7091_s6 + $0x6c] sm:$0xf]  ;;  %v2313_v33 = vshrl.u32 %v5712_v45, 16  ;;  %v2322_v51 = vshll.u32 %v7720_v61, 16  ;;  %v2326_v39 = vshrl.u32 %v7720_v61, 16  ;;  %v2337_v59 = vshrl.u32 %v5715_v53, 16 }
  0x75   : > { %6475 = vmatmul.mubr.bf16.gmra.mxu1 %v5562_v35  ;;  %v1494_v35 = vrot.slane %v6999_v54, 5  ;;  %v5566_v54 = vcombine.low %v7707_v57, %v7581_v16  ;;  %v2304_v3 = vrot.slane %v2302_v8, 4  ;;  %v2340_v46 = vshll.u32 %v5715_v53, 16  ;;  %v7003_v8 = vld [vmem:[%s7091_s6 + $0x7c] sm:$0xf] }
  0x76   : > { %6478 = vmatprep.mubr.bf16.mxu1 %v5563_v60  ;;  %6555 = vmatpush3.bf16.msra.mxu1 %v6917_v36  ;;  %v5565_v60 = vcombine.low %v7000_v17, %v7563_v48  ;;  %v1493_v36 = vrot.slane %v1491_v47, 4  ;;  %v7717_v48 = vsel %vm7433_vm5, %v5590_v62, %v1484_v58  ;;  %v2316_v17 = vshll.u32 %v5712_v45, 16  ;;  %v6929_v58 = vld [vmem:[%s9977_s1 + $0xc0] sm:$0xff]   ;;  %v7747_v45 = vld [vmem:[%s7091_s6 + $0x28] sm:$0xf] }
  0x77   : > { %6556 = vmatprep.subr.bf16.mxu1 %v6921_v0  ;;  %6605 = vmatpush3.bf16.msra.mxu0 %v6922_v23  ;;  %v9991_v62 = vrot.slane %v10024_v40, 5  ;;  %v7734_v23 = vld [vmem:[%s7091_s6 + $0x20] sm:$0x1]  ;;  %v2315_v12 = vrot.slane %v2313_v33, 4  ;;  %10026 = vst [vmem:[#allocation2_spill] sm:$0xff] %v7747_v45  ;;  %v5622_v34 = vcombine.low %v7717_v48, %v1488_v11  ;;  %v2346_v53 = vshll.u32 %v7747_v45, 16 }
  0x78   : > { %6606 = vmatprep.subr.bf16.mxu0 %v6926_v14  ;;  %v2318_v10 = vrot.slane %v2316_v17, 5  ;;  %v1495_v7 = vsel %vm7433_vm5, %v1493_v36, %v1494_v35  ;;  %v2295_v35 = vor.u32 %v2294_v49, %v2291_v63  ;;  %v7760_v36 = vld [vmem:[%s9977_s1 + $0x178] sm:$0xff]   ;;  %v5718_v63 = vld [vmem:[%s7091_s6 + $0x30] sm:$0xf]  ;;  %v7781_v48 = vld [vmem:[%s7091_s6 + $0x34] sm:$0xf] }
  0x79   : > { %6527 = vmatmul.mubr.bf16.gmra.mxu0 %v5620_v38  ;;  %v2308_v38 = vshll.u32 %v7703_v42, 16  ;;  %v5623_v17 = vcombine.low %v1492_v4, %v1495_v7  ;;  %10029 = vst [vmem:[#allocation5_spill] sm:$0xff] %v7781_v48  ;;  %v7783_v11 = vrot.slane %v2322_v51, 5  ;;  %v2342_v47 = vrot.slane %v2340_v46, 5  ;;  %v7802_v46 = vld [vmem:[%s7091_s6 + $0x40] sm:$0xf] }
  0x7a   : > { %6557 = vmatpush3.bf16.msra.mxu1 %v6921_v0  ;;  %6530 = vmatprep.mubr.bf16.mxu0 %v5621_v20  ;;  %v2305_v20 = vor.u32 %v2304_v3, %v7722_v19  ;;  %v2319_v49 = vor.u32 %v2318_v10, %v2315_v12  ;;  %v7002_v3 = vld [vmem:[%s7091_s6 + $0x78] sm:$0xf]  ;;  %v2328_v12 = vrot.slane %v2326_v39, 4  ;;  %v2339_v10 = vrot.slane %v2337_v59, 4  ;;  %10030 = vst [vmem:[#allocation4_spill] sm:$0xff] %v7802_v46 }
  0x7b   : > { %6558 = vmatprep.subr.bf16.mxu1 %v6925_v50  ;;  %6607 = vmatpush3.bf16.msra.mxu0 %v6926_v14  ;;  %v2332_v14 = vshll.u32 %v7734_v23, 16  ;;  %v5567_v33 = vcombine.low %v7002_v3, %v7003_v8  ;;  %v7774_v25 = vrot.slane %v2308_v38, 5  ;;  %v7786_v0 = vld [vmem:[%s7091_s6 + $0x38] sm:$0x1]  ;;  %v7788_v4 = vrot.slane %v2295_v35, 4 }
  0x7c   : > { %6608 = vmatprep.subr.bf16.mxu0 %v6930_v30  ;;  %v7790_v7 = vrot.slane %v2305_v20, 4  ;;  %v2361_v3 = vshrl.u32 %v5718_v63, 16  ;;  %v5721_v8 = vld [vmem:[%s7091_s6 + $0x3c] sm:$0xf]  ;;  %v7798_v51 = vrot.slane %v2346_v53, 5  ;;  %v2364_v39 = vshll.u32 %v5718_v63, 16 }
  0x7d   : > { %6479 = vmatmul.mubr.bf16.gmra.mxu1 %v5564_v55  ;;  %v1528_v55 = vrot.slane %v9991_v62, 4  ;;  %v7792_v38 = vrot.slane %v2332_v14, 5  ;;  %v2370_v59 = vshll.u32 %v7781_v48, 16  ;;  %v2374_v20 = vshrl.u32 %v7781_v48, 16 }
  0x7e   : > { %6482 = vmatprep.mubr.bf16.mxu1 %v5565_v60  ;;  %6559 = vmatpush3.bf16.msra.mxu1 %v6925_v50  ;;  %v7777_v60 = vld [vmem:[%s7091_s6 + $0x2c] sm:$0x1]  ;;  %v2350_v50 = vshrl.u32 %v7747_v45, 16  ;;  %v2329_v14 = vor.u32 %v2328_v12, %v7783_v11  ;;  %v2363_v53 = vrot.slane %v2361_v3, 4  ;;  %v2366_v63 = vrot.slane %v2364_v39, 5 }
  0x7f   : > { %6560 = vmatprep.subr.bf16.mxu1 %v6929_v58  ;;  %10028 = vst [vmem:[#allocation3_spill] sm:$0xff] %v7777_v60  ;;  %6609 = vmatpush3.bf16.msra.mxu0 %v6930_v30  ;;  %v7796_v30 = vrot.slane %v2319_v49, 4  ;;  %v2385_v49 = vshrl.u32 %v5721_v8, 16  ;;  %v2388_v62 = vshll.u32 %v5721_v8, 16  ;;  %v2376_v48 = vrot.slane %v2374_v20, 4 }
  0x80   : > { %6690 = vmatprep.subr.bf16.mxu0 %v7765_v15  ;;  %v2352_v35 = vrot.slane %v2350_v50, 4  ;;  %v7812_v50 = vrot.slane %v2370_v59, 5  ;;  %v7815_v45 = vld [vmem:[%s7091_s6 + $0x44] sm:$0x1]  ;;  %v2398_v12 = vshrl.u32 %v7802_v46, 16  ;;  %v10031_v16 = vrot.slane %v10024_v40, 5 }
  0x81   : > { %6531 = vmatmul.mubr.bf16.gmra.mxu0 %v5622_v34  ;;  %v2356_v34 = vshll.u32 %v7777_v60, 16  ;;  %v10032_v57 = vrot.slane %v7692_v1, 9  ;;  %v7836_v39 = vld [vmem:[%s7091_s6 + $0x4c] sm:$0xf]  ;;  %v2387_v59 = vrot.slane %v2385_v49, 4  ;;  %v2390_v20 = vrot.slane %v2388_v62, 5 }
  0x82   : > { %6561 = vmatpush3.bf16.msra.mxu1 %v6929_v58  ;;  %6534 = vmatprep.mubr.bf16.mxu0 %v5623_v17  ;;  %v2343_v58 = vor.u32 %v2342_v47, %v2339_v10  ;;  %v2380_v17 = vshll.u32 %v7786_v0, 16  ;;  %v2394_v47 = vshll.u32 %v7802_v46, 16  ;;  %v5724_v10 = vld [vmem:[%s7091_s6 + $0x48] sm:$0xf]  ;;  %v2353_v8 = vor.u32 %v2352_v35, %v7798_v51 }
  0x83   : > { %6642 = vmatprep.subr.bf16.mxu1 %v7760_v36  ;;  %v2400_v1 = vrot.slane %v2398_v12, 4  ;;  %v7840_v46 = vrot.slane %v2329_v14, 4  ;;  %v2301_v62 = vsel %vm7122_vm2, %v7788_v4, %v7722_v19  ;;  %v2311_v35 = vsel %vm7122_vm2, %v7790_v7, %v7774_v25  ;;  %v5727_v4 = vld [vmem:[%s7091_s6 + $0x54] sm:$0xf] }
  0x84   : > { %v7838_v60 = vrot.slane %v2394_v47, 5  ;;  %v2412_v14 = vshll.u32 %v5724_v10, 16  ;;  %v2404_v49 = vshll.u32 %v7815_v45, 16  ;;  %v2422_v19 = vshrl.u32 %v7836_v39, 16 }
  0x85   : > { %6483 = vmatmul.mubr.bf16.gmra.mxu1 %v5566_v54  ;;  %v7826_v54 = vsel %vm7433_vm5, %v10032_v57, %v10031_v16  ;;  %v7842_v16 = vrot.slane %v2343_v58, 4  ;;  %v7844_v57 = vrot.slane %v2356_v34, 5  ;;  %v2418_v58 = vshll.u32 %v7836_v39, 16 }
  0x86   : > { %6486 = vmatprep.mubr.bf16.mxu1 %v5567_v33  ;;  %v10033_v33 = vrot.slane %v10027_v5, 5  ;;  %v2409_v5 = vshrl.u32 %v5724_v10, 16  ;;  %v10035_v34 = vcombine.low %v7617_v44, %v7633_v41  ;;  %v7865_v47 = vrot.slane %v2353_v8, 4  ;;  %v7871_v10 = vld [vmem:[%s7091_s6 + $0x58] sm:$0xf] }
  0x87   : > { %v7867_v12 = vrot.slane %v2380_v17, 5  ;;  %v2391_v25 = vor.u32 %v2390_v20, %v2387_v59  ;;  %v2401_v7 = vor.u32 %v2400_v1, %v7838_v60  ;;  %v10036_v44 = vcombine.low %v7212_v13, %v7219_v22  ;;  %v7877_v41 = vld [vmem:[%s7091_s6 + $0x50] sm:$0x1] }
  0x88   : > { %v7832_v3 = vsel %vm7433_vm5, %v1528_v55, %v10033_v33  ;;  %v10034_v55 = vcombine.low %v7597_v6, %v7609_v21  ;;  %v2367_v6 = vor.u32 %v2366_v63, %v2363_v53  ;;  %v2377_v21 = vor.u32 %v2376_v48, %v7812_v50 }
  0x89   : > { %v2411_v48 = vrot.slane %v2409_v5, 4  ;;  %v2414_v53 = vrot.slane %v2412_v14, 5  ;;  %v7879_v63 = vrot.slane %v2418_v58, 5  ;;  %v2424_v17 = vrot.slane %v2422_v19, 4  ;;  %v5730_v5 = vld [vmem:[%s7091_s6 + $0x60] sm:$0xf] }
  0x8a   : > { %6535 = vmatmul.mubr.bf16.gmra.mxu0 %v10034_v55  ;;  %v10037_v33 = vcombine.low %v7264_v18, %v7270_v31  ;;  %v2433_v8 = vshrl.u32 %v5727_v4, 16  ;;  %v2436_v59 = vshll.u32 %v5727_v4, 16  ;;  %v7884_v20 = vrot.slane %v2367_v6, 4  ;;  %v7901_v31 = vld [vmem:[%s7091_s6 + $0x64] sm:$0xf] }
  0x8b   : > { %6538 = vmatprep.mubr.bf16.mxu0 %v10035_v34  ;;  %v7886_v1 = vrot.slane %v2377_v21, 4  ;;  %v7888_v13 = vrot.slane %v2404_v49, 5  ;;  %v2442_v22 = vshll.u32 %v7871_v10, 16  ;;  %v5628_v55 = vcombine.low %v7826_v54, %v7832_v3  ;;  %v7897_v34 = vld [vmem:[%s7091_s6 + $0x5c] sm:$0x1] }
  0x8c   : > { %v5773_v14 = vcombine.low %v2301_v62, %v2311_v35  ;;  %v7894_v58 = vrot.slane %v2391_v25, 4  ;;  %v2446_v18 = vshrl.u32 %v7871_v10, 16  ;;  %v7903_v6 = vrot.slane %v2401_v7, 4 }
  0x8d   : > { %6487 = vmatmul.mubr.bf16.gmra.mxu1 %v10036_v44  ;;  %v2428_v21 = vshll.u32 %v7877_v41, 16  ;;  %v2457_v49 = vshrl.u32 %v5730_v5, 16  ;;  %v2460_v19 = vshll.u32 %v5730_v5, 16  ;;  %v10038_v4 = vcombine.low %v7637_v26, %v7665_v37 }
  0x8e   : > { %6490 = vmatprep.mubr.bf16.mxu1 %v10037_v33  ;;  %v2415_v54 = vor.u32 %v2414_v53, %v2411_v48  ;;  %v2425_v3 = vor.u32 %v2424_v17, %v7879_v63  ;;  %v2435_v62 = vrot.slane %v2433_v8, 4  ;;  %v2438_v35 = vrot.slane %v2436_v59, 5  ;;  %v7941_v8 = vld [vmem:[%s7091_s6 + $0x70] sm:$0xf] }
  0x8f   : > { %v10039_v25 = vcombine.low %v7647_v2, %v7677_v29  ;;  %v7913_v7 = vrot.slane %v2442_v22, 5  ;;  %v2448_v44 = vrot.slane %v2446_v18, 4  ;;  %v2452_v33 = vshll.u32 %v7897_v34, 16 }
  0x90   : > { %v2466_v26 = vshll.u32 %v7901_v31, 16  ;;  %v2325_v37 = vsel %vm7122_vm2, %v7796_v30, %v7783_v11  ;;  %v2335_v2 = vsel %vm7122_vm2, %v7840_v46, %v7792_v38  ;;  %v2459_v29 = vrot.slane %v2457_v49, 4  ;;  %v5733_v46 = vld [vmem:[%s7091_s6 + $0x6c] sm:$0xf] }
  0x91   : > { %v2462_v48 = vrot.slane %v2460_v19, 5  ;;  %v10040_v53 = vcombine.low %v7306_v9, %v7315_v28  ;;  %v2349_v17 = vsel %vm7122_vm2, %v7842_v16, %v7798_v51  ;;  %v2359_v11 = vsel %vm7122_vm2, %v7865_v47, %v7844_v57  ;;  %v7949_v16 = vld [vmem:[%s7091_s6 + $0x68] sm:$0x1] }
  0x92   : > { %6539 = vmatmul.mubr.bf16.gmra.mxu0 %v10038_v4  ;;  %v7936_v30 = vrot.slane %v2428_v21, 5  ;;  %v2470_v38 = vshrl.u32 %v7901_v31, 16  ;;  %v10041_v9 = vcombine.low %v10022_v24, %v7370_v52  ;;  %v7946_v28 = vrot.slane %v2415_v54, 4  ;;  %v6931_v52 = vld [vmem:[%s7091_s6 + $0xc] sm:$0xff]  }
  0x93   : > { %6542 = vmatprep.mubr.bf16.mxu0 %v10039_v25  ;;  %v2439_v51 = vor.u32 %v2438_v35, %v2435_v62  ;;  %v2481_v59 = vshrl.u32 %v5733_v46, 16  ;;  %v2484_v57 = vshll.u32 %v5733_v46, 16  ;;  %v7951_v47 = vrot.slane %v2425_v3, 4  ;;  %v7962_v62 = vld [vmem:[%s7091_s6 + $0x74] sm:$0x1] }
  0x94   : > { %v2449_v22 = vor.u32 %v2448_v44, %v7913_v7  ;;  %v7954_v5 = vrot.slane %v2452_v33, 5  ;;  %v2490_v18 = vshll.u32 %v7941_v8, 16  ;;  %v2463_v24 = vor.u32 %v2462_v48, %v2459_v29  ;;  %v5736_v25 = vld [vmem:[%s7091_s6 + $0x78] sm:$0xf]  ;;  %v7966_v44 = vld [vmem:[%s7091_s6 + $0x7c] sm:$0xf] }
  0x95   : > { %6491 = vmatmul.mubr.bf16.gmra.mxu1 %v10040_v53  ;;  %v7958_v21 = vrot.slane %v2466_v26, 5  ;;  %v2472_v49 = vrot.slane %v2470_v38, 4  ;;  %v2494_v19 = vshrl.u32 %v7941_v8, 16  ;;  %v5774_v4 = vcombine.low %v2325_v37, %v2335_v2  ;;  %v7973_v26 = vld [vmem:[%s7091_s6 + $0x80] sm:$0x1] }
  0x96   : > { %6494 = vmatprep.mubr.bf16.mxu1 %v10041_v9  ;;  %v5775_v54 = vcombine.low %v2349_v17, %v2359_v11  ;;  %v2483_v3 = vrot.slane %v2481_v59, 4  ;;  %v2486_v35 = vrot.slane %v2484_v57, 5  ;;  %v7968_v33 = vrot.slane %v2439_v51, 4 }
  0x97   : > { %v7970_v53 = vrot.slane %v2490_v18, 5  ;;  %v2496_v29 = vrot.slane %v2494_v19, 4  ;;  %v2505_v48 = vshrl.u32 %v5736_v25, 16  ;;  %v2476_v37 = vshll.u32 %v7949_v16, 16  ;;  %v5739_v19 = vld [vmem:[%s7091_s6 + $0x84] sm:$0xf] }
  0x98   : > { %v2508_v2 = vshll.u32 %v5736_v25, 16  ;;  %v2514_v17 = vshll.u32 %v7966_v44, 16  ;;  %v2518_v11 = vshrl.u32 %v7966_v44, 16  ;;  %v7978_v38 = vrot.slane %v2449_v22, 4  ;;  %v6935_v25 = vld [vmem:[%s7091_s6 + $0x24] sm:$0xff]  }
  0x99   : > { %v7980_v46 = vrot.slane %v2463_v24, 4  ;;  %v2507_v9 = vrot.slane %v2505_v48, 4  ;;  %v10042_v51 = vcombine.low %v10025_v43, %v10024_v40  ;;  %v2373_v22 = vsel %vm7122_vm2, %v7884_v20, %v7812_v50 }
  0x9a   : > { %6543 = vmatmul.mubr.bf16.gmra.mxu0 %v5628_v55  ;;  %v2473_v55 = vor.u32 %v2472_v49, %v7958_v21  ;;  %v2510_v59 = vrot.slane %v2508_v2, 5  ;;  %v7986_v57 = vrot.slane %v2514_v17, 5  ;;  %v2520_v18 = vrot.slane %v2518_v11, 4  ;;  %v8035_v17 = vld [vmem:[%s7091_s6 + $0x8c] sm:$0x1] }
  0x9b   : > { %6610 = vmatprep.mubr.bf16.mxu0 %v5773_v14  ;;  %v2487_v14 = vor.u32 %v2486_v35, %v2483_v3  ;;  %v2497_v24 = vor.u32 %v2496_v29, %v7970_v53  ;;  %v2500_v49 = vshll.u32 %v7962_v62, 16  ;;  %v2524_v40 = vshll.u32 %v7973_v26, 16  ;;  %v8009_v3 = vld [vmem:[%s7091_s6 + $0x88] sm:$0xf]  ;;  %v6932_v35 = vld [vmem:[%s7091_s6 + $0x18] sm:$0xff]  }
  0x9c   : > { %v2383_v43 = vsel %vm7122_vm2, %v7886_v1, %v7867_v12  ;;  %v2407_v50 = vsel %vm7122_vm2, %v7903_v6, %v7888_v13  ;;  %v2511_v20 = vor.u32 %v2510_v59, %v2507_v9  ;;  %v6938_v12 = vld [vmem:[%s9977_s1 + $0x1b0] sm:$0xff]   ;;  %v8016_v1 = vrot.slane %v2476_v37, 5  ;;  %v8040_v11 = vld [vmem:[%s9977_s1 + $0x1a8] sm:$0xff]  }
  0x9d   : > { %6495 = vmatmul.mubr.bf16.gmra.mxu1 %v10042_v51  ;;  %v2532_v29 = vshll.u32 %v5739_v19, 16  ;;  %v6937_v13 = vld [vmem:[%s9977_s1 + $0x170] sm:$0xff]   ;;  %v2421_v6 = vsel %vm7122_vm2, %v7946_v28, %v7879_v63  ;;  %v2431_v48 = vsel %vm7122_vm2, %v7951_v47, %v7936_v30  ;;  %v8030_v37 = vrot.slane %v2473_v55, 4 }
  0x9e   : > { %6562 = vmatprep.mubr.bf16.mxu1 %v6931_v52  ;;  %v2397_v52 = vsel %vm7122_vm2, %v7894_v58, %v7838_v60  ;;  %v2521_v60 = vor.u32 %v2520_v18, %v7986_v57  ;;  %v2529_v58 = vshrl.u32 %v5739_v19, 16  ;;  %v8032_v2 = vrot.slane %v2487_v14, 4  ;;  %v5742_v14 = vld [vmem:[%s7091_s6 + $0x90] sm:$0xf]  ;;  %v8063_v59 = vld [vmem:[%s7091_s6 + $0x94] sm:$0xf] }
  0x9f   : > { %v8042_v63 = vrot.slane %v2497_v24, 4  ;;  %v8044_v28 = vrot.slane %v2500_v49, 5  ;;  %v2538_v30 = vshll.u32 %v8009_v3, 16  ;;  %v2542_v47 = vshrl.u32 %v8009_v3, 16  ;;  %10043 = vst [vmem:[#allocation6_spill] sm:$0xff] %v8063_v59 }
  0xa0   : > { %v2455_v55 = vsel %vm7122_vm2, %v7978_v38, %v7954_v5  ;;  %v8057_v9 = vrot.slane %v2511_v20, 4  ;;  %v8059_v51 = vrot.slane %v2524_v40, 5  ;;  %v2534_v18 = vrot.slane %v2532_v29, 5  ;;  %v6941_v5 = vld [vmem:[%s9977_s1 + $0x168] sm:$0xff]  }
  0xa1   : > { %v2556_v38 = vshll.u32 %v5742_v14, 16  ;;  %v2562_v24 = vshll.u32 %v8063_v59, 16  ;;  %v2566_v49 = vshrl.u32 %v8063_v59, 16  ;;  %v5776_v40 = vcombine.low %v2373_v22, %v2383_v43 }
  0xa2   : > { %6611 = vmatmul.mubr.bf16.vlgmr.msra.gmra.mxu0 %v5774_v4  ;;  %v2445_v4 = vsel %vm7122_vm2, %v7968_v33, %v7913_v7  ;;  %v2548_v7 = vshll.u32 %v8035_v17, 16  ;;  %v2553_v33 = vshrl.u32 %v5742_v14, 16  ;;  %v5777_v20 = vcombine.low %v2397_v52, %v2407_v50 }
  0xa3   : > { %6691 = vmatpush3.bf16.msra.mxu0 %v7765_v15  ;;  %6614 = vmatprep.mubr.bf16.mxu0 %v5775_v54  ;;  %v8065_v15 = vrot.slane %v2521_v60, 4  ;;  %v2531_v54 = vrot.slane %v2529_v58, 4  ;;  %v8074_v19 = vrot.slane %v2538_v30, 5  ;;  %v6936_v60 = vld [vmem:[%s7091_s6 + $0x30] sm:$0xff]   ;;  %v6946_v58 = vld [vmem:[%s9977_s1 + $0x1a0] sm:$0xff]   ;;  %v2558_v14 = vrot.slane %v2556_v38, 5 }
  0xa4   : > { %6692 = vmatprep.subr.bf16.mxu0 %v6938_v12  ;;  %v2555_v29 = vrot.slane %v2553_v33, 4  ;;  %v2568_v22 = vrot.slane %v2566_v49, 4  ;;  %v8082_v43 = vcombine.low %v2421_v6, %v2431_v48  ;;  %v8085_v52 = vcombine.low %v2445_v4, %v2455_v55  ;;  %v5745_v30 = vld [vmem:[%s7091_s6 + $0x9c] sm:$0xf]  ;;  %v8107_v4 = vld [vmem:[%s7091_s6 + $0xa4] sm:$0x1] }
  0xa5   : > { %6563 = vmatmul.mubr.bf16.vlgmr.msra.gmra.mxu1 %v6932_v35  ;;  %v2544_v35 = vrot.slane %v2542_v47, 4  ;;  %v2535_v48 = vor.u32 %v2534_v18, %v2531_v54  ;;  %v8104_v47 = vld [vmem:[%s7091_s6 + $0xa0] sm:$0xf]  ;;  %10046 = vst [vmem:[#allocation9_spill] sm:$0xff] %v8107_v4  ;;  %v2577_v55 = vshrl.u32 %v5745_v30, 16  ;;  %v2580_v33 = vshll.u32 %v5745_v30, 16 }
  0xa6   : > { %6643 = vmatpush3.bf16.msra.mxu1 %v7760_v36  ;;  %6566 = vmatprep.mubr.bf16.mxu1 %v6935_v25  ;;  %v8080_v36 = vrot.slane %v2562_v24, 5  ;;  %v2479_v25 = vsel %vm7122_vm2, %v8030_v37, %v8016_v1  ;;  %10045 = vst [vmem:[#allocation8_spill] sm:$0xff] %v8104_v47  ;;  %v6939_v38 = vld [vmem:[%s7091_s6 + $0x3c] sm:$0xff]   ;;  %v2586_v37 = vshll.u32 %v8104_v47, 16  ;;  %v2590_v24 = vshrl.u32 %v8104_v47, 16 }
  0xa7   : > { %6644 = vmatprep.subr.bf16.mxu1 %v6937_v13  ;;  %6693 = vmatpush3.bf16.msra.mxu0 %v6938_v12  ;;  %v8096_v12 = vld [vmem:[%s7091_s6 + $0x98] sm:$0x1]  ;;  %v2545_v1 = vor.u32 %v2544_v35, %v8074_v19  ;;  %v6945_v54 = vld [vmem:[%s9977_s1 + $0x160] sm:$0xff]   ;;  %v2559_v18 = vor.u32 %v2558_v14, %v2555_v29  ;;  %v2579_v30 = vrot.slane %v2577_v55, 4  ;;  %v2582_v49 = vrot.slane %v2580_v33, 5 }
  0xa8   : > { %6694 = vmatprep.subr.bf16.mxu0 %v8040_v11  ;;  %10044 = vst [vmem:[#allocation7_spill] sm:$0xff] %v8096_v12  ;;  %v2572_v35 = vshll.u32 %v8096_v12, 16  ;;  %v2592_v6 = vrot.slane %v2590_v24, 4  ;;  %v2596_v50 = vshll.u32 %v8107_v4, 16  ;;  %v5748_v47 = vld [vmem:[%s7091_s6 + $0xa8] sm:$0xf] }
  0xa9   : > { %v6949_v29 = vld [vmem:[%s9977_s1 + $0x158] sm:$0xff]   ;;  %v8130_v14 = vrot.slane %v2535_v48, 4  ;;  %v2601_v55 = vshrl.u32 %v5748_v47, 16  ;;  %v2604_v33 = vshll.u32 %v5748_v47, 16  ;;  %v8143_v4 = vld [vmem:[%s7091_s6 + $0xb0] sm:$0x1] }
  0xaa   : > { %6615 = vmatmul.mubr.bf16.gmra.mxu0 %v5776_v40  ;;  %6645 = vmatpush3.bf16.msra.mxu1 %v6937_v13  ;;  %v6950_v13 = vld [vmem:[%s9977_s1 + $0x198] sm:$0xff]   ;;  %v2569_v40 = vor.u32 %v2568_v22, %v8080_v36  ;;  %v8132_v22 = vrot.slane %v2548_v7, 5  ;;  %v6940_v48 = vld [vmem:[%s7091_s6 + $0x48] sm:$0xff]   ;;  %v8146_v7 = vrot.slane %v2545_v1, 4  ;;  %v8148_v12 = vrot.slane %v2559_v18, 4 }
  0xab   : > { %6618 = vmatprep.mubr.bf16.mxu0 %v5777_v20  ;;  %6646 = vmatprep.subr.bf16.mxu1 %v6941_v5  ;;  %v8123_v20 = vrot.slane %v2586_v37, 5  ;;  %v2583_v37 = vor.u32 %v2582_v49, %v2579_v30  ;;  %v8150_v59 = vrot.slane %v2572_v35, 5  ;;  %v6953_v49 = vld [vmem:[%s9977_s1 + $0x150] sm:$0xff]   ;;  %v8167_v18 = vrot.slane %v2604_v33, 5 }
  0xac   : > { %6695 = vmatpush3.bf16.msra.mxu0 %v8040_v11  ;;  %v8135_v11 = vld [vmem:[%s7091_s6 + $0xac] sm:$0xf]  ;;  %v2620_v35 = vshll.u32 %v8143_v4, 16 }
  0xad   : > { %6567 = vmatmul.mubr.bf16.gmra.mxu1 %v6936_v60  ;;  %6696 = vmatprep.subr.bf16.mxu0 %v6946_v58  ;;  %10047 = vst [vmem:[#allocation10_spill] sm:$0xff] %v8135_v11  ;;  %v2503_v60 = vsel %vm7122_vm2, %v8042_v63, %v8044_v28  ;;  %v2593_v24 = vor.u32 %v2592_v6, %v8123_v20  ;;  %v2610_v47 = vshll.u32 %v8135_v11, 16  ;;  %v6943_v63 = vld [vmem:[%s7091_s6 + $0x54] sm:$0xff]   ;;  %v8157_v28 = vrot.slane %v2569_v40, 4 }
  0xae   : > { %6570 = vmatprep.mubr.bf16.mxu1 %v6939_v38  ;;  %6647 = vmatpush3.bf16.msra.mxu1 %v6941_v5  ;;  %v6954_v5 = vld [vmem:[%s9977_s1 + $0x190] sm:$0xff]   ;;  %v8159_v6 = vrot.slane %v2596_v50, 5  ;;  %v8161_v38 = vrot.slane %v2601_v55, 4  ;;  %v2614_v1 = vshrl.u32 %v8135_v11, 16  ;;  %v8176_v40 = vrot.slane %v2583_v37, 4 }
  0xaf   : > { %6648 = vmatprep.subr.bf16.mxu1 %v6945_v54  ;;  %v8178_v30 = vrot.slane %v2593_v24, 4  ;;  %v5751_v55 = vld [vmem:[%s7091_s6 + $0xb4] sm:$0xf]  ;;  %v8182_v11 = vld [vmem:[%s7091_s6 + $0xb8] sm:$0xf]  ;;  %v6957_v24 = vld [vmem:[%s9977_s1 + $0x148] sm:$0xff]  }
  0xb0   : > { %6697 = vmatpush3.bf16.msra.mxu0 %v6946_v58  ;;  %v10048_v58 = vsel %vm7122_vm2, %v7980_v46, %v7958_v21  ;;  %10049 = vst [vmem:[#allocation11_spill] sm:$0xff] %v8182_v11  ;;  %v2517_v21 = vsel %vm7122_vm2, %v8057_v9, %v7986_v57  ;;  %v8194_v46 = vrot.slane %v2610_v47, 5  ;;  %v5754_v37 = vld [vmem:[%s7091_s6 + $0xc0] sm:$0xf]  ;;  %v2527_v57 = vsel %vm7122_vm2, %v8065_v15, %v8059_v51  ;;  %v8221_v47 = vld [vmem:[%s7091_s6 + $0xc4] sm:$0xf] }
  0xb1   : > { %6698 = vmatprep.subr.bf16.mxu0 %v6950_v13  ;;  %v5780_v50 = vcombine.low %v10048_v58, %v2479_v25  ;;  %v2625_v25 = vshrl.u32 %v5751_v55, 16  ;;  %v2541_v9 = vsel %vm7122_vm2, %v8130_v14, %v8074_v19  ;;  %10052 = vst [vmem:[#allocation13_spill] sm:$0xff] %v8221_v47  ;;  %v8224_v51 = vld [vmem:[%s7091_s6 + $0xc8] sm:$0x1]  ;;  %v2658_v58 = vshll.u32 %v8221_v47, 16 }
  0xb2   : > { %6619 = vmatmul.mubr.bf16.gmra.mxu0 %v8082_v43  ;;  %6649 = vmatpush3.bf16.msra.mxu1 %v6945_v54  ;;  %v10050_v43 = vsel %vm7122_vm2, %v8032_v2, %v7970_v53  ;;  %v2616_v54 = vrot.slane %v2614_v1, 4  ;;  %v2628_v53 = vshll.u32 %v5751_v55, 16  ;;  %v2634_v2 = vshll.u32 %v8182_v11, 16 }
  0xb3   : > { %6622 = vmatprep.mubr.bf16.mxu0 %v8085_v52  ;;  %v5781_v33 = vcombine.low %v10050_v43, %v2503_v60  ;;  %6650 = vmatprep.subr.bf16.mxu1 %v6949_v29  ;;  %v6958_v52 = vld [vmem:[%s9977_s1 + $0x188] sm:$0xff]   ;;  %v2638_v60 = vshrl.u32 %v8182_v11, 16  ;;  %v2627_v15 = vrot.slane %v2625_v25, 4  ;;  %v10053_v55 = vrot.slane %v7629_v32, 5 }
  0xb4   : > { %6699 = vmatpush3.bf16.msra.mxu0 %v6950_v13  ;;  %v2551_v13 = vsel %vm7122_vm2, %v8146_v7, %v8132_v22  ;;  %v2630_v19 = vrot.slane %v2628_v53, 5  ;;  %v8226_v14 = vrot.slane %v2634_v2, 5  ;;  %v2649_v22 = vshrl.u32 %v5754_v37, 16  ;;  %v6944_v2 = vld [vmem:[%s7091_s6 + $0x60] sm:$0xff]  }
  0xb5   : > { %6571 = vmatmul.mubr.bf16.gmra.mxu1 %v6940_v48  ;;  %6700 = vmatprep.subr.bf16.mxu0 %v6954_v5  ;;  %v8218_v48 = vld [vmem:[%s7091_s6 + $0xbc] sm:$0x1]  ;;  %v2640_v1 = vrot.slane %v2638_v60, 4  ;;  %v2652_v7 = vshll.u32 %v5754_v37, 16  ;;  %v8231_v43 = vrot.slane %v10053_v55, 4  ;;  %v8236_v25 = vrot.slane %v2620_v35, 5 }
  0xb6   : > { %10051 = vst [vmem:[#allocation12_spill] sm:$0xff] %v8218_v48  ;;  %6574 = vmatprep.mubr.bf16.mxu1 %v6943_v63  ;;  %6651 = vmatpush3.bf16.msra.mxu1 %v6949_v29  ;;  %v2607_v63 = vor.u32 %v8167_v18, %v8161_v38  ;;  %v2617_v29 = vor.u32 %v2616_v54, %v8194_v46  ;;  %v2662_v53 = vshrl.u32 %v8221_v47, 16  ;;  %v2644_v60 = vshll.u32 %v8218_v48, 16  ;;  %v6947_v38 = vld [vmem:[%s7091_s6 + $0x6c] sm:$0xff]   ;;  %v8256_v48 = vld [vmem:[%s7091_s6 + $0x18] sm:$0xe] }
  0xb7   : > { %6652 = vmatprep.subr.bf16.mxu1 %v6953_v49  ;;  %v2651_v37 = vrot.slane %v2649_v22, 4  ;;  %v2654_v11 = vrot.slane %v2652_v7, 5  ;;  %v8241_v55 = vrot.slane %v2658_v58, 5  ;;  %v2631_v18 = vor.u32 %v2630_v19, %v2627_v15  ;;  %v6961_v22 = vld [vmem:[%s9977_s1 + $0x140] sm:$0xff]   ;;  %v8253_v58 = vld [vmem:[%s7091_s6 + $0xc] sm:$0xe] }
  0xb8   : > { %6701 = vmatpush3.bf16.msra.mxu0 %v6954_v5  ;;  %v6962_v5 = vld [vmem:[%s9977_s1 + $0x180] sm:$0xff]   ;;  %v2641_v35 = vor.u32 %v2640_v1, %v8226_v14  ;;  %v2664_v54 = vrot.slane %v2662_v53, 4  ;;  %v2668_v47 = vshll.u32 %v8224_v51, 16  ;;  %v5782_v15 = vcombine.low %v2517_v21, %v2527_v57 }
  0xb9   : > { %6702 = vmatprep.subr.bf16.mxu0 %v6958_v52  ;;  %v2655_v7 = vor.u32 %v2654_v11, %v2651_v37  ;;  %v5783_v19 = vcombine.low %v2541_v9, %v2551_v13  ;;  %v8264_v1 = vrot.slane %v2607_v63, 4  ;;  %v8266_v11 = vrot.slane %v2617_v29, 4  ;;  %v6948_v9 = vld [vmem:[%s7091_s6 + $0x78] sm:$0xff]   ;;  %v6951_v37 = vld [vmem:[%s7091_s6 + $0x84] sm:$0xff]  }
  0xba   : > { %6623 = vmatmul.mubr.bf16.gmra.mxu0 %v5780_v50  ;;  %6653 = vmatpush3.bf16.msra.mxu1 %v6953_v49  ;;  %v8261_v49 = vld [vmem:[%s9977_s1 + $0x238] sm:$0xff]   ;;  %v2665_v50 = vor.u32 %v2664_v54, %v8241_v55  ;;  %v8275_v53 = vrot.slane %v2641_v35, 4  ;;  %v8277_v21 = vrot.slane %v2644_v60, 5  ;;  %v8283_v63 = vrot.slane %v2668_v47, 5  ;;  %v5800_v60 = vld [vmem:[%s7091_s6 + $0x30] sm:$0xe] }
  0xbb   : > { %6626 = vmatprep.mubr.bf16.mxu0 %v5781_v33  ;;  %6654 = vmatprep.subr.bf16.mxu1 %v6957_v24  ;;  %v8271_v33 = vld [vmem:[%s9977_s1 + $0x1f8] sm:$0xff]   ;;  %v8281_v13 = vrot.slane %v2655_v7, 4  ;;  %v3063_v29 = vrot.slane %v7703_v42, 5  ;;  %v10054_v35 = vld [vmem:[#allocation2_spill] sm:$0xff]  ;;  %v5816_v47 = vrot.slane %v5800_v60, 9  ;;  %v10057_v60 = vld [vmem:[#allocation3_spill] sm:$0xff] }
  0xbc   : > { %6703 = vmatpush3.bf16.msra.mxu0 %v6958_v52  ;;  %v8273_v52 = vrot.slane %v2631_v18, 4  ;;  %v10055_v7 = vld [vmem:[#allocation5_spill] sm:$0xff]  ;;  %v3084_v18 = vrot.slane %v7786_v0, 5  ;;  %v2599_v0 = vsel %vm7122_vm2, %v8178_v30, %v8159_v6  ;;  %v3098_v30 = vrot.slane %v7877_v41, 5 }
  0xbd   : > { %6575 = vmatmul.mubr.bf16.gmra.mxu1 %v6944_v2  ;;  %6704 = vmatprep.subr.bf16.mxu0 %v6962_v5  ;;  %v3081_v57 = vrot.slane %v10055_v7, 5  ;;  %v10056_v2 = vld [vmem:[#allocation4_spill] sm:$0xff] }
  0xbe   : > { %6578 = vmatprep.mubr.bf16.mxu1 %v6947_v38  ;;  %6655 = vmatpush3.bf16.msra.mxu1 %v6957_v24  ;;  %v8288_v24 = vrot.slane %v2665_v50, 4  ;;  %v3067_v38 = vrot.slane %v7720_v61, 5  ;;  %v2565_v50 = vsel %vm7122_vm2, %v8148_v12, %v8080_v36  ;;  %v3088_v54 = vrot.slane %v10056_v2, 5  ;;  %v5801_v12 = vld [vmem:[%s7091_s6 + $0x3c] sm:$0xe] }
  0xbf   : > { %6656 = vmatprep.subr.bf16.mxu1 %v6961_v22  ;;  %v8310_v7 = vsel %vm7433_vm5, %v5816_v47, %v3081_v57  ;;  %v3083_v36 = vrot.slane %v3081_v57, 4  ;;  %v5817_v2 = vrot.slane %v5801_v12, 9  ;;  %v6952_v47 = vld [vmem:[%s7091_s6 + $0x90] sm:$0xff]   ;;  %v3105_v12 = vrot.slane %v7897_v34, 5 }
  0xc0   : > { %6705 = vmatpush3.bf16.msra.mxu0 %v6962_v5  ;;  %v2575_v5 = vsel %vm7122_vm2, %v8157_v28, %v8150_v59  ;;  %v2589_v59 = vsel %vm7122_vm2, %v8176_v40, %v8123_v20  ;;  %v3090_v28 = vrot.slane %v3088_v54, 4  ;;  %v3095_v20 = vrot.slane %v7836_v39, 5 }
  0xc1   : > { %6786 = vmatprep.subr.bf16.mxu0 %v8261_v49  ;;  %v8324_v57 = vsel %vm7433_vm5, %v3083_v36, %v3084_v18  ;;  %v5785_v18 = vcombine.low %v2589_v59, %v2599_v0  ;;  %v8339_v39 = vsel %vm7433_vm5, %v5817_v2, %v3088_v54  ;;  %v2613_v36 = vsel %vm7122_vm2, %v8264_v1, %v8194_v46  ;;  %v5803_v54 = vld [vmem:[%s7091_s6 + $0x54] sm:$0xe] }
  0xc2   : > { %6627 = vmatmul.mubr.bf16.gmra.mxu0 %v5782_v15  ;;  %6657 = vmatpush3.bf16.msra.mxu1 %v6961_v22  ;;  %v3077_v15 = vrot.slane %v10057_v60, 5  ;;  %v3091_v22 = vrot.slane %v7815_v45, 5  ;;  %v5848_v40 = vcombine.low %v8310_v7, %v8324_v57  ;;  %v5802_v45 = vld [vmem:[%s7091_s6 + $0x48] sm:$0xe]  ;;  %v2623_v46 = vsel %vm7122_vm2, %v8266_v11, %v8236_v25  ;;  %v6972_v7 = vld [vmem:[%s7091_s6 + $0x54] sm:$0xff]  }
  0xc3   : > { %6630 = vmatprep.mubr.bf16.mxu0 %v5783_v19  ;;  %6738 = vmatprep.subr.bf16.mxu1 %v8271_v33  ;;  %v5784_v19 = vcombine.low %v2565_v50, %v2575_v5  ;;  %v3097_v50 = vrot.slane %v3095_v20, 4  ;;  %v6955_v5 = vld [vmem:[%s7091_s6 + $0x9c] sm:$0xff]   ;;  %v3109_v2 = vrot.slane %v7901_v31, 5  ;;  %v2637_v34 = vsel %vm7122_vm2, %v8273_v52, %v8226_v14 }
  0xc4   : > { %v8331_v6 = vsel %vm7433_vm5, %v3090_v28, %v3091_v22  ;;  %v5819_v28 = vrot.slane %v5803_v54, 9  ;;  %v5804_v22 = vld [vmem:[%s7091_s6 + $0x60] sm:$0xe]  ;;  %v3112_v25 = vrot.slane %v7949_v16, 5  ;;  %v2647_v11 = vsel %vm7122_vm2, %v8275_v53, %v8277_v21 }
  0xc5   : > { %6579 = vmatmul.mubr.bf16.gmra.mxu1 %v6948_v9  ;;  %v3102_v9 = vrot.slane %v7871_v10, 5  ;;  %v5849_v41 = vcombine.low %v8339_v39, %v8331_v6  ;;  %v8354_v59 = vsel %vm7433_vm5, %v3097_v50, %v3098_v30  ;;  %v3116_v14 = vrot.slane %v7941_v8, 5  ;;  %v6030_v6 = vld [vmem:[%s7091_s6 + $0x24] sm:$0xe] }
  0xc6   : > { %6582 = vmatprep.mubr.bf16.mxu1 %v6951_v37  ;;  %v5818_v37 = vrot.slane %v5802_v45, 9  ;;  %v3111_v45 = vrot.slane %v3109_v2, 4  ;;  %v5786_v52 = vcombine.low %v2613_v36, %v2623_v46  ;;  %v3119_v8 = vrot.slane %v7962_v62, 5  ;;  %v5806_v36 = vld [vmem:[%s7091_s6 + $0x78] sm:$0xe] }
  0xc7   : > { %v3104_v0 = vrot.slane %v3102_v9, 4  ;;  %v8381_v31 = vsel %vm7433_vm5, %v5819_v28, %v3102_v9  ;;  %v3118_v9 = vrot.slane %v3116_v14, 4  ;;  %v3123_v54 = vrot.slane %v7966_v44, 5 }
  0xc8   : > { %v8350_v10 = vsel %vm7433_vm5, %v5818_v37, %v3095_v20  ;;  %v5820_v20 = vrot.slane %v5804_v22, 9  ;;  %v8393_v53 = vsel %vm7433_vm5, %v3111_v45, %v3112_v25  ;;  %v5787_v37 = vcombine.low %v2637_v34, %v2647_v11 }
  0xc9   : > { %v8409_v46 = vsel %vm7433_vm5, %v3118_v9, %v3119_v8  ;;  %v5822_v62 = vrot.slane %v5806_v36, 9  ;;  %v3130_v28 = vrot.slane %v8009_v3, 5  ;;  %v3125_v44 = vrot.slane %v3123_v54, 4  ;;  %v6963_v8 = vld [vmem:[%s7091_s6 + $0x18] sm:$0xff]   ;;  %v10062_v36 = vld [vmem:[#allocation8_spill] sm:$0xff] }
  0xca   : > { %6631 = vmatmul.mubr.bf16.gmra.mxu0 %v5784_v19  ;;  %v8372_v19 = vsel %vm7433_vm5, %v3104_v0, %v3105_v12  ;;  %v8388_v16 = vsel %vm7433_vm5, %v5820_v20, %v3109_v2  ;;  %v3126_v0 = vrot.slane %v7973_v26, 5  ;;  %v3133_v26 = vrot.slane %v8035_v17, 5  ;;  %v5807_v20 = vld [vmem:[%s7091_s6 + $0x84] sm:$0xe] }
  0xcb   : > { %6634 = vmatprep.mubr.bf16.mxu0 %v5785_v18  ;;  %v5805_v18 = vld [vmem:[%s7091_s6 + $0x6c] sm:$0xe]  ;;  %v2661_v2 = vsel %vm7122_vm2, %v8281_v13, %v8241_v55  ;;  %v8421_v34 = vsel %vm7433_vm5, %v5822_v62, %v3123_v54  ;;  %v2671_v3 = vsel %vm7122_vm2, %v8288_v24, %v8283_v63  ;;  %v5823_v25 = vrot.slane %v5807_v20, 9  ;;  %v10060_v63 = vld [vmem:[#allocation6_spill] sm:$0xff] }
  0xcc   : > { %v5821_v21 = vrot.slane %v5805_v18, 9  ;;  %v8430_v17 = vsel %vm7433_vm5, %v3125_v44, %v3126_v0  ;;  %v3132_v11 = vrot.slane %v3130_v28, 4  ;;  %v10058_v45 = vrot.slane %v7629_v32, 5  ;;  %v5808_v18 = vld [vmem:[%s7091_s6 + $0x90] sm:$0xe]  ;;  %v6975_v62 = vld [vmem:[%s7091_s6 + $0x60] sm:$0xff]  }
  0xcd   : > { %6583 = vmatmul.mubr.bf16.gmra.mxu1 %v6952_v47  ;;  %v6956_v47 = vld [vmem:[%s7091_s6 + $0xa8] sm:$0xff]   ;;  %v10059_v55 = vrot.slane %v8253_v58, 9  ;;  %v3137_v24 = vrot.slane %v10060_v63, 5  ;;  %v8447_v32 = vsel %vm7433_vm5, %v5823_v25, %v3130_v28  ;;  %v3144_v54 = vrot.slane %v10062_v36, 5 }
  0xce   : > { %6586 = vmatprep.mubr.bf16.mxu1 %v6955_v5  ;;  %v6959_v5 = vld [vmem:[%s7091_s6 + $0xb4] sm:$0xff]   ;;  %v8405_v12 = vsel %vm7433_vm5, %v5821_v21, %v3116_v14  ;;  %v5799_v14 = vld [vmem:[%s7091_s6 + $0x24] sm:$0xe]  ;;  %v10061_v21 = vld [vmem:[#allocation7_spill] sm:$0xff]  ;;  %v8451_v58 = vsel %vm7433_vm5, %v3132_v11, %v3133_v26  ;;  %v5788_v0 = vcombine.low %v2661_v2, %v2671_v3  ;;  %v3064_v28 = vsel %vm7433_vm5, %v8231_v43, %v3063_v29 }
  0xcf   : > { %v3061_v13 = vsel %vm7433_vm5, %v10059_v55, %v10058_v45  ;;  %v3140_v9 = vrot.slane %v10061_v21, 5  ;;  %v3139_v44 = vrot.slane %v3137_v24, 4  ;;  %v6960_v45 = vld [vmem:[%s7091_s6 + $0xc0] sm:$0xff]   ;;  %v3069_v26 = vrot.slane %v3067_v38, 4  ;;  %v5809_v2 = vld [vmem:[%s7091_s6 + $0x9c] sm:$0xe] }
  0xd0   : > { %v3146_v3 = vrot.slane %v3144_v54, 4  ;;  %v5825_v11 = vrot.slane %v5809_v2, 9  ;;  %v10064_v55 = vld [vmem:[#allocation10_spill] sm:$0xff]  ;;  %v5810_v63 = vld [vmem:[%s7091_s6 + $0xa8] sm:$0xe]  ;;  %v5845_v21 = vcombine.low %v3061_v13, %v3064_v28  ;;  %v10068_v28 = vrot.slane %v8256_v48, 9 }
  0xd1   : > { %v8472_v25 = vsel %vm7433_vm5, %v3139_v44, %v3140_v9  ;;  %v3151_v42 = vrot.slane %v10064_v55, 5  ;;  %v8595_v43 = vld [vmem:[%s7091_s6 + $0x34] sm:$0xf] }
  0xd2   : > { %6635 = vmatmul.mubr.bf16.gmra.mxu0 %v5786_v52  ;;  %v8485_v9 = vsel %vm7433_vm5, %v5825_v11, %v3144_v54  ;;  %v5811_v54 = vld [vmem:[%s7091_s6 + $0xb4] sm:$0xe]  ;;  %v3985_v39 = vshll.u32 %v8595_v43, 16 }
  0xd3   : > { %6638 = vmatprep.mubr.bf16.mxu0 %v5787_v37  ;;  %v5824_v37 = vrot.slane %v5808_v18, 9  ;;  %v5815_v18 = vrot.slane %v5799_v14, 9  ;;  %v3153_v36 = vrot.slane %v3151_v42, 4  ;;  %v10065_v14 = vrot.slane %v10054_v35, 5 }
  0xd4   : > { %v5827_v55 = vrot.slane %v5811_v54, 9 }
  0xd5   : > { %6587 = vmatmul.mubr.bf16.gmra.mxu1 %v6956_v47  ;;  %v10063_v47 = vld [vmem:[#allocation9_spill] sm:$0xff]  ;;  %v3076_v44 = vrot.slane %v10065_v14, 4  ;;  %v10070_v61 = vmov %v10065_v14  ;;  %v3168_v14 = vrot.slane %v8224_v51, 5  ;;  %v5947_v51 = vld [vmem:[%s7091_s6 + $0x30] sm:$0xf] }
  0xd6   : > { %6590 = vmatprep.mubr.bf16.mxu1 %v6959_v5  ;;  %v3147_v20 = vrot.slane %v10063_v47, 5  ;;  %v8467_v5 = vsel %vm7433_vm5, %v5824_v37, %v3137_v24  ;;  %v3154_v24 = vrot.slane %v8143_v4, 5  ;;  %v5826_v37 = vrot.slane %v5810_v63, 9 }
  0xd7   : > { %v10069_v63 = vrot.slane %v7734_v23, 5  ;;  %v3075_v48 = vsel %vm7433_vm5, %v5815_v18, %v10070_v61  ;;  %v3078_v23 = vsel %vm7433_vm5, %v3076_v44, %v3077_v15  ;;  %v8565_v61 = vld [vmem:[%s7091_s6 + $0x28] sm:$0xf] }
  0xd8   : > { %v8479_v29 = vsel %vm7433_vm5, %v3146_v3, %v3147_v20  ;;  %v10066_v20 = vld [vmem:[#allocation11_spill] sm:$0xff]  ;;  %v8494_v4 = vsel %vm7433_vm5, %v5826_v37, %v3151_v42  ;;  %v8498_v13 = vsel %vm7433_vm5, %v3153_v36, %v3154_v24  ;;  %v3068_v3 = vsel %vm7433_vm5, %v10068_v28, %v3067_v38  ;;  %v5812_v37 = vld [vmem:[%s7091_s6 + $0xc0] sm:$0xe]  ;;  %v10071_v38 = vld [vmem:[#allocation13_spill] sm:$0xff] }
  0xd9   : > { %v3158_v2 = vrot.slane %v10066_v20, 5  ;;  %v3071_v24 = vsel %vm7433_vm5, %v3069_v26, %v10069_v63  ;;  %v3165_v36 = vrot.slane %v10071_v38, 5  ;;  %v5828_v18 = vrot.slane %v5812_v37, 9  ;;  %v6970_v20 = vld [vmem:[%s9977_s1 + $0x230] sm:$0xff]   ;;  %v5944_v63 = vld [vmem:[%s7091_s6 + $0x24] sm:$0xf] }
  0xda   : > { %6639 = vmatmul.mubr.bf16.gmra.mxu0 %v5788_v0  ;;  %v5846_v15 = vcombine.low %v3068_v3, %v3071_v24  ;;  %v5847_v54 = vcombine.low %v3075_v48, %v3078_v23  ;;  %v6969_v28 = vld [vmem:[%s9977_s1 + $0x1f0] sm:$0xff]   ;;  %v6968_v48 = vld [vmem:[%s7091_s6 + $0x3c] sm:$0xff]   ;;  %v3952_v37 = vshrl.u32 %v5944_v63, 16  ;;  %v6971_v38 = vld [vmem:[%s7091_s6 + $0x48] sm:$0xff]   ;;  %v3961_v23 = vshll.u32 %v8565_v61, 16 }
  0xdb   : > { %6706 = vmatprep.mubr.bf16.mxu0 %v6963_v8  ;;  %v10067_v8 = vld [vmem:[#allocation12_spill] sm:$0xff]  ;;  %v3160_v42 = vrot.slane %v3158_v2, 4  ;;  %v8529_v26 = vsel %vm7433_vm5, %v5827_v55, %v3158_v2  ;;  %v3167_v60 = vrot.slane %v3165_v36, 4  ;;  %v8542_v44 = vsel %vm7433_vm5, %v5828_v18, %v3165_v36  ;;  %v5941_v2 = vld [vmem:[%s7091_s6 + $0x18] sm:$0xf]  ;;  %v6974_v55 = vld [vmem:[%s9977_s1 + $0x228] sm:$0xff]  }
  0xdc   : > { %v3161_v0 = vrot.slane %v10067_v8, 5  ;;  %v3931_v24 = vshll.u32 %v5941_v2, 16  ;;  %v6973_v36 = vld [vmem:[%s9977_s1 + $0x1e8] sm:$0xff]   ;;  %v5943_v18 = vld [vmem:[%s7091_s6 + $0x20] sm:$0x1]  ;;  %v3954_v11 = vrot.slane %v3952_v37, 4 }
  0xdd   : > { %6591 = vmatmul.mubr.bf16.gmra.mxu1 %v6960_v45  ;;  %v6964_v45 = vld [vmem:[%s7091_s6 + $0x24] sm:$0xff]   ;;  %v8547_v8 = vsel %vm7433_vm5, %v3167_v60, %v3168_v14  ;;  %v3955_v14 = vshll.u32 %v5944_v63, 16  ;;  %v8585_v63 = vld [vmem:[%s7091_s6 + $0x2c] sm:$0x1]  ;;  %v3976_v37 = vshrl.u32 %v5947_v51, 16 }
  0xde   : > { %6658 = vmatprep.mubr.bf16.mxu1 %v5845_v21  ;;  %v6967_v21 = vld [vmem:[%s7091_s6 + $0x30] sm:$0xff]   ;;  %v8533_v35 = vsel %vm7433_vm5, %v3160_v42, %v3161_v0  ;;  %v8550_v0 = vld [vmem:[%s7091_s6 + $0x1c] sm:$0xf]  ;;  %v3928_v42 = vshrl.u32 %v5941_v2, 16 }
  0xdf   : > { %v4699_v3 = vrot.slane %v8550_v0, 5  ;;  %v3957_v47 = vrot.slane %v3955_v14, 5 }
  0xe0   : > { %v3930_v60 = vrot.slane %v3928_v42, 4  ;;  %v6977_v42 = vld [vmem:[%s9977_s1 + $0x1e0] sm:$0xff]  }
  0xe2   : > { %6707 = vmatmul.mubr.bf16.vlgmr.msra.gmra.mxu0 %v6964_v45  ;;  %v3941_v45 = vshrl.u32 %v8550_v0, 16 }
  0xe3   : > { %6787 = vmatpush3.bf16.msra.mxu0 %v8261_v49  ;;  %6710 = vmatprep.mubr.bf16.mxu0 %v6967_v21  ;;  %v3937_v49 = vshll.u32 %v8550_v0, 16  ;;  %v3965_v21 = vshrl.u32 %v8565_v61, 16 }
  0xe4   : > { %6788 = vmatprep.subr.bf16.mxu0 %v6970_v20 }
  0xe5   : > { %6659 = vmatmul.mubr.bf16.vlgmr.msra.gmra.mxu1 %v5846_v15  ;;  %v6029_v15 = vld [vmem:[%s7091_s6 + $0x18] sm:$0xe]  ;;  %v8580_v2 = vrot.slane %v3937_v49, 5  ;;  %v3947_v49 = vshll.u32 %v5943_v18, 16  ;;  %v3967_v0 = vrot.slane %v3965_v21, 4 }
  0xe6   : > { %6739 = vmatpush3.bf16.msra.mxu1 %v8271_v33  ;;  %6662 = vmatprep.mubr.bf16.mxu1 %v5847_v54  ;;  %v6978_v33 = vld [vmem:[%s9977_s1 + $0x220] sm:$0xff]   ;;  %v3943_v54 = vrot.slane %v3941_v45, 4  ;;  %v8592_v45 = vrot.slane %v3961_v23, 5  ;;  %v6982_v23 = vld [vmem:[%s9977_s1 + $0x218] sm:$0xff]  }
  0xe7   : > { %6740 = vmatprep.subr.bf16.mxu1 %v6969_v28  ;;  %6789 = vmatpush3.bf16.msra.mxu0 %v6970_v20  ;;  %v3933_v20 = vrot.slane %v3931_v24, 5 }
  0xe8   : > { %6790 = vmatprep.subr.bf16.mxu0 %v6974_v55  ;;  %v3944_v21 = vor.u32 %v3943_v54, %v8580_v2  ;;  %v3968_v54 = vor.u32 %v3967_v0, %v8592_v45 }
  0xea   : > { %6711 = vmatmul.mubr.bf16.gmra.mxu0 %v6968_v48  ;;  %6741 = vmatpush3.bf16.msra.mxu1 %v6969_v28  ;;  %v6045_v48 = vrot.slane %v6029_v15, 9  ;;  %v4702_v28 = vrot.slane %v5943_v18, 5  ;;  %v4701_v18 = vrot.slane %v4699_v3, 4  ;;  %v3971_v15 = vshll.u32 %v8585_v63, 16 }
  0xeb   : > { %6714 = vmatprep.mubr.bf16.mxu0 %v6971_v38  ;;  %6742 = vmatprep.subr.bf16.mxu1 %v6973_v36  ;;  %v3979_v38 = vshll.u32 %v5947_v51, 16  ;;  %v4706_v51 = vrot.slane %v8565_v61, 5  ;;  %v3989_v61 = vshrl.u32 %v8595_v43, 16 }
  0xec   : > { %6791 = vmatpush3.bf16.msra.mxu0 %v6974_v55  ;;  %v3934_v55 = vor.u32 %v3933_v20, %v3930_v60  ;;  %v6981_v60 = vld [vmem:[%s9977_s1 + $0x1d8] sm:$0xff]   ;;  %v8618_v20 = vrot.slane %v3947_v49, 5  ;;  %v6986_v49 = vld [vmem:[%s9977_s1 + $0x210] sm:$0xff]  }
  0xed   : > { %v8590_v24 = vpop.f32.mrf.mxu0  ;;  %6663 = vmatmul.mubr.bf16.gmra.mxu1 %v5848_v40  ;;  %6792 = vmatprep.subr.bf16.mxu0 %v6978_v33  ;;  %v8600_v14 = vpop.f32.mrf.mxu1  ;;  %v3958_v40 = vor.u32 %v3957_v47, %v3954_v11  ;;  %v3978_v47 = vrot.slane %v3976_v37, 4  ;;  %v3981_v11 = vrot.slane %v3979_v38, 5  ;;  %v8645_v37 = vld [vmem:[%s7091_s6 + $0x40] sm:$0xf]  ;;  %v4708_v50 = vrot.slane %v4706_v51, 4 }
  0xee   : > { %10072 = vst [vmem:[#allocation2_spill] sm:$0xff] %v8600_v14  ;;  %6666 = vmatprep.mubr.bf16.mxu1 %v5849_v41  ;;  %6743 = vmatpush3.bf16.msra.mxu1 %v6973_v36  ;;  %v8625_v41 = vsel %vm7433_vm5, %v6045_v48, %v4699_v3  ;;  %v5950_v36 = vld [vmem:[%s7091_s6 + $0x3c] sm:$0xf]  ;;  %v8634_v0 = vrot.slane %v3934_v55, 4  ;;  %v8640_v3 = vsel %vm7433_vm5, %v4701_v18, %v4702_v28  ;;  %v8642_v48 = vrot.slane %v3971_v15, 5  ;;  %v6985_v55 = vld [vmem:[%s9977_s1 + $0x1d0] sm:$0xff]  }
  0xef   : > { %v8611_v57 = vpop.f32.mrf.mxu0  ;;  %6744 = vmatprep.subr.bf16.mxu1 %v6977_v42  ;;  %v8629_v52 = vpop.f32.mrf.mxu1  ;;  %v8652_v22 = vrot.slane %v3958_v40, 4  ;;  %v4709_v28 = vrot.slane %v8585_v63, 5  ;;  %v3969_v18 = vrot.slane %v3968_v54, 4  ;;  %v8656_v15 = vld [vmem:[%s7091_s6 + $0x38] sm:$0x1]  ;;  %v4003_v30 = vshll.u32 %v5950_v36, 16 }
  0xf0   : > { %6793 = vmatpush3.bf16.msra.mxu0 %v6978_v33  ;;  %10073 = vst [vmem:[#allocation5_spill] sm:$0xff] %v8629_v52  ;;  %v8636_v33 = vrot.slane %v3944_v21, 4  ;;  %v6046_v21 = vrot.slane %v6030_v6, 9  ;;  %v3982_v1 = vor.u32 %v3981_v11, %v3978_v47  ;;  %v8660_v52 = vrot.slane %v3989_v61, 4  ;;  %v6031_v40 = vld [vmem:[%s7091_s6 + $0x30] sm:$0xe] }
  0xf1   : > { %6794 = vmatprep.subr.bf16.mxu0 %v6982_v23  ;;  %v8647_v38 = vpop.f32.mrf.mxu0  ;;  %v4009_v6 = vshll.u32 %v8645_v37, 16  ;;  %v4013_v63 = vshrl.u32 %v8645_v37, 16  ;;  %v8668_v54 = vpop.f32.mrf.mxu1  ;;  %v10076_v11 = vcombine.low %v8381_v31, %v8372_v19  ;;  %v6976_v61 = vld [vmem:[%s7091_s6 + $0x6c] sm:$0xff]   ;;  %v8701_v19 = vsel %vm7433_vm5, %v4708_v50, %v4709_v28  ;;  %v8719_v28 = vld [vmem:[%s7091_s6 + $0x44] sm:$0x1] }
  0xf2   : > { %6715 = vmatmul.mubr.bf16.gmra.mxu0 %v6972_v7  ;;  %6745 = vmatpush3.bf16.msra.mxu1 %v6977_v42  ;;  %v8658_v7 = vrot.slane %v3985_v39, 5  ;;  %v4000_v42 = vshrl.u32 %v5950_v36, 16  ;;  %10075 = vst [vmem:[#allocation4_spill] sm:$0xff] %v8668_v54  ;;  %v3940_v39 = vsel %vm7122_vm2, %v8634_v0, %v8580_v2  ;;  %v3950_v47 = vsel %vm7122_vm2, %v8636_v33, %v8618_v20  ;;  %v6979_v36 = vld [vmem:[%s7091_s6 + $0x78] sm:$0xff]   ;;  %v8712_v33 = vld [vmem:[%s7091_s6 + $0x4c] sm:$0xf] }
  0xf3   : > { %6718 = vmatprep.mubr.bf16.mxu0 %v6975_v62  ;;  %6746 = vmatprep.subr.bf16.mxu1 %v6981_v60  ;;  %v10074_v62 = vcombine.low %v8350_v10, %v8354_v59  ;;  %v4713_v59 = vrot.slane %v8595_v43, 5  ;;  %v3964_v2 = vsel %vm7122_vm2, %v8652_v22, %v8592_v45  ;;  %v8697_v20 = vsel %vm7433_vm5, %v6046_v21, %v4706_v51  ;;  %v5953_v43 = vld [vmem:[%s7091_s6 + $0x48] sm:$0xf]  ;;  %v8723_v54 = vpop.f32.mrf.mxu1  ;;  %v6032_v14 = vld [vmem:[%s7091_s6 + $0x3c] sm:$0xe] }
  0xf4   : > { %6795 = vmatpush3.bf16.msra.mxu0 %v6982_v23  ;;  %v6990_v23 = vld [vmem:[%s9977_s1 + $0x208] sm:$0xff]   ;;  %v3995_v31 = vshll.u32 %v8656_v15, 16  ;;  %v3974_v22 = vsel %vm7122_vm2, %v3969_v18, %v8642_v48  ;;  %v6047_v45 = vrot.slane %v6031_v40, 9  ;;  %v4002_v0 = vrot.slane %v4000_v42, 4  ;;  %10078 = vst [vmem:[#allocation6_spill] sm:$0xff] %v8723_v54  ;;  %v6993_v42 = vld [vmem:[%s9977_s1 + $0x1c0] sm:$0xff]  }
  0xf5   : > { %6667 = vmatmul.mubr.bf16.gmra.mxu1 %v10074_v62  ;;  %6796 = vmatprep.subr.bf16.mxu0 %v6986_v49  ;;  %v8689_v62 = vpop.f32.mrf.mxu0  ;;  %v4005_v51 = vrot.slane %v4003_v30, 5  ;;  %v8714_v50 = vrot.slane %v3982_v1, 4  ;;  %v3992_v21 = vor.u32 %v8660_v52, %v8658_v7  ;;  %v4015_v10 = vrot.slane %v4013_v63, 4  ;;  %v6994_v30 = vld [vmem:[%s9977_s1 + $0x200] sm:$0xff]  }
  0xf6   : > { %6670 = vmatprep.mubr.bf16.mxu1 %v10076_v11  ;;  %6747 = vmatpush3.bf16.msra.mxu1 %v6981_v60  ;;  %10077 = vst [vmem:[#allocation3_spill] sm:$0xff] %v8689_v62  ;;  %v6989_v60 = vld [vmem:[%s9977_s1 + $0x1c8] sm:$0xff]   ;;  %v8721_v11 = vrot.slane %v4009_v6, 5  ;;  %v4715_v48 = vrot.slane %v4713_v59, 4  ;;  %v4024_v1 = vshrl.u32 %v5953_v43, 16  ;;  %v4027_v18 = vshll.u32 %v5953_v43, 16 }
  0xf7   : > { %6748 = vmatprep.subr.bf16.mxu1 %v6985_v55  ;;  %v8734_v40 = vcombine.low %v3940_v39, %v3950_v47  ;;  %v4037_v63 = vshrl.u32 %v8712_v33, 16  ;;  %v8742_v43 = vrot.slane %v3995_v31, 5  ;;  %v4019_v54 = vshll.u32 %v8719_v28, 16  ;;  %v5956_v39 = vld [vmem:[%s7091_s6 + $0x54] sm:$0xf]  ;;  %v6980_v6 = vld [vmem:[%s7091_s6 + $0x84] sm:$0xff]  }
  0xf8   : > { %6797 = vmatpush3.bf16.msra.mxu0 %v6986_v49  ;;  %v4716_v49 = vrot.slane %v8656_v15, 5  ;;  %v8729_v52 = vpop.f32.mrf.mxu0  ;;  %v4033_v15 = vshll.u32 %v8712_v33, 16  ;;  %v4720_v31 = vrot.slane %v8645_v37, 5  ;;  %v10082_v37 = vcombine.low %v8405_v12, %v8409_v46  ;;  %v6983_v47 = vld [vmem:[%s7091_s6 + $0x90] sm:$0xff]  }
  0xf9   : > { %6798 = vmatprep.subr.bf16.mxu0 %v6990_v23  ;;  %10079 = vst [vmem:[#allocation7_spill] sm:$0xff] %v8729_v52 }
  0xfa   : > { %6719 = vmatmul.mubr.bf16.gmra.mxu0 %v6976_v61  ;;  %6749 = vmatpush3.bf16.msra.mxu1 %v6985_v55  ;;  %v8740_v61 = vcombine.low %v3964_v2, %v3974_v22  ;;  %v4006_v55 = vor.u32 %v4005_v51, %v4002_v0  ;;  %v4016_v2 = vor.u32 %v4015_v10, %v8721_v11  ;;  %v8758_v22 = vld [vmem:[%s7091_s6 + $0x58] sm:$0xf]  ;;  %v8765_v51 = vrot.slane %v3992_v21, 4 }
  0xfb   : > { %6722 = vmatprep.mubr.bf16.mxu0 %v6979_v36  ;;  %6750 = vmatprep.subr.bf16.mxu1 %v6989_v60  ;;  %v8753_v36 = vsel %vm7433_vm5, %v6047_v45, %v4713_v59  ;;  %v10080_v0 = vcombine.low %v8388_v16, %v8393_v53  ;;  %v8769_v59 = vsel %vm7433_vm5, %v4715_v48, %v4716_v49  ;;  %v4026_v45 = vrot.slane %v4024_v1, 4  ;;  %v8776_v16 = vpop.f32.mrf.mxu0  ;;  %v5955_v1 = vld [vmem:[%s7091_s6 + $0x50] sm:$0x1] }
  0xfc   : > { %6799 = vmatpush3.bf16.msra.mxu0 %v6990_v23  ;;  %v8763_v23 = vpop.f32.mrf.mxu1  ;;  %v4029_v10 = vrot.slane %v4027_v18, 5  ;;  %10083 = vst [vmem:[#allocation9_spill] sm:$0xff] %v8776_v16  ;;  %v6048_v53 = vrot.slane %v6032_v14, 9  ;;  %v4039_v21 = vrot.slane %v4037_v63, 4  ;;  %v4007_v48 = vrot.slane %v4006_v55, 4 }
  0xfd   : > { %6671 = vmatmul.mubr.bf16.gmra.mxu1 %v10080_v0  ;;  %10081 = vst [vmem:[#allocation8_spill] sm:$0xff] %v8763_v23  ;;  %6800 = vmatprep.subr.bf16.mxu0 %v6994_v30  ;;  %v8778_v0 = vrot.slane %v4033_v15, 5  ;;  %v4048_v23 = vshrl.u32 %v5956_v39, 16  ;;  %v4021_v49 = vrot.slane %v4019_v54, 5  ;;  %v4051_v18 = vshll.u32 %v5956_v39, 16  ;;  %v8794_v39 = vpop.f32.mrf.mxu0 }
  0xfe   : > { %6674 = vmatprep.mubr.bf16.mxu1 %v10082_v37  ;;  %6751 = vmatpush3.bf16.msra.mxu1 %v6989_v60  ;;  %v4057_v52 = vshll.u32 %v8758_v22, 16  ;;  %v4017_v12 = vrot.slane %v4016_v2, 4  ;;  %v4722_v46 = vrot.slane %v4720_v31, 4  ;;  %v4723_v37 = vrot.slane %v8719_v28, 5  ;;  %v8784_v60 = vpop.f32.mrf.mxu1  ;;  %v5959_v55 = vld [vmem:[%s7091_s6 + $0x60] sm:$0xf] }
  0xff   : > { %6752 = vmatprep.subr.bf16.mxu1 %v6993_v42  ;;  %v4061_v14 = vshrl.u32 %v8758_v22, 16  ;;  %10084 = vst [vmem:[#allocation10_spill] sm:$0xff] %v8784_v60  ;;  %v3998_v15 = vsel %vm7122_vm2, %v8765_v51, %v8742_v43  ;;  %v4030_v63 = vor.u32 %v4029_v10, %v4026_v45  ;;  %v4040_v28 = vor.u32 %v4039_v21, %v8778_v0  ;;  %v6033_v60 = vld [vmem:[%s7091_s6 + $0x48] sm:$0xe] }
 0x100   : > { %6801 = vmatpush3.bf16.msra.mxu0 %v6994_v30  ;;  %v4727_v30 = vrot.slane %v8712_v33, 5  ;;  %v4043_v2 = vshll.u32 %v5955_v1, 16  ;;  %v4050_v16 = vrot.slane %v4048_v23, 4  ;;  %v4053_v62 = vrot.slane %v4051_v18, 5  ;;  %v8819_v10 = vpop.f32.mrf.mxu1 }
 0x101   : > { %v4012_v43 = vsel %vm7122_vm2, %v4007_v48, %v8721_v11  ;;  %v8803_v33 = vsel %vm7433_vm5, %v6048_v53, %v4720_v31  ;;  %v4022_v51 = vsel %vm7122_vm2, %v4017_v12, %v4021_v49  ;;  %v8811_v23 = vsel %vm7433_vm5, %v4722_v46, %v4723_v37  ;;  %10086 = vst [vmem:[#allocation11_spill] sm:$0xff] %v8819_v10  ;;  %v8822_v49 = vld [vmem:[%s7091_s6 + $0x64] sm:$0xf]  ;;  %v6984_v12 = vld [vmem:[%s7091_s6 + $0x9c] sm:$0xff]   ;;  %v8828_v46 = vpop.f32.mrf.mxu0 }
 0x102   : > { %6723 = vmatmul.mubr.bf16.gmra.mxu0 %v6980_v6  ;;  %6753 = vmatpush3.bf16.msra.mxu1 %v6993_v42  ;;  %v8805_v6 = vrot.slane %v4057_v52, 5  ;;  %v4063_v42 = vrot.slane %v4061_v14, 4  ;;  %v4072_v45 = vshrl.u32 %v5959_v55, 16  ;;  %v4075_v11 = vshll.u32 %v5959_v55, 16  ;;  %v6987_v55 = vld [vmem:[%s7091_s6 + $0xa8] sm:$0xff]  }
 0x103   : > { %6726 = vmatprep.mubr.bf16.mxu0 %v6983_v47  ;;  %v8814_v47 = vld [vmem:[%s7091_s6 + $0x5c] sm:$0x1]  ;;  %v10085_v31 = vcombine.low %v8421_v34, %v8430_v17  ;;  %v4031_v52 = vrot.slane %v4030_v63, 4  ;;  %v6049_v53 = vrot.slane %v6033_v60, 9  ;;  %v4729_v21 = vrot.slane %v4727_v30, 4 }
 0x104   : > { %v4730_v48 = vrot.slane %v5955_v1, 5  ;;  %v10087_v18 = vcombine.low %v8447_v32, %v8451_v58  ;;  %v4041_v37 = vrot.slane %v4040_v28, 4  ;;  %v4045_v14 = vrot.slane %v4043_v2, 5  ;;  %v6034_v63 = vld [vmem:[%s7091_s6 + $0x54] sm:$0xe]  ;;  %v8846_v28 = vpop.f32.mrf.mxu1 }
 0x105   : > { %6675 = vmatmul.mubr.bf16.gmra.mxu1 %v10085_v31  ;;  %v4054_v34 = vor.u32 %v4053_v62, %v4050_v16  ;;  %v4734_v17 = vrot.slane %v8758_v22, 5  ;;  %v4064_v60 = vor.u32 %v4063_v42, %v8805_v6  ;;  %v4067_v1 = vshll.u32 %v8814_v47, 16  ;;  %10089 = vst [vmem:[#allocation12_spill] sm:$0xff] %v8846_v28  ;;  %v6035_v62 = vld [vmem:[%s7091_s6 + $0x60] sm:$0xe] }
 0x106   : > { %6678 = vmatprep.mubr.bf16.mxu1 %v10087_v18  ;;  %v4074_v31 = vrot.slane %v4072_v45, 4  ;;  %v4077_v54 = vrot.slane %v4075_v11, 5  ;;  %v10088_v32 = vsel %vm7122_vm2, %v8714_v50, %v8658_v7  ;;  %v4081_v22 = vshll.u32 %v8822_v49, 16 }
 0x107   : > { %v8840_v58 = vcombine.low %v10088_v32, %v3998_v15  ;;  %v4085_v16 = vshrl.u32 %v8822_v49, 16  ;;  %v8848_v2 = vcombine.low %v4012_v43, %v4022_v51  ;;  %v4036_v42 = vsel %vm7122_vm2, %v4031_v52, %v8778_v0  ;;  %v5962_v15 = vld [vmem:[%s7091_s6 + $0x6c] sm:$0xf]  ;;  %v8866_v32 = vld [vmem:[%s7091_s6 + $0x70] sm:$0xf] }
 0x108   : > { %v8855_v7 = vsel %vm7433_vm5, %v6049_v53, %v4727_v30  ;;  %v8859_v50 = vsel %vm7433_vm5, %v4729_v21, %v4730_v48  ;;  %v8862_v45 = vpop.f32.mrf.mxu0  ;;  %v4055_v43 = vrot.slane %v4054_v34, 4  ;;  %v6050_v51 = vrot.slane %v6034_v63, 9  ;;  %v5961_v53 = vld [vmem:[%s7091_s6 + $0x68] sm:$0x1] }
 0x109   : > { %10090 = vst [vmem:[#allocation13_spill] sm:$0xff] %v8862_v45  ;;  %v4736_v11 = vrot.slane %v4734_v17, 4  ;;  %v4737_v18 = vrot.slane %v8814_v47, 5  ;;  %v4046_v0 = vsel %vm7122_vm2, %v4041_v37, %v4045_v14  ;;  %v4065_v30 = vrot.slane %v4064_v60, 4  ;;  %v6037_v45 = vld [vmem:[%s7091_s6 + $0x78] sm:$0xe] }
 0x10a   : > { %6727 = vmatmul.mubr.bf16.gmra.mxu0 %v6984_v12  ;;  %v4069_v52 = vrot.slane %v4067_v1, 5  ;;  %v4078_v21 = vor.u32 %v4077_v54, %v4074_v31  ;;  %v8871_v48 = vrot.slane %v4081_v22, 5  ;;  %v4087_v12 = vrot.slane %v4085_v16, 4  ;;  %v6988_v31 = vld [vmem:[%s7091_s6 + $0xb4] sm:$0xff]  }
 0x10b   : > { %6730 = vmatprep.mubr.bf16.mxu0 %v6987_v55  ;;  %v4096_v34 = vshrl.u32 %v5962_v15, 16  ;;  %v4099_v63 = vshll.u32 %v5962_v15, 16  ;;  %v10091_v47 = vcombine.low %v8467_v5, %v8472_v25  ;;  %v4741_v14 = vrot.slane %v8822_v49, 5  ;;  %v8888_v5 = vpop.f32.mrf.mxu0 }
 0x10c   : > { %v4105_v54 = vshll.u32 %v8866_v32, 16  ;;  %v4109_v60 = vshrl.u32 %v8866_v32, 16  ;;  %v10093_v1 = vcombine.low %v8485_v9, %v8479_v29  ;;  %10094 = vst [vmem:[#allocation15_spill] sm:$0xff] %v8888_v5  ;;  %v8890_v25 = vcombine.low %v4036_v42, %v4046_v0  ;;  %v5965_v29 = vld [vmem:[%s7091_s6 + $0x78] sm:$0xf]  ;;  %v6991_v9 = vld [vmem:[%s7091_s6 + $0xc0] sm:$0xff]  }
 0x10d   : > { %6679 = vmatmul.mubr.bf16.gmra.mxu1 %v10091_v47  ;;  %v8877_v55 = vpop.f32.mrf.mxu1  ;;  %v4060_v22 = vsel %vm7122_vm2, %v4055_v43, %v8805_v6  ;;  %v8897_v49 = vsel %vm7433_vm5, %v6050_v51, %v4734_v17  ;;  %v8901_v16 = vsel %vm7433_vm5, %v4736_v11, %v4737_v18  ;;  %v4070_v15 = vsel %vm7122_vm2, %v4065_v30, %v4069_v52  ;;  %v8914_v43 = vld [vmem:[%s7091_s6 + $0x74] sm:$0x1]  ;;  %v8971_v5 = vld [vmem:[%s7091_s6 + $0x8c] sm:$0x1] }
 0x10e   : > { %10092 = vst [vmem:[#allocation14_spill] sm:$0xff] %v8877_v55  ;;  %6682 = vmatprep.mubr.bf16.mxu1 %v10093_v1  ;;  %v8907_v47 = vrot.slane %v4078_v21, 4  ;;  %v4091_v42 = vshll.u32 %v5961_v53, 16  ;;  %v6051_v0 = vrot.slane %v6035_v62, 9  ;;  %v8910_v1 = vld [vmem:[%s7091_s6 + $0x7c] sm:$0xf]  ;;  %v4088_v6 = vor.u32 %v4087_v12, %v8871_v48  ;;  %v8920_v21 = vpop.f32.mrf.mxu0 }
 0x10f   : > { %v4744_v17 = vrot.slane %v5961_v53, 5  ;;  %v4098_v51 = vrot.slane %v4096_v34, 4  ;;  %v4101_v11 = vrot.slane %v4099_v63, 5  ;;  %v8916_v18 = vpop.f32.mrf.mxu1  ;;  %v4743_v37 = vrot.slane %v4741_v14, 4  ;;  %10096 = vst [vmem:[#allocation17_spill] sm:$0xff] %v8920_v21 }
 0x110   : > { %10095 = vst [vmem:[#allocation16_spill] sm:$0xff] %v8916_v18  ;;  %v8918_v55 = vrot.slane %v4105_v54, 5  ;;  %v4111_v30 = vrot.slane %v4109_v60, 4  ;;  %v4120_v52 = vshrl.u32 %v5965_v29, 16  ;;  %v6036_v53 = vld [vmem:[%s7091_s6 + $0x6c] sm:$0xe]  ;;  %v8927_v18 = vcombine.low %v4060_v22, %v4070_v15 }
 0x111   : > { %v4123_v12 = vshll.u32 %v5965_v29, 16  ;;  %v4129_v34 = vshll.u32 %v8910_v1, 16  ;;  %v4133_v63 = vshrl.u32 %v8910_v1, 16  ;;  %v8929_v54 = vrot.slane %v4091_v42, 5  ;;  %v5968_v62 = vld [vmem:[%s7091_s6 + $0x84] sm:$0xf]  ;;  %v8950_v42 = vpop.f32.mrf.mxu1 }
 0x112   : > { %6731 = vmatmul.mubr.bf16.gmra.mxu0 %v6988_v31  ;;  %10097 = vst [vmem:[#allocation18_spill] sm:$0xff] %v8927_v18  ;;  %v8933_v60 = vsel %vm7433_vm5, %v6051_v0, %v4741_v14  ;;  %v4115_v31 = vshll.u32 %v8914_v43, 16  ;;  %v8941_v28 = vrot.slane %v4088_v6, 4  ;;  %v4748_v22 = vrot.slane %v8866_v32, 5  ;;  %v8945_v15 = vld [vmem:[%s7091_s6 + $0x88] sm:$0xf] }
 0x113   : > { %6734 = vmatprep.mubr.bf16.mxu0 %v6991_v9  ;;  %v4102_v9 = vor.u32 %v4101_v11, %v4098_v51  ;;  %v10098_v14 = vcombine.low %v8494_v4, %v8498_v13  ;;  %10099 = vst [vmem:[#allocation19_spill] sm:$0xff] %v8950_v42  ;;  %v6992_v0 = vld [vmem:[%s7091_s6 + $0xcc] sm:$0xff]   ;;  %v8955_v10 = vsel %vm7433_vm5, %v4743_v37, %v4744_v17  ;;  %v6052_v6 = vrot.slane %v6036_v53, 9  ;;  %v8958_v11 = vpop.f32.mrf.mxu0  ;;  %v8964_v4 = vld [vmem:[%s7091_s6 + $0x80] sm:$0x1] }
 0x114   : > { %v4112_v29 = vor.u32 %v4111_v30, %v8918_v55  ;;  %v4122_v51 = vrot.slane %v4120_v52, 4  ;;  %10100 = vst [vmem:[#allocation20_spill] sm:$0xff] %v8958_v11  ;;  %v10101_v32 = vcombine.low %v8529_v26, %v8533_v35  ;;  %v4125_v13 = vrot.slane %v4123_v12, 5 }
 0x115   : > { %6683 = vmatmul.mubr.bf16.gmra.mxu1 %v10098_v14  ;;  %v8966_v14 = vrot.slane %v4129_v34, 5  ;;  %v4135_v42 = vrot.slane %v4133_v63, 4  ;;  %v4144_v21 = vshrl.u32 %v5968_v62, 16  ;;  %v4117_v37 = vrot.slane %v4115_v31, 5 }
 0x116   : > { %6686 = vmatprep.mubr.bf16.mxu1 %v10101_v32  ;;  %v4751_v17 = vrot.slane %v8914_v43, 5  ;;  %v4147_v30 = vshll.u32 %v5968_v62, 16  ;;  %v4153_v52 = vshll.u32 %v8945_v15, 16  ;;  %v4103_v53 = vrot.slane %v4102_v9, 4  ;;  %v8974_v32 = vpop.f32.mrf.mxu1 }
 0x117   : > { %v4750_v11 = vrot.slane %v4748_v22, 4  ;;  %v4146_v26 = vrot.slane %v4144_v21, 4  ;;  %v4157_v35 = vshrl.u32 %v8945_v15, 16  ;;  %v4113_v12 = vrot.slane %v4112_v29, 4 }
 0x118   : > { %v4139_v34 = vshll.u32 %v8964_v4, 16  ;;  %v4149_v63 = vrot.slane %v4147_v30, 5  ;;  %v8977_v31 = vrot.slane %v4153_v52, 5  ;;  %v4126_v62 = vor.u32 %v4125_v13, %v4122_v51  ;;  %v6038_v52 = vld [vmem:[%s7091_s6 + $0x84] sm:$0xe] }
 0x119   : > { %v8979_v43 = vpop.f32.mrf.mxu0  ;;  %v4136_v9 = vor.u32 %v4135_v42, %v8966_v14  ;;  %v4755_v21 = vrot.slane %v8910_v1, 5  ;;  %v4159_v18 = vrot.slane %v4157_v35, 4  ;;  %v10102_v29 = vcombine.low %v8625_v41, %v8640_v3 }
 0x11a   : > { %6735 = vmatmul.mubr.bf16.gmra.mxu0 %v6992_v0  ;;  %v4094_v30 = vsel %vm7122_vm2, %v8941_v28, %v8929_v54  ;;  %v8995_v51 = vsel %vm7433_vm5, %v6052_v6, %v4748_v22  ;;  %v4163_v42 = vshll.u32 %v8971_v5, 16  ;;  %v4108_v41 = vsel %vm7122_vm2, %v4103_v53, %v8918_v55  ;;  %v5971_v54 = vld [vmem:[%s7091_s6 + $0x90] sm:$0xf] }
 0x11b   : > { %6802 = vmatprep.mubr.bf16.mxu0 %v10102_v29  ;;  %v8998_v1 = vpop.f32.mrf.mxu0  ;;  %v4150_v3 = vor.u32 %v4149_v63, %v4146_v26  ;;  %v4160_v13 = vor.u32 %v4159_v18, %v8977_v31  ;;  %v4762_v28 = vrot.slane %v8945_v15, 5  ;;  %v10104_v22 = vcombine.low %v8542_v44, %v8547_v8 }
 0x11c   : > { %v4118_v6 = vsel %vm7122_vm2, %v4113_v12, %v4117_v37  ;;  %v9016_v55 = vsel %vm7433_vm5, %v4750_v11, %v4751_v17  ;;  %v4141_v53 = vrot.slane %v4139_v34, 5  ;;  %v6053_v18 = vrot.slane %v6037_v45, 9  ;;  %v9025_v12 = vld [vmem:[%s7091_s6 + $0x94] sm:$0xf] }
 0x11d   : > { %v9007_v35 = vpop.f32.mrf.mxu1  ;;  %6687 = vmatmul.mubr.bf16.gmra.mxu1 %v10104_v22  ;;  %v9018_v26 = vpop.f32.mrf.mxu0  ;;  %v4127_v15 = vrot.slane %v4126_v62, 4  ;;  %v4137_v63 = vrot.slane %v4136_v9, 4  ;;  %v4757_v29 = vrot.slane %v4755_v21, 4  ;;  %v4758_v0 = vrot.slane %v8964_v4, 5 }
 0x11e   : > { %10103 = vst [vmem:[#allocation21_spill] sm:$0xff] %v9007_v35  ;;  %6754 = vmatprep.mubr.bf16.mxu1 %v8734_v40  ;;  %v4165_v8 = vrot.slane %v4163_v42, 5  ;;  %v6054_v37 = vrot.slane %v6038_v52, 9  ;;  %v4168_v11 = vshrl.u32 %v5971_v54, 16  ;;  %v4171_v17 = vshll.u32 %v5971_v54, 16 }
 0x11f   : > { %v9022_v44 = vpop.f32.mrf.mxu1  ;;  %v9027_v34 = vpop.f32.mrf.mxu0  ;;  %v4151_v45 = vrot.slane %v4150_v3, 4  ;;  %v4161_v22 = vrot.slane %v4160_v13, 4  ;;  %v4764_v40 = vrot.slane %v4762_v28, 4  ;;  %v4765_v62 = vrot.slane %v8971_v5, 5  ;;  %v9048_v54 = vld [vmem:[%s7091_s6 + $0x98] sm:$0x1] }
 0x120   : > { %10105 = vst [vmem:[#allocation22_spill] sm:$0xff] %v9022_v44  ;;  %v10107_v4 = vsel %vm7122_vm2, %v8907_v47, %v8871_v48  ;;  %v9039_v52 = vcombine.low %v4108_v41, %v4118_v6  ;;  %v9045_v13 = vsel %vm7433_vm5, %v6053_v18, %v4755_v21  ;;  %v4132_v48 = vsel %vm7122_vm2, %v4127_v15, %v8966_v14  ;;  %v5974_v41 = vld [vmem:[%s7091_s6 + $0x9c] sm:$0xf]  ;;  %v9065_v6 = vld [vmem:[%s7091_s6 + $0xa0] sm:$0xf] }
 0x121   : > { %v9030_v9 = vpop.f32.mrf.mxu1  ;;  %v9037_v42 = vcombine.low %v10107_v4, %v4094_v30  ;;  %v6516_v5 = vpop.f32.mrf.mxu0  ;;  %v4142_v47 = vsel %vm7122_vm2, %v4137_v63, %v4141_v53  ;;  %v9060_v30 = vsel %vm7433_vm5, %v4757_v29, %v4758_v0  ;;  %v4177_v21 = vshll.u32 %v9025_v12, 16  ;;  %v9152_v35 = vld [vmem:[%s7091_s6 + $0xb0] sm:$0x1] }
 0x122   : > { %10106 = vst [vmem:[#allocation23_spill] sm:$0xff] %v9030_v9  ;;  %v10108_v9 = vcombine.low %v8697_v20, %v8701_v19  ;;  %v10110_v20 = vcombine.low %v8753_v36, %v8769_v59  ;;  %v9074_v19 = vsel %vm7433_vm5, %v6054_v37, %v4762_v28  ;;  %v4170_v14 = vrot.slane %v4168_v11, 4  ;;  %v9089_v37 = vld [vmem:[%s7091_s6 + $0x90] sm:$0xe] }
 0x123   : > { %v9067_v18 = vpop.f32.mrf.mxu1  ;;  %v4173_v53 = vrot.slane %v4171_v17, 5  ;;  %v4181_v0 = vshrl.u32 %v9025_v12, 16  ;;  %v1694_v15 = vpop.f32.mrf.mxu0  ;;  %v4156_v63 = vsel %vm7122_vm2, %v4151_v45, %v8977_v31  ;;  %v4166_v29 = vsel %vm7122_vm2, %v4161_v22, %v4165_v8 }
 0x124   : > { %6803 = vmatmul.mubr.bf16.vlgmr.msra.gmra.mxu0 %v10108_v9  ;;  %10109 = vst [vmem:[#allocation24_spill] sm:$0xff] %v9067_v18  ;;  %v9084_v36 = vsel %vm7433_vm5, %v4764_v40, %v4765_v62  ;;  %v4187_v59 = vshll.u32 %v9048_v54, 16  ;;  %v4192_v11 = vshrl.u32 %v5974_v41, 16  ;;  %v4195_v17 = vshll.u32 %v5974_v41, 16 }
 0x125   : > { %6806 = vmatprep.mubr.bf16.mxu0 %v10110_v20  ;;  %v6468_v28 = vpop.f32.mrf.mxu1  ;;  %6755 = vmatmul.mubr.bf16.vlgmr.msra.gmra.mxu1 %v8740_v61  ;;  %v4201_v9 = vshll.u32 %v9065_v6, 16  ;;  %v4205_v31 = vshrl.u32 %v9065_v6, 16  ;;  %v6517_v45 = vpop.f32.mrf.mxu0  ;;  %v9095_v22 = vcombine.low %v4132_v48, %v4142_v47  ;;  %v9099_v40 = vrot.slane %v4177_v21, 5  ;;  %v9113_v61 = vld [vmem:[%s7091_s6 + $0xa4] sm:$0x1] }
 0x126   : > { %v1250_v8 = vadd.f32 %v6468_v28, %v8590_v24  ;;  %6758 = vmatprep.mubr.bf16.mxu1 %v8840_v58  ;;  %v9101_v4 = vcombine.low %v4156_v63, %v4166_v29  ;;  %v4174_v20 = vor.u32 %v4173_v53, %v4170_v14  ;;  %v4183_v24 = vrot.slane %v4181_v0, 4  ;;  %v5977_v28 = vld [vmem:[%s7091_s6 + $0xa8] sm:$0xf]  ;;  %v9118_v14 = vld [vmem:[%s7091_s6 + $0xac] sm:$0xf] }
 0x127   : > { %v1241_v62 = vpop.f32.mrf.mxu1  ;;  %v1697_v48 = vpop.f32.mrf.mxu0  ;;  %v9109_v47 = vrot.slane %v4187_v59, 5  ;;  %v6055_v21 = vrot.slane %v9089_v37, 9  ;;  %v4194_v29 = vrot.slane %v4192_v11, 4  ;;  %v4197_v18 = vrot.slane %v4195_v17, 5 }
 0x128   : > { %v9106_v3 = vadd.f32 %v6516_v5, %v1250_v8  ;;  %v1242_v58 = vadd.f32 %v1241_v62, %v8611_v57  ;;  %v9115_v44 = vrot.slane %v4201_v9, 5  ;;  %v4207_v41 = vrot.slane %v4205_v31, 4  ;;  %v10116_v62 = vld [vmem:[#allocation3_spill] sm:$0xff] }
 0x129   : > { %v6469_v63 = vpop.f32.mrf.mxu1  ;;  %v6520_v5 = vpop.f32.mrf.mxu0  ;;  %v10113_v0 = vcombine.low %v8803_v33, %v8811_v23  ;;  %v4216_v59 = vshrl.u32 %v5977_v28, 16  ;;  %v4219_v37 = vshll.u32 %v5977_v28, 16  ;;  %v10114_v11 = vcombine.low %v8855_v7, %v8859_v50 }
 0x12a   : > { %10111 = vst [vmem:[#allocation25_spill] sm:$0xff] %v9106_v3  ;;  %v9120_v53 = vadd.f32 %v1694_v15, %v1242_v58  ;;  %v1253_v57 = vadd.f32 %v6469_v63, %v8647_v38  ;;  %v9129_v17 = vrot.slane %v4174_v20, 4  ;;  %v4184_v15 = vor.u32 %v4183_v24, %v9099_v40  ;;  %v6040_v58 = vld [vmem:[%s7091_s6 + $0x9c] sm:$0xe] }
 0x12b   : > { %v1244_v8 = vpop.f32.mrf.mxu1  ;;  %v4769_v9 = vrot.slane %v9025_v12, 5  ;;  %v4211_v38 = vshll.u32 %v9113_v61, 16  ;;  %v1710_v23 = vpop.f32.mrf.mxu0  ;;  %v4772_v28 = vrot.slane %v9048_v54, 5  ;;  %v4225_v63 = vshll.u32 %v9118_v14, 16 }
 0x12c   : > { %10112 = vst [vmem:[#allocation26_spill] sm:$0xff] %v9120_v53  ;;  %6807 = vmatmul.mubr.bf16.gmra.mxu0 %v10113_v0  ;;  %v9134_v31 = vadd.f32 %v6517_v45, %v1253_v57  ;;  %v1245_v33 = vadd.f32 %v1244_v8, %v10116_v62  ;;  %v4198_v50 = vor.u32 %v4197_v18, %v4194_v29  ;;  %v4776_v12 = vrot.slane %v9065_v6, 5  ;;  %v10117_v57 = vld [vmem:[#allocation7_spill] sm:$0xff]  ;;  %v10118_v6 = vld [vmem:[#allocation9_spill] sm:$0xff] }
 0x12d   : > { %6810 = vmatprep.mubr.bf16.mxu0 %v10114_v11  ;;  %v6472_v7 = vpop.f32.mrf.mxu1  ;;  %6759 = vmatmul.mubr.bf16.gmra.mxu1 %v8848_v2  ;;  %v4208_v20 = vor.u32 %v4207_v41, %v9115_v44  ;;  %v4229_v45 = vshrl.u32 %v9118_v14, 16  ;;  %v6521_v8 = vpop.f32.mrf.mxu0  ;;  %v4218_v54 = vrot.slane %v4216_v59, 4  ;;  %v4221_v11 = vrot.slane %v4219_v37, 5 }
 0x12e   : > { %10115 = vst [vmem:[#allocation27_spill] sm:$0xff] %v9134_v31  ;;  %v9144_v24 = vadd.f32 %v1697_v48, %v1245_v33  ;;  %v1266_v0 = vadd.f32 %v6472_v7, %v10117_v57  ;;  %6762 = vmatprep.mubr.bf16.mxu1 %v8890_v25  ;;  %v4185_v31 = vrot.slane %v4184_v15, 4  ;;  %v4771_v2 = vrot.slane %v4769_v9, 4 }
 0x12f   : > { %v1257_v62 = vpop.f32.mrf.mxu1  ;;  %v4213_v18 = vrot.slane %v4211_v38, 5  ;;  %v6056_v29 = vrot.slane %v6040_v58, 9  ;;  %v1713_v3 = vpop.f32.mrf.mxu0  ;;  %v9154_v48 = vrot.slane %v4225_v63, 5  ;;  %v4231_v33 = vrot.slane %v4229_v45, 4 }
 0x130   : > { %v9148_v41 = vadd.f32 %v6520_v5, %v1266_v0  ;;  %v1258_v53 = vadd.f32 %v1257_v62, %v10118_v6  ;;  %v4199_v57 = vrot.slane %v4198_v50, 4  ;;  %v4209_v25 = vrot.slane %v4208_v20, 4 }
 0x131   : > { %v6473_v7 = vpop.f32.mrf.mxu1  ;;  %v4778_v59 = vrot.slane %v4776_v12, 4  ;;  %v4779_v37 = vrot.slane %v9113_v61, 5  ;;  %v6524_v38 = vpop.f32.mrf.mxu0  ;;  %v10119_v58 = vcombine.low %v8897_v49, %v8901_v16  ;;  %v9165_v63 = vsel %vm7433_vm5, %v6055_v21, %v4769_v9  ;;  %v6041_v21 = vld [vmem:[%s7091_s6 + $0xa8] sm:$0xe] }
 0x132   : > { %v9157_v15 = vadd.f32 %v1710_v23, %v1258_v53  ;;  %v1269_v5 = vadd.f32 %v6473_v7, %v8794_v39  ;;  %v4222_v50 = vor.u32 %v4221_v11, %v4218_v54  ;;  %v10120_v20 = vcombine.low %v8933_v60, %v8955_v10 }
 0x133   : > { %v1260_v45 = vpop.f32.mrf.mxu1  ;;  %v4180_v39 = vsel %vm7122_vm2, %v9129_v17, %v9099_v40  ;;  %v4190_v49 = vsel %vm7122_vm2, %v4185_v31, %v9109_v47  ;;  %v9179_v16 = vsel %vm7433_vm5, %v4771_v2, %v4772_v28  ;;  %v4235_v61 = vshll.u32 %v9152_v35, 16  ;;  %v1726_v60 = vpop.f32.mrf.mxu0  ;;  %v5980_v17 = vld [vmem:[%s7091_s6 + $0xb4] sm:$0xf]  ;;  %v10121_v47 = vld [vmem:[#allocation18_spill] sm:$0xff]  ;;  %v9208_v2 = vld [vmem:[%s7091_s6 + $0xb8] sm:$0xf] }
 0x134   : > { %6811 = vmatmul.mubr.bf16.gmra.mxu0 %v10119_v58  ;;  %v9183_v53 = vadd.f32 %v6521_v8, %v1269_v5  ;;  %v1261_v10 = vadd.f32 %v1260_v45, %v8828_v46  ;;  %v4232_v9 = vor.u32 %v4231_v33, %v9154_v48  ;;  %v4783_v40 = vrot.slane %v9118_v14, 5  ;;  %v10122_v8 = vld [vmem:[#allocation13_spill] sm:$0xff] }
 0x135   : > { %6814 = vmatprep.mubr.bf16.mxu0 %v10120_v20  ;;  %v6476_v23 = vpop.f32.mrf.mxu1  ;;  %6763 = vmatmul.mubr.bf16.gmra.mxu1 %v10121_v47  ;;  %v4204_v31 = vsel %vm7122_vm2, %v4199_v57, %v9115_v44  ;;  %v4214_v28 = vsel %vm7122_vm2, %v4209_v25, %v4213_v18  ;;  %v9197_v46 = vsel %vm7433_vm5, %v6056_v29, %v4776_v12  ;;  %v6525_v11 = vpop.f32.mrf.mxu0  ;;  %v4223_v62 = vrot.slane %v4222_v50, 4  ;;  %v10123_v57 = vld [vmem:[#allocation15_spill] sm:$0xff]  ;;  %v10127_v47 = vld [vmem:[#allocation20_spill] sm:$0xff] }
 0x136   : > { %v9201_v0 = vsel %vm7433_vm5, %v4778_v59, %v4779_v37  ;;  %v9203_v14 = vadd.f32 %v1713_v3, %v1261_v10  ;;  %v1282_v54 = vadd.f32 %v6476_v23, %v10122_v8  ;;  %6766 = vmatprep.mubr.bf16.mxu1 %v9037_v42  ;;  %v6057_v44 = vrot.slane %v6041_v21, 9 }
 0x137   : > { %v1273_v18 = vpop.f32.mrf.mxu1  ;;  %v4237_v6 = vrot.slane %v4235_v61, 5  ;;  %v4786_v12 = vrot.slane %v9152_v35, 5  ;;  %v4240_v29 = vshrl.u32 %v5980_v17, 16  ;;  %v4243_v33 = vshll.u32 %v5980_v17, 16  ;;  %v1729_v25 = vpop.f32.mrf.mxu0 }
 0x138   : > { %v9211_v7 = vadd.f32 %v6524_v38, %v1282_v54  ;;  %v1274_v3 = vadd.f32 %v1273_v18, %v10123_v57  ;;  %v4233_v59 = vrot.slane %v4232_v9, 4  ;;  %v4785_v37 = vrot.slane %v4783_v40, 4  ;;  %v10124_v38 = vld [vmem:[#allocation17_spill] sm:$0xff] }
 0x139   : > { %v6477_v42 = vpop.f32.mrf.mxu1  ;;  %v9214_v5 = vcombine.low %v4180_v39, %v4190_v49  ;;  %v6087_v58 = vcombine.low %v9165_v63, %v9179_v16  ;;  %v9218_v50 = vcombine.low %v4204_v31, %v4214_v28  ;;  %v4249_v35 = vshll.u32 %v9208_v2, 16  ;;  %v6528_v61 = vpop.f32.mrf.mxu0  ;;  %v5983_v49 = vld [vmem:[%s7091_s6 + $0xc0] sm:$0xf]  ;;  %v9232_v16 = vld [vmem:[%s7091_s6 + $0xc4] sm:$0xf] }
 0x13a   : > { %v9221_v45 = vadd.f32 %v1726_v60, %v1274_v3  ;;  %v1285_v20 = vadd.f32 %v6477_v42, %v10124_v38  ;;  %v10125_v21 = vcombine.low %v8995_v51, %v9016_v55  ;;  %v6088_v39 = vcombine.low %v9197_v46, %v9201_v0  ;;  %v10132_v46 = vld [vmem:[#allocation6_spill] sm:$0xff] }
 0x13b   : > { %v4253_v63 = vshrl.u32 %v9208_v2, 16  ;;  %v1276_v10 = vpop.f32.mrf.mxu1  ;;  %v10126_v60 = vcombine.low %v9045_v13, %v9060_v30  ;;  %v4228_v51 = vsel %vm7122_vm2, %v4223_v62, %v9154_v48  ;;  %v9242_v55 = vsel %vm7433_vm5, %v6057_v44, %v4783_v40  ;;  %v1742_v28 = vpop.f32.mrf.mxu0  ;;  %v9254_v30 = vld [vmem:[%s7091_s6 + $0xbc] sm:$0x1]  ;;  %v6042_v48 = vld [vmem:[%s7091_s6 + $0xb4] sm:$0xe] }
 0x13c   : > { %6815 = vmatmul.mubr.bf16.gmra.mxu0 %v10125_v21  ;;  %v4242_v9 = vrot.slane %v4240_v29, 4  ;;  %v4245_v17 = vrot.slane %v4243_v33, 5  ;;  %v9244_v23 = vadd.f32 %v6525_v11, %v1285_v20  ;;  %v1277_v31 = vadd.f32 %v1276_v10, %v10127_v47  ;;  %v9276_v20 = vld [vmem:[%s7091_s6 + $0xc8] sm:$0x1] }
 0x13d   : > { %6818 = vmatprep.mubr.bf16.mxu0 %v10126_v60  ;;  %v4238_v8 = vsel %vm7122_vm2, %v4233_v59, %v4237_v6  ;;  %v9251_v13 = vsel %vm7433_vm5, %v4785_v37, %v4786_v12  ;;  %v6480_v54 = vpop.f32.mrf.mxu1  ;;  %6767 = vmatmul.mubr.bf16.gmra.mxu1 %v9039_v52  ;;  %v9258_v40 = vrot.slane %v4249_v35, 5  ;;  %v4264_v11 = vshrl.u32 %v5983_v49, 16  ;;  %v6529_v29 = vpop.f32.mrf.mxu0 }
 0x13e   : > { %v4267_v62 = vshll.u32 %v5983_v49, 16  ;;  %v4273_v44 = vshll.u32 %v9232_v16, 16  ;;  %v9261_v18 = vadd.f32 %v1729_v25, %v1277_v31  ;;  %v1298_v6 = vadd.f32 %v6480_v54, %v8979_v43  ;;  %6770 = vmatprep.mubr.bf16.mxu1 %v9095_v22 }
 0x13f   : > { %v4255_v12 = vrot.slane %v4253_v63, 4  ;;  %v4277_v33 = vshrl.u32 %v9232_v16, 16  ;;  %v1289_v57 = vpop.f32.mrf.mxu1  ;;  %v4246_v3 = vor.u32 %v4245_v17, %v4242_v9  ;;  %v4259_v52 = vshll.u32 %v9254_v30, 16  ;;  %v1745_v43 = vpop.f32.mrf.mxu0  ;;  %v5986_v9 = vld [vmem:[%s7091_s6 + $0xcc] sm:$0xf] }
 0x140   : > { %v6058_v59 = vrot.slane %v6042_v48, 9  ;;  %v4790_v37 = vrot.slane %v9208_v2, 5  ;;  %v9268_v42 = vadd.f32 %v6528_v61, %v1298_v6  ;;  %v1290_v25 = vadd.f32 %v1289_v57, %v8998_v1  ;;  %v6043_v48 = vld [vmem:[%s7091_s6 + $0xc0] sm:$0xe] }
 0x141   : > { %v9271_v35 = vcombine.low %v4228_v51, %v4238_v8  ;;  %v6089_v22 = vcombine.low %v9242_v55, %v9251_v13  ;;  %v6481_v38 = vpop.f32.mrf.mxu1  ;;  %v4266_v21 = vrot.slane %v4264_v11, 4  ;;  %v4269_v63 = vrot.slane %v4267_v62, 5  ;;  %v6532_v10 = vpop.f32.mrf.mxu0  ;;  %v9298_v8 = vld [vmem:[%s7091_s6 + $0xd0] sm:$0xf] }
 0x142   : > { %v9278_v49 = vrot.slane %v4273_v44, 5  ;;  %v4279_v2 = vrot.slane %v4277_v33, 4  ;;  %v9280_v61 = vadd.f32 %v1742_v28, %v1290_v25  ;;  %v1301_v1 = vadd.f32 %v6481_v38, %v9018_v26 }
 0x143   : > { %v10128_v60 = vcombine.low %v9074_v19, %v9084_v36  ;;  %v4256_v51 = vor.u32 %v4255_v12, %v9258_v40  ;;  %v4793_v55 = vrot.slane %v9254_v30, 5  ;;  %v1292_v17 = vpop.f32.mrf.mxu1  ;;  %v9289_v47 = vrot.slane %v4246_v3, 4  ;;  %v1758_v13 = vpop.f32.mrf.mxu0 }
 0x144   : > { %v9291_v31 = vrot.slane %v4259_v52, 5  ;;  %v9295_v26 = vsel %vm7433_vm5, %v6058_v59, %v4790_v37  ;;  %v4792_v28 = vrot.slane %v4790_v37, 4  ;;  %v9300_v19 = vadd.f32 %v6529_v29, %v1301_v1  ;;  %v10129_v29 = vld [vmem:[#allocation2_spill] sm:$0xff] }
 0x145   : > { %6819 = vmatmul.mubr.bf16.gmra.mxu0 %v10128_v60  ;;  %v1293_v36 = vadd.f32 %v1292_v17, %v9027_v34  ;;  %v4283_v30 = vshll.u32 %v9276_v20, 16  ;;  %v6484_v54 = vpop.f32.mrf.mxu1  ;;  %6771 = vmatmul.mubr.bf16.gmra.mxu1 %v9101_v4  ;;  %v4270_v11 = vor.u32 %v4269_v63, %v4266_v21  ;;  %v4280_v62 = vor.u32 %v4279_v2, %v9278_v49  ;;  %v6533_v57 = vpop.f32.mrf.mxu0 }
 0x146   : > { %6822 = vmatprep.mubr.bf16.mxu0 %v6087_v58  ;;  %v4797_v58 = vrot.slane %v9232_v16, 5  ;;  %v4288_v44 = vshrl.u32 %v5986_v9, 16  ;;  %v4291_v6 = vshll.u32 %v5986_v9, 16  ;;  %v1314_v33 = vadd.f32 %v6484_v54, %v10129_v29  ;;  %6774 = vmatprep.mubr.bf16.mxu1 %v9214_v5 }
 0x147   : > { %v9308_v12 = vadd.f32 %v1745_v43, %v1293_v36  ;;  %v4297_v34 = vshll.u32 %v9298_v8, 16  ;;  %v4301_v3 = vshrl.u32 %v9298_v8, 16  ;;  %v1305_v16 = vpop.f32.mrf.mxu1  ;;  %v4257_v52 = vrot.slane %v4256_v51, 4  ;;  %v10130_v43 = vld [vmem:[#allocation5_spill] sm:$0xff]  ;;  %v1761_v21 = vpop.f32.mrf.mxu0  ;;  %v10131_v36 = vld [vmem:[#allocation4_spill] sm:$0xff] }
 0x148   : > { %v4794_v4 = vsel %vm7433_vm5, %v4792_v28, %v4793_v55  ;;  %v6059_v59 = vrot.slane %v6043_v48, 9  ;;  %v4800_v37 = vrot.slane %v9276_v20, 5  ;;  %v9317_v25 = vadd.f32 %v6532_v10, %v1314_v33  ;;  %v5988_v20 = vld [vmem:[%s7091_s6 + $0xd4] sm:$0x1] }
 0x149   : > { %v1306_v38 = vadd.f32 %v1305_v16, %v10130_v43  ;;  %v4285_v63 = vrot.slane %v4283_v30, 5  ;;  %v4799_v5 = vrot.slane %v4797_v58, 4  ;;  %v6485_v2 = vpop.f32.mrf.mxu1  ;;  %v4271_v1 = vrot.slane %v4270_v11, 4 }
 0x14a   : > { %v4281_v60 = vrot.slane %v4280_v62, 4  ;;  %v4290_v9 = vrot.slane %v4288_v44, 4  ;;  %v4293_v17 = vrot.slane %v4291_v6, 5  ;;  %v1317_v55 = vadd.f32 %v6485_v2, %v10131_v36  ;;  %v6536_v28 = vpop.f32.mrf.mxu0  ;;  %v6044_v6 = vld [vmem:[%s7091_s6 + $0xcc] sm:$0xe]  ;;  %s6105_s6 = sshll.u32 %s10284_s18, 7 }
 0x14b   : > { %v9320_v51 = vadd.f32 %v1758_v13, %v1306_v38  ;;  %v9327_v10 = vrot.slane %v4297_v34, 5  ;;  %v4303_v30 = vrot.slane %v4301_v3, 4  ;;  %v1308_v48 = vpop.f32.mrf.mxu1  ;;  %v4252_v13 = vsel %vm7122_vm2, %v9289_v47, %v9258_v40  ;;  %s9615_s7 = scalar_lea.vmem %s9980_s4, %s6105_s6 }
 0x14c   : > { %v4262_v54 = vsel %vm7122_vm2, %v4257_v52, %v9291_v31  ;;  %v4804_v11 = vrot.slane %v9298_v8, 5  ;;  %v9337_v62 = vadd.f32 %v6533_v57, %v1317_v55  ;;  %v1309_v0 = vadd.f32 %v1308_v48, %v10132_v46  ;;  %v10133_v57 = vld [vmem:[#allocation8_spill] sm:$0xff] }
 0x14d   : > { %6823 = vmatmul.mubr.bf16.gmra.mxu0 %v6088_v39  ;;  %v1774_v39 = vpop.f32.mrf.mxu0  ;;  %v4798_v44 = vsel %vm7433_vm5, %v6059_v59, %v4797_v58  ;;  %v6488_v29 = vpop.f32.mrf.mxu1  ;;  %6775 = vmatmul.mubr.bf16.gmra.mxu1 %v9218_v50  ;;  %v6090_v40 = vcombine.low %v9295_v26, %v4794_v4  ;;  %v4276_v47 = vsel %vm7122_vm2, %v4271_v1, %v9278_v49  ;;  %v4307_v8 = vshll.u32 %v5988_v20, 16  ;;  %v10136_v48 = vld [vmem:[#allocation12_spill] sm:$0xff] }
 0x14e   : > { %6826 = vmatprep.mubr.bf16.mxu0 %v6089_v22  ;;  %v4801_v22 = vsel %vm7433_vm5, %v4799_v5, %v4800_v37  ;;  %v4294_v31 = vor.u32 %v4293_v17, %v4290_v9  ;;  %v9350_v33 = vadd.f32 %v1761_v21, %v1309_v0  ;;  %v1330_v34 = vadd.f32 %v6488_v29, %v10133_v57  ;;  %v10134_v37 = vld [vmem:[#allocation10_spill] sm:$0xff]  ;;  %v10135_v9 = vld [vmem:[#allocation11_spill] sm:$0xff] }
 0x14f   : > { %v6537_v58 = vpop.f32.mrf.mxu0  ;;  %6778 = vmatprep.mubr.bf16.mxu1 %v9271_v35  ;;  %v4286_v3 = vsel %vm7122_vm2, %v4281_v60, %v4285_v63  ;;  %v4304_v50 = vor.u32 %v4303_v30, %v9327_v10  ;;  %v1321_v16 = vpop.f32.mrf.mxu1  ;;  %v6091_v26 = vcombine.low %v4798_v44, %v4801_v22  ;;  %v6060_v52 = vrot.slane %v6044_v6, 9  ;;  %v10137_v44 = vld [vmem:[#allocation14_spill] sm:$0xff] }
 0x150   : > { %v4806_v4 = vrot.slane %v4804_v11, 4  ;;  %v4807_v59 = vrot.slane %v5988_v20, 5  ;;  %v9357_v49 = vadd.f32 %v6536_v28, %v1330_v34  ;;  %v1322_v43 = vadd.f32 %v1321_v16, %v10134_v37  ;;  %v10140_v37 = vld [vmem:[#allocation21_spill] sm:$0xff] }
 0x151   : > { %v1777_v38 = vpop.f32.mrf.mxu0  ;;  %v6489_v21 = vpop.f32.mrf.mxu1  ;;  %v6018_v5 = vcombine.low %v4252_v13, %v4262_v54  ;;  %v6019_v2 = vcombine.low %v4276_v47, %v4286_v3  ;;  %v4295_v1 = vrot.slane %v4294_v31, 4  ;;  %v4305_v17 = vrot.slane %v4304_v50, 4  ;;  %v10138_v47 = vld [vmem:[#allocation16_spill] sm:$0xff] }
 0x152   : > { %v9360_v35 = vadd.f32 %v1774_v39, %v1322_v43  ;;  %v1333_v63 = vadd.f32 %v6489_v21, %v10135_v9  ;;  %v4309_v36 = vrot.slane %v4307_v8, 5  ;;  %v4805_v28 = vsel %vm7433_vm5, %v6060_v52, %v4804_v11 }
 0x153   : > { %v6540_v60 = vpop.f32.mrf.mxu0  ;;  %v1324_v55 = vpop.f32.mrf.mxu1  ;;  %v4808_v20 = vsel %vm7433_vm5, %v4806_v4, %v4807_v59  ;;  %v4300_v0 = vsel %vm7122_vm2, %v4295_v1, %v9327_v10  ;;  %v10139_v10 = vld [vmem:[#allocation19_spill] sm:$0xff] }
 0x154   : > { %v9367_v30 = vadd.f32 %v6537_v58, %v1333_v63  ;;  %v1325_v13 = vadd.f32 %v1324_v55, %v10136_v48  ;;  %v4310_v56 = vsel %vm7122_vm2, %v4305_v17, %v4309_v36  ;;  %v6092_v11 = vcombine.low %v4805_v28, %v4808_v20  ;;  %v10142_v17 = vld [vmem:[#allocation23_spill] sm:$0xff]  ;;  %v10143_v20 = vld [vmem:[#allocation24_spill] sm:$0xff] }
 0x155   : > { %6827 = vmatmul.mubr.bf16.gmra.mxu0 %v6090_v40  ;;  %v1790_v54 = vpop.f32.mrf.mxu0  ;;  %v6492_v46 = vpop.f32.mrf.mxu1  ;;  %6779 = vmatmul.mubr.bf16.gmra.mxu1 %v6018_v5  ;;  %v6020_v34 = vcombine.low %v4300_v0, %v4310_v56  ;;  %v10144_v0 = vld [vmem:[#allocation25_spill] sm:$0xff] }
 0x156   : > { %6830 = vmatprep.mubr.bf16.mxu0 %v6091_v26  ;;  %v9373_v39 = vadd.f32 %v1777_v38, %v1325_v13  ;;  %v1346_v22 = vadd.f32 %v6492_v46, %v10137_v44  ;;  %6782 = vmatprep.mubr.bf16.mxu1 %v6019_v2  ;;  %v10141_v2 = vld [vmem:[#allocation22_spill] sm:$0xff] }
 0x157   : > { %v6541_v6 = vpop.f32.mrf.mxu0  ;;  %v1337_v29 = vpop.f32.mrf.mxu1 }
 0x158   : > { %v9378_v40 = vadd.f32 %v6540_v60, %v1346_v22  ;;  %v1338_v31 = vadd.f32 %v1337_v29, %v10138_v47 }
 0x159   : > { %v1793_v8 = vpop.f32.mrf.mxu0  ;;  %v6493_v57 = vpop.f32.mrf.mxu1 }
 0x15a   : > { %v9381_v58 = vadd.f32 %v1790_v54, %v1338_v31  ;;  %v1349_v3 = vadd.f32 %v6493_v57, %v10139_v10  ;;  %v10146_v57 = vld [vmem:[#allocation27_spill] sm:$0xff] }
 0x15b   : > { %v6544_v50 = vpop.f32.mrf.mxu0  ;;  %v1340_v16 = vpop.f32.mrf.mxu1 }
 0x15c   : > { %v9384_v26 = vadd.f32 %v6541_v6, %v1349_v3  ;;  %v1341_v27 = vadd.f32 %v1340_v16, %v8974_v32 }
 0x15d   : > { %6831 = vmatmul.mubr.bf16.gmra.mxu0 %v6092_v11  ;;  %v1806_v52 = vpop.f32.mrf.mxu0  ;;  %v6496_v4 = vpop.f32.mrf.mxu1  ;;  %6783 = vmatmul.mubr.bf16.gmra.mxu1 %v6020_v34  ;;  %v10145_v11 = vld [vmem:[#allocation26_spill] sm:$0xff] }
 0x15e   : > { %v9387_v59 = vadd.f32 %v1793_v8, %v1341_v27  ;;  %v1362_v43 = vadd.f32 %v6496_v4, %v10140_v37 }
 0x15f   : > { %v6545_v38 = vpop.f32.mrf.mxu0  ;;  %v1353_v21 = vpop.f32.mrf.mxu1 }
 0x160   : > { %v9390_v5 = vadd.f32 %v6544_v50, %v1362_v43  ;;  %v1354_v1 = vadd.f32 %v1353_v21, %v10141_v2 }
 0x161   : > { %v1809_v9 = vpop.f32.mrf.mxu0  ;;  %v6497_v63 = vpop.f32.mrf.mxu1 }
 0x162   : > { %v9393_v60 = vadd.f32 %v1806_v52, %v1354_v1  ;;  %v1365_v36 = vadd.f32 %v6497_v63, %v10142_v17 }
 0x163   : > { %v6612_v32 = vpop.f32.mrf.mxu0  ;;  %v1356_v55 = vpop.f32.mrf.mxu1 }
 0x164   : > { %v9396_v28 = vadd.f32 %v6545_v38, %v1365_v36  ;;  %v1357_v48 = vadd.f32 %v1356_v55, %v10143_v20 }
 0x165   : > { %v2835_v13 = vpop.f32.mrf.mxu0  ;;  %v6564_v54 = vpop.f32.mrf.mxu1 }
 0x166   : > { %v9399_v46 = vadd.f32 %v1809_v9, %v1357_v48  ;;  %v2210_v44 = vadd.f32 %v6564_v54, %v10144_v0 }
 0x167   : > { %v6613_v22 = vpop.f32.mrf.mxu0  ;;  %v2081_v6 = vpop.f32.mrf.mxu1 }
 0x168   : > { %v9402_v56 = vadd.f32 %v6612_v32, %v2210_v44  ;;  %v2208_v29 = vadd.f32 %v2081_v6, %v10145_v11 }
 0x169   : > { %v2838_v47 = vpop.f32.mrf.mxu0  ;;  %v6565_v31 = vpop.f32.mrf.mxu1 }
 0x16a   : > { %v9405_v8 = vadd.f32 %v2835_v13, %v2208_v29  ;;  %v2211_v34 = vadd.f32 %v6565_v31, %v10146_v57 }
 0x16b   : > { %v6616_v10 = vpop.f32.mrf.mxu0  ;;  %v2084_v3 = vpop.f32.mrf.mxu1 }
 0x16c   : > { %v9408_v50 = vadd.f32 %v6613_v22, %v2211_v34  ;;  %v2209_v16 = vadd.f32 %v2084_v3, %v9144_v24 }
 0x16d   : > { %v2851_v27 = vpop.f32.mrf.mxu0  ;;  %v6568_v52 = vpop.f32.mrf.mxu1 }
 0x16e   : > { %v9411_v4 = vadd.f32 %v2838_v47, %v2209_v16  ;;  %v2214_v37 = vadd.f32 %v6568_v52, %v9148_v41 }
 0x16f   : > { %v6617_v43 = vpop.f32.mrf.mxu0  ;;  %v2097_v38 = vpop.f32.mrf.mxu1 }
 0x170   : > { %v9414_v21 = vadd.f32 %v6616_v10, %v2214_v37  ;;  %v2212_v2 = vadd.f32 %v2097_v38, %v9157_v15 }
 0x171   : > { %v2854_v1 = vpop.f32.mrf.mxu0  ;;  %v6569_v9 = vpop.f32.mrf.mxu1 }
 0x172   : > { %v9417_v63 = vadd.f32 %v2851_v27, %v2212_v2  ;;  %v2215_v17 = vadd.f32 %v6569_v9, %v9183_v53 }
 0x173   : > { %v6620_v36 = vpop.f32.mrf.mxu0  ;;  %v2100_v24 = vpop.f32.mrf.mxu1 }
 0x174   : > { %v9420_v32 = vadd.f32 %v6617_v43, %v2215_v17  ;;  %v2213_v55 = vadd.f32 %v2100_v24, %v9203_v14 }
 0x175   : > { %v2867_v20 = vpop.f32.mrf.mxu0  ;;  %v6572_v41 = vpop.f32.mrf.mxu1 }
 0x176   : > { %v9423_v48 = vadd.f32 %v2854_v1, %v2213_v55  ;;  %v2218_v13 = vadd.f32 %v6572_v41, %v9211_v7 }
 0x177   : > { %v6621_v54 = vpop.f32.mrf.mxu0  ;;  %v2113_v15 = vpop.f32.mrf.mxu1 }
 0x178   : > { %v9426_v0 = vadd.f32 %v6620_v36, %v2218_v13  ;;  %v2216_v44 = vadd.f32 %v2113_v15, %v9221_v45 }
 0x179   : > { %v2870_v22 = vpop.f32.mrf.mxu0  ;;  %v6573_v53 = vpop.f32.mrf.mxu1 }
 0x17a   : > { %v9429_v6 = vadd.f32 %v2867_v20, %v2216_v44  ;;  %v2219_v11 = vadd.f32 %v6573_v53, %v9244_v23 }
 0x17b   : > { %v6624_v29 = vpop.f32.mrf.mxu0  ;;  %v2116_v14 = vpop.f32.mrf.mxu1 }
 0x17c   : > { %v9432_v47 = vadd.f32 %v6621_v54, %v2219_v11  ;;  %v2217_v31 = vadd.f32 %v2116_v14, %v9261_v18 }
 0x17d   : > { %v2883_v57 = vpop.f32.mrf.mxu0  ;;  %v6576_v7 = vpop.f32.mrf.mxu1 }
 0x17e   : > { %v9435_v34 = vadd.f32 %v2870_v22, %v2217_v31  ;;  %v2222_v10 = vadd.f32 %v6576_v7, %v9268_v42 }
 0x17f   : > { %v6625_v3 = vpop.f32.mrf.mxu0  ;;  %v2129_v45 = vpop.f32.mrf.mxu1 }
 0x180   : > { %v9438_v16 = vadd.f32 %v6624_v29, %v2222_v10  ;;  %v2220_v27 = vadd.f32 %v2129_v45, %v9280_v61 }
 0x181   : > { %v2886_v52 = vpop.f32.mrf.mxu0  ;;  %v6577_v23 = vpop.f32.mrf.mxu1 }
 0x182   : > { %v9441_v37 = vadd.f32 %v2883_v57, %v2220_v27  ;;  %v2223_v43 = vadd.f32 %v6577_v23, %v9300_v19 }
 0x183   : > { %v6628_v38 = vpop.f32.mrf.mxu0  ;;  %v2132_v18 = vpop.f32.mrf.mxu1 }
 0x184   : > { %v9444_v2 = vadd.f32 %v6625_v3, %v2223_v43  ;;  %v2221_v1 = vadd.f32 %v2132_v18, %v9308_v12 }
 0x185   : > { %v2899_v9 = vpop.f32.mrf.mxu0  ;;  %v6580_v42 = vpop.f32.mrf.mxu1 }
 0x186   : > { %v9447_v17 = vadd.f32 %v2886_v52, %v2221_v1  ;;  %v2226_v36 = vadd.f32 %v6580_v42, %v9317_v25 }
 0x187   : > { %v6629_v24 = vpop.f32.mrf.mxu0  ;;  %v2145_v61 = vpop.f32.mrf.mxu1 }
 0x188   : > { %10147 = vst [vmem:[#allocation3_spill] sm:$0xff] %v9447_v17  ;;  %v9450_v55 = vadd.f32 %v6628_v38, %v2226_v36  ;;  %v2224_v20 = vadd.f32 %v2145_v61, %v9320_v51  ;;  %v9690_v17 = vld [vmem:[%s9615_s7 + $0x50] sm:$0xff]  }
 0x189   : > { %v2902_v41 = vpop.f32.mrf.mxu0  ;;  %v6581_v19 = vpop.f32.mrf.mxu1 }
 0x18a   : > { %10148 = vst [vmem:[#allocation7_spill] sm:$0xff] %v9450_v55  ;;  %v9453_v13 = vadd.f32 %v2899_v9, %v2224_v20  ;;  %v2227_v54 = vadd.f32 %v6581_v19, %v9337_v62  ;;  %v9673_v55 = vld [vmem:[%s9615_s7 + $0x48] sm:$0xff]  }
 0x18b   : > { %v6632_v15 = vpop.f32.mrf.mxu0  ;;  %v2148_v12 = vpop.f32.mrf.mxu1 }
 0x18c   : > { %10149 = vst [vmem:[#allocation9_spill] sm:$0xff] %v9453_v13  ;;  %v9456_v44 = vadd.f32 %v6629_v24, %v2227_v54  ;;  %v2225_v22 = vadd.f32 %v2148_v12, %v9350_v33  ;;  %v9676_v13 = vld [vmem:[%s9615_s7 + $0x40] sm:$0xff]  }
 0x18d   : > { %v2915_v53 = vpop.f32.mrf.mxu0  ;;  %v6584_v25 = vpop.f32.mrf.mxu1 }
 0x18e   : > { %10150 = vst [vmem:[#allocation18_spill] sm:$0xff] %v9456_v44  ;;  %v9459_v11 = vadd.f32 %v2902_v41, %v2225_v22  ;;  %v2230_v29 = vadd.f32 %v6584_v25, %v9357_v49 }
 0x18f   : > { %v6633_v14 = vpop.f32.mrf.mxu0  ;;  %v2161_v51 = vpop.f32.mrf.mxu1 }
 0x190   : > { %10151 = vst [vmem:[#allocation13_spill] sm:$0xff] %v9459_v11  ;;  %v9462_v31 = vadd.f32 %v6632_v15, %v2230_v29  ;;  %v2228_v57 = vadd.f32 %v2161_v51, %v9360_v35 }
 0x191   : > { %v2918_v7 = vpop.f32.mrf.mxu0  ;;  %v6585_v62 = vpop.f32.mrf.mxu1 }
 0x192   : > { %10152 = vst [vmem:[#allocation15_spill] sm:$0xff] %v9462_v31  ;;  %v9465_v10 = vadd.f32 %v2915_v53, %v2228_v57  ;;  %v2231_v3 = vadd.f32 %v6585_v62, %v9367_v30 }
 0x193   : > { %v6636_v45 = vpop.f32.mrf.mxu0  ;;  %v2164_v33 = vpop.f32.mrf.mxu1 }
 0x194   : > { %10153 = vst [vmem:[#allocation17_spill] sm:$0xff] %v9465_v10  ;;  %v9468_v27 = vadd.f32 %v6633_v14, %v2231_v3  ;;  %v2229_v52 = vadd.f32 %v2164_v33, %v9373_v39 }
 0x195   : > { %v2931_v23 = vpop.f32.mrf.mxu0  ;;  %v6588_v49 = vpop.f32.mrf.mxu1 }
 0x196   : > { %10154 = vst [vmem:[#allocation20_spill] sm:$0xff] %v9468_v27  ;;  %v9471_v43 = vadd.f32 %v2918_v7, %v2229_v52  ;;  %v2234_v38 = vadd.f32 %v6588_v49, %v9378_v40 }
 0x197   : > { %v6637_v18 = vpop.f32.mrf.mxu0  ;;  %v2177_v35 = vpop.f32.mrf.mxu1 }
 0x198   : > { %10155 = vst [vmem:[#allocation2_spill] sm:$0xff] %v9471_v43  ;;  %v9474_v1 = vadd.f32 %v6636_v45, %v2234_v38  ;;  %v2232_v9 = vadd.f32 %v2177_v35, %v9381_v58 }
 0x199   : > { %v2934_v42 = vpop.f32.mrf.mxu0  ;;  %v6589_v30 = vpop.f32.mrf.mxu1 }
 0x19a   : > { %10156 = vst [vmem:[#allocation5_spill] sm:$0xff] %v9474_v1  ;;  %v9477_v36 = vadd.f32 %v2931_v23, %v2232_v9  ;;  %v2235_v24 = vadd.f32 %v6589_v30, %v9384_v26 }
 0x19b   : > { %v6640_v61 = vpop.f32.mrf.mxu0  ;;  %v2180_v39 = vpop.f32.mrf.mxu1 }
 0x19c   : > { %10157 = vst [vmem:[#allocation4_spill] sm:$0xff] %v9477_v36  ;;  %v9480_v20 = vadd.f32 %v6637_v18, %v2235_v24  ;;  %v2233_v41 = vadd.f32 %v2180_v39, %v9387_v59 }
 0x19d   : > { %v2947_v19 = vpop.f32.mrf.mxu0  ;;  %v6592_v40 = vpop.f32.mrf.mxu1 }
 0x19e   : > { %10158 = vst [vmem:[#allocation6_spill] sm:$0xff] %v9480_v20  ;;  %v9483_v54 = vadd.f32 %v2934_v42, %v2233_v41  ;;  %v2238_v15 = vadd.f32 %v6592_v40, %v9390_v5 }
 0x19f   : > { %v6641_v12 = vpop.f32.mrf.mxu0  ;;  %v2193_v58 = vpop.f32.mrf.mxu1 }
 0x1a0   : > { %10159 = vst [vmem:[#allocation8_spill] sm:$0xff] %v9483_v54  ;;  %v9486_v22 = vadd.f32 %v6640_v61, %v2238_v15  ;;  %v2236_v53 = vadd.f32 %v2193_v58, %v9393_v60 }
 0x1a1   : > { %v2950_v25 = vpop.f32.mrf.mxu0  ;;  %v6593_v26 = vpop.f32.mrf.mxu1 }
 0x1a2   : > { %10160 = vst [vmem:[#allocation10_spill] sm:$0xff] %v9486_v22  ;;  %v9489_v29 = vadd.f32 %v2947_v19, %v2236_v53  ;;  %v2239_v14 = vadd.f32 %v6593_v26, %v9396_v28 }
 0x1a3   : > { %v9492_v51 = vpop.f32.mrf.mxu0  ;;  %v2196_v59 = vpop.f32.mrf.mxu1 }
 0x1a4   : > { %10161 = vst [vmem:[#allocation11_spill] sm:$0xff] %v9489_v29  ;;  %v9494_v57 = vadd.f32 %v6641_v12, %v2239_v14  ;;  %v2237_v7 = vadd.f32 %v2196_v59, %v9399_v46 }
 0x1a5   : > { %v9497_v5 = vpop.f32.mrf.mxu0  ;;  %v9499_v62 = vpop.f32.mrf.mxu1 }
 0x1a6   : > { %10162 = vst [vmem:[#allocation12_spill] sm:$0xff] %v9494_v57  ;;  %v9501_v3 = vadd.f32 %v2950_v25, %v2237_v7 }
 0x1a7   : > { %v9503_v60 = vpop.f32.mrf.mxu0  ;;  %v9505_v45 = vpop.f32.mrf.mxu1 }
 0x1a8   : > { %10163 = vst [vmem:[#allocation14_spill] sm:$0xff] %v9501_v3 }
 0x1a9   : > { %v9507_v33 = vpop.f32.mrf.mxu0  ;;  %v9509_v28 = vpop.f32.mrf.mxu1 }
 0x1ab   : > { %v9511_v52 = vpop.f32.mrf.mxu0  ;;  %v9513_v23 = vpop.f32.mrf.mxu1 }
 0x1ad   : > { %v9515_v49 = vpop.f32.mrf.mxu0  ;;  %v9517_v46 = vpop.f32.mrf.mxu1 }
 0x1af   : > { %v9519_v38 = vpop.f32.mrf.mxu0  ;;  %v9521_v18 = vpop.f32.mrf.mxu1 }
 0x1b1   : > { %v9523_v35 = vpop.f32.mrf.mxu0  ;;  %v9525_v9 = vpop.f32.mrf.mxu1 }
 0x1b3   : > { %v9527_v42 = vpop.f32.mrf.mxu0  ;;  %v9529_v30 = vpop.f32.mrf.mxu1 }
 0x1b5   : > { %v9531_v24 = vpop.f32.mrf.mxu0  ;;  %v9533_v61 = vpop.f32.mrf.mxu1 }
 0x1b7   : > { %v9535_v39 = vpop.f32.mrf.mxu0  ;;  %v9537_v41 = vpop.f32.mrf.mxu1 }
 0x1b9   : > { %v9539_v19 = vpop.f32.mrf.mxu0  ;;  %v9541_v40 = vpop.f32.mrf.mxu1 }
 0x1bb   : > { %v9543_v15 = vpop.f32.mrf.mxu0  ;;  %v9545_v12 = vpop.f32.mrf.mxu1 }
 0x1bd   : > { %v9547_v58 = vpop.f32.mrf.mxu0  ;;  %v9549_v53 = vpop.f32.mrf.mxu1 }
 0x1bf   : > { %v9551_v25 = vpop.f32.mrf.mxu0  ;;  %v9553_v26 = vpop.f32.mrf.mxu1 }
 0x1c0   : > { %10164 = vst [vmem:[#allocation16_spill] sm:$0xff] %v9551_v25 }
 0x1c1   : > { %v9555_v14 = vpop.f32.mrf.mxu0  ;;  %v9557_v59 = vpop.f32.mrf.mxu1 }
 0x1c2   : > { %10165 = vst [vmem:[#allocation19_spill] sm:$0xff] %v9555_v14 }
 0x1c3   : > { %v9559_v7 = vpop.f32.mrf.mxu0  ;;  %v9561_v3 = vpop.f32.mrf.mxu1 }
 0x1c4   : > { %10166 = vst [vmem:[#allocation21_spill] sm:$0xff] %v9559_v7  ;;  %10167 = vst [vmem:[#allocation22_spill] sm:$0xff] %v9561_v3  ;;  %v9687_v3 = vld [vmem:[%s9615_s7 + $0x58] sm:$0xff]  }
 0x1c5   : > { %v9563_v57 = vpop.f32.mrf.mxu0  ;;  %v9565_v29 = vpop.f32.mrf.mxu1 }
 0x1c6   : > { %10168 = vst [vmem:[#allocation23_spill] sm:$0xff] %v9563_v57  ;;  %10169 = vst [vmem:[#allocation24_spill] sm:$0xff] %v9565_v29 }
 0x1c7   : > { %v9567_v22 = vpop.f32.mrf.mxu0  ;;  %v9569_v54 = vpop.f32.mrf.mxu1 }
 0x1c8   : > { %10170 = vst [vmem:[#allocation25_spill] sm:$0xff] %v9567_v22  ;;  %10171 = vst [vmem:[#allocation26_spill] sm:$0xff] %v9569_v54  ;;  %v9656_v54 = vld [vmem:[%s9615_s7 + $0x38] sm:$0xff]  }
 0x1c9   : > { %v9571_v20 = vpop.f32.mrf.mxu0  ;;  %v9573_v36 = vpop.f32.mrf.mxu1  ;;  %10199 = vst [vmem:[#allocation54_spill] sm:$0xff] %v9656_v54  ;;  %v9704_v54 = vld [vmem:[%s9615_s7 + $0x68] sm:$0xff]  }
 0x1ca   : > { %10172 = vst [vmem:[#allocation27_spill] sm:$0xff] %v9571_v20  ;;  %10173 = vst [vmem:[#allocation28_spill] sm:$0xff] %v9573_v36 }
 0x1cb   : > { %v9575_v1 = vpop.f32.mrf.mxu0  ;;  %v9577_v43 = vpop.f32.mrf.mxu1 }
 0x1cc   : > { %10174 = vst [vmem:[#allocation29_spill] sm:$0xff] %v9575_v1  ;;  %10175 = vst [vmem:[#allocation30_spill] sm:$0xff] %v9577_v43 }
 0x1cd   : > { %v9579_v27 = vpop.f32.mrf.mxu0  ;;  %v9581_v10 = vpop.f32.mrf.mxu1 }
 0x1ce   : > { %10176 = vst [vmem:[#allocation31_spill] sm:$0xff] %v9579_v27  ;;  %10177 = vst [vmem:[#allocation32_spill] sm:$0xff] %v9581_v10 }
 0x1cf   : > { %v9583_v31 = vpop.f32.mrf.mxu0  ;;  %v9585_v11 = vpop.f32.mrf.mxu1 }
 0x1d0   : > { %10178 = vst [vmem:[#allocation33_spill] sm:$0xff] %v9583_v31  ;;  %10179 = vst [vmem:[#allocation34_spill] sm:$0xff] %v9585_v11  ;;  %v9648_v11 = vld [vmem:[%s9615_s7 + $0x20] sm:$0xff]  }
 0x1d1   : > { %v9587_v22 = vpop.f32.mrf.mxu0  ;;  %v9589_v57 = vpop.f32.mrf.mxu1  ;;  %10198 = vst [vmem:[#allocation53_spill] sm:$0xff] %v9648_v11  ;;  %v3466_v11 = vadd.f32 %v9517_v46, %v9414_v21  ;;  %v9719_v46 = vld [vmem:[%s9615_s7 + $0x60] sm:$0xff]  }
 0x1d2   : > { %10180 = vst [vmem:[#allocation35_spill] sm:$0xff] %v9587_v22  ;;  %10181 = vst [vmem:[#allocation36_spill] sm:$0xff] %v9589_v57 }
 0x1d3   : > { %v9591_v20 = vpop.f32.mrf.mxu0  ;;  %v9593_v36 = vpop.f32.mrf.mxu1 }
 0x1d4   : > { %10182 = vst [vmem:[#allocation37_spill] sm:$0xff] %v9591_v20  ;;  %10183 = vst [vmem:[#allocation38_spill] sm:$0xff] %v9593_v36  ;;  %v3462_v20 = vadd.f32 %v9499_v62, %v9402_v56  ;;  %v9645_v36 = vld [vmem:[%s9615_s7 + $0x28] sm:$0xff]   ;;  %v3463_v62 = vadd.f32 %v9509_v28, %v9408_v50  ;;  %v3461_v28 = vadd.f32 %v9513_v23, %v9411_v4 }
 0x1d5   : > { %v9595_v44 = vpop.f32.mrf.mxu0  ;;  %v9597_v1 = vpop.f32.mrf.mxu1  ;;  %v3464_v4 = vadd.f32 %v9521_v18, %v9417_v63  ;;  %v3465_v63 = vadd.f32 %v9529_v30, %v9423_v48  ;;  %v3470_v48 = vadd.f32 %v9533_v61, %v9426_v0  ;;  %v3468_v0 = vadd.f32 %v9537_v41, %v9429_v6 }
 0x1d6   : > { %10184 = vst [vmem:[#allocation39_spill] sm:$0xff] %v9595_v44  ;;  %10185 = vst [vmem:[#allocation40_spill] sm:$0xff] %v9597_v1  ;;  %v9636_v1 = vld [vmem:[%s9615_s7 + $0x18] sm:$0xff]   ;;  %v3849_v56 = vadd.f32 %v9492_v51, %v3462_v20  ;;  %v9695_v20 = vld [vmem:[%s9978_s2] ss:$0 sm:$0xff] }
 0x1d7   : > { %v9599_v43 = vpop.f32.mrf.mxu0  ;;  %v9601_v27 = vpop.f32.mrf.mxu1 }
 0x1d8   : > { %10186 = vst [vmem:[#allocation41_spill] sm:$0xff] %v9599_v43  ;;  %10187 = vst [vmem:[#allocation42_spill] sm:$0xff] %v9601_v27 }
 0x1d9   : > { %v9603_v10 = vpop.f32.mrf.mxu0  ;;  %v9606_v31 = vpop.f32.mrf.mxu1 }
 0x1da   : > { %10188 = vst [vmem:[#allocation43_spill] sm:$0xff] %v9603_v10  ;;  %10189 = vst [vmem:[#allocation44_spill] sm:$0xff] %v9606_v31  ;;  %v9629_v31 = vld [vmem:[%s9615_s7] sm:$0xff]  }
 0x1db   : > { %v9608_v22 = vpop.f32.mrf.mxu0  ;;  %v9610_v57 = vpop.f32.mrf.mxu1 }
 0x1dc   : > { %10190 = vst [vmem:[#allocation45_spill] sm:$0xff] %v9608_v22  ;;  %10191 = vst [vmem:[#allocation46_spill] sm:$0xff] %v9610_v57  ;;  %v9624_v22 = vld [vmem:[%s9615_s7 + $0x8] sm:$0xff]  }
 0x1dd   : > { %v9617_v43 = vpop.f32.mrf.mxu0  ;;  %v9619_v10 = vpop.f32.mrf.mxu1 }
 0x1de   : > { %10192 = vst [vmem:[#allocation47_spill] sm:$0xff] %v9617_v43  ;;  %10193 = vst [vmem:[#allocation48_spill] sm:$0xff] %v9619_v10  ;;  %v9639_v43 = vld [vmem:[%s9615_s7 + $0x10] sm:$0xff]  }
 0x1df   : > { %v9621_v44 = vpop.f32.mrf.mxu0  ;;  %v9626_v57 = vpop.f32.mrf.mxu1 }
 0x1e0   : > { %10194 = vst [vmem:[#allocation49_spill] sm:$0xff] %v9621_v44  ;;  %10195 = vst [vmem:[#allocation50_spill] sm:$0xff] %v9626_v57  ;;  %v3460_v57 = vadd.f32 %v9505_v45, %v9405_v8 }
 0x1e1   : > { %v9633_v27 = vpop.f32.mrf.mxu0  ;;  %v9641_v10 = vpop.f32.mrf.mxu1 }
 0x1e2   : > { %10196 = vst [vmem:[#allocation51_spill] sm:$0xff] %v9633_v27  ;;  %10197 = vst [vmem:[#allocation52_spill] sm:$0xff] %v9641_v10  ;;  %v9659_v10 = vld [vmem:[%s9615_s7 + $0x30] sm:$0xff]   ;;  %v3847_v51 = vadd.f32 %v9497_v5, %v3460_v57  ;;  %v9711_v5 = vld [vmem:[%s9979_s3] ss:$0 sm:$0xff]  ;;  %v3467_v57 = vadd.f32 %v9525_v9, %v9420_v32  ;;  %v6157_v32 = vunpack.c.l.bf16 %v9719_v46  ;;  %v6162_v9 = vunpack.c.h.bf16 %v9704_v54 }
 0x1e3   : > { %v9661_v44 = vpop.f32.mrf.mxu1 }
 0x1e4   : > { %v6804_v7 = vpop.f32.mrf.mxu0  ;;  %10200 = vst [vmem:[#allocation55_spill] sm:$0xff] %v9661_v44 }
 0x1e5   : > { %v6756_v14 = vpop.f32.mrf.mxu1 }
 0x1e6   : > { %v4972_v27 = vpop.f32.mrf.mxu0  ;;  %v4603_v29 = vadd.f32 %v6756_v14, %v3849_v56  ;;  %v3850_v14 = vadd.f32 %v9503_v60, %v3463_v62  ;;  %v3848_v62 = vadd.f32 %v9507_v33, %v3461_v28 }
 0x1e7   : > { %v4474_v50 = vpop.f32.mrf.mxu1 }
 0x1e8   : > { %v6805_v44 = vpop.f32.mrf.mxu0  ;;  %v5101_v56 = vadd.f32 %v6804_v7, %v4603_v29  ;;  %v4601_v25 = vadd.f32 %v4474_v50, %v3847_v51  ;;  %v6150_v29 = vunpack.c.h.bf16 %v9690_v17 }
 0x1e9   : > { %v6757_v23 = vpop.f32.mrf.mxu1 }
 0x1ea   : > { %v4975_v45 = vpop.f32.mrf.mxu0  ;;  %v5140_v50 = vmul.f32 %v9695_v20, %v5101_v56  ;;  %v5099_v51 = vadd.f32 %v4972_v27, %v4601_v25  ;;  %v4604_v8 = vadd.f32 %v6757_v23, %v3850_v14  ;;  %v3853_v14 = vadd.f32 %v9511_v52, %v3466_v11 }
 0x1eb   : > { %v4477_v60 = vpop.f32.mrf.mxu1  ;;  %v10201_v56 = vunpack.c.l.bf16 %v9624_v22  ;;  %v3854_v11 = vadd.f32 %v9519_v38, %v3467_v57  ;;  %v3852_v57 = vadd.f32 %v9523_v35, %v3465_v63  ;;  %v3471_v35 = vadd.f32 %v9541_v40, %v9432_v47 }
 0x1ec   : > { %v6808_v21 = vpop.f32.mrf.mxu0  ;;  %v5179_v33 = vadd.f32 %v9711_v5, %v5140_v50  ;;  %v5138_v27 = vmul.f32 %v9695_v20, %v5099_v51  ;;  %v5102_v25 = vadd.f32 %v6805_v44, %v4604_v8  ;;  %v4602_v28 = vadd.f32 %v4477_v60, %v3848_v62 }
 0x1ed   : > { %v6760_v18 = vpop.f32.mrf.mxu1  ;;  %v3851_v60 = vadd.f32 %v9515_v49, %v3464_v4 }
 0x1ee   : > { %v4988_v23 = vpop.f32.mrf.mxu0  ;;  %v5275_v7 = vadd.f32 %v10201_v56, %v5179_v33  ;;  %v5177_v50 = vadd.f32 %v9711_v5, %v5138_v27  ;;  %v5141_v51 = vmul.f32 %v9695_v20, %v5102_v25  ;;  %v5100_v44 = vadd.f32 %v4975_v45, %v4602_v28 }
 0x1ef   : > { %v4607_v52 = vadd.f32 %v6760_v18, %v3853_v14  ;;  %v4490_v30 = vpop.f32.mrf.mxu1  ;;  %v10202_v33 = vunpack.c.l.bf16 %v9629_v31 }
 0x1f0   : > { %v6809_v8 = vpop.f32.mrf.mxu0  ;;  %v5307_v62 = vmax.f32 %v5275_v7, 0.0  ;;  %v5180_v27 = vadd.f32 %v9711_v5, %v5141_v51  ;;  %v5139_v49 = vmul.f32 %v9695_v20, %v5100_v44  ;;  %v4605_v4 = vadd.f32 %v4490_v30, %v3851_v60 }
 0x1f1   : > { %v5273_v45 = vadd.f32 %v10202_v33, %v5177_v50  ;;  %v5105_v61 = vadd.f32 %v6808_v21, %v4607_v52  ;;  %v6761_v25 = vpop.f32.mrf.mxu1  ;;  %v10203_v7 = vunpack.c.h.bf16 %v9624_v22  ;;  %v3857_v51 = vadd.f32 %v9527_v42, %v3470_v48 }
 0x1f2   : > { %v4991_v38 = vpop.f32.mrf.mxu0  ;;  %5339 = vst [vmem:[%s9746_s14 + $0x10] sm:$0xff] %v5307_v62  ;;  %v5178_v18 = vadd.f32 %v9711_v5, %v5139_v49  ;;  %v4608_v56 = vadd.f32 %v6761_v25, %v3854_v11  ;;  %v5103_v41 = vadd.f32 %v4988_v23, %v4605_v4  ;;  %v10204_v44 = vunpack.c.h.bf16 %v9629_v31 }
 0x1f3   : > { %v5305_v28 = vmax.f32 %v5273_v45, 0.0  ;;  %v5276_v14 = vadd.f32 %v10203_v7, %v5180_v27  ;;  %v5144_v6 = vmul.f32 %v9695_v20, %v5105_v61  ;;  %v4493_v21 = vpop.f32.mrf.mxu1  ;;  %v3855_v11 = vadd.f32 %v9531_v24, %v3468_v0 }
 0x1f4   : > { %v6812_v50 = vpop.f32.mrf.mxu0  ;;  %v5274_v22 = vadd.f32 %v10204_v44, %v5178_v18  ;;  %v5106_v60 = vadd.f32 %v6809_v8, %v4608_v56  ;;  %v4606_v52 = vadd.f32 %v4493_v21, %v3852_v57  ;;  %v3469_v42 = vadd.f32 %v9545_v12, %v9435_v34 }
 0x1f5   : > { %5337 = vst [vmem:[%s9746_s14] sm:$0xff] %v5305_v28  ;;  %v5308_v63 = vmax.f32 %v5276_v14, 0.0  ;;  %v5183_v47 = vadd.f32 %v9711_v5, %v5144_v6  ;;  %v5142_v40 = vmul.f32 %v9695_v20, %v5103_v41  ;;  %v6764_v23 = vpop.f32.mrf.mxu1  ;;  %v3858_v45 = vadd.f32 %v9535_v39, %v3471_v35 }
 0x1f6   : > { %v5004_v30 = vpop.f32.mrf.mxu0  ;;  %v5306_v48 = vmax.f32 %v5274_v22, 0.0  ;;  %v5145_v62 = vmul.f32 %v9695_v20, %v5106_v60  ;;  %v5104_v31 = vadd.f32 %v4991_v38, %v4606_v52  ;;  %v4611_v33 = vadd.f32 %v6764_v23, %v3857_v51 }
 0x1f7   : > { %5340 = vst [vmem:[%s9746_s14 + $0x18] sm:$0xff] %v5308_v63  ;;  %v3474_v24 = vadd.f32 %v9549_v53, %v9438_v16  ;;  %v10205_v27 = vunpack.c.l.bf16 %v9636_v1  ;;  %v5181_v12 = vadd.f32 %v9711_v5, %v5142_v40  ;;  %v4506_v49 = vpop.f32.mrf.mxu1  ;;  %v3856_v39 = vadd.f32 %v9539_v19, %v3469_v42 }
 0x1f8   : > { %v6813_v8 = vpop.f32.mrf.mxu0  ;;  %5338 = vst [vmem:[%s9746_s14 + $0x8] sm:$0xff] %v5306_v48  ;;  %v5184_v57 = vadd.f32 %v9711_v5, %v5145_v62  ;;  %v5143_v0 = vmul.f32 %v9695_v20, %v5104_v31  ;;  %v5109_v38 = vadd.f32 %v6812_v50, %v4611_v33  ;;  %v4609_v61 = vadd.f32 %v4506_v49, %v3855_v11  ;;  %v10212_v31 = vld [vmem:[#allocation16_spill] sm:$0xff]  ;;  %v10215_v49 = vld [vmem:[#allocation53_spill] sm:$0xff] }
 0x1f9   : > { %v5279_v34 = vadd.f32 %v10205_v27, %v5183_v47  ;;  %v3472_v16 = vadd.f32 %v9553_v26, %v9441_v37  ;;  %v10206_v25 = vunpack.c.l.bf16 %v9639_v43  ;;  %v6765_v7 = vpop.f32.mrf.mxu1  ;;  %v10207_v14 = vunpack.c.h.bf16 %v9636_v1 }
 0x1fa   : > { %v5007_v4 = vpop.f32.mrf.mxu0  ;;  %v5182_v56 = vadd.f32 %v9711_v5, %v5143_v0  ;;  %v5148_v51 = vmul.f32 %v9695_v20, %v5109_v38  ;;  %v5107_v50 = vadd.f32 %v5004_v30, %v4609_v61  ;;  %v3861_v19 = vadd.f32 %v9543_v15, %v3474_v24  ;;  %v10209_v15 = vld [vmem:[#allocation3_spill] sm:$0xff]  ;;  %v10210_v30 = vld [vmem:[#allocation22_spill] sm:$0xff] }
 0x1fb   : > { %v5311_v53 = vmax.f32 %v5279_v34, 0.0  ;;  %v5277_v28 = vadd.f32 %v10206_v25, %v5181_v12  ;;  %v5280_v18 = vadd.f32 %v10207_v14, %v5184_v57  ;;  %v3475_v37 = vadd.f32 %v9557_v59, %v9444_v2  ;;  %v4509_v41 = vpop.f32.mrf.mxu1  ;;  %v10218_v25 = vld [vmem:[#allocation9_spill] sm:$0xff] }
 0x1fc   : > { %v6816_v35 = vpop.f32.mrf.mxu0  ;;  %v4612_v6 = vadd.f32 %v6765_v7, %v3858_v45  ;;  %v10208_v1 = vunpack.c.h.bf16 %v9639_v43  ;;  %v5187_v44 = vadd.f32 %v9711_v5, %v5148_v51  ;;  %v5146_v22 = vmul.f32 %v9695_v20, %v5107_v50  ;;  %v10214_v45 = vld [vmem:[#allocation24_spill] sm:$0xff] }
 0x1fd   : > { %5343 = vst [vmem:[%s9746_s14 + $0x30] sm:$0xff] %v5311_v53  ;;  %v5309_v26 = vmax.f32 %v5277_v28, 0.0  ;;  %v5312_v21 = vmax.f32 %v5280_v18, 0.0  ;;  %v3859_v52 = vadd.f32 %v9547_v58, %v3472_v16  ;;  %v3473_v11 = vadd.f32 %v10210_v30, %v10209_v15  ;;  %v6768_v42 = vpop.f32.mrf.mxu1  ;;  %v10213_v58 = vld [vmem:[#allocation7_spill] sm:$0xff]  ;;  %v10219_v28 = vld [vmem:[#allocation26_spill] sm:$0xff] }
 0x1fe   : > { %v5278_v63 = vadd.f32 %v10208_v1, %v5182_v56  ;;  %v5020_v60 = vpop.f32.mrf.mxu0  ;;  %v5110_v2 = vadd.f32 %v6813_v8, %v4612_v6  ;;  %v4610_v59 = vadd.f32 %v4509_v41, %v3856_v39  ;;  %v10211_v43 = vunpack.c.l.bf16 %v9645_v36  ;;  %v10217_v16 = vld [vmem:[#allocation19_spill] sm:$0xff]  ;;  %v10221_v6 = vld [vmem:[#allocation18_spill] sm:$0xff]  ;;  %v10222_v41 = vld [vmem:[#allocation28_spill] sm:$0xff] }
 0x1ff   : > { %5341 = vst [vmem:[%s9746_s14 + $0x20] sm:$0xff] %v5309_v26  ;;  %5344 = vst [vmem:[%s9746_s14 + $0x38] sm:$0xff] %v5312_v21  ;;  %v5185_v23 = vadd.f32 %v9711_v5, %v5146_v22  ;;  %v4615_v48 = vadd.f32 %v6768_v42, %v3861_v19  ;;  %v3862_v33 = vadd.f32 %v10212_v31, %v3475_v37  ;;  %v4522_v34 = vpop.f32.mrf.mxu1  ;;  %v10216_v57 = vunpack.c.l.bf16 %v10215_v49  ;;  %v10220_v37 = vld [vmem:[#allocation21_spill] sm:$0xff]  ;;  %v10228_v31 = vld [vmem:[#allocation54_spill] sm:$0xff] }
 0x200   : > { %v5310_v47 = vmax.f32 %v5278_v63, 0.0  ;;  %v5283_v40 = vadd.f32 %v10211_v43, %v5187_v44  ;;  %v6817_v62 = vpop.f32.mrf.mxu0  ;;  %v3478_v24 = vadd.f32 %v10214_v45, %v10213_v58  ;;  %v5149_v27 = vmul.f32 %v9695_v20, %v5110_v2  ;;  %v10224_v2 = vld [vmem:[#allocation23_spill] sm:$0xff]  ;;  %v10225_v42 = vld [vmem:[#allocation13_spill] sm:$0xff] }
 0x201   : > { %v5108_v8 = vadd.f32 %v5007_v4, %v4610_v59  ;;  %v5281_v0 = vadd.f32 %v10216_v57, %v5185_v23  ;;  %v5113_v38 = vadd.f32 %v6816_v35, %v4615_v48  ;;  %v4613_v61 = vadd.f32 %v4522_v34, %v3859_v52  ;;  %v6769_v4 = vpop.f32.mrf.mxu1  ;;  %v10232_v57 = vld [vmem:[#allocation32_spill] sm:$0xff] }
 0x202   : > { %5342 = vst [vmem:[%s9746_s14 + $0x28] sm:$0xff] %v5310_v47  ;;  %v5315_v12 = vmax.f32 %v5283_v40, 0.0  ;;  %v5023_v39 = vpop.f32.mrf.mxu0  ;;  %v3860_v53 = vadd.f32 %v10217_v16, %v3473_v11  ;;  %v3476_v7 = vadd.f32 %v10219_v28, %v10218_v25  ;;  %v5188_v14 = vadd.f32 %v9711_v5, %v5149_v27  ;;  %v10226_v47 = vld [vmem:[#allocation30_spill] sm:$0xff] }
 0x203   : > { %v5147_v18 = vmul.f32 %v9695_v20, %v5108_v8  ;;  %v5313_v56 = vmax.f32 %v5281_v0, 0.0  ;;  %v5152_v51 = vmul.f32 %v9695_v20, %v5113_v38  ;;  %v5111_v50 = vadd.f32 %v5020_v60, %v4613_v61  ;;  %v4525_v22 = vpop.f32.mrf.mxu1  ;;  %v10230_v8 = vld [vmem:[#allocation25_spill] sm:$0xff] }
 0x204   : > { %5347 = vst [vmem:[%s9746_s14 + $0x50] sm:$0xff] %v5315_v12  ;;  %v4616_v19 = vadd.f32 %v6769_v4, %v3862_v33  ;;  %v3865_v26 = vadd.f32 %v10220_v37, %v3478_v24  ;;  %v3479_v21 = vadd.f32 %v10222_v41, %v10221_v6  ;;  %v10223_v1 = vunpack.c.h.bf16 %v9645_v36  ;;  %v10231_v12 = vld [vmem:[#allocation15_spill] sm:$0xff]  ;;  %v10235_v4 = vld [vmem:[#allocation17_spill] sm:$0xff] }
 0x205   : > { %v6820_v35 = vpop.f32.mrf.mxu0  ;;  %v5186_v44 = vadd.f32 %v9711_v5, %v5147_v18  ;;  %5345 = vst [vmem:[%s9746_s14 + $0x40] sm:$0xff] %v5313_v56  ;;  %v5191_v52 = vadd.f32 %v9711_v5, %v5152_v51  ;;  %v5150_v15 = vmul.f32 %v9695_v20, %v5111_v50  ;;  %v4614_v30 = vadd.f32 %v4525_v22, %v3860_v53  ;;  %v6772_v48 = vpop.f32.mrf.mxu1  ;;  %v10236_v56 = vld [vmem:[#allocation34_spill] sm:$0xff] }
 0x206   : > { %v5284_v63 = vadd.f32 %v10223_v1, %v5188_v14  ;;  %v5114_v60 = vadd.f32 %v6817_v62, %v4616_v19  ;;  %v3863_v59 = vadd.f32 %v10224_v2, %v3476_v7  ;;  %v3477_v43 = vadd.f32 %v10226_v47, %v10225_v42  ;;  %v10234_v14 = vld [vmem:[#allocation27_spill] sm:$0xff] }
 0x207   : > { %v5036_v11 = vpop.f32.mrf.mxu0  ;;  %v10227_v36 = vunpack.c.h.bf16 %v10215_v49  ;;  %v10229_v33 = vunpack.c.l.bf16 %v10228_v31  ;;  %v5189_v45 = vadd.f32 %v9711_v5, %v5150_v15  ;;  %v5112_v62 = vadd.f32 %v5023_v39, %v4614_v30  ;;  %v4538_v61 = vpop.f32.mrf.mxu1  ;;  %v10240_v15 = vld [vmem:[#allocation36_spill] sm:$0xff] }
 0x208   : > { %v5316_v40 = vmax.f32 %v5284_v63, 0.0  ;;  %v5153_v24 = vmul.f32 %v9695_v20, %v5114_v60  ;;  %v3866_v34 = vadd.f32 %v10230_v8, %v3479_v21  ;;  %v3482_v0 = vadd.f32 %v10232_v57, %v10231_v12  ;;  %v10245_v12 = vld [vmem:[#allocation33_spill] sm:$0xff] }
 0x209   : > { %v5282_v23 = vadd.f32 %v10227_v36, %v5186_v44  ;;  %v5287_v58 = vadd.f32 %v10229_v33, %v5191_v52  ;;  %v6821_v27 = vpop.f32.mrf.mxu0  ;;  %v4619_v38 = vadd.f32 %v6772_v48, %v3865_v26  ;;  %v10233_v53 = vunpack.c.l.bf16 %v9659_v10  ;;  %v6773_v37 = vpop.f32.mrf.mxu1  ;;  %v10238_v44 = vld [vmem:[#allocation29_spill] sm:$0xff]  ;;  %v10239_v52 = vld [vmem:[#allocation20_spill] sm:$0xff]  ;;  %v10244_v33 = vld [vmem:[#allocation38_spill] sm:$0xff] }
 0x20a   : > { %5348 = vst [vmem:[%s9746_s14 + $0x58] sm:$0xff] %v5316_v40  ;;  %v5192_v28 = vadd.f32 %v9711_v5, %v5153_v24  ;;  %v5151_v7 = vmul.f32 %v9695_v20, %v5112_v62  ;;  %v3864_v18 = vadd.f32 %v10234_v14, %v3477_v43  ;;  %v3480_v51 = vadd.f32 %v10236_v56, %v10235_v4  ;;  %v10249_v4 = vld [vmem:[#allocation35_spill] sm:$0xff] }
 0x20b   : > { %v5314_v49 = vmax.f32 %v5282_v23, 0.0  ;;  %v5319_v16 = vmax.f32 %v5287_v58, 0.0  ;;  %v5285_v25 = vadd.f32 %v10233_v53, %v5189_v45  ;;  %v5039_v39 = vpop.f32.mrf.mxu0  ;;  %v5117_v50 = vadd.f32 %v6820_v35, %v4619_v38  ;;  %v4541_v2 = vpop.f32.mrf.mxu1  ;;  %v10242_v23 = vld [vmem:[#allocation31_spill] sm:$0xff] }
 0x20c   : > { %v4617_v19 = vadd.f32 %v4538_v61, %v3863_v59  ;;  %v10237_v6 = vunpack.c.h.bf16 %v10228_v31  ;;  %v5190_v21 = vadd.f32 %v9711_v5, %v5151_v7  ;;  %v4620_v1 = vadd.f32 %v6773_v37, %v3866_v34  ;;  %v10243_v31 = vld [vmem:[#allocation2_spill] sm:$0xff] }
 0x20d   : > { %5346 = vst [vmem:[%s9746_s14 + $0x48] sm:$0xff] %v5314_v49  ;;  %5351 = vst [vmem:[%s9746_s14 + $0x70] sm:$0xff] %v5319_v16  ;;  %v5317_v26 = vmax.f32 %v5285_v25, 0.0  ;;  %v6824_v63 = vpop.f32.mrf.mxu0  ;;  %v3869_v22 = vadd.f32 %v10238_v44, %v3482_v0  ;;  %v3483_v60 = vadd.f32 %v10240_v15, %v10239_v52  ;;  %v5156_v30 = vmul.f32 %v9695_v20, %v5117_v50  ;;  %v10246_v0 = vld [vmem:[#allocation5_spill] sm:$0xff]  ;;  %v10247_v49 = vld [vmem:[#allocation40_spill] sm:$0xff] }
 0x20e   : > { %v5288_v41 = vadd.f32 %v10237_v6, %v5192_v28  ;;  %v5115_v35 = vadd.f32 %v5036_v11, %v4617_v19  ;;  %v10241_v42 = vunpack.c.h.bf16 %v9659_v10  ;;  %v5118_v43 = vadd.f32 %v6821_v27, %v4620_v1  ;;  %v6776_v11 = vpop.f32.mrf.mxu1  ;;  %v10251_v50 = vld [vmem:[#allocation42_spill] sm:$0xff]  ;;  %v10254_v15 = vld [vmem:[#allocation37_spill] sm:$0xff] }
 0x20f   : > { %5349 = vst [vmem:[%s9746_s14 + $0x60] sm:$0xff] %v5317_v26  ;;  %v4618_v40 = vadd.f32 %v4541_v2, %v3864_v18  ;;  %v5052_v36 = vpop.f32.mrf.mxu0  ;;  %v3867_v48 = vadd.f32 %v10242_v23, %v3480_v51  ;;  %v3481_v58 = vadd.f32 %v10244_v33, %v10243_v31  ;;  %v5195_v45 = vadd.f32 %v9711_v5, %v5156_v30  ;;  %v10250_v51 = vld [vmem:[#allocation4_spill] sm:$0xff]  ;;  %v10255_v30 = vld [vmem:[#allocation6_spill] sm:$0xff]  ;;  %v10258_v31 = vld [vmem:[#allocation39_spill] sm:$0xff] }
 0x210   : > { %v5320_v59 = vmax.f32 %v5288_v41, 0.0  ;;  %v5286_v47 = vadd.f32 %v10241_v42, %v5190_v21  ;;  %v5154_v24 = vmul.f32 %v9695_v20, %v5115_v35  ;;  %v5157_v8 = vmul.f32 %v9695_v20, %v5118_v43  ;;  %v4554_v25 = vpop.f32.mrf.mxu1  ;;  %v10256_v35 = vld [vmem:[#allocation44_spill] sm:$0xff] }
 0x211   : > { %v5116_v10 = vadd.f32 %v5039_v39, %v4618_v40  ;;  %v4623_v34 = vadd.f32 %v6776_v11, %v3869_v22  ;;  %v6825_v27 = vpop.f32.mrf.mxu0  ;;  %v3870_v57 = vadd.f32 %v10245_v12, %v3483_v60  ;;  %v3486_v38 = vadd.f32 %v10247_v49, %v10246_v0  ;;  %v10262_v49 = vld [vmem:[#allocation41_spill] sm:$0xff] }
 0x212   : > { %5352 = vst [vmem:[%s9746_s14 + $0x78] sm:$0xff] %v5320_v59  ;;  %v5318_v62 = vmax.f32 %v5286_v47, 0.0  ;;  %v10248_v61 = vunpack.c.l.bf16 %v9673_v55  ;;  %v5193_v53 = vadd.f32 %v9711_v5, %v5154_v24  ;;  %v5196_v28 = vadd.f32 %v9711_v5, %v5157_v8  ;;  %v6777_v41 = vpop.f32.mrf.mxu1 }
 0x213   : > { %v5155_v7 = vmul.f32 %v9695_v20, %v5116_v10  ;;  %v5121_v39 = vadd.f32 %v6824_v63, %v4623_v34  ;;  %v4621_v14 = vadd.f32 %v4554_v25, %v3867_v48  ;;  %v5055_v18 = vpop.f32.mrf.mxu0  ;;  %v3868_v56 = vadd.f32 %v10249_v4, %v3481_v58  ;;  %v10259_v58 = vld [vmem:[#allocation8_spill] sm:$0xff] }
 0x214   : > { %v5291_v16 = vadd.f32 %v10248_v61, %v5195_v45  ;;  %5350 = vst [vmem:[%s9746_s14 + $0x68] sm:$0xff] %v5318_v62  ;;  %v3484_v19 = vadd.f32 %v10251_v50, %v10250_v51  ;;  %v10252_v26 = vunpack.c.l.bf16 %v9676_v13  ;;  %v10253_v21 = vunpack.c.h.bf16 %v9673_v55  ;;  %v4557_v47 = vpop.f32.mrf.mxu1  ;;  %v10260_v45 = vld [vmem:[#allocation46_spill] sm:$0xff] }
 0x215   : > { %v5194_v44 = vadd.f32 %v9711_v5, %v5155_v7  ;;  %v5160_v22 = vmul.f32 %v9695_v20, %v5121_v39  ;;  %v5119_v63 = vadd.f32 %v5052_v36, %v4621_v14  ;;  %v6828_v52 = vpop.f32.mrf.mxu0  ;;  %v3873_v60 = vadd.f32 %v10254_v15, %v3486_v38  ;;  %v10265_v50 = vld [vmem:[#allocation10_spill] sm:$0xff] }
 0x216   : > { %v5323_v37 = vmax.f32 %v5291_v16, 0.0  ;;  %v5289_v6 = vadd.f32 %v10252_v26, %v5193_v53  ;;  %v5292_v1 = vadd.f32 %v10253_v21, %v5196_v28  ;;  %v3487_v2 = vadd.f32 %v10256_v35, %v10255_v30  ;;  %v6780_v8 = vpop.f32.mrf.mxu1  ;;  %v10270_v30 = vld [vmem:[#allocation52_spill] sm:$0xff] }
 0x217   : > { %v4624_v42 = vadd.f32 %v6777_v41, %v3870_v57  ;;  %v10257_v55 = vunpack.c.h.bf16 %v9676_v13  ;;  %v5199_v23 = vadd.f32 %v9711_v5, %v5160_v22  ;;  %v5158_v48 = vmul.f32 %v9695_v20, %v5119_v63  ;;  %v5068_v36 = vpop.f32.mrf.mxu0  ;;  %v10267_v63 = vld [vmem:[#allocation11_spill] sm:$0xff] }
 0x218   : > { %5355 = vst [vmem:[%s9746_s14 + $0x90] sm:$0xff] %v5323_v37  ;;  %v5321_v59 = vmax.f32 %v5289_v6, 0.0  ;;  %v5324_v43 = vmax.f32 %v5292_v1, 0.0  ;;  %v3871_v33 = vadd.f32 %v10258_v31, %v3484_v19  ;;  %v3485_v24 = vadd.f32 %v10260_v45, %v10259_v58  ;;  %v4570_v53 = vpop.f32.mrf.mxu1  ;;  %v10266_v19 = vld [vmem:[#allocation48_spill] sm:$0xff]  ;;  %v10273_v31 = vld [vmem:[#allocation14_spill] sm:$0xff] }
 0x219   : > { %v5290_v40 = vadd.f32 %v10257_v55, %v5194_v44  ;;  %v5122_v11 = vadd.f32 %v6825_v27, %v4624_v42  ;;  %v4622_v62 = vadd.f32 %v4557_v47, %v3868_v56  ;;  %v10261_v13 = vunpack.c.l.bf16 %v9687_v3  ;;  %v6829_v0 = vpop.f32.mrf.mxu0  ;;  %v10264_v56 = vld [vmem:[#allocation43_spill] sm:$0xff] }
 0x21a   : > { %5353 = vst [vmem:[%s9746_s14 + $0x80] sm:$0xff] %v5321_v59  ;;  %5356 = vst [vmem:[%s9746_s14 + $0x98] sm:$0xff] %v5324_v43  ;;  %v5197_v12 = vadd.f32 %v9711_v5, %v5158_v48  ;;  %v4627_v57 = vadd.f32 %v6780_v8, %v3873_v60  ;;  %v3874_v38 = vadd.f32 %v10262_v49, %v3487_v2  ;;  %v6158_v27 = vunpack.c.h.bf16 %v9719_v46  ;;  %v6781_v6 = vpop.f32.mrf.mxu1  ;;  %v10269_v60 = vld [vmem:[#allocation12_spill] sm:$0xff]  ;;  %v10272_v48 = vld [vmem:[#allocation45_spill] sm:$0xff] }
 0x21b   : > { %v5322_v10 = vmax.f32 %v5290_v40, 0.0  ;;  %v5295_v34 = vadd.f32 %v10261_v13, %v5199_v23  ;;  %v5161_v61 = vmul.f32 %v9695_v20, %v5122_v11  ;;  %v5120_v16 = vadd.f32 %v5055_v18, %v4622_v62  ;;  %v5071_v4 = vpop.f32.mrf.mxu0 }
 0x21c   : > { %v10263_v28 = vunpack.c.l.bf16 %v9690_v17  ;;  %v5125_v39 = vadd.f32 %v6828_v52, %v4627_v57  ;;  %v4625_v14 = vadd.f32 %v4570_v53, %v3871_v33  ;;  %v3872_v51 = vadd.f32 %v10264_v56, %v3485_v24  ;;  %v10268_v52 = vld [vmem:[#allocation50_spill] sm:$0xff]  ;;  %v4573_v47 = vpop.f32.mrf.mxu1  ;;  %v10274_v33 = vld [vmem:[#allocation55_spill] sm:$0xff] }
 0x21d   : > { %5354 = vst [vmem:[%s9746_s14 + $0x88] sm:$0xff] %v5322_v10  ;;  %v5327_v25 = vmax.f32 %v5295_v34, 0.0  ;;  %v3490_v37 = vadd.f32 %v10266_v19, %v10265_v50  ;;  %v5200_v26 = vadd.f32 %v9711_v5, %v5161_v61  ;;  %v5159_v18 = vmul.f32 %v9695_v20, %v5120_v16  ;;  %v6832_v22 = vpop.f32.mrf.mxu0 }
 0x21e   : > { %v5293_v7 = vadd.f32 %v10263_v28, %v5197_v12  ;;  %v5164_v21 = vmul.f32 %v9695_v20, %v5125_v39  ;;  %v5123_v1 = vadd.f32 %v5068_v36, %v4625_v14  ;;  %v4628_v44 = vadd.f32 %v6781_v6, %v3874_v38  ;;  %v6784_v24 = vpop.f32.mrf.mxu1  ;;  %v10276_v12 = vld [vmem:[#allocation47_spill] sm:$0xff]  ;;  %v6185_v28 = vld [vmem:[%s9615_s7 + $0x78] sm:$0xff]  }
 0x21f   : > { %5359 = vst [vmem:[%s9746_s14 + $0xb0] sm:$0xff] %v5327_v25  ;;  %v3488_v15 = vadd.f32 %v10268_v52, %v10267_v63  ;;  %v3491_v35 = vadd.f32 %v10270_v30, %v10269_v60  ;;  %v10271_v2 = vunpack.c.h.bf16 %v9687_v3  ;;  %v5198_v42 = vadd.f32 %v9711_v5, %v5159_v18  ;;  %v5084_v11 = vpop.f32.mrf.mxu0 }
 0x220   : > { %v5325_v41 = vmax.f32 %v5293_v7, 0.0  ;;  %v5203_v43 = vadd.f32 %v9711_v5, %v5164_v21  ;;  %v5162_v55 = vmul.f32 %v9695_v20, %v5123_v1  ;;  %v5126_v40 = vadd.f32 %v6829_v0, %v4628_v44  ;;  %v10277_v0 = vld [vmem:[#allocation49_spill] sm:$0xff]  ;;  %v4586_v38 = vpop.f32.mrf.mxu1  ;;  %v10278_v7 = vld [vmem:[#allocation51_spill] sm:$0xff] }
 0x221   : > { %v5296_v59 = vadd.f32 %v10271_v2, %v5200_v26  ;;  %v4626_v23 = vadd.f32 %v4573_v47, %v3872_v51  ;;  %v3877_v36 = vadd.f32 %v10272_v48, %v3490_v37  ;;  %v3489_v58 = vadd.f32 %v10274_v33, %v10273_v31  ;;  %v6833_v51 = vpop.f32.mrf.mxu0  ;;  %v6184_v37 = vld [vmem:[%s9615_s7 + $0x70] sm:$0xff]  }
 0x222   : > { %5357 = vst [vmem:[%s9746_s14 + $0xa0] sm:$0xff] %v5325_v41  ;;  %v5294_v3 = vadd.f32 %v6150_v29, %v5198_v42  ;;  %v10275_v62 = vunpack.c.l.bf16 %v9704_v54  ;;  %v5201_v10 = vadd.f32 %v9711_v5, %v5162_v55  ;;  %v5165_v13 = vmul.f32 %v9695_v20, %v5126_v40  ;;  %v6785_v56 = vpop.f32.mrf.mxu1 }
 0x223   : > { %v5328_v45 = vmax.f32 %v5296_v59, 0.0  ;;  %v5124_v34 = vadd.f32 %v5071_v4, %v4626_v23  ;;  %v3875_v57 = vadd.f32 %v10276_v12, %v3488_v15  ;;  %v3878_v49 = vadd.f32 %v10277_v0, %v3491_v35  ;;  %v5087_v15 = vpop.f32.mrf.mxu0 }
 0x224   : > { %v5299_v8 = vadd.f32 %v10275_v62, %v5203_v43  ;;  %v5326_v17 = vmax.f32 %v5294_v3, 0.0  ;;  %v4631_v29 = vadd.f32 %v6784_v24, %v3877_v36  ;;  %v5297_v16 = vadd.f32 %v6157_v32, %v5201_v10  ;;  %v4589_v21 = vpop.f32.mrf.mxu1 }
 0x225   : > { %5360 = vst [vmem:[%s9746_s14 + $0xb8] sm:$0xff] %v5328_v45  ;;  %v5204_v53 = vadd.f32 %v9711_v5, %v5165_v13  ;;  %v5163_v25 = vmul.f32 %v9695_v20, %v5124_v34  ;;  %v3876_v39 = vadd.f32 %v10278_v7, %v3489_v58  ;;  %v4629_v4 = vadd.f32 %v4586_v38, %v3875_v57 }
 0x226   : > { %v5331_v61 = vmax.f32 %v5299_v8, 0.0  ;;  %5358 = vst [vmem:[%s9746_s14 + $0xa8] sm:$0xff] %v5326_v17  ;;  %v5129_v14 = vadd.f32 %v6832_v22, %v4631_v29  ;;  %v5329_v50 = vmax.f32 %v5297_v16, 0.0  ;;  %v4632_v26 = vadd.f32 %v6785_v56, %v3878_v49 }
 0x227   : > { %v5300_v19 = vadd.f32 %v6162_v9, %v5204_v53  ;;  %v5202_v32 = vadd.f32 %v9711_v5, %v5163_v25  ;;  %v6169_v6 = vunpack.c.l.bf16 %v6185_v28  ;;  %v5127_v41 = vadd.f32 %v5084_v11, %v4629_v4 }
 0x228   : > { %5363 = vst [vmem:[%s9746_s14 + $0xd0] sm:$0xff] %v5331_v61  ;;  %v5168_v18 = vmul.f32 %v9695_v20, %v5129_v14  ;;  %5361 = vst [vmem:[%s9746_s14 + $0xc0] sm:$0xff] %v5329_v50  ;;  %v5130_v22 = vadd.f32 %v6833_v51, %v4632_v26  ;;  %v4630_v63 = vadd.f32 %v4589_v21, %v3876_v39  ;;  %v6165_v52 = vunpack.c.l.bf16 %v6184_v37 }
 0x229   : > { %v5332_v1 = vmax.f32 %v5300_v19, 0.0  ;;  %v5298_v44 = vadd.f32 %v6158_v27, %v5202_v32  ;;  %v5166_v9 = vmul.f32 %v9695_v20, %v5127_v41  ;;  %v6170_v35 = vunpack.c.h.bf16 %v6185_v28 }
 0x22a   : > { %v5207_v54 = vadd.f32 %v9711_v5, %v5168_v18  ;;  %v5169_v30 = vmul.f32 %v9695_v20, %v5130_v22  ;;  %v5128_v2 = vadd.f32 %v5087_v15, %v4630_v63  ;;  %v6166_v47 = vunpack.c.h.bf16 %v6184_v37 }
 0x22b   : > { %5364 = vst [vmem:[%s9746_s14 + $0xd8] sm:$0xff] %v5332_v1  ;;  %v5330_v60 = vmax.f32 %v5298_v44, 0.0  ;;  %v5205_v46 = vadd.f32 %v9711_v5, %v5166_v9 }
 0x22c   : > { %v5303_v59 = vadd.f32 %v6169_v6, %v5207_v54  ;;  %v5208_v27 = vadd.f32 %v9711_v5, %v5169_v30  ;;  %v5167_v42 = vmul.f32 %v9695_v20, %v5128_v2 }
 0x22d   : > { %5362 = vst [vmem:[%s9746_s14 + $0xc8] sm:$0xff] %v5330_v60  ;;  %v5301_v55 = vadd.f32 %v6165_v52, %v5205_v46 }
 0x22e   : > { %v5335_v43 = vmax.f32 %v5303_v59, 0.0  ;;  %v5304_v40 = vadd.f32 %v6170_v35, %v5208_v27  ;;  %v5206_v23 = vadd.f32 %v9711_v5, %v5167_v42 }
 0x22f   : > { %v5333_v48 = vmax.f32 %v5301_v55, 0.0 }
 0x230   : > { %5367 = vst [vmem:[%s9746_s14 + $0xf0] sm:$0xff] %v5335_v43  ;;  %v5336_v36 = vmax.f32 %v5304_v40, 0.0  ;;  %v5302_v31 = vadd.f32 %v6166_v47, %v5206_v23 }
 0x231   : > { %5365 = vst [vmem:[%s9746_s14 + $0xe0] sm:$0xff] %v5333_v48 }
 0x232   : > { %5368 = vst [vmem:[%s9746_s14 + $0xf8] sm:$0xff] %v5336_v36  ;;  %v5334_v33 = vmax.f32 %v5302_v31, 0.0 }
 0x234   : > { %5366 = vst [vmem:[%s9746_s14 + $0xe8] sm:$0xff] %v5334_v33 }
 0x235 PF: > { %s15_s20 = sadd.s32 1, %s7026_s20   ;;  %s10279_s18 = smov %s7022_s19 }
 0x236   : > { %p12_p5 = scmp.ge.s32.totalorder %s15_s20, 4   ;;  %s10280_s19 = smov %s10282_s21 }
 0x238   :  { %14 = sbr.rel (!%p12_p5) target bundleno = 2 (0x2), region = 92 }

// kernel: basic_block_forward.2
= control target key start
LH: loop header
LB: loop body
LE: loop exit
PB: predicated region body
PF: predicated region fallthrough
CT: control target
= control target key end

     0   :  { %s7619_s15 = smov 0   ;;  %s7621_s16 = smov 0   ;;  %s10731_s0 = inlined_call_operand.vmem [shape: bf16[2,18,18,128], index: 0, kind: input, shape index: {}]   ;;  %s10732_s1 = inlined_call_operand.vmem [shape: bf16[9,128,128], index: 1, kind: input, shape index: {}]   ;;  %s10733_s2 = inlined_call_operand.vmem [shape: f32[1,128], index: 2, kind: input, shape index: {}]   ;;  %s10734_s3 = inlined_call_operand.vmem [shape: f32[1,128], index: 3, kind: input, shape index: {}]   ;;  %s10735_s4 = inlined_call_operand.vmem [shape: bf16[2,18,18,128], index: 4, kind: output, shape index: {}]  }
   0x1   :  { %s7623_s17 = smov 0  }
   0x2 LB: > { %s23_s18 = sadd.s32 1, %s7587_s16  ;;  %p5948_p0 = scmp.ge.s32.totalorder %s7591_s17, 1  ;;  %s7591_s17 = sphi %s7623_s17, %s14_s17   ;;  %s7587_s16 = sphi %s7621_s16, %s10906_s16   ;;  %s7583_s15 = sphi %s7619_s15, %s10905_s15  }
   0x3   : > { %p24_p1 = scmp.ge.s32.totalorder %s23_s18, 2  ;;  %p201_p2 = scmp.lt.s32.totalorder %s7591_s17, 3 }
   0x5   : > { %s10908_s18 = smov (%p24_p1, %s23_s18), 0  ;;  %p202_p3 = pnand %p5948_p0, %p201_p2 }
   0x7   : > { %205 = sbr.rel (%p202_p3) target bundleno = 597 (0x255), region = 36 }
   0xc   : > { %v7440_v0 = vld [vmem:[%s10732_s1 + $0x78] sm:$0xff]   ;;  %p240_p4 = scmp.lt.s32.totalorder %s7583_s15, 1  ;;  %v7441_v1 = vld [vmem:[%s10732_s1 + $0x70] sm:$0xff]   ;;  %v7442_v2 = vld [vmem:[%s10732_s1 + $0x68] sm:$0xff]   ;;  %vm328_vm0 = vsmask.f32 3328 }
   0xd   : > { %6966 = vmatprep.subr.bf16.mxu0 %v7440_v0  ;;  %7398 = vmatprep.subr.bf16.mxu1 %v7440_v0  ;;  %v7443_v3 = vld [vmem:[%s10732_s1 + $0x60] sm:$0xff]   ;;  %vm329_vm1 = vsmask.f32 7440  ;;  %v7444_v17 = vld [vmem:[%s10732_s1 + $0x58] sm:$0xff]   ;;  %v7445_v33 = vld [vmem:[%s10732_s1 + $0x50] sm:$0xff]   ;;  %vm1358_vm3 = vcmask 1042432  }
   0xe   : > { %s10910_s15 = smov (!%p240_p4, %s7583_s15), 1  ;;  %6967 = vmatpush3.bf16.msra.mxu0 %v7440_v0  ;;  %7406 = vmatpush3.bf16.msra.mxu1 %v7440_v0  ;;  %vm7685_vm2 = vmor %vm328_vm0, %vm329_vm1  ;;  %v7446_v58 = vld [vmem:[%s10732_s1 + $0x48] sm:$0xff]   ;;  %vm1359_vm4 = vcmask 1046532   ;;  %vm5207_vm6 = vcmask 1040384   ;;  %vm5208_vm7 = vsmask.f32 256 }
   0xf   : > { %6968 = vmatprep.subr.bf16.mxu0 %v7441_v1  ;;  %7399 = vmatprep.subr.bf16.mxu1 %v7441_v1  ;;  %s7414_s25 = smul.u32 216, %s10910_s15  ;;  %vm7996_vm5 = vmor %vm1358_vm3, %vm1359_vm4  ;;  %vm5258_vm9 = vsmask.f32 7938  ;;  %vm5710_vm11 = vcmask 1043456   ;;  %vm5388_vm12 = vsmask.f32 4368 }
  0x10   : > { %vm9985_vm8 = vmand %vm5207_vm6, %vm5208_vm7 }
  0x11   : > { %s7654_s28 = scalar_lea.vmem %s10731_s0, %s7414_s25  ;;  %s9976_s27 = scalar_lea.vmem %s10735_s4, %s7414_s25  ;;  %vm9997_vm10 = vmand %vm5207_vm6, %vm5258_vm9 }
  0x12   : > { %6969 = vmatpush3.bf16.msra.mxu0 %v7441_v1  ;;  %7407 = vmatpush3.bf16.msra.mxu1 %v7441_v1  ;;  %v7660_v4 = vld [vmem:[%s7654_s28] sm:$0xf]  ;;  %v7663_v5 = vld [vmem:[%s7654_s28 + $0x4] sm:$0xf]  ;;  %v7666_v6 = vld [vmem:[%s7654_s28 + $0x8] sm:$0x1] }
  0x13   : > { %6970 = vmatprep.subr.bf16.mxu0 %v7442_v2  ;;  %7400 = vmatprep.subr.bf16.mxu1 %v7442_v2  ;;  %v332_v7 = vshrl.u32 %v7660_v4, 16  ;;  %v335_v8 = vshll.u32 %v7660_v4, 16  ;;  %v341_v9 = vshll.u32 %v7663_v5, 16  ;;  %v345_v10 = vshrl.u32 %v7663_v5, 16  ;;  %v280_v12 = vld [vmem:[%s7654_s28 + $0x60] sm:$0xf]  ;;  %vm10359_vm13 = vmand %vm5710_vm11, %vm5258_vm9 }
  0x14   : > { %v351_v11 = vshll.u32 %v7666_v6, 16  ;;  %v281_v15 = vld [vmem:[%s7654_s28 + $0x64] sm:$0xf]  ;;  %v320_v16 = vld [vmem:[%s7654_s28 + $0x68] sm:$0x1]  ;;  %v524_v21 = vshrl.u32 %v280_v12, 16  ;;  %vm10377_vm14 = vmor %vm5208_vm7, %vm5388_vm12 }
  0x15   : > { %v334_v13 = vrot.slane %v332_v7, 4  ;;  %v337_v14 = vrot.slane %v335_v8, 5  ;;  %v343_v18 = vrot.slane %v341_v9, 5  ;;  %v347_v19 = vrot.slane %v345_v10, 4  ;;  %v7681_v26 = vld [vmem:[%s7654_s28 + $0xc] sm:$0xf] }
  0x16   : > { %6971 = vmatpush3.bf16.msra.mxu0 %v7442_v2  ;;  %7408 = vmatpush3.bf16.msra.mxu1 %v7442_v2  ;;  %v527_v23 = vshll.u32 %v280_v12, 16  ;;  %v533_v24 = vshll.u32 %v281_v15, 16  ;;  %v537_v25 = vshrl.u32 %v281_v15, 16  ;;  %v353_v29 = vrot.slane %v351_v11, 5  ;;  %v7690_v32 = vld [vmem:[%s7654_s28 + $0x10] sm:$0xf] }
  0x17   : > { %6972 = vmatprep.subr.bf16.mxu0 %v7443_v3  ;;  %7401 = vmatprep.subr.bf16.mxu1 %v7443_v3  ;;  %v338_v22 = vor.u32 %v337_v14, %v334_v13  ;;  %v348_v28 = vor.u32 %v347_v19, %v343_v18  ;;  %v526_v30 = vrot.slane %v524_v21, 4  ;;  %v543_v31 = vshll.u32 %v320_v16, 16  ;;  %v7696_v40 = vld [vmem:[%s7654_s28 + $0x14] sm:$0x1]  ;;  %v282_v47 = vld [vmem:[%s7654_s28 + $0x6c] sm:$0xf] }
  0x18   : > { %v529_v35 = vrot.slane %v527_v23, 5  ;;  %v535_v36 = vrot.slane %v533_v24, 5  ;;  %v539_v37 = vrot.slane %v537_v25, 4  ;;  %v356_v41 = vshrl.u32 %v7681_v26, 16  ;;  %v283_v52 = vld [vmem:[%s7654_s28 + $0x70] sm:$0xf] }
  0x19   : > { %v339_v34 = vrot.slane %v338_v22, 4  ;;  %v349_v38 = vrot.slane %v348_v28, 4  ;;  %v545_v39 = vrot.slane %v543_v31, 5  ;;  %v359_v42 = vshll.u32 %v7681_v26, 16  ;;  %v321_v57 = vld [vmem:[%s7654_s28 + $0x74] sm:$0x1] }
  0x1a   : > { %6973 = vmatpush3.bf16.msra.mxu0 %v7443_v3  ;;  %7409 = vmatpush3.bf16.msra.mxu1 %v7443_v3  ;;  %v530_v44 = vor.u32 %v529_v35, %v526_v30  ;;  %v540_v45 = vor.u32 %v539_v37, %v535_v36  ;;  %v365_v46 = vshll.u32 %v7690_v32, 16  ;;  %v358_v49 = vrot.slane %v356_v41, 4  ;;  %v7719_v14 = vld [vmem:[%s7654_s28 + $0x18] sm:$0xf]  ;;  %v7447_v15 = vld [vmem:[%s10732_s1 + $0x40] sm:$0xff]  }
  0x1b   : > { %6974 = vmatprep.subr.bf16.mxu0 %v7444_v17  ;;  %7402 = vmatprep.subr.bf16.mxu1 %v7444_v17  ;;  %v344_v43 = vsel %vm7685_vm2, %v339_v34, %v343_v18  ;;  %v354_v48 = vsel %vm7685_vm2, %v349_v38, %v353_v29  ;;  %v361_v50 = vrot.slane %v359_v42, 5  ;;  %v369_v51 = vshrl.u32 %v7690_v32, 16  ;;  %v7727_v19 = vld [vmem:[%s7654_s28 + $0x1c] sm:$0xf]  ;;  %v7732_v25 = vld [vmem:[%s7654_s28 + $0x20] sm:$0x1] }
  0x1c   : > { %v5967_v53 = vcombine.low %v344_v43, %v354_v48  ;;  %v531_v54 = vrot.slane %v530_v44, 4  ;;  %v541_v55 = vrot.slane %v540_v45, 4  ;;  %v367_v56 = vrot.slane %v365_v46, 5  ;;  %v284_v34 = vld [vmem:[%s7654_s28 + $0x78] sm:$0xf] }
  0x1d   : > { %v362_v59 = vor.u32 %v361_v50, %v358_v49  ;;  %v371_v60 = vrot.slane %v369_v51, 4  ;;  %v375_v61 = vshll.u32 %v7696_v40, 16  ;;  %v548_v1 = vshrl.u32 %v282_v47, 16  ;;  %v7448_v41 = vld [vmem:[%s10732_s1 + $0x38] sm:$0xff]   ;;  %v322_v49 = vld [vmem:[%s7654_s28 + $0x80] sm:$0x1] }
  0x1e   : > { %6975 = vmatpush3.bf16.msra.mxu0 %v7444_v17  ;;  %7410 = vmatpush3.bf16.msra.mxu1 %v7444_v17  ;;  %v536_v63 = vsel %vm7685_vm2, %v531_v54, %v535_v36  ;;  %v546_v0 = vsel %vm7685_vm2, %v541_v55, %v545_v39  ;;  %v551_v2 = vshll.u32 %v282_v47, 16  ;;  %v557_v12 = vshll.u32 %v283_v52, 16  ;;  %v7741_v39 = vld [vmem:[%s7654_s28 + $0x7c] sm:$0xf] }
  0x1f   : > { %6976 = vmatprep.subr.bf16.mxu0 %v7445_v33  ;;  %7403 = vmatprep.subr.bf16.mxu1 %v7445_v33  ;;  %v5975_v3 = vcombine.low %v536_v63, %v546_v0  ;;  %v363_v7 = vrot.slane %v362_v59, 4  ;;  %v372_v8 = vor.u32 %v371_v60, %v367_v56  ;;  %v377_v9 = vrot.slane %v375_v61, 5  ;;  %v7449_v42 = vld [vmem:[%s10732_s1 + $0xb8] sm:$0xff]   ;;  %v7451_v59 = vld [vmem:[%s10732_s1 + $0xb0] sm:$0xff]   ;;  %v7768_v0 = vld [vmem:[%s7654_s28 + $0x28] sm:$0xf] }
  0x20   : > { %6982 = vmatprep.mubr.bf16.mxu0 %v5967_v53  ;;  %v550_v10 = vrot.slane %v548_v1, 4  ;;  %v553_v11 = vrot.slane %v551_v2, 5  ;;  %v561_v13 = vshrl.u32 %v283_v52, 16  ;;  %v567_v18 = vshll.u32 %v321_v57, 16  ;;  %v7450_v52 = vld [vmem:[%s10732_s1 + $0x30] sm:$0xff]  }
  0x21   : > { %v368_v16 = vsel %vm7685_vm2, %v363_v7, %v367_v56  ;;  %v373_v17 = vrot.slane %v372_v8, 4  ;;  %6998 = vmatprep.mubr.bf16.mxu1 %v5975_v3  ;;  %v559_v23 = vrot.slane %v557_v12, 5  ;;  %v380_v28 = vshrl.u32 %v7719_v14, 16  ;;  %v7759_v57 = vld [vmem:[%s7654_s28 + $0x24] sm:$0xf] }
  0x22   : > { %6977 = vmatpush3.bf16.msra.mxu0 %v7445_v33  ;;  %7411 = vmatpush3.bf16.msra.mxu1 %v7445_v33  ;;  %v554_v22 = vor.u32 %v553_v11, %v550_v10  ;;  %v563_v24 = vrot.slane %v561_v13, 4  ;;  %v569_v30 = vrot.slane %v567_v18, 5  ;;  %v383_v31 = vshll.u32 %v7719_v14, 16  ;;  %v7771_v8 = vld [vmem:[%s7654_s28 + $0x2c] sm:$0x1] }
  0x23   : > { %6978 = vmatprep.subr.bf16.mxu0 %v7446_v58  ;;  %7404 = vmatprep.subr.bf16.mxu1 %v7446_v58  ;;  %v378_v29 = vsel %vm7685_vm2, %v373_v17, %v377_v9  ;;  %v389_v33 = vshll.u32 %v7727_v19, 16  ;;  %v382_v38 = vrot.slane %v380_v28, 4  ;;  %v393_v45 = vshrl.u32 %v7727_v19, 16  ;;  %v7775_v13 = vld [vmem:[%s7654_s28 + $0x84] sm:$0xf] }
  0x24   : > { %v5968_v35 = vcombine.low %v368_v16, %v378_v29  ;;  %v555_v36 = vrot.slane %v554_v22, 4  ;;  %v564_v37 = vor.u32 %v563_v24, %v559_v23  ;;  %v385_v43 = vrot.slane %v383_v31, 5  ;;  %v7782_v22 = vld [vmem:[%s7654_s28 + $0x88] sm:$0xf] }
  0x25   : > { %v391_v44 = vrot.slane %v389_v33, 5  ;;  %v399_v46 = vshll.u32 %v7732_v25, 16  ;;  %v572_v50 = vshrl.u32 %v284_v34, 16  ;;  %v575_v51 = vshll.u32 %v284_v34, 16 }
  0x26   : > { %6979 = vmatpush3.bf16.msra.mxu0 %v7446_v58  ;;  %7412 = vmatpush3.bf16.msra.mxu1 %v7446_v58  ;;  %v560_v47 = vsel %vm7685_vm2, %v555_v36, %v559_v23  ;;  %v565_v48 = vrot.slane %v564_v37, 4  ;;  %v386_v53 = vor.u32 %v385_v43, %v382_v38  ;;  %v395_v54 = vrot.slane %v393_v45, 4  ;;  %v7791_v36 = vld [vmem:[%s7654_s28 + $0x8c] sm:$0x1] }
  0x27   : > { %6980 = vmatprep.subr.bf16.mxu0 %v7447_v15  ;;  %7405 = vmatprep.subr.bf16.mxu1 %v7447_v15  ;;  %v401_v55 = vrot.slane %v399_v46, 5  ;;  %v581_v56 = vshll.u32 %v7741_v39, 16  ;;  %v574_v60 = vrot.slane %v572_v50, 4  ;;  %v577_v61 = vrot.slane %v575_v51, 5  ;;  %v7453_v37 = vld [vmem:[%s10732_s1 + $0xa8] sm:$0xff]  }
  0x28   : > { %v570_v58 = vsel %vm7685_vm2, %v565_v48, %v569_v30  ;;  %v585_v63 = vshrl.u32 %v7741_v39, 16  ;;  %v387_v2 = vrot.slane %v386_v53, 4  ;;  %v396_v3 = vor.u32 %v395_v54, %v391_v44  ;;  %v7452_v30 = vld [vmem:[%s10732_s1 + $0x28] sm:$0xff]   ;;  %v7806_v53 = vld [vmem:[%s7654_s28 + $0x30] sm:$0xf] }
  0x29   : > { %v5976_v1 = vcombine.low %v560_v47, %v570_v58  ;;  %v583_v7 = vrot.slane %v581_v56, 5  ;;  %v578_v9 = vor.u32 %v577_v61, %v574_v60  ;;  %v591_v11 = vshll.u32 %v322_v49, 16  ;;  %v7815_v60 = vld [vmem:[%s7654_s28 + $0x34] sm:$0xf] }
  0x2a   : > { %6981 = vmatpush3.bf16.msra.mxu0 %v7447_v15  ;;  %7413 = vmatpush3.bf16.msra.mxu1 %v7447_v15  ;;  %v587_v10 = vrot.slane %v585_v63, 4  ;;  %v404_v12 = vshrl.u32 %v7759_v57, 16  ;;  %v392_v15 = vsel %vm7685_vm2, %v387_v2, %v391_v44  ;;  %v397_v16 = vrot.slane %v396_v3, 4 }
  0x2b   : > { %7014 = vmatprep.subr.bf16.mxu1 %v7448_v41  ;;  %7062 = vmatprep.subr.bf16.mxu0 %v7449_v42  ;;  %v407_v17 = vshll.u32 %v7759_v57, 16  ;;  %v413_v18 = vshll.u32 %v7768_v0, 16  ;;  %v579_v23 = vrot.slane %v578_v9, 4  ;;  %v593_v28 = vrot.slane %v591_v11, 5 }
  0x2c   : > { %v588_v24 = vor.u32 %v587_v10, %v583_v7  ;;  %v406_v29 = vrot.slane %v404_v12, 4  ;;  %v402_v31 = vsel %vm7685_vm2, %v397_v16, %v401_v55  ;;  %v423_v43 = vshll.u32 %v7771_v8, 16  ;;  %v7823_v16 = vld [vmem:[%s7654_s28 + $0x38] sm:$0x1] }
  0x2d   : > { %6983 = vmatmul.mubr.bf16.vlgmr.msra.gmra.mxu0 %v5968_v35  ;;  %6999 = vmatmul.mubr.bf16.vlgmr.msra.gmra.mxu1 %v5976_v1  ;;  %v409_v33 = vrot.slane %v407_v17, 5  ;;  %v415_v34 = vrot.slane %v413_v18, 5  ;;  %v417_v35 = vshrl.u32 %v7768_v0, 16  ;;  %v5969_v38 = vcombine.low %v392_v15, %v402_v31  ;;  %v7827_v18 = vld [vmem:[%s7654_s28 + $0x90] sm:$0xf] }
  0x2e   : > { %7015 = vmatpush3.bf16.msra.mxu1 %v7448_v41  ;;  %7063 = vmatpush3.bf16.msra.mxu0 %v7449_v42  ;;  %v584_v41 = vsel %vm7685_vm2, %v579_v23, %v583_v7  ;;  %v589_v42 = vrot.slane %v588_v24, 4  ;;  %v596_v46 = vshrl.u32 %v7775_v13, 16  ;;  %v599_v47 = vshll.u32 %v7775_v13, 16  ;;  %v7833_v31 = vld [vmem:[%s7654_s28 + $0x94] sm:$0xf] }
  0x2f   : > { %7016 = vmatprep.subr.bf16.mxu1 %v7450_v52  ;;  %7064 = vmatprep.subr.bf16.mxu0 %v7451_v59  ;;  %v410_v44 = vor.u32 %v409_v33, %v406_v29  ;;  %v419_v45 = vrot.slane %v417_v35, 4  ;;  %v425_v49 = vrot.slane %v423_v43, 5  ;;  %v605_v50 = vshll.u32 %v7782_v22, 16 }
  0x30   : > { %v594_v48 = vsel %vm7685_vm2, %v589_v42, %v593_v28  ;;  %v609_v51 = vshrl.u32 %v7782_v22, 16  ;;  %6986 = vmatprep.mubr.bf16.mxu0 %v5969_v38  ;;  %v598_v58 = vrot.slane %v596_v46, 4  ;;  %v601_v61 = vrot.slane %v599_v47, 5  ;;  %v7457_v38 = vld [vmem:[%s10732_s1 + $0x98] sm:$0xff]   ;;  %v7458_v46 = vld [vmem:[%s10732_s1 + $0x10] sm:$0xff]  }
  0x31   : > { %v5977_v54 = vcombine.low %v584_v41, %v594_v48  ;;  %v411_v55 = vrot.slane %v410_v44, 4  ;;  %v420_v56 = vor.u32 %v419_v45, %v415_v34  ;;  %v607_v63 = vrot.slane %v605_v50, 5  ;;  %v7843_v44 = vld [vmem:[%s7654_s28 + $0x98] sm:$0x1] }
  0x32   : > { %7017 = vmatpush3.bf16.msra.mxu1 %v7450_v52  ;;  %7065 = vmatpush3.bf16.msra.mxu0 %v7451_v59  ;;  %v7454_v52 = vld [vmem:[%s10732_s1 + $0x20] sm:$0xff]   ;;  %v611_v1 = vrot.slane %v609_v51, 4  ;;  %v615_v2 = vshll.u32 %v7791_v36, 16  ;;  %v428_v9 = vshrl.u32 %v7806_v53, 16  ;;  %v431_v10 = vshll.u32 %v7806_v53, 16 }
  0x33   : > { %7018 = vmatprep.subr.bf16.mxu1 %v7452_v30  ;;  %v7455_v59 = vld [vmem:[%s10732_s1 + $0xa0] sm:$0xff]   ;;  %7066 = vmatprep.subr.bf16.mxu0 %v7453_v37  ;;  %v416_v3 = vsel %vm7685_vm2, %v411_v55, %v415_v34  ;;  %v421_v7 = vrot.slane %v420_v56, 4  ;;  %v602_v11 = vor.u32 %v601_v61, %v598_v58  ;;  %v437_v17 = vshll.u32 %v7815_v60, 16  ;;  %v7856_v51 = vld [vmem:[%s7654_s28 + $0x3c] sm:$0xf]  ;;  %v7459_v55 = vld [vmem:[%s10732_s1 + $0x90] sm:$0xff]  }
  0x34   : > { %7002 = vmatprep.mubr.bf16.mxu1 %v5977_v54  ;;  %v612_v12 = vor.u32 %v611_v1, %v607_v63  ;;  %v617_v15 = vrot.slane %v615_v2, 5  ;;  %v430_v24 = vrot.slane %v428_v9, 4  ;;  %v433_v28 = vrot.slane %v431_v10, 5  ;;  %v7859_v54 = vld [vmem:[%s7654_s28 + $0x40] sm:$0xf] }
  0x35   : > { %v426_v23 = vsel %vm7685_vm2, %v421_v7, %v425_v49  ;;  %v441_v29 = vshrl.u32 %v7815_v60, 16  ;;  %v603_v34 = vrot.slane %v602_v11, 4  ;;  %v447_v43 = vshll.u32 %v7823_v16, 16  ;;  %v7866_v7 = vld [vmem:[%s7654_s28 + $0x44] sm:$0x1] }
  0x36   : > { %7019 = vmatpush3.bf16.msra.mxu1 %v7452_v30  ;;  %7067 = vmatpush3.bf16.msra.mxu0 %v7453_v37  ;;  %v7456_v30 = vld [vmem:[%s10732_s1 + $0x18] sm:$0xff]   ;;  %v5970_v33 = vcombine.low %v416_v3, %v426_v23  ;;  %v613_v35 = vrot.slane %v612_v12, 4  ;;  %v439_v37 = vrot.slane %v437_v17, 5  ;;  %v434_v41 = vor.u32 %v433_v28, %v430_v24  ;;  %v7878_v28 = vld [vmem:[%s7654_s28 + $0xa0] sm:$0xf] }
  0x37   : > { %7020 = vmatprep.subr.bf16.mxu1 %v7454_v52  ;;  %7068 = vmatprep.subr.bf16.mxu0 %v7455_v59  ;;  %v443_v42 = vrot.slane %v441_v29, 4  ;;  %v620_v45 = vshrl.u32 %v7827_v18, 16  ;;  %v608_v47 = vsel %vm7685_vm2, %v603_v34, %v607_v63  ;;  %v623_v49 = vshll.u32 %v7827_v18, 16  ;;  %v7869_v9 = vld [vmem:[%s7654_s28 + $0x9c] sm:$0xf]  ;;  %v7460_v29 = vld [vmem:[%s10732_s1 + $0x8] sm:$0xff]  }
  0x38   : > { %6987 = vmatmul.mubr.bf16.gmra.mxu0 %v5970_v33  ;;  %v618_v48 = vsel %vm7685_vm2, %v613_v35, %v617_v15  ;;  %v629_v50 = vshll.u32 %v7833_v31, 16  ;;  %v435_v58 = vrot.slane %v434_v41, 4  ;;  %v449_v63 = vrot.slane %v447_v43, 5  ;;  %v7461_v41 = vld [vmem:[%s10732_s1 + $0x88] sm:$0xff]  }
  0x39   : > { %v5978_v56 = vcombine.low %v608_v47, %v618_v48  ;;  %v444_v61 = vor.u32 %v443_v42, %v439_v37  ;;  %v625_v1 = vrot.slane %v623_v49, 5  ;;  %v633_v3 = vshrl.u32 %v7833_v31, 16 }
  0x3a   : > { %7021 = vmatpush3.bf16.msra.mxu1 %v7454_v52  ;;  %7069 = vmatpush3.bf16.msra.mxu0 %v7455_v59  ;;  %v622_v52 = vrot.slane %v620_v45, 4  ;;  %v631_v2 = vrot.slane %v629_v50, 5  ;;  %v440_v10 = vsel %vm7685_vm2, %v435_v58, %v439_v37  ;;  %v639_v11 = vshll.u32 %v7843_v44, 16 }
  0x3b   : > { %7022 = vmatprep.subr.bf16.mxu1 %v7456_v30  ;;  %7070 = vmatprep.subr.bf16.mxu0 %v7457_v38  ;;  %v445_v59 = vrot.slane %v444_v61, 4  ;;  %v452_v12 = vshrl.u32 %v7856_v51, 16  ;;  %v635_v17 = vrot.slane %v633_v3, 4  ;;  %v455_v23 = vshll.u32 %v7856_v51, 16  ;;  %v7894_v61 = vld [vmem:[%s7654_s28 + $0xa4] sm:$0x1] }
  0x3c   : > { %7003 = vmatmul.mubr.bf16.gmra.mxu1 %v5978_v56  ;;  %v626_v15 = vor.u32 %v625_v1, %v622_v52  ;;  %v461_v24 = vshll.u32 %v7859_v54, 16  ;;  %v641_v34 = vrot.slane %v639_v11, 5  ;;  %v465_v37 = vshrl.u32 %v7859_v54, 16 }
  0x3d   : > { %v450_v33 = vsel %vm7685_vm2, %v445_v59, %v449_v63  ;;  %v454_v35 = vrot.slane %v452_v12, 4  ;;  %v636_v43 = vor.u32 %v635_v17, %v631_v2  ;;  %v457_v45 = vrot.slane %v455_v23, 5  ;;  %v7899_v59 = vld [vmem:[%s7654_s28 + $0x48] sm:$0xf]  ;;  %v7908_v17 = vld [vmem:[%s7654_s28 + $0x4c] sm:$0xf] }
  0x3e   : > { %7023 = vmatpush3.bf16.msra.mxu1 %v7456_v30  ;;  %7071 = vmatpush3.bf16.msra.mxu0 %v7457_v38  ;;  %v5971_v42 = vcombine.low %v440_v10, %v450_v33  ;;  %v627_v30 = vrot.slane %v626_v15, 4  ;;  %v463_v47 = vrot.slane %v461_v24, 5  ;;  %v467_v48 = vrot.slane %v465_v37, 4 }
  0x3f   : > { %7024 = vmatprep.subr.bf16.mxu1 %v7458_v46  ;;  %7072 = vmatprep.subr.bf16.mxu0 %v7459_v55  ;;  %v471_v49 = vshll.u32 %v7866_v7, 16  ;;  %v644_v50 = vshrl.u32 %v7869_v9, 16  ;;  %v637_v56 = vrot.slane %v636_v43, 4  ;;  %v458_v58 = vor.u32 %v457_v45, %v454_v35 }
  0x40   : > { %6990 = vmatprep.mubr.bf16.mxu0 %v5971_v42  ;;  %v632_v38 = vsel %vm7685_vm2, %v627_v30, %v631_v2  ;;  %v647_v63 = vshll.u32 %v7869_v9, 16  ;;  %v468_v52 = vor.u32 %v467_v48, %v463_v47  ;;  %v653_v10 = vshll.u32 %v7878_v28, 16  ;;  %v7462_v2 = vld [vmem:[%s10732_s1] sm:$0xff]   ;;  %v7917_v30 = vld [vmem:[%s7654_s28 + $0x50] sm:$0x1] }
  0x41   : > { %v473_v1 = vrot.slane %v471_v49, 5  ;;  %v646_v3 = vrot.slane %v644_v50, 4  ;;  %v642_v11 = vsel %vm7685_vm2, %v637_v56, %v641_v34  ;;  %v459_v12 = vrot.slane %v458_v58, 4 }
  0x42   : > { %7025 = vmatpush3.bf16.msra.mxu1 %v7458_v46  ;;  %7073 = vmatpush3.bf16.msra.mxu0 %v7459_v55  ;;  %v649_v15 = vrot.slane %v647_v63, 5  ;;  %v657_v46 = vshrl.u32 %v7878_v28, 16  ;;  %v7463_v55 = vld [vmem:[%s10732_s1 + $0x80] sm:$0xff]   ;;  %v5979_v23 = vcombine.low %v632_v38, %v642_v11  ;;  %v469_v24 = vrot.slane %v468_v52, 4  ;;  %v7925_v38 = vld [vmem:[%s7654_s28 + $0xa8] sm:$0xf] }
  0x43   : > { %7026 = vmatprep.subr.bf16.mxu1 %v7460_v29  ;;  %7074 = vmatprep.subr.bf16.mxu0 %v7461_v41  ;;  %v655_v33 = vrot.slane %v653_v10, 5  ;;  %v663_v35 = vshll.u32 %v7894_v61, 16  ;;  %v464_v34 = vsel %vm7685_vm2, %v459_v12, %v463_v47  ;;  %v476_v43 = vshrl.u32 %v7899_v59, 16  ;;  %10762 = vst [vmem:[#allocation2_spill] sm:$0xff] %v7925_v38  ;;  %v7930_v47 = vld [vmem:[%s10732_s1 + $0xf8] sm:$0xff]  }
  0x44   : > { %v650_v37 = vor.u32 %v649_v15, %v646_v3  ;;  %v659_v42 = vrot.slane %v657_v46, 4  ;;  %7006 = vmatprep.mubr.bf16.mxu1 %v5979_v23  ;;  %v474_v45 = vsel %vm7685_vm2, %v469_v24, %v473_v1  ;;  %v479_v49 = vshll.u32 %v7899_v59, 16  ;;  %v7933_v52 = vld [vmem:[%s7654_s28 + $0xac] sm:$0xf]  ;;  %v7938_v1 = vld [vmem:[%s10732_s1 + $0x138] sm:$0xff]  }
  0x45   : > { %v665_v48 = vrot.slane %v663_v35, 5  ;;  %v485_v50 = vshll.u32 %v7908_v17, 16  ;;  %v478_v63 = vrot.slane %v476_v43, 4  ;;  %v489_v10 = vshrl.u32 %v7908_v17, 16  ;;  %v7943_v12 = vld [vmem:[%s7654_s28 + $0xb0] sm:$0x1] }
  0x46   : > { %7027 = vmatpush3.bf16.msra.mxu1 %v7460_v29  ;;  %7075 = vmatpush3.bf16.msra.mxu0 %v7461_v41  ;;  %v5972_v29 = vcombine.low %v464_v34, %v474_v45  ;;  %v651_v56 = vrot.slane %v650_v37, 4  ;;  %v660_v58 = vor.u32 %v659_v42, %v655_v33  ;;  %v481_v41 = vrot.slane %v479_v49, 5  ;;  %10763 = vst [vmem:[#allocation3_spill] sm:$0xff] %v7943_v12  ;;  %v7946_v15 = vld [vmem:[%s7654_s28 + $0x54] sm:$0xf] }
  0x47   : > { %7028 = vmatprep.subr.bf16.mxu1 %v7462_v2  ;;  %7076 = vmatprep.subr.bf16.mxu0 %v7463_v55  ;;  %v487_v3 = vrot.slane %v485_v50, 5  ;;  %v495_v11 = vshll.u32 %v7917_v30, 16  ;;  %v668_v24 = vshrl.u32 %v7925_v38, 16  ;;  %v671_v35 = vshll.u32 %v7925_v38, 16  ;;  %v7953_v34 = vld [vmem:[%s7654_s28 + $0x58] sm:$0xf] }
  0x48   : > { %6991 = vmatmul.mubr.bf16.gmra.mxu0 %v5972_v29  ;;  %v656_v46 = vsel %vm7685_vm2, %v651_v56, %v655_v33  ;;  %v661_v23 = vrot.slane %v660_v58, 4  ;;  %v482_v37 = vor.u32 %v481_v41, %v478_v63  ;;  %v491_v42 = vrot.slane %v489_v10, 4 }
  0x49   : > { %v497_v43 = vrot.slane %v495_v11, 5  ;;  %v677_v45 = vshll.u32 %v7933_v52, 16  ;;  %v670_v49 = vrot.slane %v668_v24, 4  ;;  %v673_v50 = vrot.slane %v671_v35, 5 }
  0x4a   : > { %7029 = vmatpush3.bf16.msra.mxu1 %v7462_v2  ;;  %7077 = vmatpush3.bf16.msra.mxu0 %v7463_v55  ;;  %v666_v33 = vsel %vm7685_vm2, %v661_v23, %v665_v48  ;;  %v681_v29 = vshrl.u32 %v7933_v52, 16  ;;  %v483_v56 = vrot.slane %v482_v37, 4  ;;  %v492_v58 = vor.u32 %v491_v42, %v487_v3  ;;  %v7962_v55 = vld [vmem:[%s7654_s28 + $0x5c] sm:$0x1]  ;;  %v7967_v48 = vld [vmem:[%s7654_s28 + $0xb4] sm:$0xf] }
  0x4b   : > { %7110 = vmatprep.subr.bf16.mxu1 %v7930_v47  ;;  %7158 = vmatprep.subr.bf16.mxu0 %v7938_v1  ;;  %v5980_v2 = vcombine.low %v656_v46, %v666_v33  ;;  %v679_v63 = vrot.slane %v677_v45, 5  ;;  %v674_v41 = vor.u32 %v673_v50, %v670_v49  ;;  %v687_v11 = vshll.u32 %v7943_v12, 16  ;;  %10764 = vst [vmem:[#allocation4_spill] sm:$0xff] %v7967_v48  ;;  %v7974_v37 = vld [vmem:[%s7654_s28 + $0xb8] sm:$0xf] }
  0x4c   : > { %v683_v10 = vrot.slane %v681_v29, 4  ;;  %v500_v21 = vshrl.u32 %v7946_v15, 16  ;;  %v488_v23 = vsel %vm7685_vm2, %v483_v56, %v487_v3  ;;  %v493_v24 = vrot.slane %v492_v58, 4  ;;  %10765 = vst [vmem:[#allocation5_spill] sm:$0xff] %v7974_v37  ;;  %v7980_v3 = vld [vmem:[%s7654_s28 + $0xbc] sm:$0x1] }
  0x4d   : > { %7007 = vmatmul.mubr.bf16.gmra.mxu1 %v5980_v2  ;;  %v503_v46 = vshll.u32 %v7946_v15, 16  ;;  %v509_v35 = vshll.u32 %v7953_v34, 16  ;;  %v675_v42 = vrot.slane %v674_v41, 4  ;;  %v689_v33 = vrot.slane %v687_v11, 5  ;;  %10766 = vst [vmem:[#allocation6_spill] sm:$0xff] %v7980_v3 }
  0x4e   : > { %v684_v45 = vor.u32 %v683_v10, %v679_v63  ;;  %v502_v49 = vrot.slane %v500_v21, 4  ;;  %v498_v50 = vsel %vm7685_vm2, %v493_v24, %v497_v43  ;;  %v513_v62 = vshrl.u32 %v7953_v34, 16  ;;  %v1310_v10 = vld [vmem:[%s7654_s28] sm:$0xe] }
  0x4f   : > { %v505_v29 = vrot.slane %v503_v46, 5  ;;  %v511_v2 = vrot.slane %v509_v35, 5  ;;  %v5973_v56 = vcombine.low %v488_v23, %v498_v50  ;;  %v680_v58 = vsel %vm7685_vm2, %v675_v42, %v679_v63 }
  0x50   : > { %v685_v20 = vrot.slane %v684_v45, 4  ;;  %v519_v41 = vshll.u32 %v7962_v55, 16  ;;  %v515_v21 = vrot.slane %v513_v62, 4  ;;  %v692_v12 = vshrl.u32 %v7967_v48, 16 }
  0x51   : > { %v506_v11 = vor.u32 %v505_v29, %v502_v49  ;;  %v695_v43 = vshll.u32 %v7967_v48, 16  ;;  %6994 = vmatprep.mubr.bf16.mxu0 %v5973_v56  ;;  %v701_v46 = vshll.u32 %v7974_v37, 16  ;;  %v705_v63 = vshrl.u32 %v7974_v37, 16  ;;  %v1311_v49 = vld [vmem:[%s7654_s28 + $0xc] sm:$0xe] }
  0x52   : > { %v690_v24 = vsel %vm7685_vm2, %v685_v20, %v689_v33  ;;  %v521_v23 = vrot.slane %v519_v41, 5  ;;  %v516_v45 = vor.u32 %v515_v21, %v511_v2  ;;  %v694_v50 = vrot.slane %v692_v12, 4  ;;  %v1312_v20 = vld [vmem:[%s7654_s28 + $0x18] sm:$0xe] }
  0x53   : > { %v5981_v35 = vcombine.low %v680_v58, %v690_v24  ;;  %v507_v42 = vrot.slane %v506_v11, 4  ;;  %v697_v62 = vrot.slane %v695_v43, 5  ;;  %v703_v29 = vrot.slane %v701_v46, 5 }
  0x54   : > { %v707_v38 = vrot.slane %v705_v63, 4  ;;  %v711_v48 = vshll.u32 %v7980_v3, 16  ;;  %v517_v58 = vrot.slane %v516_v45, 4  ;;  %v6015_v41 = vrot.slane %v1310_v10, 9 }
  0x55   : > { %7010 = vmatprep.mubr.bf16.mxu1 %v5981_v35  ;;  %v512_v33 = vsel %vm7685_vm2, %v507_v42, %v511_v2  ;;  %v1363_v12 = vrot.slane %v7663_v5, 5  ;;  %v698_v11 = vor.u32 %v697_v62, %v694_v50  ;;  %v6016_v24 = vrot.slane %v1311_v49, 9 }
  0x56   : > { %v708_v21 = vor.u32 %v707_v38, %v703_v29  ;;  %v713_v43 = vrot.slane %v711_v48, 5  ;;  %v522_v46 = vsel %vm7685_vm2, %v517_v58, %v521_v23  ;;  %v1370_v35 = vrot.slane %v7690_v32, 5 }
  0x57   : > { %v1364_v63 = vsel %vm7996_vm5, %v6015_v41, %v1363_v12  ;;  %v1365_v3 = vrot.slane %v1363_v12, 4  ;;  %v5974_v37 = vcombine.low %v512_v33, %v522_v46  ;;  %v699_v2 = vrot.slane %v698_v11, 4  ;;  %v1314_v12 = vld [vmem:[%s7654_s28 + $0x30] sm:$0xe]  ;;  %v1316_v46 = vld [vmem:[%s7654_s28 + $0x48] sm:$0xe] }
  0x58   : > { %v709_v42 = vrot.slane %v708_v21, 4  ;;  %v5991_v10 = vcombine.low %v7660_v4, %v7663_v5  ;;  %v10769_v38 = vrot.slane %v7666_v6, 5  ;;  %v1372_v45 = vrot.slane %v1370_v35, 4 }
  0x59   : > { %v6017_v23 = vrot.slane %v1312_v20, 9  ;;  %6995 = vmatmul.mubr.bf16.gmra.mxu0 %v5974_v37  ;;  %v704_v50 = vsel %vm7685_vm2, %v699_v2, %v703_v29  ;;  %v1377_v33 = vrot.slane %v7727_v19, 5  ;;  %v1371_v4 = vsel %vm7996_vm5, %v6016_v24, %v1370_v35  ;;  %v1315_v24 = vld [vmem:[%s7654_s28 + $0x3c] sm:$0xe] }
  0x5a   : > { %v1367_v48 = vsel %vm7996_vm5, %v1365_v3, %v10769_v38  ;;  %v714_v49 = vsel %vm7685_vm2, %v709_v42, %v713_v43  ;;  %v10770_v5 = vrot.slane %v7696_v40, 5  ;;  %v1380_v37 = vrot.slane %v7732_v25, 5  ;;  %v1313_v3 = vld [vmem:[%s7654_s28 + $0x24] sm:$0xe]  ;;  %v7471_v25 = vld [vmem:[%s10732_s1 + $0x130] sm:$0xff]  }
  0x5b   : > { %v6047_v62 = vcombine.low %v1364_v63, %v1367_v48  ;;  %v5982_v58 = vcombine.low %v704_v50, %v714_v49  ;;  %v1378_v29 = vsel %vm7996_vm5, %v6017_v23, %v1377_v33  ;;  %v1379_v20 = vrot.slane %v1377_v33, 4  ;;  %v7470_v23 = vld [vmem:[%s10732_s1 + $0xf0] sm:$0xff]  }
  0x5c   : > { %v1374_v6 = vsel %vm7996_vm5, %v1372_v45, %v10770_v5  ;;  %v1384_v41 = vrot.slane %v7768_v0, 5  ;;  %v6018_v21 = vrot.slane %v1313_v3, 9  ;;  %v1391_v43 = vrot.slane %v7815_v60, 5  ;;  %v8071_v3 = vld [vmem:[%s7654_s28 + $0x68] sm:$0x1] }
  0x5d   : > { %7078 = vmatprep.mubr.bf16.mxu0 %v6047_v62  ;;  %7011 = vmatmul.mubr.bf16.gmra.mxu1 %v5982_v58  ;;  %v6048_v11 = vcombine.low %v1371_v4, %v1374_v6  ;;  %v1381_v40 = vsel %vm7996_vm5, %v1379_v20, %v1380_v37  ;;  %v1387_v2 = vrot.slane %v7771_v8, 5  ;;  %v6019_v42 = vrot.slane %v1314_v12, 9  ;;  %v1317_v37 = vld [vmem:[%s7654_s28 + $0x54] sm:$0xe]  ;;  %v8095_v12 = vld [vmem:[%s7654_s28 + $0x60] sm:$0xe] }
  0x5e   : > { %7030 = vmatprep.mubr.bf16.mxu1 %v5991_v10  ;;  %v6049_v63 = vcombine.low %v1378_v29, %v1381_v40  ;;  %v1386_v35 = vrot.slane %v1384_v41, 4  ;;  %v1393_v38 = vrot.slane %v1391_v43, 4  ;;  %v1394_v10 = vrot.slane %v7823_v16, 5 }
  0x5f   : > { %v1398_v48 = vrot.slane %v7859_v54, 5  ;;  %v5993_v45 = vcombine.low %v7719_v14, %v7727_v19  ;;  %v1405_v50 = vrot.slane %v7908_v17, 5  ;;  %v6020_v49 = vrot.slane %v1315_v24, 9  ;;  %v7479_v24 = vld [vmem:[%s10732_s1 + $0x120] sm:$0xff]  }
  0x60   : > { %v1401_v8 = vrot.slane %v7866_v7, 5  ;;  %v6021_v33 = vrot.slane %v1316_v46, 9  ;;  %v1385_v14 = vsel %vm7996_vm5, %v6018_v21, %v1384_v41  ;;  %v1388_v19 = vsel %vm7996_vm5, %v1386_v35, %v1387_v2  ;;  %v8107_v46 = vld [vmem:[%s7654_s28 + $0x78] sm:$0xe]  ;;  %v7478_v2 = vld [vmem:[%s10732_s1 + $0xe0] sm:$0xff]  }
  0x61   : > { %7079 = vmatmul.mubr.bf16.vlgmr.msra.gmra.mxu0 %v6048_v11  ;;  %v1400_v62 = vrot.slane %v1398_v48, 4  ;;  %v1407_v16 = vrot.slane %v1405_v50, 4  ;;  %v1408_v58 = vrot.slane %v7917_v30, 5  ;;  %v1392_v4 = vsel %vm7996_vm5, %v6019_v42, %v1391_v43  ;;  %v8098_v11 = vld [vmem:[%s7654_s28 + $0x6c] sm:$0xe] }
  0x62   : > { %7159 = vmatpush3.bf16.msra.mxu0 %v7938_v1  ;;  %7082 = vmatprep.mubr.bf16.mxu0 %v6049_v63  ;;  %v1395_v7 = vsel %vm7996_vm5, %v1393_v38, %v1394_v10  ;;  %v7475_v1 = vld [vmem:[%s10732_s1 + $0x128] sm:$0xff]   ;;  %v1412_v5 = vrot.slane %v7953_v34, 5  ;;  %v10771_v6 = vcombine.low %v7681_v26, %v7690_v32  ;;  %v5994_v30 = vcombine.low %v7759_v57, %v7768_v0  ;;  %v1321_v63 = vld [vmem:[%s7654_s28 + $0x84] sm:$0xe]  ;;  %v1322_v42 = vld [vmem:[%s7654_s28 + $0x90] sm:$0xe] }
  0x63   : > { %7160 = vmatprep.subr.bf16.mxu0 %v7471_v25  ;;  %v1422_v29 = vrot.slane %v8071_v3, 5  ;;  %v6050_v20 = vcombine.low %v1385_v14, %v1388_v19  ;;  %v8077_v41 = vsel %vm7996_vm5, %v6020_v49, %v1398_v48  ;;  %v8081_v26 = vsel %vm7996_vm5, %v1400_v62, %v1401_v8  ;;  %v7474_v32 = vld [vmem:[%s10732_s1 + $0xe8] sm:$0xff]   ;;  %v8126_v48 = vld [vmem:[%s7654_s28 + $0x64] sm:$0xf]  ;;  %v1323_v49 = vld [vmem:[%s7654_s28 + $0x9c] sm:$0xe] }
  0x64   : > { %v6051_v57 = vcombine.low %v1392_v4, %v1395_v7  ;;  %v8088_v0 = vsel %vm7996_vm5, %v6021_v33, %v1405_v50  ;;  %v5995_v40 = vcombine.low %v7806_v53, %v7815_v60  ;;  %v6022_v21 = vrot.slane %v1317_v37, 9  ;;  %v8148_v4 = vld [vmem:[%s7654_s28 + $0x74] sm:$0x1] }
  0x65   : > { %7031 = vmatmul.mubr.bf16.vlgmr.msra.gmra.mxu1 %v10771_v6  ;;  %v1415_v43 = vrot.slane %v7962_v55, 5  ;;  %v5996_v35 = vcombine.low %v7856_v51, %v7859_v54  ;;  %v6052_v53 = vcombine.low %v8077_v41, %v8081_v26  ;;  %v5997_v60 = vcombine.low %v7899_v59, %v7908_v17  ;;  %v7564_v54 = vld [vmem:[%s7654_s28 + $0x80] sm:$0x1] }
  0x66   : > { %7111 = vmatpush3.bf16.msra.mxu1 %v7930_v47  ;;  %7034 = vmatprep.mubr.bf16.mxu1 %v5993_v45  ;;  %v8092_v47 = vsel %vm7996_vm5, %v1407_v16, %v1408_v58  ;;  %v5998_v55 = vcombine.low %v7946_v15, %v7953_v34  ;;  %v6023_v10 = vrot.slane %v8095_v12, 9  ;;  %v1419_v45 = vrot.slane %v8126_v48, 5  ;;  %v8144_v16 = vld [vmem:[%s7654_s28 + $0x70] sm:$0xf]  ;;  %v7565_v17 = vld [vmem:[%s7654_s28 + $0x60] sm:$0xf] }
  0x67   : > { %7112 = vmatprep.subr.bf16.mxu1 %v7470_v23  ;;  %7161 = vmatpush3.bf16.msra.mxu0 %v7471_v25  ;;  %v1414_v25 = vrot.slane %v1412_v5, 4  ;;  %v6053_v38 = vcombine.low %v8088_v0, %v8092_v47  ;;  %v6024_v62 = vrot.slane %v8098_v11, 9  ;;  %v1440_v8 = vrot.slane %v7782_v22, 5  ;;  %v1324_v0 = vld [vmem:[%s7654_s28 + $0xa8] sm:$0xe]  ;;  %v8328_v15 = vld [vmem:[%s10732_s1 + $0x1b8] sm:$0xff]  }
  0x68   : > { %7162 = vmatprep.subr.bf16.mxu0 %v7475_v1  ;;  %v1443_v33 = vrot.slane %v7791_v36, 5  ;;  %v8137_v14 = vsel %vm7996_vm5, %v6022_v21, %v1412_v5  ;;  %v1426_v58 = vrot.slane %v8144_v16, 5  ;;  %v1429_v7 = vrot.slane %v8148_v4, 5  ;;  %v7482_v36 = vld [vmem:[%s10732_s1 + $0xd8] sm:$0xff]  }
  0x69   : > { %7083 = vmatmul.mubr.bf16.gmra.mxu0 %v6050_v20  ;;  %v8141_v19 = vsel %vm7996_vm5, %v1414_v25, %v1415_v43  ;;  %v6025_v5 = vrot.slane %v8107_v46, 9  ;;  %v1442_v37 = vrot.slane %v1440_v8, 4  ;;  %v6027_v41 = vrot.slane %v1322_v42, 9  ;;  %v6143_v42 = vld [vmem:[%s7654_s28 + $0xc] sm:$0xf] }
  0x6a   : > { %7113 = vmatpush3.bf16.msra.mxu1 %v7470_v23  ;;  %7086 = vmatprep.mubr.bf16.mxu0 %v6051_v57  ;;  %v6026_v23 = vrot.slane %v1321_v63, 9  ;;  %v1447_v26 = vrot.slane %v7833_v31, 5  ;;  %v1450_v57 = vrot.slane %v7843_v44, 5  ;;  %v1433_v47 = vrot.slane %v7741_v39, 5 }
  0x6b   : > { %7114 = vmatprep.subr.bf16.mxu1 %v7474_v32  ;;  %7163 = vmatpush3.bf16.msra.mxu0 %v7475_v1  ;;  %v7483_v1 = vld [vmem:[%s10732_s1 + $0x118] sm:$0xff]   ;;  %v8172_v21 = vsel %vm7996_vm5, %v1442_v37, %v1443_v33  ;;  %v1454_v63 = vrot.slane %v7878_v28, 5  ;;  %v6029_v33 = vrot.slane %v1324_v0, 9  ;;  %v1461_v37 = vrot.slane %v7933_v52, 5  ;;  %v7486_v0 = vld [vmem:[%s10732_s1 + $0xd0] sm:$0xff]  }
  0x6c   : > { %7164 = vmatprep.subr.bf16.mxu0 %v7479_v24  ;;  %v8160_v6 = vsel %vm7996_vm5, %v6026_v23, %v1440_v8  ;;  %v8180_v44 = vsel %vm7996_vm5, %v6027_v41, %v1447_v26  ;;  %v1449_v43 = vrot.slane %v1447_v26, 4  ;;  %v7487_v23 = vld [vmem:[%s10732_s1 + $0x110] sm:$0xff]   ;;  %v1457_v8 = vrot.slane %v7894_v61, 5  ;;  %v10773_v61 = vld [vmem:[#allocation3_spill] sm:$0xff] }
  0x6d   : > { %7035 = vmatmul.mubr.bf16.gmra.mxu1 %v5994_v30  ;;  %v1421_v30 = vrot.slane %v1419_v45, 4  ;;  %v1456_v20 = vrot.slane %v1454_v63, 4  ;;  %v1464_v50 = vrot.slane %v10773_v61, 5  ;;  %v1420_v61 = vsel %vm7996_vm5, %v6023_v10, %v1419_v45  ;;  %v6146_v45 = vld [vmem:[%s7654_s28 + $0x18] sm:$0xf] }
  0x6e   : > { %7038 = vmatprep.mubr.bf16.mxu1 %v5995_v40  ;;  %7115 = vmatpush3.bf16.msra.mxu1 %v7474_v32  ;;  %v6028_v40 = vrot.slane %v1323_v49, 9  ;;  %v8192_v32 = vld [vmem:[%s7654_s28 + $0x10] sm:$0xf]  ;;  %v8196_v41 = vsel %vm7996_vm5, %v1449_v43, %v1450_v57  ;;  %v1463_v57 = vrot.slane %v1461_v37, 4  ;;  %v2231_v12 = vshrl.u32 %v6143_v42, 16 }
  0x6f   : > { %7116 = vmatprep.subr.bf16.mxu1 %v7478_v2  ;;  %7165 = vmatpush3.bf16.msra.mxu0 %v7479_v24  ;;  %v10772_v24 = vld [vmem:[#allocation2_spill] sm:$0xff]  ;;  %v10775_v43 = vld [vmem:[#allocation4_spill] sm:$0xff]  ;;  %v2234_v10 = vshll.u32 %v6143_v42, 16  ;;  %v1428_v51 = vrot.slane %v1426_v58, 4  ;;  %v2240_v59 = vshll.u32 %v8192_v32, 16  ;;  %v1434_v4 = vsel %vm7996_vm5, %v6025_v5, %v1433_v47 }
  0x70   : > { %7166 = vmatprep.subr.bf16.mxu0 %v7483_v1  ;;  %v8200_v26 = vsel %vm7996_vm5, %v6028_v40, %v1454_v63  ;;  %v10774_v40 = vld [vmem:[#allocation5_spill] sm:$0xff]  ;;  %v8266_v42 = vld [vmem:[%s7654_s28 + $0x14] sm:$0x1]  ;;  %v2233_v63 = vrot.slane %v2231_v12, 4  ;;  %v10777_v5 = vld [vmem:[#allocation6_spill] sm:$0xff] }
  0x71   : > { %7087 = vmatmul.mubr.bf16.gmra.mxu0 %v6052_v53  ;;  %v2236_v49 = vrot.slane %v2234_v10, 5  ;;  %v6149_v53 = vld [vmem:[%s7654_s28 + $0x24] sm:$0xf]  ;;  %v1430_v11 = vsel %vm7996_vm5, %v1428_v51, %v1429_v7 }
  0x72   : > { %7117 = vmatpush3.bf16.msra.mxu1 %v7478_v2  ;;  %7090 = vmatprep.mubr.bf16.mxu0 %v6053_v38  ;;  %v8210_v2 = vsel %vm7996_vm5, %v6029_v33, %v1461_v37  ;;  %v6054_v38 = vcombine.low %v8137_v14, %v8141_v19  ;;  %v1423_v33 = vsel %vm7996_vm5, %v1421_v30, %v1422_v29  ;;  %v7491_v14 = vld [vmem:[%s10732_s1 + $0x108] sm:$0xff]   ;;  %v7495_v30 = vld [vmem:[%s10732_s1 + $0x100] sm:$0xff]   ;;  %v8285_v19 = vrot.slane %v2240_v59, 5 }
  0x73   : > { %7118 = vmatprep.subr.bf16.mxu1 %v7482_v36  ;;  %7167 = vmatpush3.bf16.msra.mxu0 %v7483_v1  ;;  %v8228_v37 = vsel %vm7996_vm5, %v1456_v20, %v1457_v8  ;;  %v8240_v29 = vsel %vm7996_vm5, %v1463_v57, %v1464_v50  ;;  %v7490_v50 = vld [vmem:[%s10732_s1 + $0xc8] sm:$0xff]   ;;  %v8255_v1 = vld [vmem:[%s7654_s28 + $0xb4] sm:$0xe]  ;;  %v6055_v20 = vcombine.low %v1420_v61, %v1423_v33  ;;  %v2244_v8 = vshrl.u32 %v8192_v32, 16  ;;  %v8283_v61 = vld [vmem:[%s7654_s28 + $0x1c] sm:$0xf] }
  0x74   : > { %7168 = vmatprep.subr.bf16.mxu0 %v7487_v23  ;;  %v8270_v57 = vld [vmem:[%s7654_s28 + $0x6c] sm:$0xf]  ;;  %v2255_v33 = vshrl.u32 %v6146_v45, 16  ;;  %v2264_v51 = vshll.u32 %v8283_v61, 16  ;;  %v2268_v39 = vshrl.u32 %v8283_v61, 16  ;;  %v2279_v59 = vshrl.u32 %v6149_v53, 16 }
  0x75   : > { %7039 = vmatmul.mubr.bf16.gmra.mxu1 %v5996_v35  ;;  %v1436_v35 = vrot.slane %v7564_v54, 5  ;;  %v6000_v54 = vcombine.low %v8270_v57, %v8144_v16  ;;  %v2246_v3 = vrot.slane %v2244_v8, 4  ;;  %v2282_v46 = vshll.u32 %v6149_v53, 16  ;;  %v7568_v8 = vld [vmem:[%s7654_s28 + $0x7c] sm:$0xf] }
  0x76   : > { %7042 = vmatprep.mubr.bf16.mxu1 %v5997_v60  ;;  %7119 = vmatpush3.bf16.msra.mxu1 %v7482_v36  ;;  %v5999_v60 = vcombine.low %v7565_v17, %v8126_v48  ;;  %v1435_v36 = vrot.slane %v1433_v47, 4  ;;  %v8280_v48 = vsel %vm7996_vm5, %v6024_v62, %v1426_v58  ;;  %v2258_v17 = vshll.u32 %v6146_v45, 16  ;;  %v7494_v58 = vld [vmem:[%s10732_s1 + $0xc0] sm:$0xff]   ;;  %v8310_v45 = vld [vmem:[%s7654_s28 + $0x28] sm:$0xf] }
  0x77   : > { %7120 = vmatprep.subr.bf16.mxu1 %v7486_v0  ;;  %7169 = vmatpush3.bf16.msra.mxu0 %v7487_v23  ;;  %v10745_v62 = vrot.slane %v10774_v40, 5  ;;  %v8297_v23 = vld [vmem:[%s7654_s28 + $0x20] sm:$0x1]  ;;  %v2257_v12 = vrot.slane %v2255_v33, 4  ;;  %10776 = vst [vmem:[#allocation2_spill] sm:$0xff] %v8310_v45  ;;  %v6056_v34 = vcombine.low %v8280_v48, %v1430_v11  ;;  %v2288_v53 = vshll.u32 %v8310_v45, 16 }
  0x78   : > { %7170 = vmatprep.subr.bf16.mxu0 %v7491_v14  ;;  %v2260_v10 = vrot.slane %v2258_v17, 5  ;;  %v1437_v7 = vsel %vm7996_vm5, %v1435_v36, %v1436_v35  ;;  %v2237_v35 = vor.u32 %v2236_v49, %v2233_v63  ;;  %v8323_v36 = vld [vmem:[%s10732_s1 + $0x178] sm:$0xff]   ;;  %v6152_v63 = vld [vmem:[%s7654_s28 + $0x30] sm:$0xf]  ;;  %v8344_v48 = vld [vmem:[%s7654_s28 + $0x34] sm:$0xf] }
  0x79   : > { %7091 = vmatmul.mubr.bf16.gmra.mxu0 %v6054_v38  ;;  %v2250_v38 = vshll.u32 %v8266_v42, 16  ;;  %v6057_v17 = vcombine.low %v1434_v4, %v1437_v7  ;;  %10779 = vst [vmem:[#allocation5_spill] sm:$0xff] %v8344_v48  ;;  %v8346_v11 = vrot.slane %v2264_v51, 5  ;;  %v2284_v47 = vrot.slane %v2282_v46, 5  ;;  %v8365_v46 = vld [vmem:[%s7654_s28 + $0x40] sm:$0xf] }
  0x7a   : > { %7121 = vmatpush3.bf16.msra.mxu1 %v7486_v0  ;;  %7094 = vmatprep.mubr.bf16.mxu0 %v6055_v20  ;;  %v2247_v20 = vor.u32 %v2246_v3, %v8285_v19  ;;  %v2261_v49 = vor.u32 %v2260_v10, %v2257_v12  ;;  %v7567_v3 = vld [vmem:[%s7654_s28 + $0x78] sm:$0xf]  ;;  %v2270_v12 = vrot.slane %v2268_v39, 4  ;;  %v2281_v10 = vrot.slane %v2279_v59, 4  ;;  %10780 = vst [vmem:[#allocation4_spill] sm:$0xff] %v8365_v46 }
  0x7b   : > { %7122 = vmatprep.subr.bf16.mxu1 %v7490_v50  ;;  %7171 = vmatpush3.bf16.msra.mxu0 %v7491_v14  ;;  %v2274_v14 = vshll.u32 %v8297_v23, 16  ;;  %v6001_v33 = vcombine.low %v7567_v3, %v7568_v8  ;;  %v8337_v25 = vrot.slane %v2250_v38, 5  ;;  %v8349_v0 = vld [vmem:[%s7654_s28 + $0x38] sm:$0x1]  ;;  %v8351_v4 = vrot.slane %v2237_v35, 4 }
  0x7c   : > { %7172 = vmatprep.subr.bf16.mxu0 %v7495_v30  ;;  %v8353_v7 = vrot.slane %v2247_v20, 4  ;;  %v2303_v3 = vshrl.u32 %v6152_v63, 16  ;;  %v6155_v8 = vld [vmem:[%s7654_s28 + $0x3c] sm:$0xf]  ;;  %v8361_v51 = vrot.slane %v2288_v53, 5  ;;  %v2306_v39 = vshll.u32 %v6152_v63, 16 }
  0x7d   : > { %7043 = vmatmul.mubr.bf16.gmra.mxu1 %v5998_v55  ;;  %v1470_v55 = vrot.slane %v10745_v62, 4  ;;  %v8355_v38 = vrot.slane %v2274_v14, 5  ;;  %v2312_v59 = vshll.u32 %v8344_v48, 16  ;;  %v2316_v20 = vshrl.u32 %v8344_v48, 16 }
  0x7e   : > { %7046 = vmatprep.mubr.bf16.mxu1 %v5999_v60  ;;  %7123 = vmatpush3.bf16.msra.mxu1 %v7490_v50  ;;  %v8340_v60 = vld [vmem:[%s7654_s28 + $0x2c] sm:$0x1]  ;;  %v2292_v50 = vshrl.u32 %v8310_v45, 16  ;;  %v2271_v14 = vor.u32 %v2270_v12, %v8346_v11  ;;  %v2305_v53 = vrot.slane %v2303_v3, 4  ;;  %v2308_v63 = vrot.slane %v2306_v39, 5 }
  0x7f   : > { %7124 = vmatprep.subr.bf16.mxu1 %v7494_v58  ;;  %10778 = vst [vmem:[#allocation3_spill] sm:$0xff] %v8340_v60  ;;  %7173 = vmatpush3.bf16.msra.mxu0 %v7495_v30  ;;  %v8359_v30 = vrot.slane %v2261_v49, 4  ;;  %v2327_v49 = vshrl.u32 %v6155_v8, 16  ;;  %v2330_v62 = vshll.u32 %v6155_v8, 16  ;;  %v2318_v48 = vrot.slane %v2316_v20, 4 }
  0x80   : > { %7254 = vmatprep.subr.bf16.mxu0 %v8328_v15  ;;  %v2294_v35 = vrot.slane %v2292_v50, 4  ;;  %v8375_v50 = vrot.slane %v2312_v59, 5  ;;  %v8378_v45 = vld [vmem:[%s7654_s28 + $0x44] sm:$0x1]  ;;  %v2340_v12 = vshrl.u32 %v8365_v46, 16  ;;  %v10781_v16 = vrot.slane %v10774_v40, 5 }
  0x81   : > { %7095 = vmatmul.mubr.bf16.gmra.mxu0 %v6056_v34  ;;  %v2298_v34 = vshll.u32 %v8340_v60, 16  ;;  %v10782_v57 = vrot.slane %v8255_v1, 9  ;;  %v8399_v39 = vld [vmem:[%s7654_s28 + $0x4c] sm:$0xf]  ;;  %v2329_v59 = vrot.slane %v2327_v49, 4  ;;  %v2332_v20 = vrot.slane %v2330_v62, 5 }
  0x82   : > { %7125 = vmatpush3.bf16.msra.mxu1 %v7494_v58  ;;  %7098 = vmatprep.mubr.bf16.mxu0 %v6057_v17  ;;  %v2285_v58 = vor.u32 %v2284_v47, %v2281_v10  ;;  %v2322_v17 = vshll.u32 %v8349_v0, 16  ;;  %v2336_v47 = vshll.u32 %v8365_v46, 16  ;;  %v6158_v10 = vld [vmem:[%s7654_s28 + $0x48] sm:$0xf]  ;;  %v2295_v8 = vor.u32 %v2294_v35, %v8361_v51 }
  0x83   : > { %7206 = vmatprep.subr.bf16.mxu1 %v8323_v36  ;;  %v2342_v1 = vrot.slane %v2340_v12, 4  ;;  %v8403_v46 = vrot.slane %v2271_v14, 4  ;;  %v2243_v62 = vsel %vm7685_vm2, %v8351_v4, %v8285_v19  ;;  %v2253_v35 = vsel %vm7685_vm2, %v8353_v7, %v8337_v25  ;;  %v6161_v4 = vld [vmem:[%s7654_s28 + $0x54] sm:$0xf] }
  0x84   : > { %v8401_v60 = vrot.slane %v2336_v47, 5  ;;  %v2354_v14 = vshll.u32 %v6158_v10, 16  ;;  %v2346_v49 = vshll.u32 %v8378_v45, 16  ;;  %v2364_v19 = vshrl.u32 %v8399_v39, 16 }
  0x85   : > { %7047 = vmatmul.mubr.bf16.gmra.mxu1 %v6000_v54  ;;  %v8389_v54 = vsel %vm7996_vm5, %v10782_v57, %v10781_v16  ;;  %v8405_v16 = vrot.slane %v2285_v58, 4  ;;  %v8407_v57 = vrot.slane %v2298_v34, 5  ;;  %v2360_v58 = vshll.u32 %v8399_v39, 16 }
  0x86   : > { %7050 = vmatprep.mubr.bf16.mxu1 %v6001_v33  ;;  %v10783_v33 = vrot.slane %v10777_v5, 5  ;;  %v2351_v5 = vshrl.u32 %v6158_v10, 16  ;;  %v10785_v34 = vcombine.low %v8180_v44, %v8196_v41  ;;  %v8428_v47 = vrot.slane %v2295_v8, 4  ;;  %v8434_v10 = vld [vmem:[%s7654_s28 + $0x58] sm:$0xf] }
  0x87   : > { %v8430_v12 = vrot.slane %v2322_v17, 5  ;;  %v2333_v25 = vor.u32 %v2332_v20, %v2329_v59  ;;  %v2343_v7 = vor.u32 %v2342_v1, %v8401_v60  ;;  %v10786_v44 = vcombine.low %v7775_v13, %v7782_v22  ;;  %v8440_v41 = vld [vmem:[%s7654_s28 + $0x50] sm:$0x1] }
  0x88   : > { %v8395_v3 = vsel %vm7996_vm5, %v1470_v55, %v10783_v33  ;;  %v10784_v55 = vcombine.low %v8160_v6, %v8172_v21  ;;  %v2309_v6 = vor.u32 %v2308_v63, %v2305_v53  ;;  %v2319_v21 = vor.u32 %v2318_v48, %v8375_v50 }
  0x89   : > { %v2353_v48 = vrot.slane %v2351_v5, 4  ;;  %v2356_v53 = vrot.slane %v2354_v14, 5  ;;  %v8442_v63 = vrot.slane %v2360_v58, 5  ;;  %v2366_v17 = vrot.slane %v2364_v19, 4  ;;  %v6164_v5 = vld [vmem:[%s7654_s28 + $0x60] sm:$0xf] }
  0x8a   : > { %7099 = vmatmul.mubr.bf16.gmra.mxu0 %v10784_v55  ;;  %v10787_v33 = vcombine.low %v7827_v18, %v7833_v31  ;;  %v2375_v8 = vshrl.u32 %v6161_v4, 16  ;;  %v2378_v59 = vshll.u32 %v6161_v4, 16  ;;  %v8447_v20 = vrot.slane %v2309_v6, 4  ;;  %v8464_v31 = vld [vmem:[%s7654_s28 + $0x64] sm:$0xf] }
  0x8b   : > { %7102 = vmatprep.mubr.bf16.mxu0 %v10785_v34  ;;  %v8449_v1 = vrot.slane %v2319_v21, 4  ;;  %v8451_v13 = vrot.slane %v2346_v49, 5  ;;  %v2384_v22 = vshll.u32 %v8434_v10, 16  ;;  %v6062_v55 = vcombine.low %v8389_v54, %v8395_v3  ;;  %v8460_v34 = vld [vmem:[%s7654_s28 + $0x5c] sm:$0x1] }
  0x8c   : > { %v6207_v14 = vcombine.low %v2243_v62, %v2253_v35  ;;  %v8457_v58 = vrot.slane %v2333_v25, 4  ;;  %v2388_v18 = vshrl.u32 %v8434_v10, 16  ;;  %v8466_v6 = vrot.slane %v2343_v7, 4 }
  0x8d   : > { %7051 = vmatmul.mubr.bf16.gmra.mxu1 %v10786_v44  ;;  %v2370_v21 = vshll.u32 %v8440_v41, 16  ;;  %v2399_v49 = vshrl.u32 %v6164_v5, 16  ;;  %v2402_v19 = vshll.u32 %v6164_v5, 16  ;;  %v10788_v4 = vcombine.low %v8200_v26, %v8228_v37 }
  0x8e   : > { %7054 = vmatprep.mubr.bf16.mxu1 %v10787_v33  ;;  %v2357_v54 = vor.u32 %v2356_v53, %v2353_v48  ;;  %v2367_v3 = vor.u32 %v2366_v17, %v8442_v63  ;;  %v2377_v62 = vrot.slane %v2375_v8, 4  ;;  %v2380_v35 = vrot.slane %v2378_v59, 5  ;;  %v8504_v8 = vld [vmem:[%s7654_s28 + $0x70] sm:$0xf] }
  0x8f   : > { %v10789_v25 = vcombine.low %v8210_v2, %v8240_v29  ;;  %v8476_v7 = vrot.slane %v2384_v22, 5  ;;  %v2390_v44 = vrot.slane %v2388_v18, 4  ;;  %v2394_v33 = vshll.u32 %v8460_v34, 16 }
  0x90   : > { %v2408_v26 = vshll.u32 %v8464_v31, 16  ;;  %v2267_v37 = vsel %vm7685_vm2, %v8359_v30, %v8346_v11  ;;  %v2277_v2 = vsel %vm7685_vm2, %v8403_v46, %v8355_v38  ;;  %v2401_v29 = vrot.slane %v2399_v49, 4  ;;  %v6167_v46 = vld [vmem:[%s7654_s28 + $0x6c] sm:$0xf] }
  0x91   : > { %v2404_v48 = vrot.slane %v2402_v19, 5  ;;  %v10790_v53 = vcombine.low %v7869_v9, %v7878_v28  ;;  %v2291_v17 = vsel %vm7685_vm2, %v8405_v16, %v8361_v51  ;;  %v2301_v11 = vsel %vm7685_vm2, %v8428_v47, %v8407_v57  ;;  %v8512_v16 = vld [vmem:[%s7654_s28 + $0x68] sm:$0x1] }
  0x92   : > { %7103 = vmatmul.mubr.bf16.gmra.mxu0 %v10788_v4  ;;  %v8499_v30 = vrot.slane %v2370_v21, 5  ;;  %v2412_v38 = vshrl.u32 %v8464_v31, 16  ;;  %v10791_v9 = vcombine.low %v10772_v24, %v7933_v52  ;;  %v8509_v28 = vrot.slane %v2357_v54, 4  ;;  %v7496_v52 = vld [vmem:[%s7654_s28 + $0xc] sm:$0xff]  }
  0x93   : > { %7106 = vmatprep.mubr.bf16.mxu0 %v10789_v25  ;;  %v2381_v51 = vor.u32 %v2380_v35, %v2377_v62  ;;  %v2423_v59 = vshrl.u32 %v6167_v46, 16  ;;  %v2426_v57 = vshll.u32 %v6167_v46, 16  ;;  %v8514_v47 = vrot.slane %v2367_v3, 4  ;;  %v8525_v62 = vld [vmem:[%s7654_s28 + $0x74] sm:$0x1] }
  0x94   : > { %v2391_v22 = vor.u32 %v2390_v44, %v8476_v7  ;;  %v8517_v5 = vrot.slane %v2394_v33, 5  ;;  %v2432_v18 = vshll.u32 %v8504_v8, 16  ;;  %v2405_v24 = vor.u32 %v2404_v48, %v2401_v29  ;;  %v6170_v25 = vld [vmem:[%s7654_s28 + $0x78] sm:$0xf]  ;;  %v8529_v44 = vld [vmem:[%s7654_s28 + $0x7c] sm:$0xf] }
  0x95   : > { %7055 = vmatmul.mubr.bf16.gmra.mxu1 %v10790_v53  ;;  %v8521_v21 = vrot.slane %v2408_v26, 5  ;;  %v2414_v49 = vrot.slane %v2412_v38, 4  ;;  %v2436_v19 = vshrl.u32 %v8504_v8, 16  ;;  %v6208_v4 = vcombine.low %v2267_v37, %v2277_v2  ;;  %v8536_v26 = vld [vmem:[%s7654_s28 + $0x80] sm:$0x1] }
  0x96   : > { %7058 = vmatprep.mubr.bf16.mxu1 %v10791_v9  ;;  %v6209_v54 = vcombine.low %v2291_v17, %v2301_v11  ;;  %v2425_v3 = vrot.slane %v2423_v59, 4  ;;  %v2428_v35 = vrot.slane %v2426_v57, 5  ;;  %v8531_v33 = vrot.slane %v2381_v51, 4 }
  0x97   : > { %v8533_v53 = vrot.slane %v2432_v18, 5  ;;  %v2438_v29 = vrot.slane %v2436_v19, 4  ;;  %v2447_v48 = vshrl.u32 %v6170_v25, 16  ;;  %v2418_v37 = vshll.u32 %v8512_v16, 16  ;;  %v6173_v19 = vld [vmem:[%s7654_s28 + $0x84] sm:$0xf] }
  0x98   : > { %v2450_v2 = vshll.u32 %v6170_v25, 16  ;;  %v2456_v17 = vshll.u32 %v8529_v44, 16  ;;  %v2460_v11 = vshrl.u32 %v8529_v44, 16  ;;  %v8541_v38 = vrot.slane %v2391_v22, 4  ;;  %v7500_v25 = vld [vmem:[%s7654_s28 + $0x24] sm:$0xff]  }
  0x99   : > { %v8543_v46 = vrot.slane %v2405_v24, 4  ;;  %v2449_v9 = vrot.slane %v2447_v48, 4  ;;  %v10792_v51 = vcombine.low %v10775_v43, %v10774_v40  ;;  %v2315_v22 = vsel %vm7685_vm2, %v8447_v20, %v8375_v50 }
  0x9a   : > { %7107 = vmatmul.mubr.bf16.gmra.mxu0 %v6062_v55  ;;  %v2415_v55 = vor.u32 %v2414_v49, %v8521_v21  ;;  %v2452_v59 = vrot.slane %v2450_v2, 5  ;;  %v8549_v57 = vrot.slane %v2456_v17, 5  ;;  %v2462_v18 = vrot.slane %v2460_v11, 4  ;;  %v8598_v17 = vld [vmem:[%s7654_s28 + $0x8c] sm:$0x1] }
  0x9b   : > { %7174 = vmatprep.mubr.bf16.mxu0 %v6207_v14  ;;  %v2429_v14 = vor.u32 %v2428_v35, %v2425_v3  ;;  %v2439_v24 = vor.u32 %v2438_v29, %v8533_v53  ;;  %v2442_v49 = vshll.u32 %v8525_v62, 16  ;;  %v2466_v40 = vshll.u32 %v8536_v26, 16  ;;  %v8572_v3 = vld [vmem:[%s7654_s28 + $0x88] sm:$0xf]  ;;  %v7497_v35 = vld [vmem:[%s7654_s28 + $0x18] sm:$0xff]  }
  0x9c   : > { %v2325_v43 = vsel %vm7685_vm2, %v8449_v1, %v8430_v12  ;;  %v2349_v50 = vsel %vm7685_vm2, %v8466_v6, %v8451_v13  ;;  %v2453_v20 = vor.u32 %v2452_v59, %v2449_v9  ;;  %v7503_v12 = vld [vmem:[%s10732_s1 + $0x1b0] sm:$0xff]   ;;  %v8579_v1 = vrot.slane %v2418_v37, 5  ;;  %v8603_v11 = vld [vmem:[%s10732_s1 + $0x1a8] sm:$0xff]  }
  0x9d   : > { %7059 = vmatmul.mubr.bf16.gmra.mxu1 %v10792_v51  ;;  %v2474_v29 = vshll.u32 %v6173_v19, 16  ;;  %v7502_v13 = vld [vmem:[%s10732_s1 + $0x170] sm:$0xff]   ;;  %v2363_v6 = vsel %vm7685_vm2, %v8509_v28, %v8442_v63  ;;  %v2373_v48 = vsel %vm7685_vm2, %v8514_v47, %v8499_v30  ;;  %v8593_v37 = vrot.slane %v2415_v55, 4 }
  0x9e   : > { %7126 = vmatprep.mubr.bf16.mxu1 %v7496_v52  ;;  %v2339_v52 = vsel %vm7685_vm2, %v8457_v58, %v8401_v60  ;;  %v2463_v60 = vor.u32 %v2462_v18, %v8549_v57  ;;  %v2471_v58 = vshrl.u32 %v6173_v19, 16  ;;  %v8595_v2 = vrot.slane %v2429_v14, 4  ;;  %v6176_v14 = vld [vmem:[%s7654_s28 + $0x90] sm:$0xf]  ;;  %v8626_v59 = vld [vmem:[%s7654_s28 + $0x94] sm:$0xf] }
  0x9f   : > { %v8605_v63 = vrot.slane %v2439_v24, 4  ;;  %v8607_v28 = vrot.slane %v2442_v49, 5  ;;  %v2480_v30 = vshll.u32 %v8572_v3, 16  ;;  %v2484_v47 = vshrl.u32 %v8572_v3, 16  ;;  %10793 = vst [vmem:[#allocation6_spill] sm:$0xff] %v8626_v59 }
  0xa0   : > { %v2397_v55 = vsel %vm7685_vm2, %v8541_v38, %v8517_v5  ;;  %v8620_v9 = vrot.slane %v2453_v20, 4  ;;  %v8622_v51 = vrot.slane %v2466_v40, 5  ;;  %v2476_v18 = vrot.slane %v2474_v29, 5  ;;  %v7506_v5 = vld [vmem:[%s10732_s1 + $0x168] sm:$0xff]  }
  0xa1   : > { %v2498_v38 = vshll.u32 %v6176_v14, 16  ;;  %v2504_v24 = vshll.u32 %v8626_v59, 16  ;;  %v2508_v49 = vshrl.u32 %v8626_v59, 16  ;;  %v6210_v40 = vcombine.low %v2315_v22, %v2325_v43 }
  0xa2   : > { %7175 = vmatmul.mubr.bf16.vlgmr.msra.gmra.mxu0 %v6208_v4  ;;  %v2387_v4 = vsel %vm7685_vm2, %v8531_v33, %v8476_v7  ;;  %v2490_v7 = vshll.u32 %v8598_v17, 16  ;;  %v2495_v33 = vshrl.u32 %v6176_v14, 16  ;;  %v6211_v20 = vcombine.low %v2339_v52, %v2349_v50 }
  0xa3   : > { %7255 = vmatpush3.bf16.msra.mxu0 %v8328_v15  ;;  %7178 = vmatprep.mubr.bf16.mxu0 %v6209_v54  ;;  %v8628_v15 = vrot.slane %v2463_v60, 4  ;;  %v2473_v54 = vrot.slane %v2471_v58, 4  ;;  %v8637_v19 = vrot.slane %v2480_v30, 5  ;;  %v7501_v60 = vld [vmem:[%s7654_s28 + $0x30] sm:$0xff]   ;;  %v7511_v58 = vld [vmem:[%s10732_s1 + $0x1a0] sm:$0xff]   ;;  %v2500_v14 = vrot.slane %v2498_v38, 5 }
  0xa4   : > { %7256 = vmatprep.subr.bf16.mxu0 %v7503_v12  ;;  %v2497_v29 = vrot.slane %v2495_v33, 4  ;;  %v2510_v22 = vrot.slane %v2508_v49, 4  ;;  %v8645_v43 = vcombine.low %v2363_v6, %v2373_v48  ;;  %v8648_v52 = vcombine.low %v2387_v4, %v2397_v55  ;;  %v6179_v30 = vld [vmem:[%s7654_s28 + $0x9c] sm:$0xf]  ;;  %v8670_v4 = vld [vmem:[%s7654_s28 + $0xa4] sm:$0x1] }
  0xa5   : > { %7127 = vmatmul.mubr.bf16.vlgmr.msra.gmra.mxu1 %v7497_v35  ;;  %v2486_v35 = vrot.slane %v2484_v47, 4  ;;  %v2477_v48 = vor.u32 %v2476_v18, %v2473_v54  ;;  %v8667_v47 = vld [vmem:[%s7654_s28 + $0xa0] sm:$0xf]  ;;  %10796 = vst [vmem:[#allocation9_spill] sm:$0xff] %v8670_v4  ;;  %v2519_v55 = vshrl.u32 %v6179_v30, 16  ;;  %v2522_v33 = vshll.u32 %v6179_v30, 16 }
  0xa6   : > { %7207 = vmatpush3.bf16.msra.mxu1 %v8323_v36  ;;  %7130 = vmatprep.mubr.bf16.mxu1 %v7500_v25  ;;  %v8643_v36 = vrot.slane %v2504_v24, 5  ;;  %v2421_v25 = vsel %vm7685_vm2, %v8593_v37, %v8579_v1  ;;  %10795 = vst [vmem:[#allocation8_spill] sm:$0xff] %v8667_v47  ;;  %v7504_v38 = vld [vmem:[%s7654_s28 + $0x3c] sm:$0xff]   ;;  %v2528_v37 = vshll.u32 %v8667_v47, 16  ;;  %v2532_v24 = vshrl.u32 %v8667_v47, 16 }
  0xa7   : > { %7208 = vmatprep.subr.bf16.mxu1 %v7502_v13  ;;  %7257 = vmatpush3.bf16.msra.mxu0 %v7503_v12  ;;  %v8659_v12 = vld [vmem:[%s7654_s28 + $0x98] sm:$0x1]  ;;  %v2487_v1 = vor.u32 %v2486_v35, %v8637_v19  ;;  %v7510_v54 = vld [vmem:[%s10732_s1 + $0x160] sm:$0xff]   ;;  %v2501_v18 = vor.u32 %v2500_v14, %v2497_v29  ;;  %v2521_v30 = vrot.slane %v2519_v55, 4  ;;  %v2524_v49 = vrot.slane %v2522_v33, 5 }
  0xa8   : > { %7258 = vmatprep.subr.bf16.mxu0 %v8603_v11  ;;  %10794 = vst [vmem:[#allocation7_spill] sm:$0xff] %v8659_v12  ;;  %v2514_v35 = vshll.u32 %v8659_v12, 16  ;;  %v2534_v6 = vrot.slane %v2532_v24, 4  ;;  %v2538_v50 = vshll.u32 %v8670_v4, 16  ;;  %v6182_v47 = vld [vmem:[%s7654_s28 + $0xa8] sm:$0xf] }
  0xa9   : > { %v7514_v29 = vld [vmem:[%s10732_s1 + $0x158] sm:$0xff]   ;;  %v8693_v14 = vrot.slane %v2477_v48, 4  ;;  %v2543_v55 = vshrl.u32 %v6182_v47, 16  ;;  %v2546_v33 = vshll.u32 %v6182_v47, 16  ;;  %v8706_v4 = vld [vmem:[%s7654_s28 + $0xb0] sm:$0x1] }
  0xaa   : > { %7179 = vmatmul.mubr.bf16.gmra.mxu0 %v6210_v40  ;;  %7209 = vmatpush3.bf16.msra.mxu1 %v7502_v13  ;;  %v7515_v13 = vld [vmem:[%s10732_s1 + $0x198] sm:$0xff]   ;;  %v2511_v40 = vor.u32 %v2510_v22, %v8643_v36  ;;  %v8695_v22 = vrot.slane %v2490_v7, 5  ;;  %v7505_v48 = vld [vmem:[%s7654_s28 + $0x48] sm:$0xff]   ;;  %v8709_v7 = vrot.slane %v2487_v1, 4  ;;  %v8711_v12 = vrot.slane %v2501_v18, 4 }
  0xab   : > { %7182 = vmatprep.mubr.bf16.mxu0 %v6211_v20  ;;  %7210 = vmatprep.subr.bf16.mxu1 %v7506_v5  ;;  %v8686_v20 = vrot.slane %v2528_v37, 5  ;;  %v2525_v37 = vor.u32 %v2524_v49, %v2521_v30  ;;  %v8713_v59 = vrot.slane %v2514_v35, 5  ;;  %v7518_v49 = vld [vmem:[%s10732_s1 + $0x150] sm:$0xff]   ;;  %v8730_v18 = vrot.slane %v2546_v33, 5 }
  0xac   : > { %7259 = vmatpush3.bf16.msra.mxu0 %v8603_v11  ;;  %v8698_v11 = vld [vmem:[%s7654_s28 + $0xac] sm:$0xf]  ;;  %v2562_v35 = vshll.u32 %v8706_v4, 16 }
  0xad   : > { %7131 = vmatmul.mubr.bf16.gmra.mxu1 %v7501_v60  ;;  %7260 = vmatprep.subr.bf16.mxu0 %v7511_v58  ;;  %10797 = vst [vmem:[#allocation10_spill] sm:$0xff] %v8698_v11  ;;  %v2445_v60 = vsel %vm7685_vm2, %v8605_v63, %v8607_v28  ;;  %v2535_v24 = vor.u32 %v2534_v6, %v8686_v20  ;;  %v2552_v47 = vshll.u32 %v8698_v11, 16  ;;  %v7508_v63 = vld [vmem:[%s7654_s28 + $0x54] sm:$0xff]   ;;  %v8720_v28 = vrot.slane %v2511_v40, 4 }
  0xae   : > { %7134 = vmatprep.mubr.bf16.mxu1 %v7504_v38  ;;  %7211 = vmatpush3.bf16.msra.mxu1 %v7506_v5  ;;  %v7519_v5 = vld [vmem:[%s10732_s1 + $0x190] sm:$0xff]   ;;  %v8722_v6 = vrot.slane %v2538_v50, 5  ;;  %v8724_v38 = vrot.slane %v2543_v55, 4  ;;  %v2556_v1 = vshrl.u32 %v8698_v11, 16  ;;  %v8739_v40 = vrot.slane %v2525_v37, 4 }
  0xaf   : > { %7212 = vmatprep.subr.bf16.mxu1 %v7510_v54  ;;  %v8741_v30 = vrot.slane %v2535_v24, 4  ;;  %v6185_v55 = vld [vmem:[%s7654_s28 + $0xb4] sm:$0xf]  ;;  %v8745_v11 = vld [vmem:[%s7654_s28 + $0xb8] sm:$0xf]  ;;  %v7522_v24 = vld [vmem:[%s10732_s1 + $0x148] sm:$0xff]  }
  0xb0   : > { %7261 = vmatpush3.bf16.msra.mxu0 %v7511_v58  ;;  %v10798_v58 = vsel %vm7685_vm2, %v8543_v46, %v8521_v21  ;;  %10799 = vst [vmem:[#allocation11_spill] sm:$0xff] %v8745_v11  ;;  %v2459_v21 = vsel %vm7685_vm2, %v8620_v9, %v8549_v57  ;;  %v8757_v46 = vrot.slane %v2552_v47, 5  ;;  %v6188_v37 = vld [vmem:[%s7654_s28 + $0xc0] sm:$0xf]  ;;  %v2469_v57 = vsel %vm7685_vm2, %v8628_v15, %v8622_v51  ;;  %v8784_v47 = vld [vmem:[%s7654_s28 + $0xc4] sm:$0xf] }
  0xb1   : > { %7262 = vmatprep.subr.bf16.mxu0 %v7515_v13  ;;  %v6214_v50 = vcombine.low %v10798_v58, %v2421_v25  ;;  %v2567_v25 = vshrl.u32 %v6185_v55, 16  ;;  %v2483_v9 = vsel %vm7685_vm2, %v8693_v14, %v8637_v19  ;;  %10802 = vst [vmem:[#allocation13_spill] sm:$0xff] %v8784_v47  ;;  %v8787_v51 = vld [vmem:[%s7654_s28 + $0xc8] sm:$0x1]  ;;  %v2600_v58 = vshll.u32 %v8784_v47, 16 }
  0xb2   : > { %7183 = vmatmul.mubr.bf16.gmra.mxu0 %v8645_v43  ;;  %7213 = vmatpush3.bf16.msra.mxu1 %v7510_v54  ;;  %v10800_v43 = vsel %vm7685_vm2, %v8595_v2, %v8533_v53  ;;  %v2558_v54 = vrot.slane %v2556_v1, 4  ;;  %v2570_v53 = vshll.u32 %v6185_v55, 16  ;;  %v2576_v2 = vshll.u32 %v8745_v11, 16 }
  0xb3   : > { %7186 = vmatprep.mubr.bf16.mxu0 %v8648_v52  ;;  %v6215_v33 = vcombine.low %v10800_v43, %v2445_v60  ;;  %7214 = vmatprep.subr.bf16.mxu1 %v7514_v29  ;;  %v7523_v52 = vld [vmem:[%s10732_s1 + $0x188] sm:$0xff]   ;;  %v2580_v60 = vshrl.u32 %v8745_v11, 16  ;;  %v2569_v15 = vrot.slane %v2567_v25, 4  ;;  %v10803_v55 = vrot.slane %v8192_v32, 5 }
  0xb4   : > { %7263 = vmatpush3.bf16.msra.mxu0 %v7515_v13  ;;  %v2493_v13 = vsel %vm7685_vm2, %v8709_v7, %v8695_v22  ;;  %v2572_v19 = vrot.slane %v2570_v53, 5  ;;  %v8789_v14 = vrot.slane %v2576_v2, 5  ;;  %v2591_v22 = vshrl.u32 %v6188_v37, 16  ;;  %v7509_v2 = vld [vmem:[%s7654_s28 + $0x60] sm:$0xff]  }
  0xb5   : > { %7135 = vmatmul.mubr.bf16.gmra.mxu1 %v7505_v48  ;;  %7264 = vmatprep.subr.bf16.mxu0 %v7519_v5  ;;  %v8781_v48 = vld [vmem:[%s7654_s28 + $0xbc] sm:$0x1]  ;;  %v2582_v1 = vrot.slane %v2580_v60, 4  ;;  %v2594_v7 = vshll.u32 %v6188_v37, 16  ;;  %v8794_v43 = vrot.slane %v10803_v55, 4  ;;  %v8799_v25 = vrot.slane %v2562_v35, 5 }
  0xb6   : > { %10801 = vst [vmem:[#allocation12_spill] sm:$0xff] %v8781_v48  ;;  %7138 = vmatprep.mubr.bf16.mxu1 %v7508_v63  ;;  %7215 = vmatpush3.bf16.msra.mxu1 %v7514_v29  ;;  %v2549_v63 = vor.u32 %v8730_v18, %v8724_v38  ;;  %v2559_v29 = vor.u32 %v2558_v54, %v8757_v46  ;;  %v2604_v53 = vshrl.u32 %v8784_v47, 16  ;;  %v2586_v60 = vshll.u32 %v8781_v48, 16  ;;  %v7512_v38 = vld [vmem:[%s7654_s28 + $0x6c] sm:$0xff]   ;;  %v8819_v48 = vld [vmem:[%s7654_s28 + $0x18] sm:$0xe] }
  0xb7   : > { %7216 = vmatprep.subr.bf16.mxu1 %v7518_v49  ;;  %v2593_v37 = vrot.slane %v2591_v22, 4  ;;  %v2596_v11 = vrot.slane %v2594_v7, 5  ;;  %v8804_v55 = vrot.slane %v2600_v58, 5  ;;  %v2573_v18 = vor.u32 %v2572_v19, %v2569_v15  ;;  %v7526_v22 = vld [vmem:[%s10732_s1 + $0x140] sm:$0xff]   ;;  %v8816_v58 = vld [vmem:[%s7654_s28 + $0xc] sm:$0xe] }
  0xb8   : > { %7265 = vmatpush3.bf16.msra.mxu0 %v7519_v5  ;;  %v7527_v5 = vld [vmem:[%s10732_s1 + $0x180] sm:$0xff]   ;;  %v2583_v35 = vor.u32 %v2582_v1, %v8789_v14  ;;  %v2606_v54 = vrot.slane %v2604_v53, 4  ;;  %v2610_v47 = vshll.u32 %v8787_v51, 16  ;;  %v6216_v15 = vcombine.low %v2459_v21, %v2469_v57 }
  0xb9   : > { %7266 = vmatprep.subr.bf16.mxu0 %v7523_v52  ;;  %v2597_v7 = vor.u32 %v2596_v11, %v2593_v37  ;;  %v6217_v19 = vcombine.low %v2483_v9, %v2493_v13  ;;  %v8827_v1 = vrot.slane %v2549_v63, 4  ;;  %v8829_v11 = vrot.slane %v2559_v29, 4  ;;  %v7513_v9 = vld [vmem:[%s7654_s28 + $0x78] sm:$0xff]   ;;  %v7516_v37 = vld [vmem:[%s7654_s28 + $0x84] sm:$0xff]  }
  0xba   : > { %7187 = vmatmul.mubr.bf16.gmra.mxu0 %v6214_v50  ;;  %7217 = vmatpush3.bf16.msra.mxu1 %v7518_v49  ;;  %v8824_v49 = vld [vmem:[%s10732_s1 + $0x238] sm:$0xff]   ;;  %v2607_v50 = vor.u32 %v2606_v54, %v8804_v55  ;;  %v8838_v53 = vrot.slane %v2583_v35, 4  ;;  %v8840_v21 = vrot.slane %v2586_v60, 5  ;;  %v8846_v63 = vrot.slane %v2610_v47, 5  ;;  %v6234_v60 = vld [vmem:[%s7654_s28 + $0x30] sm:$0xe] }
  0xbb   : > { %7190 = vmatprep.mubr.bf16.mxu0 %v6215_v33  ;;  %7218 = vmatprep.subr.bf16.mxu1 %v7522_v24  ;;  %v8834_v33 = vld [vmem:[%s10732_s1 + $0x1f8] sm:$0xff]   ;;  %v8844_v13 = vrot.slane %v2597_v7, 4  ;;  %v3005_v29 = vrot.slane %v8266_v42, 5  ;;  %v10804_v35 = vld [vmem:[#allocation2_spill] sm:$0xff]  ;;  %v6250_v47 = vrot.slane %v6234_v60, 9  ;;  %v10807_v60 = vld [vmem:[#allocation3_spill] sm:$0xff] }
  0xbc   : > { %7267 = vmatpush3.bf16.msra.mxu0 %v7523_v52  ;;  %v8836_v52 = vrot.slane %v2573_v18, 4  ;;  %v10805_v7 = vld [vmem:[#allocation5_spill] sm:$0xff]  ;;  %v3026_v18 = vrot.slane %v8349_v0, 5  ;;  %v2541_v0 = vsel %vm7685_vm2, %v8741_v30, %v8722_v6  ;;  %v3040_v30 = vrot.slane %v8440_v41, 5 }
  0xbd   : > { %7139 = vmatmul.mubr.bf16.gmra.mxu1 %v7509_v2  ;;  %7268 = vmatprep.subr.bf16.mxu0 %v7527_v5  ;;  %v3023_v57 = vrot.slane %v10805_v7, 5  ;;  %v10806_v2 = vld [vmem:[#allocation4_spill] sm:$0xff] }
  0xbe   : > { %7142 = vmatprep.mubr.bf16.mxu1 %v7512_v38  ;;  %7219 = vmatpush3.bf16.msra.mxu1 %v7522_v24  ;;  %v8851_v24 = vrot.slane %v2607_v50, 4  ;;  %v3009_v38 = vrot.slane %v8283_v61, 5  ;;  %v2507_v50 = vsel %vm7685_vm2, %v8711_v12, %v8643_v36  ;;  %v3030_v54 = vrot.slane %v10806_v2, 5  ;;  %v6235_v12 = vld [vmem:[%s7654_s28 + $0x3c] sm:$0xe] }
  0xbf   : > { %7220 = vmatprep.subr.bf16.mxu1 %v7526_v22  ;;  %v8873_v7 = vsel %vm7996_vm5, %v6250_v47, %v3023_v57  ;;  %v3025_v36 = vrot.slane %v3023_v57, 4  ;;  %v6251_v2 = vrot.slane %v6235_v12, 9  ;;  %v7517_v47 = vld [vmem:[%s7654_s28 + $0x90] sm:$0xff]   ;;  %v3047_v12 = vrot.slane %v8460_v34, 5 }
  0xc0   : > { %7269 = vmatpush3.bf16.msra.mxu0 %v7527_v5  ;;  %v2517_v5 = vsel %vm7685_vm2, %v8720_v28, %v8713_v59  ;;  %v2531_v59 = vsel %vm7685_vm2, %v8739_v40, %v8686_v20  ;;  %v3032_v28 = vrot.slane %v3030_v54, 4  ;;  %v3037_v20 = vrot.slane %v8399_v39, 5 }
  0xc1   : > { %7350 = vmatprep.subr.bf16.mxu0 %v8824_v49  ;;  %v8887_v57 = vsel %vm7996_vm5, %v3025_v36, %v3026_v18  ;;  %v6219_v18 = vcombine.low %v2531_v59, %v2541_v0  ;;  %v8902_v39 = vsel %vm7996_vm5, %v6251_v2, %v3030_v54  ;;  %v2555_v36 = vsel %vm7685_vm2, %v8827_v1, %v8757_v46  ;;  %v6237_v54 = vld [vmem:[%s7654_s28 + $0x54] sm:$0xe] }
  0xc2   : > { %7191 = vmatmul.mubr.bf16.gmra.mxu0 %v6216_v15  ;;  %7221 = vmatpush3.bf16.msra.mxu1 %v7526_v22  ;;  %v3019_v15 = vrot.slane %v10807_v60, 5  ;;  %v3033_v22 = vrot.slane %v8378_v45, 5  ;;  %v6282_v40 = vcombine.low %v8873_v7, %v8887_v57  ;;  %v6236_v45 = vld [vmem:[%s7654_s28 + $0x48] sm:$0xe]  ;;  %v2565_v46 = vsel %vm7685_vm2, %v8829_v11, %v8799_v25  ;;  %v7537_v7 = vld [vmem:[%s7654_s28 + $0x54] sm:$0xff]  }
  0xc3   : > { %7194 = vmatprep.mubr.bf16.mxu0 %v6217_v19  ;;  %7302 = vmatprep.subr.bf16.mxu1 %v8834_v33  ;;  %v6218_v19 = vcombine.low %v2507_v50, %v2517_v5  ;;  %v3039_v50 = vrot.slane %v3037_v20, 4  ;;  %v7520_v5 = vld [vmem:[%s7654_s28 + $0x9c] sm:$0xff]   ;;  %v3051_v2 = vrot.slane %v8464_v31, 5  ;;  %v2579_v34 = vsel %vm7685_vm2, %v8836_v52, %v8789_v14 }
  0xc4   : > { %v8894_v6 = vsel %vm7996_vm5, %v3032_v28, %v3033_v22  ;;  %v6253_v28 = vrot.slane %v6237_v54, 9  ;;  %v6238_v22 = vld [vmem:[%s7654_s28 + $0x60] sm:$0xe]  ;;  %v3054_v25 = vrot.slane %v8512_v16, 5  ;;  %v2589_v11 = vsel %vm7685_vm2, %v8838_v53, %v8840_v21 }
  0xc5   : > { %7143 = vmatmul.mubr.bf16.gmra.mxu1 %v7513_v9  ;;  %v3044_v9 = vrot.slane %v8434_v10, 5  ;;  %v6283_v41 = vcombine.low %v8902_v39, %v8894_v6  ;;  %v8917_v59 = vsel %vm7996_vm5, %v3039_v50, %v3040_v30  ;;  %v3058_v14 = vrot.slane %v8504_v8, 5  ;;  %v6464_v6 = vld [vmem:[%s7654_s28 + $0x24] sm:$0xe] }
  0xc6   : > { %7146 = vmatprep.mubr.bf16.mxu1 %v7516_v37  ;;  %v6252_v37 = vrot.slane %v6236_v45, 9  ;;  %v3053_v45 = vrot.slane %v3051_v2, 4  ;;  %v6220_v52 = vcombine.low %v2555_v36, %v2565_v46  ;;  %v3061_v8 = vrot.slane %v8525_v62, 5  ;;  %v6240_v36 = vld [vmem:[%s7654_s28 + $0x78] sm:$0xe] }
  0xc7   : > { %v3046_v0 = vrot.slane %v3044_v9, 4  ;;  %v8944_v31 = vsel %vm7996_vm5, %v6253_v28, %v3044_v9  ;;  %v3060_v9 = vrot.slane %v3058_v14, 4  ;;  %v3065_v54 = vrot.slane %v8529_v44, 5 }
  0xc8   : > { %v8913_v10 = vsel %vm7996_vm5, %v6252_v37, %v3037_v20  ;;  %v6254_v20 = vrot.slane %v6238_v22, 9  ;;  %v8956_v53 = vsel %vm7996_vm5, %v3053_v45, %v3054_v25  ;;  %v6221_v37 = vcombine.low %v2579_v34, %v2589_v11 }
  0xc9   : > { %v8972_v46 = vsel %vm7996_vm5, %v3060_v9, %v3061_v8  ;;  %v6256_v62 = vrot.slane %v6240_v36, 9  ;;  %v3072_v28 = vrot.slane %v8572_v3, 5  ;;  %v3067_v44 = vrot.slane %v3065_v54, 4  ;;  %v7528_v8 = vld [vmem:[%s7654_s28 + $0x18] sm:$0xff]   ;;  %v10812_v36 = vld [vmem:[#allocation8_spill] sm:$0xff] }
  0xca   : > { %7195 = vmatmul.mubr.bf16.gmra.mxu0 %v6218_v19  ;;  %v8935_v19 = vsel %vm7996_vm5, %v3046_v0, %v3047_v12  ;;  %v8951_v16 = vsel %vm7996_vm5, %v6254_v20, %v3051_v2  ;;  %v3068_v0 = vrot.slane %v8536_v26, 5  ;;  %v3075_v26 = vrot.slane %v8598_v17, 5  ;;  %v6241_v20 = vld [vmem:[%s7654_s28 + $0x84] sm:$0xe] }
  0xcb   : > { %7198 = vmatprep.mubr.bf16.mxu0 %v6219_v18  ;;  %v6239_v18 = vld [vmem:[%s7654_s28 + $0x6c] sm:$0xe]  ;;  %v2603_v2 = vsel %vm7685_vm2, %v8844_v13, %v8804_v55  ;;  %v8984_v34 = vsel %vm7996_vm5, %v6256_v62, %v3065_v54  ;;  %v2613_v3 = vsel %vm7685_vm2, %v8851_v24, %v8846_v63  ;;  %v6257_v25 = vrot.slane %v6241_v20, 9  ;;  %v10810_v63 = vld [vmem:[#allocation6_spill] sm:$0xff] }
  0xcc   : > { %v6255_v21 = vrot.slane %v6239_v18, 9  ;;  %v8993_v17 = vsel %vm7996_vm5, %v3067_v44, %v3068_v0  ;;  %v3074_v11 = vrot.slane %v3072_v28, 4  ;;  %v10808_v45 = vrot.slane %v8192_v32, 5  ;;  %v6242_v18 = vld [vmem:[%s7654_s28 + $0x90] sm:$0xe]  ;;  %v7540_v62 = vld [vmem:[%s7654_s28 + $0x60] sm:$0xff]  }
  0xcd   : > { %7147 = vmatmul.mubr.bf16.gmra.mxu1 %v7517_v47  ;;  %v7521_v47 = vld [vmem:[%s7654_s28 + $0xa8] sm:$0xff]   ;;  %v10809_v55 = vrot.slane %v8816_v58, 9  ;;  %v3079_v24 = vrot.slane %v10810_v63, 5  ;;  %v9010_v32 = vsel %vm7996_vm5, %v6257_v25, %v3072_v28  ;;  %v3086_v54 = vrot.slane %v10812_v36, 5 }
  0xce   : > { %7150 = vmatprep.mubr.bf16.mxu1 %v7520_v5  ;;  %v7524_v5 = vld [vmem:[%s7654_s28 + $0xb4] sm:$0xff]   ;;  %v8968_v12 = vsel %vm7996_vm5, %v6255_v21, %v3058_v14  ;;  %v6233_v14 = vld [vmem:[%s7654_s28 + $0x24] sm:$0xe]  ;;  %v10811_v21 = vld [vmem:[#allocation7_spill] sm:$0xff]  ;;  %v9014_v58 = vsel %vm7996_vm5, %v3074_v11, %v3075_v26  ;;  %v6222_v0 = vcombine.low %v2603_v2, %v2613_v3  ;;  %v3006_v28 = vsel %vm7996_vm5, %v8794_v43, %v3005_v29 }
  0xcf   : > { %v3003_v13 = vsel %vm7996_vm5, %v10809_v55, %v10808_v45  ;;  %v3082_v9 = vrot.slane %v10811_v21, 5  ;;  %v3081_v44 = vrot.slane %v3079_v24, 4  ;;  %v7525_v45 = vld [vmem:[%s7654_s28 + $0xc0] sm:$0xff]   ;;  %v3011_v26 = vrot.slane %v3009_v38, 4  ;;  %v6243_v2 = vld [vmem:[%s7654_s28 + $0x9c] sm:$0xe] }
  0xd0   : > { %v3088_v3 = vrot.slane %v3086_v54, 4  ;;  %v6259_v11 = vrot.slane %v6243_v2, 9  ;;  %v10814_v55 = vld [vmem:[#allocation10_spill] sm:$0xff]  ;;  %v6244_v63 = vld [vmem:[%s7654_s28 + $0xa8] sm:$0xe]  ;;  %v6279_v21 = vcombine.low %v3003_v13, %v3006_v28  ;;  %v10818_v28 = vrot.slane %v8819_v48, 9 }
  0xd1   : > { %v9035_v25 = vsel %vm7996_vm5, %v3081_v44, %v3082_v9  ;;  %v3093_v42 = vrot.slane %v10814_v55, 5  ;;  %v9158_v43 = vld [vmem:[%s7654_s28 + $0x34] sm:$0xf] }
  0xd2   : > { %7199 = vmatmul.mubr.bf16.gmra.mxu0 %v6220_v52  ;;  %v9048_v9 = vsel %vm7996_vm5, %v6259_v11, %v3086_v54  ;;  %v6245_v54 = vld [vmem:[%s7654_s28 + $0xb4] sm:$0xe]  ;;  %v3927_v39 = vshll.u32 %v9158_v43, 16 }
  0xd3   : > { %7202 = vmatprep.mubr.bf16.mxu0 %v6221_v37  ;;  %v6258_v37 = vrot.slane %v6242_v18, 9  ;;  %v6249_v18 = vrot.slane %v6233_v14, 9  ;;  %v3095_v36 = vrot.slane %v3093_v42, 4  ;;  %v10815_v14 = vrot.slane %v10804_v35, 5 }
  0xd4   : > { %v6261_v55 = vrot.slane %v6245_v54, 9 }
  0xd5   : > { %7151 = vmatmul.mubr.bf16.gmra.mxu1 %v7521_v47  ;;  %v10813_v47 = vld [vmem:[#allocation9_spill] sm:$0xff]  ;;  %v3018_v44 = vrot.slane %v10815_v14, 4  ;;  %v10820_v61 = vmov %v10815_v14  ;;  %v3110_v14 = vrot.slane %v8787_v51, 5  ;;  %v6381_v51 = vld [vmem:[%s7654_s28 + $0x30] sm:$0xf] }
  0xd6   : > { %7154 = vmatprep.mubr.bf16.mxu1 %v7524_v5  ;;  %v3089_v20 = vrot.slane %v10813_v47, 5  ;;  %v9030_v5 = vsel %vm7996_vm5, %v6258_v37, %v3079_v24  ;;  %v3096_v24 = vrot.slane %v8706_v4, 5  ;;  %v6260_v37 = vrot.slane %v6244_v63, 9 }
  0xd7   : > { %v10819_v63 = vrot.slane %v8297_v23, 5  ;;  %v3017_v48 = vsel %vm7996_vm5, %v6249_v18, %v10820_v61  ;;  %v3020_v23 = vsel %vm7996_vm5, %v3018_v44, %v3019_v15  ;;  %v9128_v61 = vld [vmem:[%s7654_s28 + $0x28] sm:$0xf] }
  0xd8   : > { %v9042_v29 = vsel %vm7996_vm5, %v3088_v3, %v3089_v20  ;;  %v10816_v20 = vld [vmem:[#allocation11_spill] sm:$0xff]  ;;  %v9057_v4 = vsel %vm7996_vm5, %v6260_v37, %v3093_v42  ;;  %v9061_v13 = vsel %vm7996_vm5, %v3095_v36, %v3096_v24  ;;  %v3010_v3 = vsel %vm7996_vm5, %v10818_v28, %v3009_v38  ;;  %v6246_v37 = vld [vmem:[%s7654_s28 + $0xc0] sm:$0xe]  ;;  %v10821_v38 = vld [vmem:[#allocation13_spill] sm:$0xff] }
  0xd9   : > { %v3100_v2 = vrot.slane %v10816_v20, 5  ;;  %v3013_v24 = vsel %vm7996_vm5, %v3011_v26, %v10819_v63  ;;  %v3107_v36 = vrot.slane %v10821_v38, 5  ;;  %v6262_v18 = vrot.slane %v6246_v37, 9  ;;  %v7535_v20 = vld [vmem:[%s10732_s1 + $0x230] sm:$0xff]   ;;  %v6378_v63 = vld [vmem:[%s7654_s28 + $0x24] sm:$0xf] }
  0xda   : > { %7203 = vmatmul.mubr.bf16.gmra.mxu0 %v6222_v0  ;;  %v6280_v15 = vcombine.low %v3010_v3, %v3013_v24  ;;  %v6281_v54 = vcombine.low %v3017_v48, %v3020_v23  ;;  %v7534_v28 = vld [vmem:[%s10732_s1 + $0x1f0] sm:$0xff]   ;;  %v7533_v48 = vld [vmem:[%s7654_s28 + $0x3c] sm:$0xff]   ;;  %v3894_v37 = vshrl.u32 %v6378_v63, 16  ;;  %v7536_v38 = vld [vmem:[%s7654_s28 + $0x48] sm:$0xff]   ;;  %v3903_v23 = vshll.u32 %v9128_v61, 16 }
  0xdb   : > { %7270 = vmatprep.mubr.bf16.mxu0 %v7528_v8  ;;  %v10817_v8 = vld [vmem:[#allocation12_spill] sm:$0xff]  ;;  %v3102_v42 = vrot.slane %v3100_v2, 4  ;;  %v9092_v26 = vsel %vm7996_vm5, %v6261_v55, %v3100_v2  ;;  %v3109_v60 = vrot.slane %v3107_v36, 4  ;;  %v9105_v44 = vsel %vm7996_vm5, %v6262_v18, %v3107_v36  ;;  %v6375_v2 = vld [vmem:[%s7654_s28 + $0x18] sm:$0xf]  ;;  %v7539_v55 = vld [vmem:[%s10732_s1 + $0x228] sm:$0xff]  }
  0xdc   : > { %v3103_v0 = vrot.slane %v10817_v8, 5  ;;  %v3873_v24 = vshll.u32 %v6375_v2, 16  ;;  %v7538_v36 = vld [vmem:[%s10732_s1 + $0x1e8] sm:$0xff]   ;;  %v6377_v18 = vld [vmem:[%s7654_s28 + $0x20] sm:$0x1]  ;;  %v3896_v11 = vrot.slane %v3894_v37, 4 }
  0xdd   : > { %7155 = vmatmul.mubr.bf16.gmra.mxu1 %v7525_v45  ;;  %v7529_v45 = vld [vmem:[%s7654_s28 + $0x24] sm:$0xff]   ;;  %v9110_v8 = vsel %vm7996_vm5, %v3109_v60, %v3110_v14  ;;  %v3897_v14 = vshll.u32 %v6378_v63, 16  ;;  %v9148_v63 = vld [vmem:[%s7654_s28 + $0x2c] sm:$0x1]  ;;  %v3918_v37 = vshrl.u32 %v6381_v51, 16 }
  0xde   : > { %7222 = vmatprep.mubr.bf16.mxu1 %v6279_v21  ;;  %v7532_v21 = vld [vmem:[%s7654_s28 + $0x30] sm:$0xff]   ;;  %v9096_v35 = vsel %vm7996_vm5, %v3102_v42, %v3103_v0  ;;  %v9113_v0 = vld [vmem:[%s7654_s28 + $0x1c] sm:$0xf]  ;;  %v3870_v42 = vshrl.u32 %v6375_v2, 16 }
  0xdf   : > { %v4641_v3 = vrot.slane %v9113_v0, 5  ;;  %v3899_v47 = vrot.slane %v3897_v14, 5 }
  0xe0   : > { %v3872_v60 = vrot.slane %v3870_v42, 4  ;;  %v7542_v42 = vld [vmem:[%s10732_s1 + $0x1e0] sm:$0xff]  }
  0xe2   : > { %7271 = vmatmul.mubr.bf16.vlgmr.msra.gmra.mxu0 %v7529_v45  ;;  %v3883_v45 = vshrl.u32 %v9113_v0, 16 }
  0xe3   : > { %7351 = vmatpush3.bf16.msra.mxu0 %v8824_v49  ;;  %7274 = vmatprep.mubr.bf16.mxu0 %v7532_v21  ;;  %v3879_v49 = vshll.u32 %v9113_v0, 16  ;;  %v3907_v21 = vshrl.u32 %v9128_v61, 16 }
  0xe4   : > { %7352 = vmatprep.subr.bf16.mxu0 %v7535_v20 }
  0xe5   : > { %7223 = vmatmul.mubr.bf16.vlgmr.msra.gmra.mxu1 %v6280_v15  ;;  %v6463_v15 = vld [vmem:[%s7654_s28 + $0x18] sm:$0xe]  ;;  %v9143_v2 = vrot.slane %v3879_v49, 5  ;;  %v3889_v49 = vshll.u32 %v6377_v18, 16  ;;  %v3909_v0 = vrot.slane %v3907_v21, 4 }
  0xe6   : > { %7303 = vmatpush3.bf16.msra.mxu1 %v8834_v33  ;;  %7226 = vmatprep.mubr.bf16.mxu1 %v6281_v54  ;;  %v7543_v33 = vld [vmem:[%s10732_s1 + $0x220] sm:$0xff]   ;;  %v3885_v54 = vrot.slane %v3883_v45, 4  ;;  %v9155_v45 = vrot.slane %v3903_v23, 5  ;;  %v7547_v23 = vld [vmem:[%s10732_s1 + $0x218] sm:$0xff]  }
  0xe7   : > { %7304 = vmatprep.subr.bf16.mxu1 %v7534_v28  ;;  %7353 = vmatpush3.bf16.msra.mxu0 %v7535_v20  ;;  %v3875_v20 = vrot.slane %v3873_v24, 5 }
  0xe8   : > { %7354 = vmatprep.subr.bf16.mxu0 %v7539_v55  ;;  %v3886_v21 = vor.u32 %v3885_v54, %v9143_v2  ;;  %v3910_v54 = vor.u32 %v3909_v0, %v9155_v45 }
  0xea   : > { %7275 = vmatmul.mubr.bf16.gmra.mxu0 %v7533_v48  ;;  %7305 = vmatpush3.bf16.msra.mxu1 %v7534_v28  ;;  %v6479_v48 = vrot.slane %v6463_v15, 9  ;;  %v4644_v28 = vrot.slane %v6377_v18, 5  ;;  %v4643_v18 = vrot.slane %v4641_v3, 4  ;;  %v3913_v15 = vshll.u32 %v9148_v63, 16 }
  0xeb   : > { %7278 = vmatprep.mubr.bf16.mxu0 %v7536_v38  ;;  %7306 = vmatprep.subr.bf16.mxu1 %v7538_v36  ;;  %v3921_v38 = vshll.u32 %v6381_v51, 16  ;;  %v4648_v51 = vrot.slane %v9128_v61, 5  ;;  %v3931_v61 = vshrl.u32 %v9158_v43, 16 }
  0xec   : > { %7355 = vmatpush3.bf16.msra.mxu0 %v7539_v55  ;;  %v3876_v55 = vor.u32 %v3875_v20, %v3872_v60  ;;  %v7546_v60 = vld [vmem:[%s10732_s1 + $0x1d8] sm:$0xff]   ;;  %v9181_v20 = vrot.slane %v3889_v49, 5  ;;  %v7551_v49 = vld [vmem:[%s10732_s1 + $0x210] sm:$0xff]  }
  0xed   : > { %v9153_v24 = vpop.f32.mrf.mxu0  ;;  %7227 = vmatmul.mubr.bf16.gmra.mxu1 %v6282_v40  ;;  %7356 = vmatprep.subr.bf16.mxu0 %v7543_v33  ;;  %v9163_v14 = vpop.f32.mrf.mxu1  ;;  %v3900_v40 = vor.u32 %v3899_v47, %v3896_v11  ;;  %v3920_v47 = vrot.slane %v3918_v37, 4  ;;  %v3923_v11 = vrot.slane %v3921_v38, 5  ;;  %v9208_v37 = vld [vmem:[%s7654_s28 + $0x40] sm:$0xf]  ;;  %v4650_v50 = vrot.slane %v4648_v51, 4 }
  0xee   : > { %10822 = vst [vmem:[#allocation2_spill] sm:$0xff] %v9163_v14  ;;  %7230 = vmatprep.mubr.bf16.mxu1 %v6283_v41  ;;  %7307 = vmatpush3.bf16.msra.mxu1 %v7538_v36  ;;  %v9188_v41 = vsel %vm7996_vm5, %v6479_v48, %v4641_v3  ;;  %v6384_v36 = vld [vmem:[%s7654_s28 + $0x3c] sm:$0xf]  ;;  %v9197_v0 = vrot.slane %v3876_v55, 4  ;;  %v9203_v3 = vsel %vm7996_vm5, %v4643_v18, %v4644_v28  ;;  %v9205_v48 = vrot.slane %v3913_v15, 5  ;;  %v7550_v55 = vld [vmem:[%s10732_s1 + $0x1d0] sm:$0xff]  }
  0xef   : > { %v9174_v57 = vpop.f32.mrf.mxu0  ;;  %7308 = vmatprep.subr.bf16.mxu1 %v7542_v42  ;;  %v9192_v52 = vpop.f32.mrf.mxu1  ;;  %v9215_v22 = vrot.slane %v3900_v40, 4  ;;  %v4651_v28 = vrot.slane %v9148_v63, 5  ;;  %v3911_v18 = vrot.slane %v3910_v54, 4  ;;  %v9219_v15 = vld [vmem:[%s7654_s28 + $0x38] sm:$0x1]  ;;  %v3945_v30 = vshll.u32 %v6384_v36, 16 }
  0xf0   : > { %7357 = vmatpush3.bf16.msra.mxu0 %v7543_v33  ;;  %10823 = vst [vmem:[#allocation5_spill] sm:$0xff] %v9192_v52  ;;  %v9199_v33 = vrot.slane %v3886_v21, 4  ;;  %v6480_v21 = vrot.slane %v6464_v6, 9  ;;  %v3924_v1 = vor.u32 %v3923_v11, %v3920_v47  ;;  %v9223_v52 = vrot.slane %v3931_v61, 4  ;;  %v6465_v40 = vld [vmem:[%s7654_s28 + $0x30] sm:$0xe] }
  0xf1   : > { %7358 = vmatprep.subr.bf16.mxu0 %v7547_v23  ;;  %v9210_v38 = vpop.f32.mrf.mxu0  ;;  %v3951_v6 = vshll.u32 %v9208_v37, 16  ;;  %v3955_v63 = vshrl.u32 %v9208_v37, 16  ;;  %v9231_v54 = vpop.f32.mrf.mxu1  ;;  %v10826_v11 = vcombine.low %v8944_v31, %v8935_v19  ;;  %v7541_v61 = vld [vmem:[%s7654_s28 + $0x6c] sm:$0xff]   ;;  %v9264_v19 = vsel %vm7996_vm5, %v4650_v50, %v4651_v28  ;;  %v9282_v28 = vld [vmem:[%s7654_s28 + $0x44] sm:$0x1] }
  0xf2   : > { %7279 = vmatmul.mubr.bf16.gmra.mxu0 %v7537_v7  ;;  %7309 = vmatpush3.bf16.msra.mxu1 %v7542_v42  ;;  %v9221_v7 = vrot.slane %v3927_v39, 5  ;;  %v3942_v42 = vshrl.u32 %v6384_v36, 16  ;;  %10825 = vst [vmem:[#allocation4_spill] sm:$0xff] %v9231_v54  ;;  %v3882_v39 = vsel %vm7685_vm2, %v9197_v0, %v9143_v2  ;;  %v3892_v47 = vsel %vm7685_vm2, %v9199_v33, %v9181_v20  ;;  %v7544_v36 = vld [vmem:[%s7654_s28 + $0x78] sm:$0xff]   ;;  %v9275_v33 = vld [vmem:[%s7654_s28 + $0x4c] sm:$0xf] }
  0xf3   : > { %7282 = vmatprep.mubr.bf16.mxu0 %v7540_v62  ;;  %7310 = vmatprep.subr.bf16.mxu1 %v7546_v60  ;;  %v10824_v62 = vcombine.low %v8913_v10, %v8917_v59  ;;  %v4655_v59 = vrot.slane %v9158_v43, 5  ;;  %v3906_v2 = vsel %vm7685_vm2, %v9215_v22, %v9155_v45  ;;  %v9260_v20 = vsel %vm7996_vm5, %v6480_v21, %v4648_v51  ;;  %v6387_v43 = vld [vmem:[%s7654_s28 + $0x48] sm:$0xf]  ;;  %v9286_v54 = vpop.f32.mrf.mxu1  ;;  %v6466_v14 = vld [vmem:[%s7654_s28 + $0x3c] sm:$0xe] }
  0xf4   : > { %7359 = vmatpush3.bf16.msra.mxu0 %v7547_v23  ;;  %v7555_v23 = vld [vmem:[%s10732_s1 + $0x208] sm:$0xff]   ;;  %v3937_v31 = vshll.u32 %v9219_v15, 16  ;;  %v3916_v22 = vsel %vm7685_vm2, %v3911_v18, %v9205_v48  ;;  %v6481_v45 = vrot.slane %v6465_v40, 9  ;;  %v3944_v0 = vrot.slane %v3942_v42, 4  ;;  %10828 = vst [vmem:[#allocation6_spill] sm:$0xff] %v9286_v54  ;;  %v7558_v42 = vld [vmem:[%s10732_s1 + $0x1c0] sm:$0xff]  }
  0xf5   : > { %7231 = vmatmul.mubr.bf16.gmra.mxu1 %v10824_v62  ;;  %7360 = vmatprep.subr.bf16.mxu0 %v7551_v49  ;;  %v9252_v62 = vpop.f32.mrf.mxu0  ;;  %v3947_v51 = vrot.slane %v3945_v30, 5  ;;  %v9277_v50 = vrot.slane %v3924_v1, 4  ;;  %v3934_v21 = vor.u32 %v9223_v52, %v9221_v7  ;;  %v3957_v10 = vrot.slane %v3955_v63, 4  ;;  %v7559_v30 = vld [vmem:[%s10732_s1 + $0x200] sm:$0xff]  }
  0xf6   : > { %7234 = vmatprep.mubr.bf16.mxu1 %v10826_v11  ;;  %7311 = vmatpush3.bf16.msra.mxu1 %v7546_v60  ;;  %10827 = vst [vmem:[#allocation3_spill] sm:$0xff] %v9252_v62  ;;  %v7554_v60 = vld [vmem:[%s10732_s1 + $0x1c8] sm:$0xff]   ;;  %v9284_v11 = vrot.slane %v3951_v6, 5  ;;  %v4657_v48 = vrot.slane %v4655_v59, 4  ;;  %v3966_v1 = vshrl.u32 %v6387_v43, 16  ;;  %v3969_v18 = vshll.u32 %v6387_v43, 16 }
  0xf7   : > { %7312 = vmatprep.subr.bf16.mxu1 %v7550_v55  ;;  %v9297_v40 = vcombine.low %v3882_v39, %v3892_v47  ;;  %v3979_v63 = vshrl.u32 %v9275_v33, 16  ;;  %v9305_v43 = vrot.slane %v3937_v31, 5  ;;  %v3961_v54 = vshll.u32 %v9282_v28, 16  ;;  %v6390_v39 = vld [vmem:[%s7654_s28 + $0x54] sm:$0xf]  ;;  %v7545_v6 = vld [vmem:[%s7654_s28 + $0x84] sm:$0xff]  }
  0xf8   : > { %7361 = vmatpush3.bf16.msra.mxu0 %v7551_v49  ;;  %v4658_v49 = vrot.slane %v9219_v15, 5  ;;  %v9292_v52 = vpop.f32.mrf.mxu0  ;;  %v3975_v15 = vshll.u32 %v9275_v33, 16  ;;  %v4662_v31 = vrot.slane %v9208_v37, 5  ;;  %v10832_v37 = vcombine.low %v8968_v12, %v8972_v46  ;;  %v7548_v47 = vld [vmem:[%s7654_s28 + $0x90] sm:$0xff]  }
  0xf9   : > { %7362 = vmatprep.subr.bf16.mxu0 %v7555_v23  ;;  %10829 = vst [vmem:[#allocation7_spill] sm:$0xff] %v9292_v52 }
  0xfa   : > { %7283 = vmatmul.mubr.bf16.gmra.mxu0 %v7541_v61  ;;  %7313 = vmatpush3.bf16.msra.mxu1 %v7550_v55  ;;  %v9303_v61 = vcombine.low %v3906_v2, %v3916_v22  ;;  %v3948_v55 = vor.u32 %v3947_v51, %v3944_v0  ;;  %v3958_v2 = vor.u32 %v3957_v10, %v9284_v11  ;;  %v9321_v22 = vld [vmem:[%s7654_s28 + $0x58] sm:$0xf]  ;;  %v9328_v51 = vrot.slane %v3934_v21, 4 }
  0xfb   : > { %7286 = vmatprep.mubr.bf16.mxu0 %v7544_v36  ;;  %7314 = vmatprep.subr.bf16.mxu1 %v7554_v60  ;;  %v9316_v36 = vsel %vm7996_vm5, %v6481_v45, %v4655_v59  ;;  %v10830_v0 = vcombine.low %v8951_v16, %v8956_v53  ;;  %v9332_v59 = vsel %vm7996_vm5, %v4657_v48, %v4658_v49  ;;  %v3968_v45 = vrot.slane %v3966_v1, 4  ;;  %v9339_v16 = vpop.f32.mrf.mxu0  ;;  %v6389_v1 = vld [vmem:[%s7654_s28 + $0x50] sm:$0x1] }
  0xfc   : > { %7363 = vmatpush3.bf16.msra.mxu0 %v7555_v23  ;;  %v9326_v23 = vpop.f32.mrf.mxu1  ;;  %v3971_v10 = vrot.slane %v3969_v18, 5  ;;  %10833 = vst [vmem:[#allocation9_spill] sm:$0xff] %v9339_v16  ;;  %v6482_v53 = vrot.slane %v6466_v14, 9  ;;  %v3981_v21 = vrot.slane %v3979_v63, 4  ;;  %v3949_v48 = vrot.slane %v3948_v55, 4 }
  0xfd   : > { %7235 = vmatmul.mubr.bf16.gmra.mxu1 %v10830_v0  ;;  %10831 = vst [vmem:[#allocation8_spill] sm:$0xff] %v9326_v23  ;;  %7364 = vmatprep.subr.bf16.mxu0 %v7559_v30  ;;  %v9341_v0 = vrot.slane %v3975_v15, 5  ;;  %v3990_v23 = vshrl.u32 %v6390_v39, 16  ;;  %v3963_v49 = vrot.slane %v3961_v54, 5  ;;  %v3993_v18 = vshll.u32 %v6390_v39, 16  ;;  %v9357_v39 = vpop.f32.mrf.mxu0 }
  0xfe   : > { %7238 = vmatprep.mubr.bf16.mxu1 %v10832_v37  ;;  %7315 = vmatpush3.bf16.msra.mxu1 %v7554_v60  ;;  %v3999_v52 = vshll.u32 %v9321_v22, 16  ;;  %v3959_v12 = vrot.slane %v3958_v2, 4  ;;  %v4664_v46 = vrot.slane %v4662_v31, 4  ;;  %v4665_v37 = vrot.slane %v9282_v28, 5  ;;  %v9347_v60 = vpop.f32.mrf.mxu1  ;;  %v6393_v55 = vld [vmem:[%s7654_s28 + $0x60] sm:$0xf] }
  0xff   : > { %7316 = vmatprep.subr.bf16.mxu1 %v7558_v42  ;;  %v4003_v14 = vshrl.u32 %v9321_v22, 16  ;;  %10834 = vst [vmem:[#allocation10_spill] sm:$0xff] %v9347_v60  ;;  %v3940_v15 = vsel %vm7685_vm2, %v9328_v51, %v9305_v43  ;;  %v3972_v63 = vor.u32 %v3971_v10, %v3968_v45  ;;  %v3982_v28 = vor.u32 %v3981_v21, %v9341_v0  ;;  %v6467_v60 = vld [vmem:[%s7654_s28 + $0x48] sm:$0xe] }
 0x100   : > { %7365 = vmatpush3.bf16.msra.mxu0 %v7559_v30  ;;  %v4669_v30 = vrot.slane %v9275_v33, 5  ;;  %v3985_v2 = vshll.u32 %v6389_v1, 16  ;;  %v3992_v16 = vrot.slane %v3990_v23, 4  ;;  %v3995_v62 = vrot.slane %v3993_v18, 5  ;;  %v9382_v10 = vpop.f32.mrf.mxu1 }
 0x101   : > { %v3954_v43 = vsel %vm7685_vm2, %v3949_v48, %v9284_v11  ;;  %v9366_v33 = vsel %vm7996_vm5, %v6482_v53, %v4662_v31  ;;  %v3964_v51 = vsel %vm7685_vm2, %v3959_v12, %v3963_v49  ;;  %v9374_v23 = vsel %vm7996_vm5, %v4664_v46, %v4665_v37  ;;  %10836 = vst [vmem:[#allocation11_spill] sm:$0xff] %v9382_v10  ;;  %v9385_v49 = vld [vmem:[%s7654_s28 + $0x64] sm:$0xf]  ;;  %v7549_v12 = vld [vmem:[%s7654_s28 + $0x9c] sm:$0xff]   ;;  %v9391_v46 = vpop.f32.mrf.mxu0 }
 0x102   : > { %7287 = vmatmul.mubr.bf16.gmra.mxu0 %v7545_v6  ;;  %7317 = vmatpush3.bf16.msra.mxu1 %v7558_v42  ;;  %v9368_v6 = vrot.slane %v3999_v52, 5  ;;  %v4005_v42 = vrot.slane %v4003_v14, 4  ;;  %v4014_v45 = vshrl.u32 %v6393_v55, 16  ;;  %v4017_v11 = vshll.u32 %v6393_v55, 16  ;;  %v7552_v55 = vld [vmem:[%s7654_s28 + $0xa8] sm:$0xff]  }
 0x103   : > { %7290 = vmatprep.mubr.bf16.mxu0 %v7548_v47  ;;  %v9377_v47 = vld [vmem:[%s7654_s28 + $0x5c] sm:$0x1]  ;;  %v10835_v31 = vcombine.low %v8984_v34, %v8993_v17  ;;  %v3973_v52 = vrot.slane %v3972_v63, 4  ;;  %v6483_v53 = vrot.slane %v6467_v60, 9  ;;  %v4671_v21 = vrot.slane %v4669_v30, 4 }
 0x104   : > { %v4672_v48 = vrot.slane %v6389_v1, 5  ;;  %v10837_v18 = vcombine.low %v9010_v32, %v9014_v58  ;;  %v3983_v37 = vrot.slane %v3982_v28, 4  ;;  %v3987_v14 = vrot.slane %v3985_v2, 5  ;;  %v6468_v63 = vld [vmem:[%s7654_s28 + $0x54] sm:$0xe]  ;;  %v9409_v28 = vpop.f32.mrf.mxu1 }
 0x105   : > { %7239 = vmatmul.mubr.bf16.gmra.mxu1 %v10835_v31  ;;  %v3996_v34 = vor.u32 %v3995_v62, %v3992_v16  ;;  %v4676_v17 = vrot.slane %v9321_v22, 5  ;;  %v4006_v60 = vor.u32 %v4005_v42, %v9368_v6  ;;  %v4009_v1 = vshll.u32 %v9377_v47, 16  ;;  %10839 = vst [vmem:[#allocation12_spill] sm:$0xff] %v9409_v28  ;;  %v6469_v62 = vld [vmem:[%s7654_s28 + $0x60] sm:$0xe] }
 0x106   : > { %7242 = vmatprep.mubr.bf16.mxu1 %v10837_v18  ;;  %v4016_v31 = vrot.slane %v4014_v45, 4  ;;  %v4019_v54 = vrot.slane %v4017_v11, 5  ;;  %v10838_v32 = vsel %vm7685_vm2, %v9277_v50, %v9221_v7  ;;  %v4023_v22 = vshll.u32 %v9385_v49, 16 }
 0x107   : > { %v9403_v58 = vcombine.low %v10838_v32, %v3940_v15  ;;  %v4027_v16 = vshrl.u32 %v9385_v49, 16  ;;  %v9411_v2 = vcombine.low %v3954_v43, %v3964_v51  ;;  %v3978_v42 = vsel %vm7685_vm2, %v3973_v52, %v9341_v0  ;;  %v6396_v15 = vld [vmem:[%s7654_s28 + $0x6c] sm:$0xf]  ;;  %v9429_v32 = vld [vmem:[%s7654_s28 + $0x70] sm:$0xf] }
 0x108   : > { %v9418_v7 = vsel %vm7996_vm5, %v6483_v53, %v4669_v30  ;;  %v9422_v50 = vsel %vm7996_vm5, %v4671_v21, %v4672_v48  ;;  %v9425_v45 = vpop.f32.mrf.mxu0  ;;  %v3997_v43 = vrot.slane %v3996_v34, 4  ;;  %v6484_v51 = vrot.slane %v6468_v63, 9  ;;  %v6395_v53 = vld [vmem:[%s7654_s28 + $0x68] sm:$0x1] }
 0x109   : > { %10840 = vst [vmem:[#allocation13_spill] sm:$0xff] %v9425_v45  ;;  %v4678_v11 = vrot.slane %v4676_v17, 4  ;;  %v4679_v18 = vrot.slane %v9377_v47, 5  ;;  %v3988_v0 = vsel %vm7685_vm2, %v3983_v37, %v3987_v14  ;;  %v4007_v30 = vrot.slane %v4006_v60, 4  ;;  %v6471_v45 = vld [vmem:[%s7654_s28 + $0x78] sm:$0xe] }
 0x10a   : > { %7291 = vmatmul.mubr.bf16.gmra.mxu0 %v7549_v12  ;;  %v4011_v52 = vrot.slane %v4009_v1, 5  ;;  %v4020_v21 = vor.u32 %v4019_v54, %v4016_v31  ;;  %v9434_v48 = vrot.slane %v4023_v22, 5  ;;  %v4029_v12 = vrot.slane %v4027_v16, 4  ;;  %v7553_v31 = vld [vmem:[%s7654_s28 + $0xb4] sm:$0xff]  }
 0x10b   : > { %7294 = vmatprep.mubr.bf16.mxu0 %v7552_v55  ;;  %v4038_v34 = vshrl.u32 %v6396_v15, 16  ;;  %v4041_v63 = vshll.u32 %v6396_v15, 16  ;;  %v10841_v47 = vcombine.low %v9030_v5, %v9035_v25  ;;  %v4683_v14 = vrot.slane %v9385_v49, 5  ;;  %v9451_v5 = vpop.f32.mrf.mxu0 }
 0x10c   : > { %v4047_v54 = vshll.u32 %v9429_v32, 16  ;;  %v4051_v60 = vshrl.u32 %v9429_v32, 16  ;;  %v10843_v1 = vcombine.low %v9048_v9, %v9042_v29  ;;  %10844 = vst [vmem:[#allocation15_spill] sm:$0xff] %v9451_v5  ;;  %v9453_v25 = vcombine.low %v3978_v42, %v3988_v0  ;;  %v6399_v29 = vld [vmem:[%s7654_s28 + $0x78] sm:$0xf]  ;;  %v7556_v9 = vld [vmem:[%s7654_s28 + $0xc0] sm:$0xff]  }
 0x10d   : > { %7243 = vmatmul.mubr.bf16.gmra.mxu1 %v10841_v47  ;;  %v9440_v55 = vpop.f32.mrf.mxu1  ;;  %v4002_v22 = vsel %vm7685_vm2, %v3997_v43, %v9368_v6  ;;  %v9460_v49 = vsel %vm7996_vm5, %v6484_v51, %v4676_v17  ;;  %v9464_v16 = vsel %vm7996_vm5, %v4678_v11, %v4679_v18  ;;  %v4012_v15 = vsel %vm7685_vm2, %v4007_v30, %v4011_v52  ;;  %v9477_v43 = vld [vmem:[%s7654_s28 + $0x74] sm:$0x1]  ;;  %v9534_v5 = vld [vmem:[%s7654_s28 + $0x8c] sm:$0x1] }
 0x10e   : > { %10842 = vst [vmem:[#allocation14_spill] sm:$0xff] %v9440_v55  ;;  %7246 = vmatprep.mubr.bf16.mxu1 %v10843_v1  ;;  %v9470_v47 = vrot.slane %v4020_v21, 4  ;;  %v4033_v42 = vshll.u32 %v6395_v53, 16  ;;  %v6485_v0 = vrot.slane %v6469_v62, 9  ;;  %v9473_v1 = vld [vmem:[%s7654_s28 + $0x7c] sm:$0xf]  ;;  %v4030_v6 = vor.u32 %v4029_v12, %v9434_v48  ;;  %v9483_v21 = vpop.f32.mrf.mxu0 }
 0x10f   : > { %v4686_v17 = vrot.slane %v6395_v53, 5  ;;  %v4040_v51 = vrot.slane %v4038_v34, 4  ;;  %v4043_v11 = vrot.slane %v4041_v63, 5  ;;  %v9479_v18 = vpop.f32.mrf.mxu1  ;;  %v4685_v37 = vrot.slane %v4683_v14, 4  ;;  %10846 = vst [vmem:[#allocation17_spill] sm:$0xff] %v9483_v21 }
 0x110   : > { %10845 = vst [vmem:[#allocation16_spill] sm:$0xff] %v9479_v18  ;;  %v9481_v55 = vrot.slane %v4047_v54, 5  ;;  %v4053_v30 = vrot.slane %v4051_v60, 4  ;;  %v4062_v52 = vshrl.u32 %v6399_v29, 16  ;;  %v6470_v53 = vld [vmem:[%s7654_s28 + $0x6c] sm:$0xe]  ;;  %v9490_v18 = vcombine.low %v4002_v22, %v4012_v15 }
 0x111   : > { %v4065_v12 = vshll.u32 %v6399_v29, 16  ;;  %v4071_v34 = vshll.u32 %v9473_v1, 16  ;;  %v4075_v63 = vshrl.u32 %v9473_v1, 16  ;;  %v9492_v54 = vrot.slane %v4033_v42, 5  ;;  %v6402_v62 = vld [vmem:[%s7654_s28 + $0x84] sm:$0xf]  ;;  %v9513_v42 = vpop.f32.mrf.mxu1 }
 0x112   : > { %7295 = vmatmul.mubr.bf16.gmra.mxu0 %v7553_v31  ;;  %10847 = vst [vmem:[#allocation18_spill] sm:$0xff] %v9490_v18  ;;  %v9496_v60 = vsel %vm7996_vm5, %v6485_v0, %v4683_v14  ;;  %v4057_v31 = vshll.u32 %v9477_v43, 16  ;;  %v9504_v28 = vrot.slane %v4030_v6, 4  ;;  %v4690_v22 = vrot.slane %v9429_v32, 5  ;;  %v9508_v15 = vld [vmem:[%s7654_s28 + $0x88] sm:$0xf] }
 0x113   : > { %7298 = vmatprep.mubr.bf16.mxu0 %v7556_v9  ;;  %v4044_v9 = vor.u32 %v4043_v11, %v4040_v51  ;;  %v10848_v14 = vcombine.low %v9057_v4, %v9061_v13  ;;  %10849 = vst [vmem:[#allocation19_spill] sm:$0xff] %v9513_v42  ;;  %v7557_v0 = vld [vmem:[%s7654_s28 + $0xcc] sm:$0xff]   ;;  %v9518_v10 = vsel %vm7996_vm5, %v4685_v37, %v4686_v17  ;;  %v6486_v6 = vrot.slane %v6470_v53, 9  ;;  %v9521_v11 = vpop.f32.mrf.mxu0  ;;  %v9527_v4 = vld [vmem:[%s7654_s28 + $0x80] sm:$0x1] }
 0x114   : > { %v4054_v29 = vor.u32 %v4053_v30, %v9481_v55  ;;  %v4064_v51 = vrot.slane %v4062_v52, 4  ;;  %10850 = vst [vmem:[#allocation20_spill] sm:$0xff] %v9521_v11  ;;  %v10851_v32 = vcombine.low %v9092_v26, %v9096_v35  ;;  %v4067_v13 = vrot.slane %v4065_v12, 5 }
 0x115   : > { %7247 = vmatmul.mubr.bf16.gmra.mxu1 %v10848_v14  ;;  %v9529_v14 = vrot.slane %v4071_v34, 5  ;;  %v4077_v42 = vrot.slane %v4075_v63, 4  ;;  %v4086_v21 = vshrl.u32 %v6402_v62, 16  ;;  %v4059_v37 = vrot.slane %v4057_v31, 5 }
 0x116   : > { %7250 = vmatprep.mubr.bf16.mxu1 %v10851_v32  ;;  %v4693_v17 = vrot.slane %v9477_v43, 5  ;;  %v4089_v30 = vshll.u32 %v6402_v62, 16  ;;  %v4095_v52 = vshll.u32 %v9508_v15, 16  ;;  %v4045_v53 = vrot.slane %v4044_v9, 4  ;;  %v9537_v32 = vpop.f32.mrf.mxu1 }
 0x117   : > { %v4692_v11 = vrot.slane %v4690_v22, 4  ;;  %v4088_v26 = vrot.slane %v4086_v21, 4  ;;  %v4099_v35 = vshrl.u32 %v9508_v15, 16  ;;  %v4055_v12 = vrot.slane %v4054_v29, 4 }
 0x118   : > { %v4081_v34 = vshll.u32 %v9527_v4, 16  ;;  %v4091_v63 = vrot.slane %v4089_v30, 5  ;;  %v9540_v31 = vrot.slane %v4095_v52, 5  ;;  %v4068_v62 = vor.u32 %v4067_v13, %v4064_v51  ;;  %v6472_v52 = vld [vmem:[%s7654_s28 + $0x84] sm:$0xe] }
 0x119   : > { %v9542_v43 = vpop.f32.mrf.mxu0  ;;  %v4078_v9 = vor.u32 %v4077_v42, %v9529_v14  ;;  %v4697_v21 = vrot.slane %v9473_v1, 5  ;;  %v4101_v18 = vrot.slane %v4099_v35, 4  ;;  %v10852_v29 = vcombine.low %v9188_v41, %v9203_v3 }
 0x11a   : > { %7299 = vmatmul.mubr.bf16.gmra.mxu0 %v7557_v0  ;;  %v4036_v30 = vsel %vm7685_vm2, %v9504_v28, %v9492_v54  ;;  %v9558_v51 = vsel %vm7996_vm5, %v6486_v6, %v4690_v22  ;;  %v4105_v42 = vshll.u32 %v9534_v5, 16  ;;  %v4050_v41 = vsel %vm7685_vm2, %v4045_v53, %v9481_v55  ;;  %v6405_v54 = vld [vmem:[%s7654_s28 + $0x90] sm:$0xf] }
 0x11b   : > { %7366 = vmatprep.mubr.bf16.mxu0 %v10852_v29  ;;  %v9561_v1 = vpop.f32.mrf.mxu0  ;;  %v4092_v3 = vor.u32 %v4091_v63, %v4088_v26  ;;  %v4102_v13 = vor.u32 %v4101_v18, %v9540_v31  ;;  %v4704_v28 = vrot.slane %v9508_v15, 5  ;;  %v10854_v22 = vcombine.low %v9105_v44, %v9110_v8 }
 0x11c   : > { %v4060_v6 = vsel %vm7685_vm2, %v4055_v12, %v4059_v37  ;;  %v9579_v55 = vsel %vm7996_vm5, %v4692_v11, %v4693_v17  ;;  %v4083_v53 = vrot.slane %v4081_v34, 5  ;;  %v6487_v18 = vrot.slane %v6471_v45, 9  ;;  %v9588_v12 = vld [vmem:[%s7654_s28 + $0x94] sm:$0xf] }
 0x11d   : > { %v9570_v35 = vpop.f32.mrf.mxu1  ;;  %7251 = vmatmul.mubr.bf16.gmra.mxu1 %v10854_v22  ;;  %v9581_v26 = vpop.f32.mrf.mxu0  ;;  %v4069_v15 = vrot.slane %v4068_v62, 4  ;;  %v4079_v63 = vrot.slane %v4078_v9, 4  ;;  %v4699_v29 = vrot.slane %v4697_v21, 4  ;;  %v4700_v0 = vrot.slane %v9527_v4, 5 }
 0x11e   : > { %10853 = vst [vmem:[#allocation21_spill] sm:$0xff] %v9570_v35  ;;  %7318 = vmatprep.mubr.bf16.mxu1 %v9297_v40  ;;  %v4107_v8 = vrot.slane %v4105_v42, 5  ;;  %v6488_v37 = vrot.slane %v6472_v52, 9  ;;  %v4110_v11 = vshrl.u32 %v6405_v54, 16  ;;  %v4113_v17 = vshll.u32 %v6405_v54, 16 }
 0x11f   : > { %v9585_v44 = vpop.f32.mrf.mxu1  ;;  %v9590_v34 = vpop.f32.mrf.mxu0  ;;  %v4093_v45 = vrot.slane %v4092_v3, 4  ;;  %v4103_v22 = vrot.slane %v4102_v13, 4  ;;  %v4706_v40 = vrot.slane %v4704_v28, 4  ;;  %v4707_v62 = vrot.slane %v9534_v5, 5  ;;  %v9611_v54 = vld [vmem:[%s7654_s28 + $0x98] sm:$0x1] }
 0x120   : > { %10855 = vst [vmem:[#allocation22_spill] sm:$0xff] %v9585_v44  ;;  %v10857_v4 = vsel %vm7685_vm2, %v9470_v47, %v9434_v48  ;;  %v9602_v52 = vcombine.low %v4050_v41, %v4060_v6  ;;  %v9608_v13 = vsel %vm7996_vm5, %v6487_v18, %v4697_v21  ;;  %v4074_v48 = vsel %vm7685_vm2, %v4069_v15, %v9529_v14  ;;  %v6408_v41 = vld [vmem:[%s7654_s28 + $0x9c] sm:$0xf]  ;;  %v9628_v6 = vld [vmem:[%s7654_s28 + $0xa0] sm:$0xf] }
 0x121   : > { %v9593_v9 = vpop.f32.mrf.mxu1  ;;  %v9600_v42 = vcombine.low %v10857_v4, %v4036_v30  ;;  %v7080_v5 = vpop.f32.mrf.mxu0  ;;  %v4084_v47 = vsel %vm7685_vm2, %v4079_v63, %v4083_v53  ;;  %v9623_v30 = vsel %vm7996_vm5, %v4699_v29, %v4700_v0  ;;  %v4119_v21 = vshll.u32 %v9588_v12, 16  ;;  %v9715_v35 = vld [vmem:[%s7654_s28 + $0xb0] sm:$0x1] }
 0x122   : > { %10856 = vst [vmem:[#allocation23_spill] sm:$0xff] %v9593_v9  ;;  %v10858_v9 = vcombine.low %v9260_v20, %v9264_v19  ;;  %v10860_v20 = vcombine.low %v9316_v36, %v9332_v59  ;;  %v9637_v19 = vsel %vm7996_vm5, %v6488_v37, %v4704_v28  ;;  %v4112_v14 = vrot.slane %v4110_v11, 4  ;;  %v9652_v37 = vld [vmem:[%s7654_s28 + $0x90] sm:$0xe] }
 0x123   : > { %v9630_v18 = vpop.f32.mrf.mxu1  ;;  %v4115_v53 = vrot.slane %v4113_v17, 5  ;;  %v4123_v0 = vshrl.u32 %v9588_v12, 16  ;;  %v1636_v15 = vpop.f32.mrf.mxu0  ;;  %v4098_v63 = vsel %vm7685_vm2, %v4093_v45, %v9540_v31  ;;  %v4108_v29 = vsel %vm7685_vm2, %v4103_v22, %v4107_v8 }
 0x124   : > { %7367 = vmatmul.mubr.bf16.vlgmr.msra.gmra.mxu0 %v10858_v9  ;;  %10859 = vst [vmem:[#allocation24_spill] sm:$0xff] %v9630_v18  ;;  %v9647_v36 = vsel %vm7996_vm5, %v4706_v40, %v4707_v62  ;;  %v4129_v59 = vshll.u32 %v9611_v54, 16  ;;  %v4134_v11 = vshrl.u32 %v6408_v41, 16  ;;  %v4137_v17 = vshll.u32 %v6408_v41, 16 }
 0x125   : > { %7370 = vmatprep.mubr.bf16.mxu0 %v10860_v20  ;;  %v7032_v28 = vpop.f32.mrf.mxu1  ;;  %7319 = vmatmul.mubr.bf16.vlgmr.msra.gmra.mxu1 %v9303_v61  ;;  %v4143_v9 = vshll.u32 %v9628_v6, 16  ;;  %v4147_v31 = vshrl.u32 %v9628_v6, 16  ;;  %v7081_v45 = vpop.f32.mrf.mxu0  ;;  %v9658_v22 = vcombine.low %v4074_v48, %v4084_v47  ;;  %v9662_v40 = vrot.slane %v4119_v21, 5  ;;  %v9676_v61 = vld [vmem:[%s7654_s28 + $0xa4] sm:$0x1] }
 0x126   : > { %v1192_v8 = vadd.f32 %v7032_v28, %v9153_v24  ;;  %7322 = vmatprep.mubr.bf16.mxu1 %v9403_v58  ;;  %v9664_v4 = vcombine.low %v4098_v63, %v4108_v29  ;;  %v4116_v20 = vor.u32 %v4115_v53, %v4112_v14  ;;  %v4125_v24 = vrot.slane %v4123_v0, 4  ;;  %v6411_v28 = vld [vmem:[%s7654_s28 + $0xa8] sm:$0xf]  ;;  %v9681_v14 = vld [vmem:[%s7654_s28 + $0xac] sm:$0xf] }
 0x127   : > { %v1183_v62 = vpop.f32.mrf.mxu1  ;;  %v1639_v48 = vpop.f32.mrf.mxu0  ;;  %v9672_v47 = vrot.slane %v4129_v59, 5  ;;  %v6489_v21 = vrot.slane %v9652_v37, 9  ;;  %v4136_v29 = vrot.slane %v4134_v11, 4  ;;  %v4139_v18 = vrot.slane %v4137_v17, 5 }
 0x128   : > { %v9669_v3 = vadd.f32 %v7080_v5, %v1192_v8  ;;  %v1184_v58 = vadd.f32 %v1183_v62, %v9174_v57  ;;  %v9678_v44 = vrot.slane %v4143_v9, 5  ;;  %v4149_v41 = vrot.slane %v4147_v31, 4  ;;  %v10866_v62 = vld [vmem:[#allocation3_spill] sm:$0xff] }
 0x129   : > { %v7033_v63 = vpop.f32.mrf.mxu1  ;;  %v7084_v5 = vpop.f32.mrf.mxu0  ;;  %v10863_v0 = vcombine.low %v9366_v33, %v9374_v23  ;;  %v4158_v59 = vshrl.u32 %v6411_v28, 16  ;;  %v4161_v37 = vshll.u32 %v6411_v28, 16  ;;  %v10864_v11 = vcombine.low %v9418_v7, %v9422_v50 }
 0x12a   : > { %10861 = vst [vmem:[#allocation25_spill] sm:$0xff] %v9669_v3  ;;  %v9683_v53 = vadd.f32 %v1636_v15, %v1184_v58  ;;  %v1195_v57 = vadd.f32 %v7033_v63, %v9210_v38  ;;  %v9692_v17 = vrot.slane %v4116_v20, 4  ;;  %v4126_v15 = vor.u32 %v4125_v24, %v9662_v40  ;;  %v6474_v58 = vld [vmem:[%s7654_s28 + $0x9c] sm:$0xe] }
 0x12b   : > { %v1186_v8 = vpop.f32.mrf.mxu1  ;;  %v4711_v9 = vrot.slane %v9588_v12, 5  ;;  %v4153_v38 = vshll.u32 %v9676_v61, 16  ;;  %v1652_v23 = vpop.f32.mrf.mxu0  ;;  %v4714_v28 = vrot.slane %v9611_v54, 5  ;;  %v4167_v63 = vshll.u32 %v9681_v14, 16 }
 0x12c   : > { %10862 = vst [vmem:[#allocation26_spill] sm:$0xff] %v9683_v53  ;;  %7371 = vmatmul.mubr.bf16.gmra.mxu0 %v10863_v0  ;;  %v9697_v31 = vadd.f32 %v7081_v45, %v1195_v57  ;;  %v1187_v33 = vadd.f32 %v1186_v8, %v10866_v62  ;;  %v4140_v50 = vor.u32 %v4139_v18, %v4136_v29  ;;  %v4718_v12 = vrot.slane %v9628_v6, 5  ;;  %v10867_v57 = vld [vmem:[#allocation7_spill] sm:$0xff]  ;;  %v10868_v6 = vld [vmem:[#allocation9_spill] sm:$0xff] }
 0x12d   : > { %7374 = vmatprep.mubr.bf16.mxu0 %v10864_v11  ;;  %v7036_v7 = vpop.f32.mrf.mxu1  ;;  %7323 = vmatmul.mubr.bf16.gmra.mxu1 %v9411_v2  ;;  %v4150_v20 = vor.u32 %v4149_v41, %v9678_v44  ;;  %v4171_v45 = vshrl.u32 %v9681_v14, 16  ;;  %v7085_v8 = vpop.f32.mrf.mxu0  ;;  %v4160_v54 = vrot.slane %v4158_v59, 4  ;;  %v4163_v11 = vrot.slane %v4161_v37, 5 }
 0x12e   : > { %10865 = vst [vmem:[#allocation27_spill] sm:$0xff] %v9697_v31  ;;  %v9707_v24 = vadd.f32 %v1639_v48, %v1187_v33  ;;  %v1208_v0 = vadd.f32 %v7036_v7, %v10867_v57  ;;  %7326 = vmatprep.mubr.bf16.mxu1 %v9453_v25  ;;  %v4127_v31 = vrot.slane %v4126_v15, 4  ;;  %v4713_v2 = vrot.slane %v4711_v9, 4 }
 0x12f   : > { %v1199_v62 = vpop.f32.mrf.mxu1  ;;  %v4155_v18 = vrot.slane %v4153_v38, 5  ;;  %v6490_v29 = vrot.slane %v6474_v58, 9  ;;  %v1655_v3 = vpop.f32.mrf.mxu0  ;;  %v9717_v48 = vrot.slane %v4167_v63, 5  ;;  %v4173_v33 = vrot.slane %v4171_v45, 4 }
 0x130   : > { %v9711_v41 = vadd.f32 %v7084_v5, %v1208_v0  ;;  %v1200_v53 = vadd.f32 %v1199_v62, %v10868_v6  ;;  %v4141_v57 = vrot.slane %v4140_v50, 4  ;;  %v4151_v25 = vrot.slane %v4150_v20, 4 }
 0x131   : > { %v7037_v7 = vpop.f32.mrf.mxu1  ;;  %v4720_v59 = vrot.slane %v4718_v12, 4  ;;  %v4721_v37 = vrot.slane %v9676_v61, 5  ;;  %v7088_v38 = vpop.f32.mrf.mxu0  ;;  %v10869_v58 = vcombine.low %v9460_v49, %v9464_v16  ;;  %v9728_v63 = vsel %vm7996_vm5, %v6489_v21, %v4711_v9  ;;  %v6475_v21 = vld [vmem:[%s7654_s28 + $0xa8] sm:$0xe] }
 0x132   : > { %v9720_v15 = vadd.f32 %v1652_v23, %v1200_v53  ;;  %v1211_v5 = vadd.f32 %v7037_v7, %v9357_v39  ;;  %v4164_v50 = vor.u32 %v4163_v11, %v4160_v54  ;;  %v10870_v20 = vcombine.low %v9496_v60, %v9518_v10 }
 0x133   : > { %v1202_v45 = vpop.f32.mrf.mxu1  ;;  %v4122_v39 = vsel %vm7685_vm2, %v9692_v17, %v9662_v40  ;;  %v4132_v49 = vsel %vm7685_vm2, %v4127_v31, %v9672_v47  ;;  %v9742_v16 = vsel %vm7996_vm5, %v4713_v2, %v4714_v28  ;;  %v4177_v61 = vshll.u32 %v9715_v35, 16  ;;  %v1668_v60 = vpop.f32.mrf.mxu0  ;;  %v6414_v17 = vld [vmem:[%s7654_s28 + $0xb4] sm:$0xf]  ;;  %v10871_v47 = vld [vmem:[#allocation18_spill] sm:$0xff]  ;;  %v9771_v2 = vld [vmem:[%s7654_s28 + $0xb8] sm:$0xf] }
 0x134   : > { %7375 = vmatmul.mubr.bf16.gmra.mxu0 %v10869_v58  ;;  %v9746_v53 = vadd.f32 %v7085_v8, %v1211_v5  ;;  %v1203_v10 = vadd.f32 %v1202_v45, %v9391_v46  ;;  %v4174_v9 = vor.u32 %v4173_v33, %v9717_v48  ;;  %v4725_v40 = vrot.slane %v9681_v14, 5  ;;  %v10872_v8 = vld [vmem:[#allocation13_spill] sm:$0xff] }
 0x135   : > { %7378 = vmatprep.mubr.bf16.mxu0 %v10870_v20  ;;  %v7040_v23 = vpop.f32.mrf.mxu1  ;;  %7327 = vmatmul.mubr.bf16.gmra.mxu1 %v10871_v47  ;;  %v4146_v31 = vsel %vm7685_vm2, %v4141_v57, %v9678_v44  ;;  %v4156_v28 = vsel %vm7685_vm2, %v4151_v25, %v4155_v18  ;;  %v9760_v46 = vsel %vm7996_vm5, %v6490_v29, %v4718_v12  ;;  %v7089_v11 = vpop.f32.mrf.mxu0  ;;  %v4165_v62 = vrot.slane %v4164_v50, 4  ;;  %v10873_v57 = vld [vmem:[#allocation15_spill] sm:$0xff]  ;;  %v10877_v47 = vld [vmem:[#allocation20_spill] sm:$0xff] }
 0x136   : > { %v9764_v0 = vsel %vm7996_vm5, %v4720_v59, %v4721_v37  ;;  %v9766_v14 = vadd.f32 %v1655_v3, %v1203_v10  ;;  %v1224_v54 = vadd.f32 %v7040_v23, %v10872_v8  ;;  %7330 = vmatprep.mubr.bf16.mxu1 %v9600_v42  ;;  %v6491_v44 = vrot.slane %v6475_v21, 9 }
 0x137   : > { %v1215_v18 = vpop.f32.mrf.mxu1  ;;  %v4179_v6 = vrot.slane %v4177_v61, 5  ;;  %v4728_v12 = vrot.slane %v9715_v35, 5  ;;  %v4182_v29 = vshrl.u32 %v6414_v17, 16  ;;  %v4185_v33 = vshll.u32 %v6414_v17, 16  ;;  %v1671_v25 = vpop.f32.mrf.mxu0 }
 0x138   : > { %v9774_v7 = vadd.f32 %v7088_v38, %v1224_v54  ;;  %v1216_v3 = vadd.f32 %v1215_v18, %v10873_v57  ;;  %v4175_v59 = vrot.slane %v4174_v9, 4  ;;  %v4727_v37 = vrot.slane %v4725_v40, 4  ;;  %v10874_v38 = vld [vmem:[#allocation17_spill] sm:$0xff] }
 0x139   : > { %v7041_v42 = vpop.f32.mrf.mxu1  ;;  %v9777_v5 = vcombine.low %v4122_v39, %v4132_v49  ;;  %v6521_v58 = vcombine.low %v9728_v63, %v9742_v16  ;;  %v9781_v50 = vcombine.low %v4146_v31, %v4156_v28  ;;  %v4191_v35 = vshll.u32 %v9771_v2, 16  ;;  %v7092_v61 = vpop.f32.mrf.mxu0  ;;  %v6417_v49 = vld [vmem:[%s7654_s28 + $0xc0] sm:$0xf]  ;;  %v9795_v16 = vld [vmem:[%s7654_s28 + $0xc4] sm:$0xf] }
 0x13a   : > { %v9784_v45 = vadd.f32 %v1668_v60, %v1216_v3  ;;  %v1227_v20 = vadd.f32 %v7041_v42, %v10874_v38  ;;  %v10875_v21 = vcombine.low %v9558_v51, %v9579_v55  ;;  %v6522_v39 = vcombine.low %v9760_v46, %v9764_v0  ;;  %v10882_v46 = vld [vmem:[#allocation6_spill] sm:$0xff] }
 0x13b   : > { %v4195_v63 = vshrl.u32 %v9771_v2, 16  ;;  %v1218_v10 = vpop.f32.mrf.mxu1  ;;  %v10876_v60 = vcombine.low %v9608_v13, %v9623_v30  ;;  %v4170_v51 = vsel %vm7685_vm2, %v4165_v62, %v9717_v48  ;;  %v9805_v55 = vsel %vm7996_vm5, %v6491_v44, %v4725_v40  ;;  %v1684_v28 = vpop.f32.mrf.mxu0  ;;  %v9817_v30 = vld [vmem:[%s7654_s28 + $0xbc] sm:$0x1]  ;;  %v6476_v48 = vld [vmem:[%s7654_s28 + $0xb4] sm:$0xe] }
 0x13c   : > { %7379 = vmatmul.mubr.bf16.gmra.mxu0 %v10875_v21  ;;  %v4184_v9 = vrot.slane %v4182_v29, 4  ;;  %v4187_v17 = vrot.slane %v4185_v33, 5  ;;  %v9807_v23 = vadd.f32 %v7089_v11, %v1227_v20  ;;  %v1219_v31 = vadd.f32 %v1218_v10, %v10877_v47  ;;  %v9839_v20 = vld [vmem:[%s7654_s28 + $0xc8] sm:$0x1] }
 0x13d   : > { %7382 = vmatprep.mubr.bf16.mxu0 %v10876_v60  ;;  %v4180_v8 = vsel %vm7685_vm2, %v4175_v59, %v4179_v6  ;;  %v9814_v13 = vsel %vm7996_vm5, %v4727_v37, %v4728_v12  ;;  %v7044_v54 = vpop.f32.mrf.mxu1  ;;  %7331 = vmatmul.mubr.bf16.gmra.mxu1 %v9602_v52  ;;  %v9821_v40 = vrot.slane %v4191_v35, 5  ;;  %v4206_v11 = vshrl.u32 %v6417_v49, 16  ;;  %v7093_v29 = vpop.f32.mrf.mxu0 }
 0x13e   : > { %v4209_v62 = vshll.u32 %v6417_v49, 16  ;;  %v4215_v44 = vshll.u32 %v9795_v16, 16  ;;  %v9824_v18 = vadd.f32 %v1671_v25, %v1219_v31  ;;  %v1240_v6 = vadd.f32 %v7044_v54, %v9542_v43  ;;  %7334 = vmatprep.mubr.bf16.mxu1 %v9658_v22 }
 0x13f   : > { %v4197_v12 = vrot.slane %v4195_v63, 4  ;;  %v4219_v33 = vshrl.u32 %v9795_v16, 16  ;;  %v1231_v57 = vpop.f32.mrf.mxu1  ;;  %v4188_v3 = vor.u32 %v4187_v17, %v4184_v9  ;;  %v4201_v52 = vshll.u32 %v9817_v30, 16  ;;  %v1687_v43 = vpop.f32.mrf.mxu0  ;;  %v6420_v9 = vld [vmem:[%s7654_s28 + $0xcc] sm:$0xf] }
 0x140   : > { %v6492_v59 = vrot.slane %v6476_v48, 9  ;;  %v4732_v37 = vrot.slane %v9771_v2, 5  ;;  %v9831_v42 = vadd.f32 %v7092_v61, %v1240_v6  ;;  %v1232_v25 = vadd.f32 %v1231_v57, %v9561_v1  ;;  %v6477_v48 = vld [vmem:[%s7654_s28 + $0xc0] sm:$0xe] }
 0x141   : > { %v9834_v35 = vcombine.low %v4170_v51, %v4180_v8  ;;  %v6523_v22 = vcombine.low %v9805_v55, %v9814_v13  ;;  %v7045_v38 = vpop.f32.mrf.mxu1  ;;  %v4208_v21 = vrot.slane %v4206_v11, 4  ;;  %v4211_v63 = vrot.slane %v4209_v62, 5  ;;  %v7096_v10 = vpop.f32.mrf.mxu0  ;;  %v9861_v8 = vld [vmem:[%s7654_s28 + $0xd0] sm:$0xf] }
 0x142   : > { %v9841_v49 = vrot.slane %v4215_v44, 5  ;;  %v4221_v2 = vrot.slane %v4219_v33, 4  ;;  %v9843_v61 = vadd.f32 %v1684_v28, %v1232_v25  ;;  %v1243_v1 = vadd.f32 %v7045_v38, %v9581_v26 }
 0x143   : > { %v10878_v60 = vcombine.low %v9637_v19, %v9647_v36  ;;  %v4198_v51 = vor.u32 %v4197_v12, %v9821_v40  ;;  %v4735_v55 = vrot.slane %v9817_v30, 5  ;;  %v1234_v17 = vpop.f32.mrf.mxu1  ;;  %v9852_v47 = vrot.slane %v4188_v3, 4  ;;  %v1700_v13 = vpop.f32.mrf.mxu0 }
 0x144   : > { %v9854_v31 = vrot.slane %v4201_v52, 5  ;;  %v9858_v26 = vsel %vm7996_vm5, %v6492_v59, %v4732_v37  ;;  %v4734_v28 = vrot.slane %v4732_v37, 4  ;;  %v9863_v19 = vadd.f32 %v7093_v29, %v1243_v1  ;;  %v10879_v29 = vld [vmem:[#allocation2_spill] sm:$0xff] }
 0x145   : > { %7383 = vmatmul.mubr.bf16.gmra.mxu0 %v10878_v60  ;;  %v1235_v36 = vadd.f32 %v1234_v17, %v9590_v34  ;;  %v4225_v30 = vshll.u32 %v9839_v20, 16  ;;  %v7048_v54 = vpop.f32.mrf.mxu1  ;;  %7335 = vmatmul.mubr.bf16.gmra.mxu1 %v9664_v4  ;;  %v4212_v11 = vor.u32 %v4211_v63, %v4208_v21  ;;  %v4222_v62 = vor.u32 %v4221_v2, %v9841_v49  ;;  %v7097_v57 = vpop.f32.mrf.mxu0 }
 0x146   : > { %7386 = vmatprep.mubr.bf16.mxu0 %v6521_v58  ;;  %v4739_v58 = vrot.slane %v9795_v16, 5  ;;  %v4230_v44 = vshrl.u32 %v6420_v9, 16  ;;  %v4233_v6 = vshll.u32 %v6420_v9, 16  ;;  %v1256_v33 = vadd.f32 %v7048_v54, %v10879_v29  ;;  %7338 = vmatprep.mubr.bf16.mxu1 %v9777_v5 }
 0x147   : > { %v9871_v12 = vadd.f32 %v1687_v43, %v1235_v36  ;;  %v4239_v34 = vshll.u32 %v9861_v8, 16  ;;  %v4243_v3 = vshrl.u32 %v9861_v8, 16  ;;  %v1247_v16 = vpop.f32.mrf.mxu1  ;;  %v4199_v52 = vrot.slane %v4198_v51, 4  ;;  %v10880_v43 = vld [vmem:[#allocation5_spill] sm:$0xff]  ;;  %v1703_v21 = vpop.f32.mrf.mxu0  ;;  %v10881_v36 = vld [vmem:[#allocation4_spill] sm:$0xff] }
 0x148   : > { %v4736_v4 = vsel %vm7996_vm5, %v4734_v28, %v4735_v55  ;;  %v6493_v59 = vrot.slane %v6477_v48, 9  ;;  %v4742_v37 = vrot.slane %v9839_v20, 5  ;;  %v9880_v25 = vadd.f32 %v7096_v10, %v1256_v33  ;;  %v6422_v20 = vld [vmem:[%s7654_s28 + $0xd4] sm:$0x1] }
 0x149   : > { %v1248_v38 = vadd.f32 %v1247_v16, %v10880_v43  ;;  %v4227_v63 = vrot.slane %v4225_v30, 5  ;;  %v4741_v5 = vrot.slane %v4739_v58, 4  ;;  %v7049_v2 = vpop.f32.mrf.mxu1  ;;  %v4213_v1 = vrot.slane %v4212_v11, 4 }
 0x14a   : > { %v4223_v60 = vrot.slane %v4222_v62, 4  ;;  %v4232_v9 = vrot.slane %v4230_v44, 4  ;;  %v4235_v17 = vrot.slane %v4233_v6, 5  ;;  %v1259_v55 = vadd.f32 %v7049_v2, %v10881_v36  ;;  %v7100_v28 = vpop.f32.mrf.mxu0  ;;  %v6478_v6 = vld [vmem:[%s7654_s28 + $0xcc] sm:$0xe] }
 0x14b   : > { %v9883_v51 = vadd.f32 %v1700_v13, %v1248_v38  ;;  %v9890_v10 = vrot.slane %v4239_v34, 5  ;;  %v4245_v30 = vrot.slane %v4243_v3, 4  ;;  %v1250_v48 = vpop.f32.mrf.mxu1  ;;  %v4194_v13 = vsel %vm7685_vm2, %v9852_v47, %v9821_v40 }
 0x14c   : > { %v4204_v54 = vsel %vm7685_vm2, %v4199_v52, %v9854_v31  ;;  %v4746_v11 = vrot.slane %v9861_v8, 5  ;;  %v9900_v62 = vadd.f32 %v7097_v57, %v1259_v55  ;;  %v1251_v0 = vadd.f32 %v1250_v48, %v10882_v46  ;;  %v10883_v57 = vld [vmem:[#allocation8_spill] sm:$0xff] }
 0x14d   : > { %7387 = vmatmul.mubr.bf16.gmra.mxu0 %v6522_v39  ;;  %v1716_v39 = vpop.f32.mrf.mxu0  ;;  %v4740_v44 = vsel %vm7996_vm5, %v6493_v59, %v4739_v58  ;;  %v7052_v29 = vpop.f32.mrf.mxu1  ;;  %7339 = vmatmul.mubr.bf16.gmra.mxu1 %v9781_v50  ;;  %v6524_v40 = vcombine.low %v9858_v26, %v4736_v4  ;;  %v4218_v47 = vsel %vm7685_vm2, %v4213_v1, %v9841_v49  ;;  %v4249_v8 = vshll.u32 %v6422_v20, 16  ;;  %v10886_v48 = vld [vmem:[#allocation12_spill] sm:$0xff] }
 0x14e   : > { %7390 = vmatprep.mubr.bf16.mxu0 %v6523_v22  ;;  %v4743_v22 = vsel %vm7996_vm5, %v4741_v5, %v4742_v37  ;;  %v4236_v31 = vor.u32 %v4235_v17, %v4232_v9  ;;  %v9913_v33 = vadd.f32 %v1703_v21, %v1251_v0  ;;  %v1272_v34 = vadd.f32 %v7052_v29, %v10883_v57  ;;  %v10884_v37 = vld [vmem:[#allocation10_spill] sm:$0xff]  ;;  %v10885_v9 = vld [vmem:[#allocation11_spill] sm:$0xff] }
 0x14f   : > { %v7101_v58 = vpop.f32.mrf.mxu0  ;;  %7342 = vmatprep.mubr.bf16.mxu1 %v9834_v35  ;;  %v4228_v3 = vsel %vm7685_vm2, %v4223_v60, %v4227_v63  ;;  %v4246_v50 = vor.u32 %v4245_v30, %v9890_v10  ;;  %v1263_v16 = vpop.f32.mrf.mxu1  ;;  %v6525_v26 = vcombine.low %v4740_v44, %v4743_v22  ;;  %v6494_v52 = vrot.slane %v6478_v6, 9  ;;  %v10887_v44 = vld [vmem:[#allocation14_spill] sm:$0xff] }
 0x150   : > { %v4748_v4 = vrot.slane %v4746_v11, 4  ;;  %v4749_v59 = vrot.slane %v6422_v20, 5  ;;  %v9920_v49 = vadd.f32 %v7100_v28, %v1272_v34  ;;  %v1264_v43 = vadd.f32 %v1263_v16, %v10884_v37  ;;  %v10890_v37 = vld [vmem:[#allocation21_spill] sm:$0xff] }
 0x151   : > { %v1719_v38 = vpop.f32.mrf.mxu0  ;;  %v7053_v21 = vpop.f32.mrf.mxu1  ;;  %v6452_v5 = vcombine.low %v4194_v13, %v4204_v54  ;;  %v6453_v2 = vcombine.low %v4218_v47, %v4228_v3  ;;  %v4237_v1 = vrot.slane %v4236_v31, 4  ;;  %v4247_v17 = vrot.slane %v4246_v50, 4  ;;  %v10888_v47 = vld [vmem:[#allocation16_spill] sm:$0xff] }
 0x152   : > { %v9923_v35 = vadd.f32 %v1716_v39, %v1264_v43  ;;  %v1275_v63 = vadd.f32 %v7053_v21, %v10885_v9  ;;  %v4251_v36 = vrot.slane %v4249_v8, 5  ;;  %v4747_v28 = vsel %vm7996_vm5, %v6494_v52, %v4746_v11 }
 0x153   : > { %v7104_v60 = vpop.f32.mrf.mxu0  ;;  %v1266_v55 = vpop.f32.mrf.mxu1  ;;  %v4750_v20 = vsel %vm7996_vm5, %v4748_v4, %v4749_v59  ;;  %v4242_v0 = vsel %vm7685_vm2, %v4237_v1, %v9890_v10  ;;  %v10889_v10 = vld [vmem:[#allocation19_spill] sm:$0xff] }
 0x154   : > { %v9930_v30 = vadd.f32 %v7101_v58, %v1275_v63  ;;  %v1267_v13 = vadd.f32 %v1266_v55, %v10886_v48  ;;  %v4252_v56 = vsel %vm7685_vm2, %v4247_v17, %v4251_v36  ;;  %v6526_v11 = vcombine.low %v4747_v28, %v4750_v20  ;;  %v10892_v17 = vld [vmem:[#allocation23_spill] sm:$0xff]  ;;  %v10893_v20 = vld [vmem:[#allocation24_spill] sm:$0xff] }
 0x155   : > { %7391 = vmatmul.mubr.bf16.gmra.mxu0 %v6524_v40  ;;  %v1732_v54 = vpop.f32.mrf.mxu0  ;;  %v7056_v46 = vpop.f32.mrf.mxu1  ;;  %7343 = vmatmul.mubr.bf16.gmra.mxu1 %v6452_v5  ;;  %v6454_v34 = vcombine.low %v4242_v0, %v4252_v56  ;;  %v10894_v0 = vld [vmem:[#allocation25_spill] sm:$0xff] }
 0x156   : > { %7394 = vmatprep.mubr.bf16.mxu0 %v6525_v26  ;;  %v9936_v39 = vadd.f32 %v1719_v38, %v1267_v13  ;;  %v1288_v22 = vadd.f32 %v7056_v46, %v10887_v44  ;;  %7346 = vmatprep.mubr.bf16.mxu1 %v6453_v2  ;;  %v10891_v2 = vld [vmem:[#allocation22_spill] sm:$0xff] }
 0x157   : > { %v7105_v6 = vpop.f32.mrf.mxu0  ;;  %v1279_v29 = vpop.f32.mrf.mxu1 }
 0x158   : > { %v9941_v40 = vadd.f32 %v7104_v60, %v1288_v22  ;;  %v1280_v31 = vadd.f32 %v1279_v29, %v10888_v47 }
 0x159   : > { %v1735_v8 = vpop.f32.mrf.mxu0  ;;  %v7057_v57 = vpop.f32.mrf.mxu1 }
 0x15a   : > { %v9944_v58 = vadd.f32 %v1732_v54, %v1280_v31  ;;  %v1291_v3 = vadd.f32 %v7057_v57, %v10889_v10  ;;  %v10896_v57 = vld [vmem:[#allocation27_spill] sm:$0xff] }
 0x15b   : > { %v7108_v50 = vpop.f32.mrf.mxu0  ;;  %v1282_v16 = vpop.f32.mrf.mxu1 }
 0x15c   : > { %v9947_v26 = vadd.f32 %v7105_v6, %v1291_v3  ;;  %v1283_v27 = vadd.f32 %v1282_v16, %v9537_v32 }
 0x15d   : > { %7395 = vmatmul.mubr.bf16.gmra.mxu0 %v6526_v11  ;;  %v1748_v52 = vpop.f32.mrf.mxu0  ;;  %v7060_v4 = vpop.f32.mrf.mxu1  ;;  %7347 = vmatmul.mubr.bf16.gmra.mxu1 %v6454_v34  ;;  %v10895_v11 = vld [vmem:[#allocation26_spill] sm:$0xff] }
 0x15e   : > { %v9950_v59 = vadd.f32 %v1735_v8, %v1283_v27  ;;  %v1304_v43 = vadd.f32 %v7060_v4, %v10890_v37 }
 0x15f   : > { %v7109_v38 = vpop.f32.mrf.mxu0  ;;  %v1295_v21 = vpop.f32.mrf.mxu1 }
 0x160   : > { %v9953_v5 = vadd.f32 %v7108_v50, %v1304_v43  ;;  %v1296_v1 = vadd.f32 %v1295_v21, %v10891_v2  ;;  %v6542_v21 = vld [vmem:[%s9976_s27 + $0x18] sm:$0x1] }
 0x161   : > { %v1751_v9 = vpop.f32.mrf.mxu0  ;;  %v7061_v63 = vpop.f32.mrf.mxu1  ;;  %v5214_v2 = vsel %vm9985_vm8, 0, %v6542_v21 }
 0x162   : > { %v9956_v60 = vadd.f32 %v1748_v52, %v1296_v1  ;;  %v1307_v36 = vadd.f32 %v7061_v63, %v10892_v17  ;;  %6543 = vst [vmem:[%s9976_s27 + $0x18] sm:$0x1] %v5214_v2  ;;  %v6540_v17 = vld [vmem:[%s9976_s27 + $0xc] sm:$0x1] }
 0x163   : > { %v7176_v32 = vpop.f32.mrf.mxu0  ;;  %v1298_v55 = vpop.f32.mrf.mxu1 }
 0x164   : > { %v9959_v28 = vadd.f32 %v7109_v38, %v1307_v36  ;;  %v1299_v48 = vadd.f32 %v1298_v55, %v10893_v20 }
 0x165   : > { %v2777_v13 = vpop.f32.mrf.mxu0  ;;  %v7128_v54 = vpop.f32.mrf.mxu1 }
 0x166   : > { %v9962_v46 = vadd.f32 %v1751_v9, %v1299_v48  ;;  %v2152_v44 = vadd.f32 %v7128_v54, %v10894_v0 }
 0x167   : > { %v7177_v22 = vpop.f32.mrf.mxu0  ;;  %v2023_v6 = vpop.f32.mrf.mxu1 }
 0x168   : > { %v9965_v56 = vadd.f32 %v7176_v32, %v2152_v44  ;;  %v2150_v29 = vadd.f32 %v2023_v6, %v10895_v11  ;;  %v5211_v32 = vsel %vm9985_vm8, 0, %v6540_v17  ;;  %v6572_v11 = vld [vmem:[%s9976_s27 + $0x14] sm:$0x1] }
 0x169   : > { %v2780_v47 = vpop.f32.mrf.mxu0  ;;  %v7129_v31 = vpop.f32.mrf.mxu1  ;;  %6541 = vst [vmem:[%s9976_s27 + $0xc] sm:$0x1] %v5211_v32 }
 0x16a   : > { %v9968_v8 = vadd.f32 %v2777_v13, %v2150_v29  ;;  %v2153_v34 = vadd.f32 %v7129_v31, %v10896_v57  ;;  %v5261_v31 = vsel %vm9997_vm10, 0, %v6572_v11 }
 0x16b   : > { %v7180_v10 = vpop.f32.mrf.mxu0  ;;  %v2026_v3 = vpop.f32.mrf.mxu1  ;;  %6573 = vst [vmem:[%s9976_s27 + $0x14] sm:$0x1] %v5261_v31 }
 0x16c   : > { %v9978_v50 = vadd.f32 %v7177_v22, %v2153_v34  ;;  %v2151_v16 = vadd.f32 %v2026_v3, %v9707_v24  ;;  %v6546_v34 = vld [vmem:[%s9976_s27 + $0x30] sm:$0x1] }
 0x16d   : > { %v2793_v27 = vpop.f32.mrf.mxu0  ;;  %v7132_v52 = vpop.f32.mrf.mxu1 }
 0x16e   : > { %v9981_v4 = vadd.f32 %v2780_v47, %v2151_v16  ;;  %v2156_v37 = vadd.f32 %v7132_v52, %v9711_v41  ;;  %v5220_v16 = vsel %vm9985_vm8, 0, %v6546_v34 }
 0x16f   : > { %v7181_v43 = vpop.f32.mrf.mxu0  ;;  %v2039_v24 = vpop.f32.mrf.mxu1  ;;  %6547 = vst [vmem:[%s9976_s27 + $0x30] sm:$0x1] %v5220_v16  ;;  %v6550_v16 = vld [vmem:[%s9976_s27 + $0x48] sm:$0x1] }
 0x170   : > { %v9992_v1 = vadd.f32 %v7180_v10, %v2156_v37  ;;  %v2154_v9 = vadd.f32 %v2039_v24, %v9720_v15  ;;  %v6574_v15 = vld [vmem:[%s9976_s27 + $0x20] sm:$0x1] }
 0x171   : > { %v2796_v63 = vpop.f32.mrf.mxu0  ;;  %v7133_v36 = vpop.f32.mrf.mxu1  ;;  %v5264_v54 = vsel %vm9997_vm10, 0, %v6574_v15 }
 0x172   : > { %v10004_v55 = vadd.f32 %v2793_v27, %v2154_v9  ;;  %v2157_v20 = vadd.f32 %v7133_v36, %v9746_v53  ;;  %6575 = vst [vmem:[%s9976_s27 + $0x20] sm:$0x1] %v5264_v54 }
 0x173   : > { %v7184_v48 = vpop.f32.mrf.mxu0  ;;  %v2042_v13 = vpop.f32.mrf.mxu1 }
 0x174   : > { %v10011_v0 = vadd.f32 %v7181_v43, %v2157_v20  ;;  %v2155_v44 = vadd.f32 %v2042_v13, %v9766_v14  ;;  %v6578_v20 = vld [vmem:[%s9976_s27 + $0x38] sm:$0x1] }
 0x175   : > { %v2809_v22 = vpop.f32.mrf.mxu0  ;;  %v7136_v6 = vpop.f32.mrf.mxu1 }
 0x176   : > { %v10016_v53 = vadd.f32 %v2796_v63, %v2155_v44  ;;  %v2160_v29 = vadd.f32 %v7136_v6, %v9774_v7  ;;  %v6544_v7 = vld [vmem:[%s9976_s27 + $0x24] sm:$0x1] }
 0x177   : > { %v7185_v47 = vpop.f32.mrf.mxu0  ;;  %v2055_v57 = vpop.f32.mrf.mxu1  ;;  %v5217_v21 = vsel %vm9985_vm8, 0, %v6544_v7 }
 0x178   : > { %v10023_v10 = vadd.f32 %v7184_v48, %v2160_v29  ;;  %v2158_v14 = vadd.f32 %v2055_v57, %v9784_v45  ;;  %6545 = vst [vmem:[%s9976_s27 + $0x24] sm:$0x1] %v5217_v21  ;;  %v5270_v48 = vsel %vm9997_vm10, 0, %v6578_v20  ;;  %v6582_v20 = vld [vmem:[%s9976_s27 + $0x50] sm:$0x1] }
 0x179   : > { %v2812_v3 = vpop.f32.mrf.mxu0  ;;  %v7137_v27 = vpop.f32.mrf.mxu1  ;;  %6579 = vst [vmem:[%s9976_s27 + $0x38] sm:$0x1] %v5270_v48  ;;  %v5276_v48 = vsel %vm9997_vm10, 0, %v6582_v20 }
 0x17a   : > { %v10030_v52 = vadd.f32 %v2809_v22, %v2158_v14  ;;  %v2161_v37 = vadd.f32 %v7137_v27, %v9807_v23  ;;  %6583 = vst [vmem:[%s9976_s27 + $0x50] sm:$0x1] %v5276_v48 }
 0x17b   : > { %v7188_v43 = vpop.f32.mrf.mxu0  ;;  %v2058_v24 = vpop.f32.mrf.mxu1 }
 0x17c   : > { %v10036_v45 = vadd.f32 %v7185_v47, %v2161_v37  ;;  %v2159_v2 = vadd.f32 %v2058_v24, %v9824_v18  ;;  %v5226_v37 = vsel %vm9985_vm8, 0, %v6550_v16 }
 0x17d   : > { %v2825_v9 = vpop.f32.mrf.mxu0  ;;  %v7140_v63 = vpop.f32.mrf.mxu1  ;;  %6551 = vst [vmem:[%s9976_s27 + $0x48] sm:$0x1] %v5226_v37 }
 0x17e   : > { %v10039_v17 = vadd.f32 %v2812_v3, %v2159_v2  ;;  %v2164_v36 = vadd.f32 %v7140_v63, %v9831_v42 }
 0x17f   : > { %v7189_v32 = vpop.f32.mrf.mxu0  ;;  %v2071_v23 = vpop.f32.mrf.mxu1 }
 0x180   : > { %v10045_v15 = vadd.f32 %v7188_v43, %v2164_v36  ;;  %v2162_v13 = vadd.f32 %v2071_v23, %v9843_v61  ;;  %v6576_v61 = vld [vmem:[%s9976_s27 + $0x2c] sm:$0x1] }
 0x181   : > { %v2828_v54 = vpop.f32.mrf.mxu0  ;;  %v7141_v18 = vpop.f32.mrf.mxu1  ;;  %v5267_v3 = vsel %vm9997_vm10, 0, %v6576_v61 }
 0x182   : > { %v10049_v44 = vadd.f32 %v2825_v9, %v2162_v13  ;;  %v2165_v42 = vadd.f32 %v7141_v18, %v9863_v19  ;;  %6577 = vst [vmem:[%s9976_s27 + $0x2c] sm:$0x1] %v5267_v3  ;;  %v6580_v18 = vld [vmem:[%s9976_s27 + $0x44] sm:$0x1] }
 0x183   : > { %v7192_v22 = vpop.f32.mrf.mxu0  ;;  %v2074_v6 = vpop.f32.mrf.mxu1 }
 0x184   : > { %v10052_v11 = vadd.f32 %v7189_v32, %v2165_v42  ;;  %v2163_v29 = vadd.f32 %v2074_v6, %v9871_v12 }
 0x185   : > { %v2841_v47 = vpop.f32.mrf.mxu0  ;;  %v7144_v31 = vpop.f32.mrf.mxu1 }
 0x186   : > { %v10056_v57 = vadd.f32 %v2828_v54, %v2163_v29  ;;  %v2168_v34 = vadd.f32 %v7144_v31, %v9880_v25  ;;  %v6548_v25 = vld [vmem:[%s9976_s27 + $0x3c] sm:$0x1] }
 0x187   : > { %v7193_v14 = vpop.f32.mrf.mxu0  ;;  %v2087_v19 = vpop.f32.mrf.mxu1  ;;  %v5223_v9 = vsel %vm9985_vm8, 0, %v6548_v25  ;;  %v6552_v25 = vld [vmem:[%s9976_s27 + $0x54] sm:$0x1] }
 0x188   : > { %v10063_v27 = vadd.f32 %v7192_v22, %v2168_v34  ;;  %v2166_v12 = vadd.f32 %v2087_v19, %v9883_v51  ;;  %6549 = vst [vmem:[%s9976_s27 + $0x3c] sm:$0x1] %v5223_v9  ;;  %v5273_v22 = vsel %vm9997_vm10, 0, %v6580_v18 }
 0x189   : > { %v2844_v7 = vpop.f32.mrf.mxu0  ;;  %v7145_v43 = vpop.f32.mrf.mxu1  ;;  %6581 = vst [vmem:[%s9976_s27 + $0x44] sm:$0x1] %v5273_v22 }
 0x18a   : > { %v10070_v21 = vadd.f32 %v2841_v47, %v2166_v12  ;;  %v2169_v24 = vadd.f32 %v7145_v43, %v9900_v62  ;;  %v6554_v47 = vld [vmem:[%s9976_s27 + $0x60] sm:$0x1] }
 0x18b   : > { %v7196_v2 = vpop.f32.mrf.mxu0  ;;  %v2090_v63 = vpop.f32.mrf.mxu1 }
 0x18c   : > { %v10076_v51 = vadd.f32 %v7193_v14, %v2169_v24  ;;  %v2167_v36 = vadd.f32 %v2090_v63, %v9913_v33 }
 0x18d   : > { %v2857_v32 = vpop.f32.mrf.mxu0  ;;  %v7148_v23 = vpop.f32.mrf.mxu1 }
 0x18e   : > { %v10082_v13 = vadd.f32 %v2844_v7, %v2167_v36  ;;  %v2172_v62 = vadd.f32 %v7148_v23, %v9920_v49  ;;  %v5232_v49 = vsel %vm9985_vm8, 0, %v6554_v47  ;;  %v6586_v23 = vld [vmem:[%s9976_s27 + $0x68] sm:$0x1] }
 0x18f   : > { %v7197_v54 = vpop.f32.mrf.mxu0  ;;  %v2103_v42 = vpop.f32.mrf.mxu1  ;;  %6555 = vst [vmem:[%s9976_s27 + $0x60] sm:$0x1] %v5232_v49 }
 0x190   : > { %v10089_v33 = vadd.f32 %v7196_v2, %v2172_v62  ;;  %v2170_v6 = vadd.f32 %v2103_v42, %v9923_v35 }
 0x191   : > { %v2860_v29 = vpop.f32.mrf.mxu0  ;;  %v7149_v31 = vpop.f32.mrf.mxu1 }
 0x192   : > { %v10096_v61 = vadd.f32 %v2857_v32, %v2170_v6  ;;  %v2173_v34 = vadd.f32 %v7149_v31, %v9930_v30  ;;  %v5229_v30 = vsel %vm9985_vm8, 0, %v6552_v25  ;;  %v6584_v6 = vld [vmem:[%s9976_s27 + $0x5c] sm:$0x1] }
 0x193   : > { %v7200_v14 = vpop.f32.mrf.mxu0  ;;  %v2106_v3 = vpop.f32.mrf.mxu1  ;;  %6553 = vst [vmem:[%s9976_s27 + $0x54] sm:$0x1] %v5229_v30  ;;  %v5279_v47 = vsel %vm9997_vm10, 0, %v6584_v6  ;;  %v6590_v30 = vld [vmem:[%s9976_s27 + $0x80] sm:$0x1] }
 0x194   : > { %v10100_v19 = vadd.f32 %v7197_v54, %v2173_v34  ;;  %v2171_v35 = vadd.f32 %v2106_v3, %v9936_v39  ;;  %6585 = vst [vmem:[%s9976_s27 + $0x5c] sm:$0x1] %v5279_v47  ;;  %v6558_v34 = vld [vmem:[%s9976_s27 + $0x78] sm:$0x1] }
 0x195   : > { %v2873_v16 = vpop.f32.mrf.mxu0  ;;  %v7152_v12 = vpop.f32.mrf.mxu1 }
 0x196   : > { %v10103_v7 = vadd.f32 %v2860_v29, %v2171_v35  ;;  %v2176_v37 = vadd.f32 %v7152_v12, %v9941_v40  ;;  %v6556_v12 = vld [vmem:[%s9976_s27 + $0x6c] sm:$0x1] }
 0x197   : > { %v7201_v43 = vpop.f32.mrf.mxu0  ;;  %v2119_v24 = vpop.f32.mrf.mxu1 }
 0x198   : > { %v10109_v2 = vadd.f32 %v7200_v14, %v2176_v37  ;;  %v2174_v9 = vadd.f32 %v2119_v24, %v9944_v58  ;;  %v5282_v58 = vsel %vm9997_vm10, 0, %v6586_v23  ;;  %v5235_v37 = vsel %vm9985_vm8, 0, %v6556_v12 }
 0x199   : > { %v2876_v63 = vpop.f32.mrf.mxu0  ;;  %v7153_v39 = vpop.f32.mrf.mxu1  ;;  %6587 = vst [vmem:[%s9976_s27 + $0x68] sm:$0x1] %v5282_v58  ;;  %6557 = vst [vmem:[%s9976_s27 + $0x6c] sm:$0x1] %v5235_v37 }
 0x19a   : > { %v10113_v36 = vadd.f32 %v2873_v16, %v2174_v9  ;;  %v2177_v32 = vadd.f32 %v7153_v39, %v9947_v26  ;;  %v5288_v9 = vsel %vm9997_vm10, 0, %v6590_v30 }
 0x19b   : > { %v7204_v40 = vpop.f32.mrf.mxu0  ;;  %v2122_v20 = vpop.f32.mrf.mxu1  ;;  %6591 = vst [vmem:[%s9976_s27 + $0x80] sm:$0x1] %v5288_v9 }
 0x19c   : > { %v10117_v48 = vadd.f32 %v7201_v43, %v2177_v32  ;;  %v2175_v62 = vadd.f32 %v2122_v20, %v9950_v59  ;;  %v6588_v32 = vld [vmem:[%s9976_s27 + $0x74] sm:$0x1] }
 0x19d   : > { %v2889_v54 = vpop.f32.mrf.mxu0  ;;  %v7156_v18 = vpop.f32.mrf.mxu1 }
 0x19e   : > { %v10123_v42 = vadd.f32 %v2876_v63, %v2175_v62  ;;  %v2180_v26 = vadd.f32 %v7156_v18, %v9953_v5  ;;  %v5238_v5 = vsel %vm9985_vm8, 0, %v6558_v34  ;;  %v6562_v18 = vld [vmem:[%s9976_s27 + $0x90] sm:$0x1] }
 0x19f   : > { %v7205_v22 = vpop.f32.mrf.mxu0  ;;  %v2135_v29 = vpop.f32.mrf.mxu1  ;;  %6559 = vst [vmem:[%s9976_s27 + $0x78] sm:$0x1] %v5238_v5 }
 0x1a0   : > { %v10129_v31 = vadd.f32 %v7204_v40, %v2180_v26  ;;  %v2178_v59 = vadd.f32 %v2135_v29, %v9956_v60 }
 0x1a1   : > { %v2892_v49 = vpop.f32.mrf.mxu0  ;;  %v7157_v14 = vpop.f32.mrf.mxu1 }
 0x1a2   : > { %v10136_v3 = vadd.f32 %v2889_v54, %v2178_v59  ;;  %v2181_v35 = vadd.f32 %v7157_v14, %v9959_v28  ;;  %v6560_v14 = vld [vmem:[%s9976_s27 + $0x84] sm:$0x1] }
 0x1a3   : > { %v10139_v16 = vpop.f32.mrf.mxu0  ;;  %v2138_v60 = vpop.f32.mrf.mxu1 }
 0x1a4   : > { %v10145_v43 = vadd.f32 %v7205_v22, %v2181_v35  ;;  %v2179_v25 = vadd.f32 %v2138_v60, %v9962_v46  ;;  %v5285_v46 = vsel %vm9997_vm10, 0, %v6588_v32  ;;  %v5244_v22 = vsel %vm9985_vm8, 0, %v6562_v18  ;;  %v6592_v18 = vld [vmem:[%s9976_s27 + $0x8c] sm:$0x1] }
 0x1a5   : > { %v10148_v24 = vpop.f32.mrf.mxu0  ;;  %v10152_v28 = vpop.f32.mrf.mxu1  ;;  %6589 = vst [vmem:[%s9976_s27 + $0x74] sm:$0x1] %v5285_v46  ;;  %6563 = vst [vmem:[%s9976_s27 + $0x90] sm:$0x1] %v5244_v22  ;;  %v5241_v35 = vsel %vm9985_vm8, 0, %v6560_v14 }
 0x1a6   : > { %v10156_v63 = vadd.f32 %v2892_v49, %v2179_v25  ;;  %6561 = vst [vmem:[%s9976_s27 + $0x84] sm:$0x1] %v5241_v35  ;;  %v6594_v25 = vld [vmem:[%s9976_s27 + $0x98] sm:$0x1] }
 0x1a7   : > { %v10158_v39 = vpop.f32.mrf.mxu0  ;;  %v10162_v40 = vpop.f32.mrf.mxu1 }
 0x1a9   : > { %v10166_v20 = vpop.f32.mrf.mxu0  ;;  %v10169_v23 = vpop.f32.mrf.mxu1 }
 0x1ab   : > { %v10171_v62 = vpop.f32.mrf.mxu0  ;;  %v10173_v54 = vpop.f32.mrf.mxu1 }
 0x1ad   : > { %v10175_v58 = vpop.f32.mrf.mxu0  ;;  %v10178_v26 = vpop.f32.mrf.mxu1 }
 0x1af   : > { %v7277_v6 = vpop.f32.mrf.mxu0  ;;  %v10183_v29 = vpop.f32.mrf.mxu1 }
 0x1b1   : > { %v3681_v47 = vpop.f32.mrf.mxu0  ;;  %v7229_v59 = vpop.f32.mrf.mxu1 }
 0x1b2   : > { %v3409_v49 = vadd.f32 %v7229_v59, %v10011_v0  ;;  %v5294_v0 = vsel %vm9997_vm10, 0, %v6594_v25  ;;  %v6564_v25 = vld [vmem:[%s9976_s27 + $0x9c] sm:$0x1] }
 0x1b3   : > { %v7280_v34 = vpop.f32.mrf.mxu0  ;;  %v3294_v5 = vpop.f32.mrf.mxu1  ;;  %6595 = vst [vmem:[%s9976_s27 + $0x98] sm:$0x1] %v5294_v0 }
 0x1b4   : > { %v10189_v12 = vadd.f32 %v7277_v6, %v3409_v49  ;;  %v3407_v60 = vadd.f32 %v3294_v5, %v10016_v53  ;;  %v5291_v53 = vsel %vm9997_vm10, 0, %v6592_v18 }
 0x1b5   : > { %v3694_v37 = vpop.f32.mrf.mxu0  ;;  %v7232_v30 = vpop.f32.mrf.mxu1  ;;  %6593 = vst [vmem:[%s9976_s27 + $0x8c] sm:$0x1] %v5291_v53  ;;  %v6598_v53 = vld [vmem:[%s9976_s27 + $0xb0] sm:$0x1] }
 0x1b6   : > { %v10196_v9 = vadd.f32 %v3681_v47, %v3407_v60  ;;  %v3412_v32 = vadd.f32 %v7232_v30, %v10023_v10  ;;  %v6566_v47 = vld [vmem:[%s9976_s27 + $0xa8] sm:$0x1] }
 0x1b7   : > { %v7281_v46 = vpop.f32.mrf.mxu0  ;;  %v3307_v22 = vpop.f32.mrf.mxu1  ;;  %v5250_v10 = vsel %vm9985_vm8, 0, %v6566_v47  ;;  %v5300_v47 = vsel %vm9997_vm10, 0, %v6598_v53 }
 0x1b8   : > { %v10203_v6 = vadd.f32 %v7280_v34, %v3412_v32  ;;  %v3410_v59 = vadd.f32 %v3307_v22, %v10030_v52  ;;  %6567 = vst [vmem:[%s9976_s27 + $0xa8] sm:$0x1] %v5250_v10  ;;  %v5247_v52 = vsel %vm9985_vm8, 0, %v6564_v25  ;;  %6599 = vst [vmem:[%s9976_s27 + $0xb0] sm:$0x1] %v5300_v47 }
 0x1b9   : > { %v3697_v49 = vpop.f32.mrf.mxu0  ;;  %v7233_v14 = vpop.f32.mrf.mxu1  ;;  %6565 = vst [vmem:[%s9976_s27 + $0x9c] sm:$0x1] %v5247_v52  ;;  %v6596_v25 = vld [vmem:[%s9976_s27 + $0xa4] sm:$0x1] }
 0x1ba   : > { %v10210_v5 = vadd.f32 %v3694_v37, %v3410_v59  ;;  %v3413_v35 = vadd.f32 %v7233_v14, %v10036_v45  ;;  %v5297_v52 = vsel %vm9997_vm10, 0, %v6596_v25 }
 0x1bb   : > { %v7284_v60 = vpop.f32.mrf.mxu0  ;;  %v3310_v34 = vpop.f32.mrf.mxu1  ;;  %6597 = vst [vmem:[%s9976_s27 + $0xa4] sm:$0x1] %v5297_v52 }
 0x1bc   : > { %v10217_v30 = vadd.f32 %v7281_v46, %v3413_v35  ;;  %v3411_v0 = vadd.f32 %v3310_v34, %v10039_v17 }
 0x1bd   : > { %v3710_v32 = vpop.f32.mrf.mxu0  ;;  %v7236_v18 = vpop.f32.mrf.mxu1 }
 0x1be   : > { %v10221_v37 = vadd.f32 %v3697_v49, %v3411_v0  ;;  %v3416_v45 = vadd.f32 %v7236_v18, %v10045_v15 }
 0x1bf   : > { %v7285_v22 = vpop.f32.mrf.mxu0  ;;  %v3323_v59 = vpop.f32.mrf.mxu1 }
 0x1c0   : > { %v10227_v14 = vadd.f32 %v7284_v60, %v3416_v45  ;;  %v3414_v46 = vadd.f32 %v3323_v59, %v10049_v44  ;;  %v6570_v59 = vld [vmem:[%s9976_s27 + $0xc0] sm:$0x1] }
 0x1c1   : > { %v3713_v17 = vpop.f32.mrf.mxu0  ;;  %v7237_v10 = vpop.f32.mrf.mxu1 }
 0x1c2   : > { %v10231_v35 = vadd.f32 %v3710_v32, %v3414_v46  ;;  %v3417_v49 = vadd.f32 %v7237_v10, %v10052_v11 }
 0x1c3   : > { %v7288_v15 = vpop.f32.mrf.mxu0  ;;  %v3326_v34 = vpop.f32.mrf.mxu1 }
 0x1c4   : > { %v10237_v0 = vadd.f32 %v7285_v22, %v3417_v49  ;;  %v3415_v44 = vadd.f32 %v3326_v34, %v10056_v57  ;;  %v5256_v57 = vsel %vm9985_vm8, 0, %v6570_v59 }
 0x1c5   : > { %v3726_v60 = vpop.f32.mrf.mxu0  ;;  %v7240_v18 = vpop.f32.mrf.mxu1  ;;  %6571 = vst [vmem:[%s9976_s27 + $0xc0] sm:$0x1] %v5256_v57 }
 0x1c6   : > { %v10241_v45 = vadd.f32 %v3713_v17, %v3415_v44  ;;  %v3420_v32 = vadd.f32 %v7240_v18, %v10063_v27  ;;  %v6568_v17 = vld [vmem:[%s9976_s27 + $0xb4] sm:$0x1] }
 0x1c7   : > { %v7289_v11 = vpop.f32.mrf.mxu0  ;;  %v3339_v53 = vpop.f32.mrf.mxu1 }
 0x1c8   : > { %v10245_v47 = vadd.f32 %v7288_v15, %v3420_v32  ;;  %v3418_v22 = vadd.f32 %v3339_v53, %v10070_v21  ;;  %v5253_v15 = vsel %vm9985_vm8, 0, %v6568_v17  ;;  %v6602_v21 = vld [vmem:[%s9976_s27 + $0xc8] sm:$0x1]  ;;  %v6600_v53 = vld [vmem:[%s9976_s27 + $0xbc] sm:$0x1] }
 0x1c9   : > { %v3729_v46 = vpop.f32.mrf.mxu0  ;;  %v7241_v10 = vpop.f32.mrf.mxu1  ;;  %6569 = vst [vmem:[%s9976_s27 + $0xb4] sm:$0x1] %v5253_v15  ;;  %v5306_v32 = vsel %vm9997_vm10, 0, %v6602_v21  ;;  %v5303_v57 = vsel %vm9997_vm10, 0, %v6600_v53  ;;  %v7593_v53 = vmov 0  }
 0x1ca   : > { %v10252_v49 = vadd.f32 %v3726_v60, %v3418_v22  ;;  %v3421_v27 = vadd.f32 %v7241_v10, %v10076_v51  ;;  %6603 = vst [vmem:[%s9976_s27 + $0xc8] sm:$0x1] %v5306_v32  ;;  %6601 = vst [vmem:[%s9976_s27 + $0xbc] sm:$0x1] %v5303_v57 }
 0x1cb   : > { %v7292_v25 = vpop.f32.mrf.mxu0  ;;  %v3342_v34 = vpop.f32.mrf.mxu1  ;;  %5199 = vst [vmem:[%s9976_s27] sm:$0xf] %v7593_v53  ;;  %5200 = vst [vmem:[%s9976_s27 + $0x4] sm:$0xf] %v7593_v53 }
 0x1cc   : > { %v10259_v52 = vadd.f32 %v7289_v11, %v3421_v27  ;;  %v3419_v44 = vadd.f32 %v3342_v34, %v10082_v13  ;;  %5201 = vst [vmem:[%s9976_s27 + $0x8] sm:$0x1] %v7593_v53  ;;  %6537 = vst [vmem:[%s9976_s27 + $0xcc] sm:$0xf] %v7593_v53 }
 0x1cd   : > { %v3742_v18 = vpop.f32.mrf.mxu0  ;;  %v7244_v60 = vpop.f32.mrf.mxu1  ;;  %6538 = vst [vmem:[%s9976_s27 + $0xd0] sm:$0xf] %v7593_v53  ;;  %6539 = vst [vmem:[%s9976_s27 + $0xd4] sm:$0x1] %v7593_v53 }
 0x1ce   : > { %v10266_v51 = vadd.f32 %v3729_v46, %v3419_v44  ;;  %v3424_v59 = vadd.f32 %v7244_v60, %v10089_v33 }
 0x1cf   : > { %v7293_v22 = vpop.f32.mrf.mxu0  ;;  %v3355_v10 = vpop.f32.mrf.mxu1 }
 0x1d0   : > { %v10272_v11 = vadd.f32 %v7292_v25, %v3424_v59  ;;  %v3422_v13 = vadd.f32 %v3355_v10, %v10096_v61 }
 0x1d1   : > { %v3745_v17 = vpop.f32.mrf.mxu0  ;;  %v7245_v27 = vpop.f32.mrf.mxu1 }
 0x1d2   : > { %v10275_v46 = vadd.f32 %v3742_v18, %v3422_v13  ;;  %v3425_v33 = vadd.f32 %v7245_v27, %v10100_v19 }
 0x1d3   : > { %v7296_v41 = vpop.f32.mrf.mxu0  ;;  %v3358_v15 = vpop.f32.mrf.mxu1 }
 0x1d4   : > { %v10278_v34 = vadd.f32 %v7293_v22, %v3425_v33  ;;  %v3423_v25 = vadd.f32 %v3358_v15, %v10103_v7 }
 0x1d5   : > { %v3758_v21 = vpop.f32.mrf.mxu0  ;;  %v7248_v44 = vpop.f32.mrf.mxu1 }
 0x1d6   : > { %v10281_v61 = vadd.f32 %v3745_v17, %v3423_v25  ;;  %v3428_v32 = vadd.f32 %v7248_v44, %v10109_v2 }
 0x1d7   : > { %v7297_v60 = vpop.f32.mrf.mxu0  ;;  %v3371_v19 = vpop.f32.mrf.mxu1 }
 0x1d8   : > { %v10290_v18 = vadd.f32 %v7296_v41, %v3428_v32  ;;  %v3426_v59 = vadd.f32 %v3371_v19, %v10113_v36 }
 0x1d9   : > { %v3761_v7 = vpop.f32.mrf.mxu0  ;;  %v7249_v22 = vpop.f32.mrf.mxu1 }
 0x1da   : > { %v10293_v57 = vadd.f32 %v3758_v21, %v3426_v59  ;;  %v3429_v10 = vadd.f32 %v7249_v22, %v10117_v48  ;;  %v3404_v21 = vadd.f32 %v10152_v28, %v9965_v56  ;;  %v3405_v56 = vadd.f32 %v10169_v23, %v9978_v50 }
 0x1db   : > { %v7300_v2 = vpop.f32.mrf.mxu0  ;;  %v3374_v13 = vpop.f32.mrf.mxu1 }
 0x1dc   : > { %v10296_v17 = vadd.f32 %v7297_v60, %v3429_v10  ;;  %v3427_v27 = vadd.f32 %v3374_v13, %v10123_v42  ;;  %v3402_v42 = vadd.f32 %v10162_v40, %v9968_v8  ;;  %v3791_v22 = vadd.f32 %v10139_v16, %v3404_v21  ;;  %v10326_v16 = vld [vmem:[%s10733_s2] ss:$0 sm:$0xff] }
 0x1dd   : > { %v3774_v33 = vpop.f32.mrf.mxu0  ;;  %v7252_v15 = vpop.f32.mrf.mxu1  ;;  %v3403_v8 = vadd.f32 %v10173_v54, %v9981_v4  ;;  %v3792_v23 = vadd.f32 %v10158_v39, %v3405_v56  ;;  %v10334_v4 = vld [vmem:[%s10734_s3] ss:$0 sm:$0xff]  ;;  %v3406_v39 = vadd.f32 %v10183_v29, %v10004_v55 }
 0x1de   : > { %v10299_v25 = vadd.f32 %v3761_v7, %v3427_v27  ;;  %v3432_v41 = vadd.f32 %v7252_v15, %v10129_v31  ;;  %v3789_v13 = vadd.f32 %v10148_v24, %v3402_v42  ;;  %v3408_v24 = vadd.f32 %v10178_v26, %v9992_v1 }
 0x1df   : > { %v7301_v44 = vpop.f32.mrf.mxu0  ;;  %v3387_v36 = vpop.f32.mrf.mxu1  ;;  %v3793_v55 = vadd.f32 %v10175_v58, %v3406_v39 }
 0x1e0   : > { %v10304_v32 = vadd.f32 %v7300_v2, %v3432_v41  ;;  %v3430_v48 = vadd.f32 %v3387_v36, %v10136_v3  ;;  %v3790_v41 = vadd.f32 %v10166_v20, %v3403_v8 }
 0x1e1   : > { %v3777_v53 = vpop.f32.mrf.mxu0  ;;  %v7253_v60 = vpop.f32.mrf.mxu1 }
 0x1e2   : > { %v10309_v19 = vadd.f32 %v3774_v33, %v3430_v48  ;;  %v3433_v59 = vadd.f32 %v7253_v60, %v10145_v43 }
 0x1e3   : > { %v3390_v31 = vpop.f32.mrf.mxu1 }
 0x1e4   : > { %v7368_v7 = vpop.f32.mrf.mxu0  ;;  %v10315_v28 = vadd.f32 %v7301_v44, %v3433_v59  ;;  %v3431_v3 = vadd.f32 %v3390_v31, %v10156_v63 }
 0x1e5   : > { %v7320_v2 = vpop.f32.mrf.mxu1 }
 0x1e6   : > { %v4914_v10 = vpop.f32.mrf.mxu0  ;;  %v10321_v40 = vadd.f32 %v3777_v53, %v3431_v3  ;;  %v4545_v43 = vadd.f32 %v7320_v2, %v3791_v22 }
 0x1e7   : > { %v4416_v50 = vpop.f32.mrf.mxu1 }
 0x1e8   : > { %v7369_v27 = vpop.f32.mrf.mxu0  ;;  %v5043_v63 = vadd.f32 %v7368_v7, %v4545_v43  ;;  %v4543_v33 = vadd.f32 %v4416_v50, %v3789_v13  ;;  %v3795_v7 = vadd.f32 %v10171_v62, %v3408_v24 }
 0x1e9   : > { %v7321_v54 = vpop.f32.mrf.mxu1 }
 0x1ea   : > { %v4917_v15 = vpop.f32.mrf.mxu0  ;;  %v5082_v44 = vmul.f32 %v10326_v16, %v5043_v63  ;;  %v5041_v36 = vadd.f32 %v4914_v10, %v4543_v33  ;;  %v4546_v21 = vadd.f32 %v7321_v54, %v3792_v23 }
 0x1eb   : > { %v4419_v53 = vpop.f32.mrf.mxu1 }
 0x1ec   : > { %v7372_v48 = vpop.f32.mrf.mxu0  ;;  %v5121_v60 = vadd.f32 %v10334_v4, %v5082_v44  ;;  %v5080_v1 = vmul.f32 %v10326_v16, %v5041_v36  ;;  %v5044_v26 = vadd.f32 %v7369_v27, %v4546_v21  ;;  %v4544_v42 = vadd.f32 %v4419_v53, %v3790_v41 }
 0x1ed   : > { %v7324_v31 = vpop.f32.mrf.mxu1 }
 0x1ee   : > { %v4930_v59 = vpop.f32.mrf.mxu0  ;;  %v5153_v20 = vmax.f32 %v5121_v60, 0.0  ;;  %v5119_v22 = vadd.f32 %v10334_v4, %v5080_v1  ;;  %v5083_v56 = vmul.f32 %v10326_v16, %v5044_v26  ;;  %v5042_v3 = vadd.f32 %v4917_v15, %v4544_v42 }
 0x1ef   : > { %v4549_v29 = vadd.f32 %v7324_v31, %v3795_v7  ;;  %v4432_v2 = vpop.f32.mrf.mxu1  ;;  %v6641_v7 = vld [vmem:[%s9976_s27 + $0x18] sm:$0xf] }
 0x1f0   : > { %v7373_v10 = vpop.f32.mrf.mxu0  ;;  %v6720_v13 = vpack.c.bf16 %v5153_v20, %v5153_v20  ;;  %v5151_v8 = vmax.f32 %v5119_v22, 0.0  ;;  %v5122_v43 = vadd.f32 %v10334_v4, %v5083_v56  ;;  %v5081_v27 = vmul.f32 %v10326_v16, %v5042_v3 }
 0x1f1   : > { %v5047_v62 = vadd.f32 %v7372_v48, %v4549_v29  ;;  %v4547_v23 = vadd.f32 %v4432_v2, %v3793_v55  ;;  %v7325_v63 = vpop.f32.mrf.mxu1 }
 0x1f2   : > { %v10348_v50 = vpop.f32.mrf.mxu0  ;;  %v5408_v33 = vshrl.u32 %v6720_v13, 16  ;;  %v5411_v15 = vshll.u32 %v6720_v13, 16  ;;  %v6718_v24 = vpack.c.bf16 %v5151_v8, %v5151_v8  ;;  %v5154_v58 = vmax.f32 %v5122_v43, 0.0  ;;  %v6636_v13 = vld [vmem:[%s9976_s27 + $0xc] sm:$0xf] }
 0x1f3   : > { %v5120_v41 = vadd.f32 %v10334_v4, %v5081_v27  ;;  %v5086_v44 = vmul.f32 %v10326_v16, %v5047_v62  ;;  %v5045_v36 = vadd.f32 %v4930_v59, %v4547_v23  ;;  %v4550_v21 = vadd.f32 %v7325_v63, %v10189_v12  ;;  %v4435_v39 = vpop.f32.mrf.mxu1 }
 0x1f4   : > { %v10350_v54 = vpop.f32.mrf.mxu0  ;;  %v5410_v53 = vrot.slane %v5408_v33, 7  ;;  %v5391_v60 = vshrl.u32 %v6718_v24, 16  ;;  %v5394_v48 = vshll.u32 %v6718_v24, 16  ;;  %v6721_v1 = vpack.c.bf16 %v5154_v58, %v5154_v58 }
 0x1f5   : > { %v5152_v31 = vmax.f32 %v5120_v41, 0.0  ;;  %v5125_v59 = vadd.f32 %v10334_v4, %v5086_v44  ;;  %v5084_v12 = vmul.f32 %v10326_v16, %v5045_v36  ;;  %v5048_v20 = vadd.f32 %v7373_v10, %v4550_v21  ;;  %v7328_v22 = vpop.f32.mrf.mxu1  ;;  %v6644_v41 = vld [vmem:[%s9976_s27 + $0x20] sm:$0x1] }
 0x1f6   : > { %v10355_v26 = vpop.f32.mrf.mxu0  ;;  %v5413_v56 = vor.u32 %v5411_v15, %v5410_v53  ;;  %v5414_v3 = vrot.slane %v5410_v53, 4  ;;  %v5393_v55 = vrot.slane %v5391_v60, 7  ;;  %v5416_v29 = vshrl.u32 %v6721_v1, 16 }
 0x1f7   : > { %v5419_v8 = vshll.u32 %v6721_v1, 16  ;;  %v6719_v43 = vpack.c.bf16 %v5152_v31, %v5152_v31  ;;  %v5157_v27 = vmax.f32 %v5125_v59, 0.0  ;;  %v5123_v62 = vadd.f32 %v10334_v4, %v5084_v12  ;;  %v4448_v23 = vpop.f32.mrf.mxu1 }
 0x1f8   : > { %v10366_v2 = vpop.f32.mrf.mxu0  ;;  %v5720_v63 = vsel %vm10359_vm13, %v5413_v56, %v6641_v7  ;;  %v5396_v10 = vor.u32 %v5394_v48, %v5393_v55  ;;  %v5397_v33 = vrot.slane %v5393_v55, 4  ;;  %v5418_v15 = vrot.slane %v5416_v29, 7 }
 0x1f9   : > { %6642 = vst [vmem:[%s9976_s27 + $0x18] sm:$0xf] %v5720_v63  ;;  %v5399_v44 = vshrl.u32 %v6719_v43, 16  ;;  %v5402_v36 = vshll.u32 %v6719_v43, 16  ;;  %v6724_v21 = vpack.c.bf16 %v5157_v27, %v5157_v27  ;;  %v5155_v53 = vmax.f32 %v5123_v62, 0.0  ;;  %v7329_v60 = vpop.f32.mrf.mxu1 }
 0x1fa   : > { %v10372_v24 = vpop.f32.mrf.mxu0  ;;  %v5713_v48 = vsel %vm10359_vm13, %v5396_v10, %v6636_v13  ;;  %v5421_v1 = vor.u32 %v5419_v8, %v5418_v15  ;;  %v5423_v7 = vrot.slane %v5418_v15, 4  ;;  %v5087_v31 = vmul.f32 %v10326_v16, %v5048_v20  ;;  %v6639_v8 = vld [vmem:[%s9976_s27 + $0x14] sm:$0x1] }
 0x1fb   : > { %6637 = vst [vmem:[%s9976_s27 + $0xc] sm:$0xf] %v5713_v48  ;;  %v5401_v12 = vrot.slane %v5399_v44, 7  ;;  %v5442_v56 = vshrl.u32 %v6724_v21, 16  ;;  %v5445_v55 = vshll.u32 %v6724_v21, 16  ;;  %v6722_v29 = vpack.c.bf16 %v5155_v53, %v5155_v53  ;;  %v4451_v43 = vpop.f32.mrf.mxu1 }
 0x1fc   : > { %v10385_v59 = vpop.f32.mrf.mxu0  ;;  %v5422_v27 = vsel %vm10377_vm14, %v5414_v3, %v5421_v1  ;;  %v5724_v13 = vsel %vm9985_vm8, %v5423_v7, %v6644_v41  ;;  %v5126_v62 = vadd.f32 %v10334_v4, %v5087_v31  ;;  %v4548_v20 = vadd.f32 %v4435_v39, %v10196_v9  ;;  %v6651_v3 = vld [vmem:[%s9976_s27 + $0x30] sm:$0xf] }
 0x1fd   : > { %6643 = vst [vmem:[%s9976_s27 + $0x1c] sm:$0xf] %v5422_v27  ;;  %6645 = vst [vmem:[%s9976_s27 + $0x20] sm:$0x1] %v5724_v13  ;;  %v5404_v10 = vor.u32 %v5402_v36, %v5401_v12  ;;  %v5406_v15 = vrot.slane %v5401_v12, 4  ;;  %v5444_v44 = vrot.slane %v5442_v56, 7  ;;  %v7332_v53 = vpop.f32.mrf.mxu1  ;;  %v4553_v7 = vadd.f32 %v7328_v22, %v10203_v6 }
 0x1fe   : > { %v10395_v63 = vpop.f32.mrf.mxu0  ;;  %v5425_v21 = vshrl.u32 %v6722_v29, 16  ;;  %v5428_v48 = vshll.u32 %v6722_v29, 16  ;;  %v5158_v1 = vmax.f32 %v5126_v62, 0.0  ;;  %v5046_v41 = vadd.f32 %v10348_v50, %v4548_v20  ;;  %v6646_v13 = vld [vmem:[%s9976_s27 + $0x24] sm:$0xf] }
 0x1ff   : > { %v5405_v39 = vsel %vm10377_vm14, %v5397_v33, %v5404_v10  ;;  %v5717_v36 = vsel %vm9985_vm8, %v5406_v15, %v6639_v8  ;;  %v5447_v31 = vor.u32 %v5445_v55, %v5444_v44  ;;  %v5448_v12 = vrot.slane %v5444_v44, 4  ;;  %v4464_v56 = vpop.f32.mrf.mxu1 }
 0x200   : > { %v10402_v9 = vpop.f32.mrf.mxu0  ;;  %6638 = vst [vmem:[%s9976_s27 + $0x10] sm:$0xf] %v5405_v39  ;;  %6640 = vst [vmem:[%s9976_s27 + $0x14] sm:$0x1] %v5717_v36  ;;  %v10410_v29 = vrot.slane %v5425_v21, 7  ;;  %v6725_v50 = vpack.c.bf16 %v5158_v1, %v5158_v1  ;;  %v5085_v27 = vmul.f32 %v10326_v16, %v5046_v41  ;;  %v5051_v6 = vadd.f32 %v10350_v54, %v4553_v7 }
 0x201   : > { %v5734_v33 = vsel %vm10359_vm13, %v5447_v31, %v6651_v3  ;;  %v4551_v55 = vadd.f32 %v4448_v23, %v10210_v5  ;;  %v4554_v8 = vadd.f32 %v7329_v60, %v10217_v30  ;;  %v4552_v62 = vadd.f32 %v4451_v43, %v10221_v37  ;;  %v10422_v20 = vpop.f32.mrf.mxu1  ;;  %v6654_v41 = vld [vmem:[%s9976_s27 + $0x38] sm:$0x1] }
 0x202   : > { %v10414_v22 = vpop.f32.mrf.mxu0  ;;  %6652 = vst [vmem:[%s9976_s27 + $0x30] sm:$0xf] %v5734_v33  ;;  %v5430_v10 = vor.u32 %v5428_v48, %v10410_v29  ;;  %v5431_v54 = vrot.slane %v10410_v29, 4  ;;  %v5450_v15 = vshrl.u32 %v6725_v50, 16  ;;  %v5453_v44 = vshll.u32 %v6725_v50, 16 }
 0x203   : > { %v5124_v21 = vadd.f32 %v10334_v4, %v5085_v27  ;;  %v5090_v3 = vmul.f32 %v10326_v16, %v5051_v6  ;;  %v5049_v5 = vadd.f32 %v10355_v26, %v4551_v55  ;;  %v5052_v30 = vadd.f32 %v10366_v2, %v4554_v8  ;;  %v10431_v37 = vpop.f32.mrf.mxu1 }
 0x204   : > { %v5727_v23 = vsel %vm10359_vm13, %v5430_v10, %v6646_v13  ;;  %v5452_v60 = vrot.slane %v5450_v15, 7  ;;  %v5050_v43 = vadd.f32 %v10372_v24, %v4552_v62  ;;  %v4557_v48 = vadd.f32 %v7332_v53, %v10227_v14 }
 0x205   : > { %v10437_v1 = vpop.f32.mrf.mxu0  ;;  %6647 = vst [vmem:[%s9976_s27 + $0x24] sm:$0xf] %v5727_v23  ;;  %v5156_v7 = vmax.f32 %v5124_v21, 0.0  ;;  %v5129_v39 = vadd.f32 %v10334_v4, %v5090_v3  ;;  %v5088_v26 = vmul.f32 %v10326_v16, %v5049_v5  ;;  %v5091_v2 = vmul.f32 %v10326_v16, %v5052_v30  ;;  %v10444_v36 = vpop.f32.mrf.mxu1 }
 0x206   : > { %v5455_v31 = vor.u32 %v5453_v44, %v5452_v60  ;;  %v5457_v50 = vrot.slane %v5452_v60, 4  ;;  %v5089_v24 = vmul.f32 %v10326_v16, %v5050_v43  ;;  %v5055_v14 = vadd.f32 %v10385_v59, %v4557_v48 }
 0x207   : > { %v6723_v53 = vpack.c.bf16 %v5156_v7, %v5156_v7  ;;  %v5161_v27 = vmax.f32 %v5129_v39, 0.0  ;;  %v5127_v6 = vadd.f32 %v10334_v4, %v5088_v26  ;;  %v5130_v33 = vadd.f32 %v10334_v4, %v5091_v2  ;;  %v10450_v13 = vpop.f32.mrf.mxu1  ;;  %v10458_v15 = vpop.f32.mrf.mxu0  ;;  %v6649_v39 = vld [vmem:[%s9976_s27 + $0x2c] sm:$0x1] }
 0x208   : > { %v5456_v55 = vsel %vm10377_vm14, %v5448_v12, %v5455_v31  ;;  %v5738_v8 = vsel %vm9985_vm8, %v5457_v50, %v6654_v41  ;;  %v5128_v62 = vadd.f32 %v10334_v4, %v5089_v24  ;;  %v5094_v10 = vmul.f32 %v10326_v16, %v5055_v14 }
 0x209   : > { %6653 = vst [vmem:[%s9976_s27 + $0x34] sm:$0xf] %v5456_v55  ;;  %6655 = vst [vmem:[%s9976_s27 + $0x38] sm:$0x1] %v5738_v8  ;;  %v5433_v59 = vshrl.u32 %v6723_v53, 16  ;;  %v5436_v44 = vshll.u32 %v6723_v53, 16  ;;  %v6728_v21 = vpack.c.bf16 %v5161_v27, %v5161_v27  ;;  %v10462_v5 = vpop.f32.mrf.mxu1  ;;  %v4555_v60 = vadd.f32 %v4464_v56, %v10231_v35  ;;  %v10468_v24 = vpop.f32.mrf.mxu0 }
 0x20a   : > { %v5159_v3 = vmax.f32 %v5127_v6, 0.0  ;;  %v5162_v30 = vmax.f32 %v5130_v33, 0.0  ;;  %v5160_v12 = vmax.f32 %v5128_v62, 0.0  ;;  %v5133_v23 = vadd.f32 %v10334_v4, %v5094_v10  ;;  %v6661_v6 = vld [vmem:[%s9976_s27 + $0x48] sm:$0xf] }
 0x20b   : > { %v5435_v43 = vrot.slane %v5433_v59, 7  ;;  %v5476_v48 = vshrl.u32 %v6728_v21, 16  ;;  %v5479_v41 = vshll.u32 %v6728_v21, 16  ;;  %v5053_v50 = vadd.f32 %v10395_v63, %v4555_v60  ;;  %v10470_v14 = vpop.f32.mrf.mxu1 }
 0x20c   : > { %v6726_v7 = vpack.c.bf16 %v5159_v3, %v5159_v3  ;;  %v6729_v26 = vpack.c.bf16 %v5162_v30, %v5162_v30  ;;  %v6727_v2 = vpack.c.bf16 %v5160_v12, %v5160_v12  ;;  %v5165_v31 = vmax.f32 %v5133_v23, 0.0  ;;  %v4981_v23 = vpop.f32.mrf.mxu0 }
 0x20d   : > { %v5438_v53 = vor.u32 %v5436_v44, %v5435_v43  ;;  %v5440_v27 = vrot.slane %v5435_v43, 4  ;;  %v5478_v35 = vrot.slane %v5476_v48, 7  ;;  %v10481_v60 = vpop.f32.mrf.mxu1  ;;  %v6664_v43 = vld [vmem:[%s9976_s27 + $0x50] sm:$0x1] }
 0x20e   : > { %v5459_v56 = vshrl.u32 %v6726_v7, 16  ;;  %v5462_v33 = vshll.u32 %v6726_v7, 16  ;;  %v5484_v55 = vshrl.u32 %v6729_v26, 16  ;;  %v5487_v8 = vshll.u32 %v6729_v26, 16 }
 0x20f   : > { %v5467_v62 = vshrl.u32 %v6727_v2, 16  ;;  %v5439_v63 = vsel %vm10377_vm14, %v5431_v54, %v5438_v53  ;;  %v5731_v10 = vsel %vm9985_vm8, %v5440_v27, %v6649_v39  ;;  %v5481_v59 = vor.u32 %v5479_v41, %v5478_v35  ;;  %v6656_v54 = vld [vmem:[%s9976_s27 + $0x3c] sm:$0xf]  ;;  %v6659_v27 = vld [vmem:[%s9976_s27 + $0x44] sm:$0x1] }
 0x210   : > { %v5482_v44 = vrot.slane %v5478_v35, 4  ;;  %6648 = vst [vmem:[%s9976_s27 + $0x28] sm:$0xf] %v5439_v63  ;;  %6650 = vst [vmem:[%s9976_s27 + $0x2c] sm:$0x1] %v5731_v10  ;;  %v5461_v21 = vrot.slane %v5459_v56, 7  ;;  %v6732_v48 = vpack.c.bf16 %v5165_v31, %v5165_v31  ;;  %v5092_v41 = vmul.f32 %v10326_v16, %v5053_v50 }
 0x211   : > { %v5486_v3 = vrot.slane %v5484_v55, 7  ;;  %v5469_v30 = vrot.slane %v5467_v62, 7  ;;  %v5470_v12 = vshll.u32 %v6727_v2, 16  ;;  %v5748_v29 = vsel %vm10359_vm13, %v5481_v59, %v6661_v6  ;;  %v10499_v55 = vpop.f32.mrf.mxu0 }
 0x212   : > { %v4558_v7 = vadd.f32 %v10422_v20, %v10237_v0  ;;  %6662 = vst [vmem:[%s9976_s27 + $0x48] sm:$0xf] %v5748_v29  ;;  %v5464_v39 = vor.u32 %v5462_v33, %v5461_v21  ;;  %v5465_v26 = vrot.slane %v5461_v21, 4  ;;  %v5510_v6 = vshrl.u32 %v6732_v48, 16 }
 0x213   : > { %v5489_v2 = vor.u32 %v5487_v8, %v5486_v3  ;;  %v5491_v53 = vrot.slane %v5486_v3, 4  ;;  %v5472_v35 = vor.u32 %v5470_v12, %v5469_v30  ;;  %v5474_v56 = vrot.slane %v5469_v30, 4  ;;  %v10501_v8 = vpop.f32.mrf.mxu1 }
 0x214   : > { %v5513_v31 = vshll.u32 %v6732_v48, 16  ;;  %v5741_v50 = vsel %vm10359_vm13, %v5464_v39, %v6656_v54  ;;  %v5131_v33 = vadd.f32 %v10334_v4, %v5092_v41  ;;  %v10510_v10 = vrot.slane %v5510_v6, 7  ;;  %v6666_v6 = vld [vmem:[%s9976_s27 + $0x54] sm:$0xf] }
 0x215   : > { %v5490_v0 = vsel %vm10377_vm14, %v5482_v44, %v5489_v2  ;;  %v5752_v20 = vsel %vm9985_vm8, %v5491_v53, %v6664_v43  ;;  %6657 = vst [vmem:[%s9976_s27 + $0x3c] sm:$0xf] %v5741_v50  ;;  %v5473_v62 = vsel %vm10377_vm14, %v5465_v26, %v5472_v35  ;;  %v5745_v63 = vsel %vm9985_vm8, %v5474_v56, %v6659_v27  ;;  %v6671_v44 = vld [vmem:[%s9976_s27 + $0x60] sm:$0xf] }
 0x216   : > { %6663 = vst [vmem:[%s9976_s27 + $0x4c] sm:$0xf] %v5490_v0  ;;  %6665 = vst [vmem:[%s9976_s27 + $0x50] sm:$0x1] %v5752_v20  ;;  %v5056_v59 = vadd.f32 %v10402_v9, %v4558_v7  ;;  %v5163_v21 = vmax.f32 %v5131_v33, 0.0  ;;  %v4556_v3 = vadd.f32 %v10431_v37, %v10241_v45  ;;  %v4561_v30 = vadd.f32 %v10444_v36, %v10245_v47  ;;  %v10530_v37 = vpop.f32.mrf.mxu0  ;;  %v10532_v36 = vpop.f32.mrf.mxu1 }
 0x217   : > { %6658 = vst [vmem:[%s9976_s27 + $0x40] sm:$0xf] %v5473_v62  ;;  %6660 = vst [vmem:[%s9976_s27 + $0x44] sm:$0x1] %v5745_v63  ;;  %v4559_v12 = vadd.f32 %v10450_v13, %v10252_v49  ;;  %v5515_v29 = vor.u32 %v5513_v31, %v10510_v10  ;;  %v5516_v54 = vrot.slane %v10510_v10, 4  ;;  %v4562_v43 = vadd.f32 %v10462_v5, %v10259_v52 }
 0x218   : > { %v5095_v9 = vmul.f32 %v10326_v16, %v5056_v59  ;;  %v6730_v48 = vpack.c.bf16 %v5163_v21, %v5163_v21  ;;  %v5054_v41 = vadd.f32 %v10414_v22, %v4556_v3  ;;  %v5059_v45 = vadd.f32 %v10437_v1, %v4561_v30  ;;  %v10551_v35 = vpop.f32.mrf.mxu0  ;;  %v10553_v56 = vpop.f32.mrf.mxu1 }
 0x219   : > { %v5057_v47 = vadd.f32 %v10458_v15, %v4559_v12  ;;  %v5762_v49 = vsel %vm10359_vm13, %v5515_v29, %v6671_v44  ;;  %v5060_v7 = vadd.f32 %v10468_v24, %v4562_v43  ;;  %v4560_v52 = vadd.f32 %v10470_v14, %v10266_v51 }
 0x21a   : > { %v5134_v13 = vadd.f32 %v10334_v4, %v5095_v9  ;;  %6672 = vst [vmem:[%s9976_s27 + $0x60] sm:$0xf] %v5762_v49  ;;  %v5493_v22 = vshrl.u32 %v6730_v48, 16  ;;  %v5496_v1 = vshll.u32 %v6730_v48, 16  ;;  %v5093_v15 = vmul.f32 %v10326_v16, %v5054_v41  ;;  %v10564_v29 = vpop.f32.mrf.mxu0  ;;  %v10566_v9 = vpop.f32.mrf.mxu1 }
 0x21b   : > { %v5098_v5 = vmul.f32 %v10326_v16, %v5059_v45  ;;  %v5096_v26 = vmul.f32 %v10326_v16, %v5057_v47  ;;  %v5099_v2 = vmul.f32 %v10326_v16, %v5060_v7  ;;  %v5058_v53 = vadd.f32 %v4981_v23, %v4560_v52  ;;  %v6674_v47 = vld [vmem:[%s9976_s27 + $0x68] sm:$0x1] }
 0x21c   : > { %v5166_v39 = vmax.f32 %v5134_v13, 0.0  ;;  %v10545_v27 = vrot.slane %v5493_v22, 7  ;;  %v5132_v24 = vadd.f32 %v10334_v4, %v5093_v15  ;;  %v4565_v14 = vadd.f32 %v10481_v60, %v10272_v11 }
 0x21d   : > { %v5137_v51 = vadd.f32 %v10334_v4, %v5098_v5  ;;  %v5135_v50 = vadd.f32 %v10334_v4, %v5096_v26  ;;  %v5138_v0 = vadd.f32 %v10334_v4, %v5099_v2  ;;  %v5097_v23 = vmul.f32 %v10326_v16, %v5058_v53 }
 0x21e   : > { %v6733_v31 = vpack.c.bf16 %v5166_v39, %v5166_v39  ;;  %v5498_v20 = vor.u32 %v5496_v1, %v10545_v27  ;;  %v5499_v33 = vrot.slane %v10545_v27, 4  ;;  %v5164_v62 = vmax.f32 %v5132_v24, 0.0  ;;  %v7392_v27 = vpop.f32.mrf.mxu0 }
 0x21f   : > { %v5169_v63 = vmax.f32 %v5137_v51, 0.0  ;;  %v5167_v59 = vmax.f32 %v5135_v50, 0.0  ;;  %v5170_v44 = vmax.f32 %v5138_v0, 0.0  ;;  %v5136_v12 = vadd.f32 %v10334_v4, %v5097_v23 }
 0x220   : > { %v5518_v11 = vshrl.u32 %v6733_v31, 16  ;;  %v5521_v60 = vshll.u32 %v6733_v31, 16  ;;  %v5755_v21 = vsel %vm10359_vm13, %v5498_v20, %v6666_v6  ;;  %v6731_v3 = vpack.c.bf16 %v5164_v62, %v5164_v62  ;;  %v6681_v6 = vld [vmem:[%s9976_s27 + $0x78] sm:$0xf]  ;;  %v6676_v62 = vld [vmem:[%s9976_s27 + $0x6c] sm:$0xf] }
 0x221   : > { %v6736_v30 = vpack.c.bf16 %v5169_v63, %v5169_v63  ;;  %6667 = vst [vmem:[%s9976_s27 + $0x54] sm:$0xf] %v5755_v21  ;;  %v6734_v48 = vpack.c.bf16 %v5167_v59, %v5167_v59  ;;  %v6737_v41 = vpack.c.bf16 %v5170_v44, %v5170_v44  ;;  %v5063_v45 = vadd.f32 %v10499_v55, %v4565_v14  ;;  %v4512_v55 = vpop.f32.mrf.mxu1  ;;  %v6669_v14 = vld [vmem:[%s9976_s27 + $0x5c] sm:$0x1] }
 0x222   : > { %v5520_v43 = vrot.slane %v5518_v11, 7  ;;  %v5501_v49 = vshrl.u32 %v6731_v3, 16  ;;  %v5504_v13 = vshll.u32 %v6731_v3, 16  ;;  %v5168_v50 = vmax.f32 %v5136_v12, 0.0  ;;  %v6684_v3 = vld [vmem:[%s9976_s27 + $0x80] sm:$0x1]  ;;  %v5010_v12 = vpop.f32.mrf.mxu0 }
 0x223   : > { %v5544_v7 = vshrl.u32 %v6736_v30, 16  ;;  %v5547_v52 = vshll.u32 %v6736_v30, 16  ;;  %v5527_v15 = vshrl.u32 %v6734_v48, 16  ;;  %v5530_v5 = vshll.u32 %v6734_v48, 16 }
 0x224   : > { %v5523_v22 = vor.u32 %v5521_v60, %v5520_v43  ;;  %v5525_v1 = vrot.slane %v5520_v43, 4  ;;  %v5503_v39 = vrot.slane %v5501_v49, 7  ;;  %v5552_v2 = vshrl.u32 %v6737_v41, 16  ;;  %v7345_v43 = vpop.f32.mrf.mxu1 }
 0x225   : > { %v5546_v26 = vrot.slane %v5544_v7, 7  ;;  %v5555_v53 = vshll.u32 %v6737_v41, 16  ;;  %v5529_v31 = vrot.slane %v5527_v15, 7  ;;  %v6735_v60 = vpack.c.bf16 %v5168_v50, %v5168_v50 }
 0x226   : > { %v5524_v24 = vsel %vm10377_vm14, %v5516_v54, %v5523_v22  ;;  %v5766_v51 = vsel %vm9985_vm8, %v5525_v1, %v6674_v47  ;;  %v5506_v0 = vor.u32 %v5504_v13, %v5503_v39  ;;  %v5508_v23 = vrot.slane %v5503_v39, 4 }
 0x227   : > { %6673 = vst [vmem:[%s9976_s27 + $0x64] sm:$0xf] %v5524_v24  ;;  %6675 = vst [vmem:[%s9976_s27 + $0x68] sm:$0x1] %v5766_v51  ;;  %v5549_v20 = vor.u32 %v5547_v52, %v5546_v26  ;;  %v5550_v10 = vrot.slane %v5546_v26, 4  ;;  %v5532_v63 = vor.u32 %v5530_v5, %v5529_v31  ;;  %v5533_v54 = vrot.slane %v5529_v31, 4 }
 0x228   : > { %v5554_v11 = vrot.slane %v5552_v2, 7  ;;  %v5507_v59 = vsel %vm10377_vm14, %v5499_v33, %v5506_v0  ;;  %v5759_v44 = vsel %vm9985_vm8, %v5508_v23, %v6669_v14  ;;  %v5102_v30 = vmul.f32 %v10326_v16, %v5063_v45  ;;  %v6679_v5 = vld [vmem:[%s9976_s27 + $0x74] sm:$0x1] }
 0x229   : > { %v5776_v21 = vsel %vm10359_vm13, %v5549_v20, %v6681_v6  ;;  %6668 = vst [vmem:[%s9976_s27 + $0x58] sm:$0xf] %v5507_v59  ;;  %6670 = vst [vmem:[%s9976_s27 + $0x5c] sm:$0x1] %v5759_v44  ;;  %v5769_v33 = vsel %vm10359_vm13, %v5532_v63, %v6676_v62  ;;  %v5535_v47 = vshrl.u32 %v6735_v60, 16  ;;  %v5538_v49 = vshll.u32 %v6735_v60, 16 }
 0x22a   : > { %6682 = vst [vmem:[%s9976_s27 + $0x78] sm:$0xf] %v5776_v21  ;;  %v5557_v48 = vor.u32 %v5555_v53, %v5554_v11  ;;  %v5559_v41 = vrot.slane %v5554_v11, 4  ;;  %6677 = vst [vmem:[%s9976_s27 + $0x6c] sm:$0xf] %v5769_v33  ;;  %v5141_v13 = vadd.f32 %v10334_v4, %v5102_v30  ;;  %v4563_v45 = vadd.f32 %v10501_v8, %v10275_v46  ;;  %v7393_v8 = vpop.f32.mrf.mxu0 }
 0x22b   : > { %v4566_v7 = vadd.f32 %v10532_v36, %v10278_v34  ;;  %v5537_v1 = vrot.slane %v5535_v47, 7  ;;  %v4564_v15 = vadd.f32 %v10553_v56, %v10281_v61  ;;  %v4569_v34 = vadd.f32 %v10566_v9, %v10290_v18  ;;  %v4515_v36 = vpop.f32.mrf.mxu1  ;;  %v6691_v60 = vld [vmem:[%s9976_s27 + $0x90] sm:$0xf] }
 0x22c   : > { %v5558_v52 = vsel %vm10377_vm14, %v5550_v10, %v5557_v48  ;;  %v5780_v22 = vsel %vm9985_vm8, %v5559_v41, %v6684_v3  ;;  %v5173_v39 = vmax.f32 %v5141_v13, 0.0  ;;  %v5061_v26 = vadd.f32 %v10530_v37, %v4563_v45  ;;  %v5013_v50 = vpop.f32.mrf.mxu0 }
 0x22d   : > { %6683 = vst [vmem:[%s9976_s27 + $0x7c] sm:$0xf] %v5558_v52  ;;  %6685 = vst [vmem:[%s9976_s27 + $0x80] sm:$0x1] %v5780_v22  ;;  %v5064_v46 = vadd.f32 %v10551_v35, %v4566_v7  ;;  %v5540_v2 = vor.u32 %v5538_v49, %v5537_v1  ;;  %v5542_v53 = vrot.slane %v5537_v1, 4  ;;  %v5062_v24 = vadd.f32 %v10564_v29, %v4564_v15 }
 0x22e   : > { %v4567_v61 = vadd.f32 %v4512_v55, %v10293_v57  ;;  %v6740_v56 = vpack.c.bf16 %v5173_v39, %v5173_v39  ;;  %v5100_v51 = vmul.f32 %v10326_v16, %v5061_v26  ;;  %v5067_v14 = vadd.f32 %v7392_v27, %v4569_v34  ;;  %v10627_v27 = vpop.f32.mrf.mxu1  ;;  %v10637_v41 = vpop.f32.mrf.mxu0  ;;  %v6686_v26 = vld [vmem:[%s9976_s27 + $0x84] sm:$0xf] }
 0x22f   : > { %v5103_v37 = vmul.f32 %v10326_v16, %v5064_v46  ;;  %v5541_v35 = vsel %vm10377_vm14, %v5533_v54, %v5540_v2  ;;  %v5773_v18 = vsel %vm9985_vm8, %v5542_v53, %v6679_v5  ;;  %v5101_v9 = vmul.f32 %v10326_v16, %v5062_v24  ;;  %v6694_v53 = vld [vmem:[%s9976_s27 + $0x98] sm:$0x1] }
 0x230   : > { %v5065_v6 = vadd.f32 %v5010_v12, %v4567_v61  ;;  %6678 = vst [vmem:[%s9976_s27 + $0x70] sm:$0xf] %v5541_v35  ;;  %6680 = vst [vmem:[%s9976_s27 + $0x74] sm:$0x1] %v5773_v18  ;;  %v5578_v29 = vshrl.u32 %v6740_v56, 16  ;;  %v5581_v57 = vshll.u32 %v6740_v56, 16  ;;  %v5139_v55 = vadd.f32 %v10334_v4, %v5100_v51 }
 0x231   : > { %v5142_v31 = vadd.f32 %v10334_v4, %v5103_v37  ;;  %v5140_v0 = vadd.f32 %v10334_v4, %v5101_v9  ;;  %v5106_v23 = vmul.f32 %v10326_v16, %v5067_v14  ;;  %v4570_v10 = vadd.f32 %v7345_v43, %v10296_v17  ;;  %v4528_v17 = vpop.f32.mrf.mxu1  ;;  %v6689_v9 = vld [vmem:[%s9976_s27 + $0x8c] sm:$0x1] }
 0x232   : > { %v5104_v20 = vmul.f32 %v10326_v16, %v5065_v6  ;;  %v5580_v62 = vrot.slane %v5578_v29, 7  ;;  %v5171_v63 = vmax.f32 %v5139_v55, 0.0  ;;  %v4568_v11 = vadd.f32 %v4515_v36, %v10299_v25  ;;  %v5026_v36 = vpop.f32.mrf.mxu0 }
 0x233   : > { %v5174_v54 = vmax.f32 %v5142_v31, 0.0  ;;  %v5172_v59 = vmax.f32 %v5140_v0, 0.0  ;;  %v5145_v44 = vadd.f32 %v10334_v4, %v5106_v23  ;;  %v5068_v3 = vadd.f32 %v7393_v8, %v4570_v10  ;;  %v7349_v2 = vpop.f32.mrf.mxu1  ;;  %v6701_v23 = vld [vmem:[%s9976_s27 + $0xa8] sm:$0xf] }
 0x234   : > { %v5143_v21 = vadd.f32 %v10334_v4, %v5104_v20  ;;  %v5583_v30 = vor.u32 %v5581_v57, %v5580_v62  ;;  %v5584_v12 = vrot.slane %v5580_v62, 4  ;;  %v6738_v33 = vpack.c.bf16 %v5171_v63, %v5171_v63  ;;  %v7397_v20 = vpop.f32.mrf.mxu0 }
 0x235   : > { %v6741_v48 = vpack.c.bf16 %v5174_v54, %v5174_v54  ;;  %v6739_v43 = vpack.c.bf16 %v5172_v59, %v5172_v59  ;;  %v5177_v47 = vmax.f32 %v5145_v44, 0.0  ;;  %v5107_v25 = vmul.f32 %v10326_v16, %v5068_v3  ;;  %v4531_v10 = vpop.f32.mrf.mxu1 }
 0x236   : > { %v5175_v49 = vmax.f32 %v5143_v21, 0.0  ;;  %v5790_v13 = vsel %vm10359_vm13, %v5583_v30, %v6691_v60  ;;  %v5561_v45 = vshrl.u32 %v6738_v33, 16  ;;  %v5564_v7 = vshll.u32 %v6738_v33, 16  ;;  %v6696_v30 = vld [vmem:[%s9976_s27 + $0x9c] sm:$0xf] }
 0x237   : > { %v5586_v52 = vshrl.u32 %v6741_v48, 16  ;;  %6692 = vst [vmem:[%s9976_s27 + $0x90] sm:$0xf] %v5790_v13  ;;  %v5589_v22 = vshll.u32 %v6741_v48, 16  ;;  %v5569_v1 = vshrl.u32 %v6739_v43, 16  ;;  %v5572_v15 = vshll.u32 %v6739_v43, 16 }
 0x238   : > { %v6744_v5 = vpack.c.bf16 %v5177_v47, %v5177_v47  ;;  %v5563_v39 = vrot.slane %v5561_v45, 7  ;;  %v6742_v34 = vpack.c.bf16 %v5175_v49, %v5175_v49  ;;  %v5146_v8 = vadd.f32 %v10334_v4, %v5107_v25  ;;  %v5029_v25 = vpop.f32.mrf.mxu0 }
 0x239   : > { %v5588_v46 = vrot.slane %v5586_v52, 7  ;;  %v5571_v24 = vrot.slane %v5569_v1, 7  ;;  %v5066_v51 = vadd.f32 %v5013_v50, %v4568_v11  ;;  %v4573_v21 = vadd.f32 %v10627_v27, %v10304_v32 }
 0x23a   : > { %v5612_v61 = vshrl.u32 %v6744_v5, 16  ;;  %v5615_v56 = vshll.u32 %v6744_v5, 16  ;;  %v5566_v37 = vor.u32 %v5564_v7, %v5563_v39  ;;  %v5567_v14 = vrot.slane %v5563_v39, 4  ;;  %v6704_v5 = vld [vmem:[%s9976_s27 + $0xb0] sm:$0x1] }
 0x23b   : > { %v5591_v35 = vor.u32 %v5589_v22, %v5588_v46  ;;  %v5593_v18 = vrot.slane %v5588_v46, 4  ;;  %v5574_v6 = vor.u32 %v5572_v15, %v5571_v24  ;;  %v5576_v29 = vrot.slane %v5571_v24, 4 }
 0x23c   : > { %v5614_v57 = vrot.slane %v5612_v61, 7  ;;  %v5595_v55 = vshrl.u32 %v6742_v34, 16  ;;  %v5783_v31 = vsel %vm10359_vm13, %v5566_v37, %v6686_v26  ;;  %v5598_v11 = vshll.u32 %v6742_v34, 16 }
 0x23d   : > { %v5592_v50 = vsel %vm10377_vm14, %v5584_v12, %v5591_v35  ;;  %v5794_v0 = vsel %vm9985_vm8, %v5593_v18, %v6694_v53  ;;  %6687 = vst [vmem:[%s9976_s27 + $0x84] sm:$0xf] %v5783_v31  ;;  %v5575_v62 = vsel %vm10377_vm14, %v5567_v14, %v5574_v6  ;;  %v5787_v63 = vsel %vm9985_vm8, %v5576_v29, %v6689_v9 }
 0x23e   : > { %6693 = vst [vmem:[%s9976_s27 + $0x94] sm:$0xf] %v5592_v50  ;;  %6695 = vst [vmem:[%s9976_s27 + $0x98] sm:$0x1] %v5794_v0  ;;  %v5617_v54 = vor.u32 %v5615_v56, %v5614_v57  ;;  %v5597_v60 = vrot.slane %v5595_v55, 7  ;;  %v5178_v59 = vmax.f32 %v5146_v8, 0.0  ;;  %v5105_v44 = vmul.f32 %v10326_v16, %v5066_v51 }
 0x23f   : > { %6688 = vst [vmem:[%s9976_s27 + $0x88] sm:$0xf] %v5575_v62  ;;  %6690 = vst [vmem:[%s9976_s27 + $0x8c] sm:$0x1] %v5787_v63  ;;  %v4571_v12 = vadd.f32 %v4528_v17, %v10309_v19  ;;  %v4574_v33 = vadd.f32 %v7349_v2, %v10315_v28  ;;  %v4572_v48 = vadd.f32 %v4531_v10, %v10321_v40  ;;  %v5618_v8 = vrot.slane %v5614_v57, 4 }
 0x240   : > { %v5804_v3 = vsel %vm10359_vm13, %v5617_v54, %v6701_v23  ;;  %v5600_v43 = vor.u32 %v5598_v11, %v5597_v60  ;;  %v6745_v47 = vpack.c.bf16 %v5178_v59, %v5178_v59  ;;  %v5144_v49 = vadd.f32 %v10334_v4, %v5105_v44  ;;  %v6711_v59 = vld [vmem:[%s9976_s27 + $0xc0] sm:$0xf]  ;;  %v6706_v44 = vld [vmem:[%s9976_s27 + $0xb4] sm:$0xf] }
 0x241   : > { %6702 = vst [vmem:[%s9976_s27 + $0xa8] sm:$0xf] %v5804_v3  ;;  %v5071_v32 = vadd.f32 %v10637_v41, %v4573_v21  ;;  %v5069_v27 = vadd.f32 %v5026_v36, %v4571_v12  ;;  %v5072_v13 = vadd.f32 %v7397_v20, %v4574_v33  ;;  %v5070_v45 = vadd.f32 %v5029_v25, %v4572_v48  ;;  %v6714_v33 = vld [vmem:[%s9976_s27 + $0xc8] sm:$0x1] }
 0x242   : > { %v5797_v7 = vsel %vm10359_vm13, %v5600_v43, %v6696_v30  ;;  %v5620_v19 = vshrl.u32 %v6745_v47, 16  ;;  %v5176_v17 = vmax.f32 %v5144_v49, 0.0  ;;  %v5623_v15 = vshll.u32 %v6745_v47, 16 }
 0x243   : > { %6697 = vst [vmem:[%s9976_s27 + $0x9c] sm:$0xf] %v5797_v7  ;;  %v5110_v28 = vmul.f32 %v10326_v16, %v5071_v32  ;;  %v5108_v40 = vmul.f32 %v10326_v16, %v5069_v27  ;;  %v5111_v52 = vmul.f32 %v10326_v16, %v5072_v13  ;;  %v5109_v22 = vmul.f32 %v10326_v16, %v5070_v45  ;;  %v6709_v45 = vld [vmem:[%s9976_s27 + $0xbc] sm:$0x1] }
 0x244   : > { %v5622_v1 = vrot.slane %v5620_v19, 7  ;;  %v6743_v41 = vpack.c.bf16 %v5176_v17, %v5176_v17  ;;  %v5601_v57 = vrot.slane %v5597_v60, 4 }
 0x245   : > { %v5149_v39 = vadd.f32 %v10334_v4, %v5110_v28  ;;  %v5147_v26 = vadd.f32 %v10334_v4, %v5108_v40  ;;  %v5150_v46 = vadd.f32 %v10334_v4, %v5111_v52  ;;  %v5148_v34 = vadd.f32 %v10334_v4, %v5109_v22  ;;  %v6699_v4 = vld [vmem:[%s9976_s27 + $0xa4] sm:$0x1] }
 0x246   : > { %v5625_v36 = vor.u32 %v5623_v15, %v5622_v1  ;;  %v5627_v2 = vrot.slane %v5622_v1, 4  ;;  %v5603_v53 = vshrl.u32 %v6743_v41, 16  ;;  %v5606_v35 = vshll.u32 %v6743_v41, 16 }
 0x247   : > { %v5181_v16 = vmax.f32 %v5149_v39, 0.0  ;;  %v5179_v24 = vmax.f32 %v5147_v26, 0.0  ;;  %v5182_v61 = vmax.f32 %v5150_v46, 0.0  ;;  %v5180_v56 = vmax.f32 %v5148_v34, 0.0 }
 0x248   : > { %v5626_v51 = vsel %vm10377_vm14, %v5618_v8, %v5625_v36  ;;  %v5808_v37 = vsel %vm9985_vm8, %v5627_v2, %v6704_v5  ;;  %v5605_v14 = vrot.slane %v5603_v53, 7 }
 0x249   : > { %6703 = vst [vmem:[%s9976_s27 + $0xac] sm:$0xf] %v5626_v51  ;;  %6705 = vst [vmem:[%s9976_s27 + $0xb0] sm:$0x1] %v5808_v37  ;;  %v6748_v18 = vpack.c.bf16 %v5181_v16, %v5181_v16  ;;  %v6746_v9 = vpack.c.bf16 %v5179_v24, %v5179_v24  ;;  %v6749_v6 = vpack.c.bf16 %v5182_v61, %v5182_v61 }
 0x24a   : > { %v6747_v29 = vpack.c.bf16 %v5180_v56, %v5180_v56  ;;  %v5608_v55 = vor.u32 %v5606_v35, %v5605_v14  ;;  %v5610_v31 = vrot.slane %v5605_v14, 4 }
 0x24b   : > { %v5646_v50 = vshrl.u32 %v6748_v18, 16  ;;  %v5629_v0 = vshrl.u32 %v6746_v9, 16  ;;  %v5649_v10 = vshll.u32 %v6748_v18, 16  ;;  %v5654_v62 = vshrl.u32 %v6749_v6, 16 }
 0x24c   : > { %v5609_v23 = vsel %vm10377_vm14, %v5601_v57, %v5608_v55  ;;  %v5801_v20 = vsel %vm9985_vm8, %v5610_v31, %v6699_v4  ;;  %v5632_v11 = vshll.u32 %v6746_v9, 16  ;;  %v5637_v60 = vshrl.u32 %v6747_v29, 16 }
 0x24d   : > { %6698 = vst [vmem:[%s9976_s27 + $0xa0] sm:$0xf] %v5609_v23  ;;  %6700 = vst [vmem:[%s9976_s27 + $0xa4] sm:$0x1] %v5801_v20  ;;  %v5648_v63 = vrot.slane %v5646_v50, 7  ;;  %v5631_v54 = vrot.slane %v5629_v0, 7 }
 0x24e   : > { %v5656_v21 = vrot.slane %v5654_v62, 7  ;;  %v5657_v3 = vshll.u32 %v6749_v6, 16  ;;  %v5640_v48 = vshll.u32 %v6747_v29, 16  ;;  %v5639_v25 = vrot.slane %v5637_v60, 7 }
 0x24f   : > { %v5651_v30 = vor.u32 %v5649_v10, %v5648_v63  ;;  %v5634_v12 = vor.u32 %v5632_v11, %v5631_v54  ;;  %v5652_v43 = vrot.slane %v5648_v63, 4  ;;  %v5635_v27 = vrot.slane %v5631_v54, 4 }
 0x250   : > { %v5659_v47 = vor.u32 %v5657_v3, %v5656_v21  ;;  %v5661_v49 = vrot.slane %v5656_v21, 4  ;;  %v5642_v17 = vor.u32 %v5640_v48, %v5639_v25  ;;  %v5644_v28 = vrot.slane %v5639_v25, 4 }
 0x251   : > { %v5818_v32 = vsel %vm10359_vm13, %v5651_v30, %v6711_v59  ;;  %v5811_v13 = vsel %vm10359_vm13, %v5634_v12, %v6706_v44 }
 0x252   : > { %6712 = vst [vmem:[%s9976_s27 + $0xc0] sm:$0xf] %v5818_v32  ;;  %6707 = vst [vmem:[%s9976_s27 + $0xb4] sm:$0xf] %v5811_v13  ;;  %v5660_v7 = vsel %vm10377_vm14, %v5652_v43, %v5659_v47  ;;  %v5822_v19 = vsel %vm9985_vm8, %v5661_v49, %v6714_v33  ;;  %v5643_v40 = vsel %vm10377_vm14, %v5635_v27, %v5642_v17 }
 0x253   : > { %6713 = vst [vmem:[%s9976_s27 + $0xc4] sm:$0xf] %v5660_v7  ;;  %6715 = vst [vmem:[%s9976_s27 + $0xc8] sm:$0x1] %v5822_v19  ;;  %v5815_v42 = vsel %vm9985_vm8, %v5644_v28, %v6709_v45 }
 0x254   : > { %6708 = vst [vmem:[%s9976_s27 + $0xb8] sm:$0xf] %v5643_v40  ;;  %6710 = vst [vmem:[%s9976_s27 + $0xbc] sm:$0x1] %v5815_v42 }
 0x255 PF: > { %s14_s17 = sadd.s32 1, %s7591_s17   ;;  %s10905_s15 = smov %s7587_s16 }
 0x256   : > { %p11_p5 = scmp.ge.s32.totalorder %s14_s17, 4   ;;  %s10906_s16 = smov %s10908_s18 }
 0x258   :  { %13 = sbr.rel (!%p11_p5) target bundleno = 2 (0x2), region = 87 }

</bundles_post_ra>
